<compile_context>
chip_gen: v6e
topology: v6e:2x2x1
jax: 0.10.0
libtpu: 0.0.40
codegen_flags: <defaults>
</compile_context>

<pallas_src>
import numpy as np
import jax
import jax.numpy as jnp
from jax import lax
from jax.experimental import pallas as pl
from jax.experimental.pallas import tpu as pltpu

# ----------------------- small NEZHA config -----------------------
VOCAB_SIZE = 100
TYPE_VOCAB_SIZE = 2
EMB_SIZE = 32          # embedding_size == hidden_size -> no outputs_dense branch
HIDDEN = 32
NUM_LAYERS = 2
NUM_HEADS = 2
HEAD_SIZE = 16         # attention_head_size
KEY_SIZE = 16          # attention_key_size (None in the module -> head_size)
INTERMEDIATE = 64
LN_EPS = 1e-12
INIT_RANGE = 0.02
MAX_REL = 64           # emb_input_dim = 2*64 + 1 = 129
REL_INPUT_DIM = 2 * MAX_REL + 1

B = 2
SEQ = 8
BL = B * SEQ

QKV_OUT = NUM_HEADS * (2 * KEY_SIZE + HEAD_SIZE)   # fused q|k|v projection width = 96
NREL = 2 * SEQ - 1                                 # number of in-range relative offsets
NREL_PAD = ((NREL + 7) // 8) * 8                   # pad table rows for aligned matmul operands
OUT_LANES = 128                                    # lane-dense output width
NEG_INF = -1e12


# ----------------------- in-kernel helpers -----------------------
def _layer_norm(x, g, b):
    mu = jnp.mean(x, axis=-1, keepdims=True)
    var = jnp.mean(jnp.square(x - mu), axis=-1, keepdims=True)
    return (x - mu) * lax.rsqrt(var + jnp.float32(LN_EPS)) * g + b


def _gelu(x):
    # tanh-approximate GELU
    # TODO(synk): exact erf-GELU if the reference hidden_act requires it.
    c = jnp.float32(0.7978845608028654)  # sqrt(2/pi)
    return 0.5 * x * (1.0 + jnp.tanh(c * (x + 0.044715 * x * x * x)))


# ----------------------- fused NEZHA kernel -----------------------
def nezha_kernel(tok_ref, seg_ref, mask_ref, tab_ref, eg_ref, eb_ref,
                 wqkv_ref, bqkv_ref, wo_ref, bo_ref,
                 g1_ref, b1_ref, wf1_ref, bf1_ref, wf2_ref, bf2_ref,
                 g2_ref, b2_ref, out_ref):
    bl = tok_ref.shape[0]

    # --- BertEmbeddings: token + segment, LayerNorm (dropout == identity at eval) ---
    x = _layer_norm(tok_ref[...] + seg_ref[...], eg_ref[...], eb_ref[...])    # (BL, H) f32

    addmask = mask_ref[...]              # (BL, BL): 0 keep / -1e12 pad-key or cross-batch
    tab = tab_ref[...]                   # (NREL_PAD, Dk) bf16 compact relative-position table
    scale = jnp.float32(1.0 / np.sqrt(KEY_SIZE))
    nk = NUM_HEADS * KEY_SIZE

    # Static relative offsets (k - q) + (SEQ-1); only the same-batch block-diagonal
    # entries matter -- everything else is killed by addmask / zero probabilities.
    row = lax.broadcasted_iota(jnp.int32, (bl, bl), 0)
    col = lax.broadcasted_iota(jnp.int32, (bl, bl), 1)
    rel = col - row + (SEQ - 1)
    col_r = lax.broadcasted_iota(jnp.int32, (1, NREL_PAD), 1)

    for l in range(NUM_LAYERS):
        # ---- fused QKV projection: one bf16 MXU matmul, f32 accumulate ----
        qkv = jnp.dot(x.astype(jnp.bfloat16), wqkv_ref[l],
                      preferred_element_type=jnp.float32) + bqkv_ref[l]       # (BL, 96)
        wo_l = wo_ref[l]                                                      # (NH*Dh, H) bf16

        attn = jnp.zeros((bl, HIDDEN), jnp.float32)
        for h in range(NUM_HEADS):
            qh = qkv[:, h * KEY_SIZE:(h + 1) * KEY_SIZE].astype(jnp.bfloat16)
            kh = qkv[:, nk + h * KEY_SIZE:nk + (h + 1) * KEY_SIZE].astype(jnp.bfloat16)
            vh = qkv[:, 2 * nk + h * HEAD_SIZE:2 * nk + (h + 1) * HEAD_SIZE].astype(jnp.bfloat16)

            # content score q . k^T (contracting dims, no explicit transpose)
            s = lax.dot_general(qh, kh, (((1,), (1,)), ((), ())),
                                preferred_element_type=jnp.float32)           # (BL, BL)

            # typical_relation key bias: ONE matmul against the compact table, then a
            # static relative shift (unrolled diagonal select; at production SEQ this
            # becomes pltpu.roll with a per-sublane stride on a 128-aligned table).
            c = lax.dot_general(qh, tab, (((1,), (1,)), ((), ())),
                                preferred_element_type=jnp.float32)           # (BL, NREL_PAD)
            bias_k = jnp.zeros((bl, bl), jnp.float32)
            for j in range(NREL):
                bias_k = bias_k + jnp.where(rel == j, c[:, j:j + 1], 0.0)

            s = (s + bias_k) * scale + addmask

            # softmax in f32; EUP reciprocal + one Newton step (near-exact divide)
            s = s - jnp.max(s, axis=-1, keepdims=True)
            p = jnp.exp(s)
            denom = jnp.sum(p, axis=-1, keepdims=True)
            r = pl.reciprocal(denom, approx=True)
            r = r * (2.0 - denom * r)
            p = p * r

            pb = p.astype(jnp.bfloat16)
            ch = jnp.dot(pb, vh, preferred_element_type=jnp.float32)          # (BL, Dh)

            # typical_relation value bias: bucket p by relative offset, then ONE
            # matmul against the compact table (requires KEY_SIZE == HEAD_SIZE,
            # as in the reference typical_relation path).
            prel = jnp.zeros((bl, NREL_PAD), jnp.float32)
            for j in range(NREL):
                prel = prel + (jnp.sum(jnp.where(rel == j, p, 0.0),
                                       axis=-1, keepdims=True)
                               * jnp.where(col_r == j, 1.0, 0.0))
            ch = ch + jnp.dot(prel.astype(jnp.bfloat16), tab,
                              preferred_element_type=jnp.float32)             # (BL, Dh)

            # accumulate the output projection per head via a row-sliced (sublane) wo
            # -- no lane-axis concatenate of per-head contexts.
            attn = attn + jnp.dot(ch.astype(jnp.bfloat16),
                                  wo_l[h * HEAD_SIZE:(h + 1) * HEAD_SIZE, :],
                                  preferred_element_type=jnp.float32)

        attn = attn + bo_ref[l]
        # residual + LayerNorm (dropout == identity)
        x = _layer_norm(attn + x, g1_ref[l], b1_ref[l])

        # FeedForward: dense -> gelu -> dense, residual + LayerNorm
        ff = _gelu(jnp.dot(x.astype(jnp.bfloat16), wf1_ref[l],
                           preferred_element_type=jnp.float32) + bf1_ref[l])
        ff = jnp.dot(ff.astype(jnp.bfloat16), wf2_ref[l],
                     preferred_element_type=jnp.float32) + bf2_ref[l]
        x = _layer_norm(ff + x, g2_ref[l], b2_ref[l])

    # Lane-dense (128-wide) unmasked store; the wrapper slices back to HIDDEN columns.
    out_ref[...] = jnp.concatenate(
        [x, jnp.zeros((bl, OUT_LANES - HIDDEN), jnp.float32)], axis=-1)


# ----------------------- pallas_call wrapper -----------------------
def run_nezha(tok2d, seg2d, addmask, p):
    bl = tok2d.shape[0]
    full = lambda a: pl.BlockSpec(a.shape, lambda i: (0,) * a.ndim)
    args = (tok2d, seg2d, addmask, p['rel_tab'],
            p['emb_ln_g'], p['emb_ln_b'],
            p['wqkv'], p['bqkv'], p['wo'], p['bo'],
            p['ln1_g'], p['ln1_b'], p['wf1'], p['bf1'],
            p['wf2'], p['bf2'], p['ln2_g'], p['ln2_b'])
    return pl.pallas_call(
        nezha_kernel,
        out_shape=jax.ShapeDtypeStruct((bl, OUT_LANES), jnp.float32),
        grid=(1,),                       # single step: whole problem fits VMEM; no batch grid
        in_specs=[full(a) for a in args],
        out_specs=pl.BlockSpec((bl, OUT_LANES), lambda i: (0, 0)),
        compiler_params=pltpu.CompilerParams(
            dimension_semantics=("arbitrary",),
            vmem_limit_bytes=32 * 1024 * 1024),
    )(*args)


# ----------------------- parameter construction (deterministic) -----------------------
def trunc_normal(key, shape, std=INIT_RANGE):
    return (std * jax.random.truncated_normal(key, -2.0, 2.0, shape)).astype(jnp.float32)


def sinusoidal_table(position, depth):
    pos = np.arange(position, dtype=np.float64)[:, None]
    i = np.arange(depth, dtype=np.float64)[None, :]
    angle = pos / np.power(10000.0, 2.0 * (i // 2) / depth)
    table = np.zeros((position, depth), dtype=np.float64)
    table[:, 0::2] = np.sin(angle[:, 0::2])
    table[:, 1::2] = np.cos(angle[:, 1::2])
    return table


def compact_relative_table(seq_len):
    # Rows for relative offsets -(L-1)..+(L-1), clipped to [-MAX_REL, MAX_REL],
    # zero-padded to NREL_PAD rows so MXU operands are sublane-aligned.
    full = sinusoidal_table(REL_INPUT_DIM, KEY_SIZE)                      # (129, Dk)
    offs = np.clip(np.arange(-(seq_len - 1), seq_len), -MAX_REL, MAX_REL) + MAX_REL
    tab = full[offs]                                                      # (2L-1, Dk)
    tab = np.concatenate(
        [tab, np.zeros((NREL_PAD - tab.shape[0], KEY_SIZE))], axis=0)     # (NREL_PAD, Dk)
    return jnp.asarray(tab, jnp.bfloat16)


def make_params(key):
    keys = jax.random.split(key, 2 + NUM_LAYERS * 6)
    ki = iter(keys)
    params = {
        'token_emb': trunc_normal(next(ki), (VOCAB_SIZE, EMB_SIZE)),
        'segment_emb': trunc_normal(next(ki), (TYPE_VOCAB_SIZE, EMB_SIZE)),
        'emb_ln_g': jnp.ones((1, EMB_SIZE), jnp.float32),
        'emb_ln_b': jnp.zeros((1, EMB_SIZE), jnp.float32),
        'rel_tab': compact_relative_table(SEQ),                            # (16, Dk) bf16
    }
    wqkv, wo, wf1, wf2 = [], [], [], []
    for _ in range(NUM_LAYERS):
        wq = trunc_normal(next(ki), (HIDDEN, NUM_HEADS * KEY_SIZE))
        wk = trunc_normal(next(ki), (HIDDEN, NUM_HEADS * KEY_SIZE))
        wv = trunc_normal(next(ki), (HIDDEN, NUM_HEADS * HEAD_SIZE))
        wqkv.append(jnp.concatenate([wq, wk, wv], axis=-1))                # fused QKV weight
        wo.append(trunc_normal(next(ki), (NUM_HEADS * HEAD_SIZE, HIDDEN)))
        wf1.append(trunc_normal(next(ki), (HIDDEN, INTERMEDIATE)))
        wf2.append(trunc_normal(next(ki), (INTERMEDIATE, HIDDEN)))
    params.update({
        # matmul weights stored bf16 (MXU inputs); biases / LN params stay f32
        'wqkv': jnp.stack(wqkv).astype(jnp.bfloat16),                      # (NL, H, 96)
        'bqkv': jnp.zeros((NUM_LAYERS, 1, QKV_OUT), jnp.float32),
        'wo': jnp.stack(wo).astype(jnp.bfloat16),                          # (NL, NH*Dh, H)
        'bo': jnp.zeros((NUM_LAYERS, 1, HIDDEN), jnp.float32),
        'ln1_g': jnp.ones((NUM_LAYERS, 1, HIDDEN), jnp.float32),
        'ln1_b': jnp.zeros((NUM_LAYERS, 1, HIDDEN), jnp.float32),
        'wf1': jnp.stack(wf1).astype(jnp.bfloat16),                        # (NL, H, I)
        'bf1': jnp.zeros((NUM_LAYERS, 1, INTERMEDIATE), jnp.float32),
        'wf2': jnp.stack(wf2).astype(jnp.bfloat16),                        # (NL, I, H)
        'bf2': jnp.zeros((NUM_LAYERS, 1, HIDDEN), jnp.float32),
        'ln2_g': jnp.ones((NUM_LAYERS, 1, HIDDEN), jnp.float32),
        'ln2_b': jnp.zeros((NUM_LAYERS, 1, HIDDEN), jnp.float32),
    })
    return params


# ----------------------- full NEZHA forward -----------------------
def nezha_forward(params, input_ids, token_type_ids):
    bsz, seq = input_ids.shape
    # embedding gathers are plain-JAX glue outside the kernel
    tok = params['token_emb'][input_ids].reshape(bsz * seq, EMB_SIZE)
    seg = params['segment_emb'][token_type_ids].reshape(bsz * seq, EMB_SIZE)

    # Additive mask over the folded (B*L) rows: keep same-batch, non-pad keys; everything
    # else gets -1e12 (the reference masks padded keys; cross-batch blocks only exist
    # because batch was folded into the matmul M dimension).
    pad_key = (input_ids == 0).reshape(-1)                                  # (BL,)
    batch_of = jnp.repeat(jnp.arange(bsz, dtype=jnp.int32), seq)            # (BL,)
    allow = (batch_of[:, None] == batch_of[None, :]) & (~pad_key)[None, :]
    addmask = jnp.where(allow, 0.0, NEG_INF).astype(jnp.float32)            # (BL, BL)

    out = run_nezha(tok, seg, addmask, params)                              # (BL, 128)
    # TODO(synk): BertOutput with with_pool/with_nsp/with_mlm all False -> sequence output passthrough
    return out[:, :HIDDEN].reshape(bsz, seq, HIDDEN)


if __name__ == "__main__":
    key = jax.random.PRNGKey(0)
    k_param, k_ids, k_seg = jax.random.split(key, 3)
    params = make_params(k_param)

    input_ids = jax.random.randint(k_ids, (B, SEQ), 0, VOCAB_SIZE, dtype=jnp.int32)
    token_type_ids = jax.random.randint(k_seg, (B, SEQ), 0, TYPE_VOCAB_SIZE, dtype=jnp.int32)

    out = nezha_forward(params, input_ids, token_type_ids)
    out = jax.block_until_ready(out)
    assert out.shape == (B, SEQ, HIDDEN) and out.dtype == jnp.float32
    assert bool(jnp.all(jnp.isfinite(out)))
    print("KERNEL_OK")
</pallas_src>

<mosaic_0001>
module attributes {stable_mosaic.version = 11 : i64} {
  func.func @nezha_kernel(%arg0: i32, %arg1: memref<16x32xf32, #tpu.memory_space<vmem>>, %arg2: memref<16x32xf32, #tpu.memory_space<vmem>>, %arg3: memref<16x16xf32, #tpu.memory_space<vmem>>, %arg4: memref<16x16xbf16, #tpu.memory_space<vmem>>, %arg5: memref<1x32xf32, #tpu.memory_space<vmem>>, %arg6: memref<1x32xf32, #tpu.memory_space<vmem>>, %arg7: memref<2x32x96xbf16, #tpu.memory_space<vmem>>, %arg8: memref<2x1x96xf32, #tpu.memory_space<vmem>>, %arg9: memref<2x32x32xbf16, #tpu.memory_space<vmem>>, %arg10: memref<2x1x32xf32, #tpu.memory_space<vmem>>, %arg11: memref<2x1x32xf32, #tpu.memory_space<vmem>>, %arg12: memref<2x1x32xf32, #tpu.memory_space<vmem>>, %arg13: memref<2x32x64xbf16, #tpu.memory_space<vmem>>, %arg14: memref<2x1x64xf32, #tpu.memory_space<vmem>>, %arg15: memref<2x64x32xbf16, #tpu.memory_space<vmem>>, %arg16: memref<2x1x32xf32, #tpu.memory_space<vmem>>, %arg17: memref<2x1x32xf32, #tpu.memory_space<vmem>>, %arg18: memref<2x1x32xf32, #tpu.memory_space<vmem>>, %arg19: memref<16x128xf32, #tpu.memory_space<vmem>>) attributes {dimension_semantics = [#tpu.dimension_semantics<arbitrary>], iteration_bounds = array<i64: 1>, scalar_prefetch = 0 : i64, scratch_operands = 0 : i64, tpu.core_type = #tpu.core_type<tc>, window_params = [{pipeline_mode = #tpu.pipeline_mode<synchronous>, transform_indices = @transform_0, window_bounds = array<i64: 16, 32>}, {pipeline_mode = #tpu.pipeline_mode<synchronous>, transform_indices = @transform_1, window_bounds = array<i64: 16, 32>}, {pipeline_mode = #tpu.pipeline_mode<synchronous>, transform_indices = @transform_2, window_bounds = array<i64: 16, 16>}, {pipeline_mode = #tpu.pipeline_mode<synchronous>, transform_indices = @transform_3, window_bounds = array<i64: 16, 16>}, {pipeline_mode = #tpu.pipeline_mode<synchronous>, transform_indices = @transform_4, window_bounds = array<i64: 1, 32>}, {pipeline_mode = #tpu.pipeline_mode<synchronous>, transform_indices = @transform_5, window_bounds = array<i64: 1, 32>}, {pipeline_mode = #tpu.pipeline_mode<synchronous>, transform_indices = @transform_6, window_bounds = array<i64: 2, 32, 96>}, {pipeline_mode = #tpu.pipeline_mode<synchronous>, transform_indices = @transform_7, window_bounds = array<i64: 2, 1, 96>}, {pipeline_mode = #tpu.pipeline_mode<synchronous>, transform_indices = @transform_8, window_bounds = array<i64: 2, 32, 32>}, {pipeline_mode = #tpu.pipeline_mode<synchronous>, transform_indices = @transform_9, window_bounds = array<i64: 2, 1, 32>}, {pipeline_mode = #tpu.pipeline_mode<synchronous>, transform_indices = @transform_10, window_bounds = array<i64: 2, 1, 32>}, {pipeline_mode = #tpu.pipeline_mode<synchronous>, transform_indices = @transform_11, window_bounds = array<i64: 2, 1, 32>}, {pipeline_mode = #tpu.pipeline_mode<synchronous>, transform_indices = @transform_12, window_bounds = array<i64: 2, 32, 64>}, {pipeline_mode = #tpu.pipeline_mode<synchronous>, transform_indices = @transform_13, window_bounds = array<i64: 2, 1, 64>}, {pipeline_mode = #tpu.pipeline_mode<synchronous>, transform_indices = @transform_14, window_bounds = array<i64: 2, 64, 32>}, {pipeline_mode = #tpu.pipeline_mode<synchronous>, transform_indices = @transform_15, window_bounds = array<i64: 2, 1, 32>}, {pipeline_mode = #tpu.pipeline_mode<synchronous>, transform_indices = @transform_16, window_bounds = array<i64: 2, 1, 32>}, {pipeline_mode = #tpu.pipeline_mode<synchronous>, transform_indices = @transform_17, window_bounds = array<i64: 2, 1, 32>}, {pipeline_mode = #tpu.pipeline_mode<synchronous>, transform_indices = @transform_18, window_bounds = array<i64: 16, 128>}]} {
    %c0 = arith.constant 0 : index
    %c0_0 = arith.constant 0 : index
    %0 = vector.load %arg1[%c0, %c0_0] : memref<16x32xf32, #tpu.memory_space<vmem>>, vector<16x32xf32>
    %c0_1 = arith.constant 0 : index
    %c0_2 = arith.constant 0 : index
    %1 = vector.load %arg2[%c0_1, %c0_2] : memref<16x32xf32, #tpu.memory_space<vmem>>, vector<16x32xf32>
    %2 = arith.addf %0, %1 : vector<16x32xf32>
    %c0_3 = arith.constant 0 : index
    %c0_4 = arith.constant 0 : index
    %3 = vector.load %arg5[%c0_3, %c0_4] : memref<1x32xf32, #tpu.memory_space<vmem>>, vector<1x32xf32>
    %c0_5 = arith.constant 0 : index
    %c0_6 = arith.constant 0 : index
    %4 = vector.load %arg6[%c0_5, %c0_6] : memref<1x32xf32, #tpu.memory_space<vmem>>, vector<1x32xf32>
    %cst = arith.constant dense<0.000000e+00> : vector<16xf32>
    %5 = vector.multi_reduction <add>, %2, %cst [1] : vector<16x32xf32> to vector<16xf32>
    %6 = vector.shape_cast %5 : vector<16xf32> to vector<16x1xf32>
    %cst_7 = arith.constant 3.200000e+01 : f32
    %7 = vector.broadcast %cst_7 : f32 to vector<16x1xf32>
    %8 = arith.divf %6, %7 : vector<16x1xf32>
    %9 = vector.broadcast %8 : vector<16x1xf32> to vector<16x32xf32>
    %10 = arith.subf %2, %9 : vector<16x32xf32>
    %11 = arith.mulf %10, %10 : vector<16x32xf32>
    %cst_8 = arith.constant dense<0.000000e+00> : vector<16xf32>
    %12 = vector.multi_reduction <add>, %11, %cst_8 [1] : vector<16x32xf32> to vector<16xf32>
    %13 = vector.shape_cast %12 : vector<16xf32> to vector<16x1xf32>
    %cst_9 = arith.constant 3.200000e+01 : f32
    %14 = vector.broadcast %cst_9 : f32 to vector<16x1xf32>
    %15 = arith.divf %13, %14 : vector<16x1xf32>
    %16 = vector.broadcast %8 : vector<16x1xf32> to vector<16x32xf32>
    %17 = arith.subf %2, %16 : vector<16x32xf32>
    %cst_10 = arith.constant 9.99999996E-13 : f32
    %18 = vector.broadcast %cst_10 : f32 to vector<16x1xf32>
    %19 = arith.addf %15, %18 : vector<16x1xf32>
    %20 = math.rsqrt %19 : vector<16x1xf32>
    %21 = vector.broadcast %20 : vector<16x1xf32> to vector<16x32xf32>
    %22 = arith.mulf %17, %21 : vector<16x32xf32>
    %23 = vector.broadcast %3 : vector<1x32xf32> to vector<16x32xf32>
    %24 = arith.mulf %22, %23 : vector<16x32xf32>
    %25 = vector.broadcast %4 : vector<1x32xf32> to vector<16x32xf32>
    %26 = arith.addf %24, %25 : vector<16x32xf32>
    %c0_11 = arith.constant 0 : index
    %c0_12 = arith.constant 0 : index
    %27 = vector.load %arg3[%c0_11, %c0_12] : memref<16x16xf32, #tpu.memory_space<vmem>>, vector<16x16xf32>
    %c0_13 = arith.constant 0 : index
    %c0_14 = arith.constant 0 : index
    %28 = vector.load %arg4[%c0_13, %c0_14] : memref<16x16xbf16, #tpu.memory_space<vmem>>, vector<16x16xbf16>
    %29 = tpu.iota {dimensions = array<i32: 0>} : vector<16x16xi32>
    %30 = tpu.iota {dimensions = array<i32: 1>} : vector<16x16xi32>
    %31 = arith.subi %30, %29 : vector<16x16xi32>
    %c7_i32 = arith.constant 7 : i32
    %32 = vector.broadcast %c7_i32 : i32 to vector<16x16xi32>
    %33 = arith.addi %31, %32 : vector<16x16xi32>
    %34 = tpu.iota {dimensions = array<i32: 1>} : vector<1x16xi32>
    %35 = arith.truncf %26 : vector<16x32xf32> to vector<16x32xbf16>
    %c0_15 = arith.constant 0 : index
    %c0_16 = arith.constant 0 : index
    %c0_17 = arith.constant 0 : index
    %36 = vector.load %arg7[%c0_15, %c0_16, %c0_17] : memref<2x32x96xbf16, #tpu.memory_space<vmem>>, vector<1x32x96xbf16>
    %37 = vector.shape_cast %36 : vector<1x32x96xbf16> to vector<32x96xbf16>
    %cst_18 = arith.constant dense<0.000000e+00> : vector<16x96xf32>
    %38 = tpu.matmul %35, %37, %cst_18 {dimension_numbers = #tpu.dot_dimension_numbers<[1], [0], [0], [1], [0, 0, 1, 1], [], []>} : vector<16x32xbf16>, vector<32x96xbf16>, vector<16x96xf32> -> vector<16x96xf32>
    %c0_19 = arith.constant 0 : index
    %c0_20 = arith.constant 0 : index
    %c0_21 = arith.constant 0 : index
    %39 = vector.load %arg8[%c0_19, %c0_20, %c0_21] : memref<2x1x96xf32, #tpu.memory_space<vmem>>, vector<1x1x96xf32>
    %40 = vector.shape_cast %39 : vector<1x1x96xf32> to vector<1x96xf32>
    %41 = vector.broadcast %40 : vector<1x96xf32> to vector<16x96xf32>
    %42 = arith.addf %38, %41 : vector<16x96xf32>
    %c0_22 = arith.constant 0 : index
    %c0_23 = arith.constant 0 : index
    %c0_24 = arith.constant 0 : index
    %43 = vector.load %arg9[%c0_22, %c0_23, %c0_24] : memref<2x32x32xbf16, #tpu.memory_space<vmem>>, vector<1x32x32xbf16>
    %44 = vector.shape_cast %43 : vector<1x32x32xbf16> to vector<32x32xbf16>
    %cst_25 = arith.constant 0.000000e+00 : f32
    %45 = vector.broadcast %cst_25 : f32 to vector<16x32xf32>
    %46 = vector.extract_strided_slice %42 {offsets = [0, 0], sizes = [16, 16], strides = [1, 1]} : vector<16x96xf32> to vector<16x16xf32>
    %47 = arith.truncf %46 : vector<16x16xf32> to vector<16x16xbf16>
    %48 = vector.extract_strided_slice %42 {offsets = [0, 32], sizes = [16, 16], strides = [1, 1]} : vector<16x96xf32> to vector<16x16xf32>
    %49 = arith.truncf %48 : vector<16x16xf32> to vector<16x16xbf16>
    %50 = vector.extract_strided_slice %42 {offsets = [0, 64], sizes = [16, 16], strides = [1, 1]} : vector<16x96xf32> to vector<16x16xf32>
    %51 = arith.truncf %50 : vector<16x16xf32> to vector<16x16xbf16>
    %cst_26 = arith.constant dense<0.000000e+00> : vector<16x16xf32>
    %52 = tpu.matmul %47, %49, %cst_26 {dimension_numbers = #tpu.dot_dimension_numbers<[1], [1], [0], [0], [0, 0, 1, 0], [], []>} : vector<16x16xbf16>, vector<16x16xbf16>, vector<16x16xf32> -> vector<16x16xf32>
    %cst_27 = arith.constant dense<0.000000e+00> : vector<16x16xf32>
    %53 = tpu.matmul %47, %28, %cst_27 {dimension_numbers = #tpu.dot_dimension_numbers<[1], [1], [0], [0], [0, 0, 1, 0], [], []>} : vector<16x16xbf16>, vector<16x16xbf16>, vector<16x16xf32> -> vector<16x16xf32>
    %cst_28 = arith.constant 0.000000e+00 : f32
    %54 = vector.broadcast %cst_28 : f32 to vector<16x16xf32>
    %c0_i32 = arith.constant 0 : i32
    %55 = vector.broadcast %c0_i32 : i32 to vector<16x16xi32>
    %56 = arith.cmpi eq, %33, %55 : vector<16x16xi32>
    %57 = vector.extract_strided_slice %53 {offsets = [0, 0], sizes = [16, 1], strides = [1, 1]} : vector<16x16xf32> to vector<16x1xf32>
    %cst_29 = arith.constant 0.000000e+00 : f32
    %58 = vector.shape_cast %57 : vector<16x1xf32> to vector<16x1xf32>
    %59 = vector.broadcast %58 : vector<16x1xf32> to vector<16x16xf32>
    %60 = vector.broadcast %cst_29 : f32 to vector<16x16xf32>
    %61 = arith.select %56, %59, %60 : vector<16x16xi1>, vector<16x16xf32>
    %62 = arith.addf %54, %61 : vector<16x16xf32>
    %c1_i32 = arith.constant 1 : i32
    %63 = vector.broadcast %c1_i32 : i32 to vector<16x16xi32>
    %64 = arith.cmpi eq, %33, %63 : vector<16x16xi32>
    %65 = vector.extract_strided_slice %53 {offsets = [0, 1], sizes = [16, 1], strides = [1, 1]} : vector<16x16xf32> to vector<16x1xf32>
    %cst_30 = arith.constant 0.000000e+00 : f32
    %66 = vector.shape_cast %65 : vector<16x1xf32> to vector<16x1xf32>
    %67 = vector.broadcast %66 : vector<16x1xf32> to vector<16x16xf32>
    %68 = vector.broadcast %cst_30 : f32 to vector<16x16xf32>
    %69 = arith.select %64, %67, %68 : vector<16x16xi1>, vector<16x16xf32>
    %70 = arith.addf %62, %69 : vector<16x16xf32>
    %c2_i32 = arith.constant 2 : i32
    %71 = vector.broadcast %c2_i32 : i32 to vector<16x16xi32>
    %72 = arith.cmpi eq, %33, %71 : vector<16x16xi32>
    %73 = vector.extract_strided_slice %53 {offsets = [0, 2], sizes = [16, 1], strides = [1, 1]} : vector<16x16xf32> to vector<16x1xf32>
    %cst_31 = arith.constant 0.000000e+00 : f32
    %74 = vector.shape_cast %73 : vector<16x1xf32> to vector<16x1xf32>
    %75 = vector.broadcast %74 : vector<16x1xf32> to vector<16x16xf32>
    %76 = vector.broadcast %cst_31 : f32 to vector<16x16xf32>
    %77 = arith.select %72, %75, %76 : vector<16x16xi1>, vector<16x16xf32>
    %78 = arith.addf %70, %77 : vector<16x16xf32>
    %c3_i32 = arith.constant 3 : i32
    %79 = vector.broadcast %c3_i32 : i32 to vector<16x16xi32>
    %80 = arith.cmpi eq, %33, %79 : vector<16x16xi32>
    %81 = vector.extract_strided_slice %53 {offsets = [0, 3], sizes = [16, 1], strides = [1, 1]} : vector<16x16xf32> to vector<16x1xf32>
    %cst_32 = arith.constant 0.000000e+00 : f32
    %82 = vector.shape_cast %81 : vector<16x1xf32> to vector<16x1xf32>
    %83 = vector.broadcast %82 : vector<16x1xf32> to vector<16x16xf32>
    %84 = vector.broadcast %cst_32 : f32 to vector<16x16xf32>
    %85 = arith.select %80, %83, %84 : vector<16x16xi1>, vector<16x16xf32>
    %86 = arith.addf %78, %85 : vector<16x16xf32>
    %c4_i32 = arith.constant 4 : i32
    %87 = vector.broadcast %c4_i32 : i32 to vector<16x16xi32>
    %88 = arith.cmpi eq, %33, %87 : vector<16x16xi32>
    %89 = vector.extract_strided_slice %53 {offsets = [0, 4], sizes = [16, 1], strides = [1, 1]} : vector<16x16xf32> to vector<16x1xf32>
    %cst_33 = arith.constant 0.000000e+00 : f32
    %90 = vector.shape_cast %89 : vector<16x1xf32> to vector<16x1xf32>
    %91 = vector.broadcast %90 : vector<16x1xf32> to vector<16x16xf32>
    %92 = vector.broadcast %cst_33 : f32 to vector<16x16xf32>
    %93 = arith.select %88, %91, %92 : vector<16x16xi1>, vector<16x16xf32>
    %94 = arith.addf %86, %93 : vector<16x16xf32>
    %c5_i32 = arith.constant 5 : i32
    %95 = vector.broadcast %c5_i32 : i32 to vector<16x16xi32>
    %96 = arith.cmpi eq, %33, %95 : vector<16x16xi32>
    %97 = vector.extract_strided_slice %53 {offsets = [0, 5], sizes = [16, 1], strides = [1, 1]} : vector<16x16xf32> to vector<16x1xf32>
    %cst_34 = arith.constant 0.000000e+00 : f32
    %98 = vector.shape_cast %97 : vector<16x1xf32> to vector<16x1xf32>
    %99 = vector.broadcast %98 : vector<16x1xf32> to vector<16x16xf32>
    %100 = vector.broadcast %cst_34 : f32 to vector<16x16xf32>
    %101 = arith.select %96, %99, %100 : vector<16x16xi1>, vector<16x16xf32>
    %102 = arith.addf %94, %101 : vector<16x16xf32>
    %c6_i32 = arith.constant 6 : i32
    %103 = vector.broadcast %c6_i32 : i32 to vector<16x16xi32>
    %104 = arith.cmpi eq, %33, %103 : vector<16x16xi32>
    %105 = vector.extract_strided_slice %53 {offsets = [0, 6], sizes = [16, 1], strides = [1, 1]} : vector<16x16xf32> to vector<16x1xf32>
    %cst_35 = arith.constant 0.000000e+00 : f32
    %106 = vector.shape_cast %105 : vector<16x1xf32> to vector<16x1xf32>
    %107 = vector.broadcast %106 : vector<16x1xf32> to vector<16x16xf32>
    %108 = vector.broadcast %cst_35 : f32 to vector<16x16xf32>
    %109 = arith.select %104, %107, %108 : vector<16x16xi1>, vector<16x16xf32>
    %110 = arith.addf %102, %109 : vector<16x16xf32>
    %c7_i32_36 = arith.constant 7 : i32
    %111 = vector.broadcast %c7_i32_36 : i32 to vector<16x16xi32>
    %112 = arith.cmpi eq, %33, %111 : vector<16x16xi32>
    %113 = vector.extract_strided_slice %53 {offsets = [0, 7], sizes = [16, 1], strides = [1, 1]} : vector<16x16xf32> to vector<16x1xf32>
    %cst_37 = arith.constant 0.000000e+00 : f32
    %114 = vector.shape_cast %113 : vector<16x1xf32> to vector<16x1xf32>
    %115 = vector.broadcast %114 : vector<16x1xf32> to vector<16x16xf32>
    %116 = vector.broadcast %cst_37 : f32 to vector<16x16xf32>
    %117 = arith.select %112, %115, %116 : vector<16x16xi1>, vector<16x16xf32>
    %118 = arith.addf %110, %117 : vector<16x16xf32>
    %c8_i32 = arith.constant 8 : i32
    %119 = vector.broadcast %c8_i32 : i32 to vector<16x16xi32>
    %120 = arith.cmpi eq, %33, %119 : vector<16x16xi32>
    %121 = vector.extract_strided_slice %53 {offsets = [0, 8], sizes = [16, 1], strides = [1, 1]} : vector<16x16xf32> to vector<16x1xf32>
    %cst_38 = arith.constant 0.000000e+00 : f32
    %122 = vector.shape_cast %121 : vector<16x1xf32> to vector<16x1xf32>
    %123 = vector.broadcast %122 : vector<16x1xf32> to vector<16x16xf32>
    %124 = vector.broadcast %cst_38 : f32 to vector<16x16xf32>
    %125 = arith.select %120, %123, %124 : vector<16x16xi1>, vector<16x16xf32>
    %126 = arith.addf %118, %125 : vector<16x16xf32>
    %c9_i32 = arith.constant 9 : i32
    %127 = vector.broadcast %c9_i32 : i32 to vector<16x16xi32>
    %128 = arith.cmpi eq, %33, %127 : vector<16x16xi32>
    %129 = vector.extract_strided_slice %53 {offsets = [0, 9], sizes = [16, 1], strides = [1, 1]} : vector<16x16xf32> to vector<16x1xf32>
    %cst_39 = arith.constant 0.000000e+00 : f32
    %130 = vector.shape_cast %129 : vector<16x1xf32> to vector<16x1xf32>
    %131 = vector.broadcast %130 : vector<16x1xf32> to vector<16x16xf32>
    %132 = vector.broadcast %cst_39 : f32 to vector<16x16xf32>
    %133 = arith.select %128, %131, %132 : vector<16x16xi1>, vector<16x16xf32>
    %134 = arith.addf %126, %133 : vector<16x16xf32>
    %c10_i32 = arith.constant 10 : i32
    %135 = vector.broadcast %c10_i32 : i32 to vector<16x16xi32>
    %136 = arith.cmpi eq, %33, %135 : vector<16x16xi32>
    %137 = vector.extract_strided_slice %53 {offsets = [0, 10], sizes = [16, 1], strides = [1, 1]} : vector<16x16xf32> to vector<16x1xf32>
    %cst_40 = arith.constant 0.000000e+00 : f32
    %138 = vector.shape_cast %137 : vector<16x1xf32> to vector<16x1xf32>
    %139 = vector.broadcast %138 : vector<16x1xf32> to vector<16x16xf32>
    %140 = vector.broadcast %cst_40 : f32 to vector<16x16xf32>
    %141 = arith.select %136, %139, %140 : vector<16x16xi1>, vector<16x16xf32>
    %142 = arith.addf %134, %141 : vector<16x16xf32>
    %c11_i32 = arith.constant 11 : i32
    %143 = vector.broadcast %c11_i32 : i32 to vector<16x16xi32>
    %144 = arith.cmpi eq, %33, %143 : vector<16x16xi32>
    %145 = vector.extract_strided_slice %53 {offsets = [0, 11], sizes = [16, 1], strides = [1, 1]} : vector<16x16xf32> to vector<16x1xf32>
    %cst_41 = arith.constant 0.000000e+00 : f32
    %146 = vector.shape_cast %145 : vector<16x1xf32> to vector<16x1xf32>
    %147 = vector.broadcast %146 : vector<16x1xf32> to vector<16x16xf32>
    %148 = vector.broadcast %cst_41 : f32 to vector<16x16xf32>
    %149 = arith.select %144, %147, %148 : vector<16x16xi1>, vector<16x16xf32>
    %150 = arith.addf %142, %149 : vector<16x16xf32>
    %c12_i32 = arith.constant 12 : i32
    %151 = vector.broadcast %c12_i32 : i32 to vector<16x16xi32>
    %152 = arith.cmpi eq, %33, %151 : vector<16x16xi32>
    %153 = vector.extract_strided_slice %53 {offsets = [0, 12], sizes = [16, 1], strides = [1, 1]} : vector<16x16xf32> to vector<16x1xf32>
    %cst_42 = arith.constant 0.000000e+00 : f32
    %154 = vector.shape_cast %153 : vector<16x1xf32> to vector<16x1xf32>
    %155 = vector.broadcast %154 : vector<16x1xf32> to vector<16x16xf32>
    %156 = vector.broadcast %cst_42 : f32 to vector<16x16xf32>
    %157 = arith.select %152, %155, %156 : vector<16x16xi1>, vector<16x16xf32>
    %158 = arith.addf %150, %157 : vector<16x16xf32>
    %c13_i32 = arith.constant 13 : i32
    %159 = vector.broadcast %c13_i32 : i32 to vector<16x16xi32>
    %160 = arith.cmpi eq, %33, %159 : vector<16x16xi32>
    %161 = vector.extract_strided_slice %53 {offsets = [0, 13], sizes = [16, 1], strides = [1, 1]} : vector<16x16xf32> to vector<16x1xf32>
    %cst_43 = arith.constant 0.000000e+00 : f32
    %162 = vector.shape_cast %161 : vector<16x1xf32> to vector<16x1xf32>
    %163 = vector.broadcast %162 : vector<16x1xf32> to vector<16x16xf32>
    %164 = vector.broadcast %cst_43 : f32 to vector<16x16xf32>
    %165 = arith.select %160, %163, %164 : vector<16x16xi1>, vector<16x16xf32>
    %166 = arith.addf %158, %165 : vector<16x16xf32>
    %c14_i32 = arith.constant 14 : i32
    %167 = vector.broadcast %c14_i32 : i32 to vector<16x16xi32>
    %168 = arith.cmpi eq, %33, %167 : vector<16x16xi32>
    %169 = vector.extract_strided_slice %53 {offsets = [0, 14], sizes = [16, 1], strides = [1, 1]} : vector<16x16xf32> to vector<16x1xf32>
    %cst_44 = arith.constant 0.000000e+00 : f32
    %170 = vector.shape_cast %169 : vector<16x1xf32> to vector<16x1xf32>
    %171 = vector.broadcast %170 : vector<16x1xf32> to vector<16x16xf32>
    %172 = vector.broadcast %cst_44 : f32 to vector<16x16xf32>
    %173 = arith.select %168, %171, %172 : vector<16x16xi1>, vector<16x16xf32>
    %174 = arith.addf %166, %173 : vector<16x16xf32>
    %175 = arith.addf %52, %174 : vector<16x16xf32>
    %cst_45 = arith.constant 2.500000e-01 : f32
    %176 = vector.broadcast %cst_45 : f32 to vector<16x16xf32>
    %177 = arith.mulf %175, %176 : vector<16x16xf32>
    %178 = arith.addf %177, %27 : vector<16x16xf32>
    %cst_46 = arith.constant dense<0xFF800000> : vector<16xf32>
    %179 = vector.multi_reduction <maximumf>, %178, %cst_46 [1] : vector<16x16xf32> to vector<16xf32>
    %180 = vector.shape_cast %179 : vector<16xf32> to vector<16x1xf32>
    %181 = vector.broadcast %180 : vector<16x1xf32> to vector<16x16xf32>
    %182 = arith.subf %178, %181 : vector<16x16xf32>
    %183 = math.exp %182 : vector<16x16xf32>
    %cst_47 = arith.constant dense<0.000000e+00> : vector<16xf32>
    %184 = vector.multi_reduction <add>, %183, %cst_47 [1] : vector<16x16xf32> to vector<16xf32>
    %185 = vector.shape_cast %184 : vector<16xf32> to vector<16x1xf32>
    %186 = tpu.reciprocal %185 {approx = true} : vector<16x1xf32> -> vector<16x1xf32>
    %187 = arith.mulf %185, %186 : vector<16x1xf32>
    %cst_48 = arith.constant 2.000000e+00 : f32
    %188 = vector.broadcast %cst_48 : f32 to vector<16x1xf32>
    %189 = arith.subf %188, %187 : vector<16x1xf32>
    %190 = arith.mulf %186, %189 : vector<16x1xf32>
    %191 = vector.broadcast %190 : vector<16x1xf32> to vector<16x16xf32>
    %192 = arith.mulf %183, %191 : vector<16x16xf32>
    %193 = arith.truncf %192 : vector<16x16xf32> to vector<16x16xbf16>
    %cst_49 = arith.constant dense<0.000000e+00> : vector<16x16xf32>
    %194 = tpu.matmul %193, %51, %cst_49 {dimension_numbers = #tpu.dot_dimension_numbers<[1], [0], [0], [1], [0, 0, 1, 1], [], []>} : vector<16x16xbf16>, vector<16x16xbf16>, vector<16x16xf32> -> vector<16x16xf32>
    %cst_50 = arith.constant 0.000000e+00 : f32
    %195 = vector.broadcast %cst_50 : f32 to vector<16x16xf32>
    %c0_i32_51 = arith.constant 0 : i32
    %196 = vector.broadcast %c0_i32_51 : i32 to vector<16x16xi32>
    %197 = arith.cmpi eq, %33, %196 : vector<16x16xi32>
    %cst_52 = arith.constant 0.000000e+00 : f32
    %198 = vector.broadcast %cst_52 : f32 to vector<16x16xf32>
    %199 = arith.select %197, %192, %198 : vector<16x16xi1>, vector<16x16xf32>
    %cst_53 = arith.constant dense<0.000000e+00> : vector<16xf32>
    %200 = vector.multi_reduction <add>, %199, %cst_53 [1] : vector<16x16xf32> to vector<16xf32>
    %201 = vector.shape_cast %200 : vector<16xf32> to vector<16x1xf32>
    %c0_i32_54 = arith.constant 0 : i32
    %202 = vector.broadcast %c0_i32_54 : i32 to vector<1x16xi32>
    %203 = arith.cmpi eq, %34, %202 : vector<1x16xi32>
    %cst_55 = arith.constant 1.000000e+00 : f32
    %cst_56 = arith.constant 0.000000e+00 : f32
    %204 = vector.broadcast %cst_55 : f32 to vector<1x16xf32>
    %205 = vector.broadcast %cst_56 : f32 to vector<1x16xf32>
    %206 = arith.select %203, %204, %205 : vector<1x16xi1>, vector<1x16xf32>
    %207 = vector.broadcast %201 : vector<16x1xf32> to vector<16x16xf32>
    %208 = vector.broadcast %206 : vector<1x16xf32> to vector<16x16xf32>
    %209 = arith.mulf %207, %208 : vector<16x16xf32>
    %210 = arith.addf %195, %209 : vector<16x16xf32>
    %c1_i32_57 = arith.constant 1 : i32
    %211 = vector.broadcast %c1_i32_57 : i32 to vector<16x16xi32>
    %212 = arith.cmpi eq, %33, %211 : vector<16x16xi32>
    %cst_58 = arith.constant 0.000000e+00 : f32
    %213 = vector.broadcast %cst_58 : f32 to vector<16x16xf32>
    %214 = arith.select %212, %192, %213 : vector<16x16xi1>, vector<16x16xf32>
    %cst_59 = arith.constant dense<0.000000e+00> : vector<16xf32>
    %215 = vector.multi_reduction <add>, %214, %cst_59 [1] : vector<16x16xf32> to vector<16xf32>
    %216 = vector.shape_cast %215 : vector<16xf32> to vector<16x1xf32>
    %c1_i32_60 = arith.constant 1 : i32
    %217 = vector.broadcast %c1_i32_60 : i32 to vector<1x16xi32>
    %218 = arith.cmpi eq, %34, %217 : vector<1x16xi32>
    %cst_61 = arith.constant 1.000000e+00 : f32
    %cst_62 = arith.constant 0.000000e+00 : f32
    %219 = vector.broadcast %cst_61 : f32 to vector<1x16xf32>
    %220 = vector.broadcast %cst_62 : f32 to vector<1x16xf32>
    %221 = arith.select %218, %219, %220 : vector<1x16xi1>, vector<1x16xf32>
    %222 = vector.broadcast %216 : vector<16x1xf32> to vector<16x16xf32>
    %223 = vector.broadcast %221 : vector<1x16xf32> to vector<16x16xf32>
    %224 = arith.mulf %222, %223 : vector<16x16xf32>
    %225 = arith.addf %210, %224 : vector<16x16xf32>
    %c2_i32_63 = arith.constant 2 : i32
    %226 = vector.broadcast %c2_i32_63 : i32 to vector<16x16xi32>
    %227 = arith.cmpi eq, %33, %226 : vector<16x16xi32>
    %cst_64 = arith.constant 0.000000e+00 : f32
    %228 = vector.broadcast %cst_64 : f32 to vector<16x16xf32>
    %229 = arith.select %227, %192, %228 : vector<16x16xi1>, vector<16x16xf32>
    %cst_65 = arith.constant dense<0.000000e+00> : vector<16xf32>
    %230 = vector.multi_reduction <add>, %229, %cst_65 [1] : vector<16x16xf32> to vector<16xf32>
    %231 = vector.shape_cast %230 : vector<16xf32> to vector<16x1xf32>
    %c2_i32_66 = arith.constant 2 : i32
    %232 = vector.broadcast %c2_i32_66 : i32 to vector<1x16xi32>
    %233 = arith.cmpi eq, %34, %232 : vector<1x16xi32>
    %cst_67 = arith.constant 1.000000e+00 : f32
    %cst_68 = arith.constant 0.000000e+00 : f32
    %234 = vector.broadcast %cst_67 : f32 to vector<1x16xf32>
    %235 = vector.broadcast %cst_68 : f32 to vector<1x16xf32>
    %236 = arith.select %233, %234, %235 : vector<1x16xi1>, vector<1x16xf32>
    %237 = vector.broadcast %231 : vector<16x1xf32> to vector<16x16xf32>
    %238 = vector.broadcast %236 : vector<1x16xf32> to vector<16x16xf32>
    %239 = arith.mulf %237, %238 : vector<16x16xf32>
    %240 = arith.addf %225, %239 : vector<16x16xf32>
    %c3_i32_69 = arith.constant 3 : i32
    %241 = vector.broadcast %c3_i32_69 : i32 to vector<16x16xi32>
    %242 = arith.cmpi eq, %33, %241 : vector<16x16xi32>
    %cst_70 = arith.constant 0.000000e+00 : f32
    %243 = vector.broadcast %cst_70 : f32 to vector<16x16xf32>
    %244 = arith.select %242, %192, %243 : vector<16x16xi1>, vector<16x16xf32>
    %cst_71 = arith.constant dense<0.000000e+00> : vector<16xf32>
    %245 = vector.multi_reduction <add>, %244, %cst_71 [1] : vector<16x16xf32> to vector<16xf32>
    %246 = vector.shape_cast %245 : vector<16xf32> to vector<16x1xf32>
    %c3_i32_72 = arith.constant 3 : i32
    %247 = vector.broadcast %c3_i32_72 : i32 to vector<1x16xi32>
    %248 = arith.cmpi eq, %34, %247 : vector<1x16xi32>
    %cst_73 = arith.constant 1.000000e+00 : f32
    %cst_74 = arith.constant 0.000000e+00 : f32
    %249 = vector.broadcast %cst_73 : f32 to vector<1x16xf32>
    %250 = vector.broadcast %cst_74 : f32 to vector<1x16xf32>
    %251 = arith.select %248, %249, %250 : vector<1x16xi1>, vector<1x16xf32>
    %252 = vector.broadcast %246 : vector<16x1xf32> to vector<16x16xf32>
    %253 = vector.broadcast %251 : vector<1x16xf32> to vector<16x16xf32>
    %254 = arith.mulf %252, %253 : vector<16x16xf32>
    %255 = arith.addf %240, %254 : vector<16x16xf32>
    %c4_i32_75 = arith.constant 4 : i32
    %256 = vector.broadcast %c4_i32_75 : i32 to vector<16x16xi32>
    %257 = arith.cmpi eq, %33, %256 : vector<16x16xi32>
    %cst_76 = arith.constant 0.000000e+00 : f32
    %258 = vector.broadcast %cst_76 : f32 to vector<16x16xf32>
    %259 = arith.select %257, %192, %258 : vector<16x16xi1>, vector<16x16xf32>
    %cst_77 = arith.constant dense<0.000000e+00> : vector<16xf32>
    %260 = vector.multi_reduction <add>, %259, %cst_77 [1] : vector<16x16xf32> to vector<16xf32>
    %261 = vector.shape_cast %260 : vector<16xf32> to vector<16x1xf32>
    %c4_i32_78 = arith.constant 4 : i32
    %262 = vector.broadcast %c4_i32_78 : i32 to vector<1x16xi32>
    %263 = arith.cmpi eq, %34, %262 : vector<1x16xi32>
    %cst_79 = arith.constant 1.000000e+00 : f32
    %cst_80 = arith.constant 0.000000e+00 : f32
    %264 = vector.broadcast %cst_79 : f32 to vector<1x16xf32>
    %265 = vector.broadcast %cst_80 : f32 to vector<1x16xf32>
    %266 = arith.select %263, %264, %265 : vector<1x16xi1>, vector<1x16xf32>
    %267 = vector.broadcast %261 : vector<16x1xf32> to vector<16x16xf32>
    %268 = vector.broadcast %266 : vector<1x16xf32> to vector<16x16xf32>
    %269 = arith.mulf %267, %268 : vector<16x16xf32>
    %270 = arith.addf %255, %269 : vector<16x16xf32>
    %c5_i32_81 = arith.constant 5 : i32
    %271 = vector.broadcast %c5_i32_81 : i32 to vector<16x16xi32>
    %272 = arith.cmpi eq, %33, %271 : vector<16x16xi32>
    %cst_82 = arith.constant 0.000000e+00 : f32
    %273 = vector.broadcast %cst_82 : f32 to vector<16x16xf32>
    %274 = arith.select %272, %192, %273 : vector<16x16xi1>, vector<16x16xf32>
    %cst_83 = arith.constant dense<0.000000e+00> : vector<16xf32>
    %275 = vector.multi_reduction <add>, %274, %cst_83 [1] : vector<16x16xf32> to vector<16xf32>
    %276 = vector.shape_cast %275 : vector<16xf32> to vector<16x1xf32>
    %c5_i32_84 = arith.constant 5 : i32
    %277 = vector.broadcast %c5_i32_84 : i32 to vector<1x16xi32>
    %278 = arith.cmpi eq, %34, %277 : vector<1x16xi32>
    %cst_85 = arith.constant 1.000000e+00 : f32
    %cst_86 = arith.constant 0.000000e+00 : f32
    %279 = vector.broadcast %cst_85 : f32 to vector<1x16xf32>
    %280 = vector.broadcast %cst_86 : f32 to vector<1x16xf32>
    %281 = arith.select %278, %279, %280 : vector<1x16xi1>, vector<1x16xf32>
    %282 = vector.broadcast %276 : vector<16x1xf32> to vector<16x16xf32>
    %283 = vector.broadcast %281 : vector<1x16xf32> to vector<16x16xf32>
    %284 = arith.mulf %282, %283 : vector<16x16xf32>
    %285 = arith.addf %270, %284 : vector<16x16xf32>
    %c6_i32_87 = arith.constant 6 : i32
    %286 = vector.broadcast %c6_i32_87 : i32 to vector<16x16xi32>
    %287 = arith.cmpi eq, %33, %286 : vector<16x16xi32>
    %cst_88 = arith.constant 0.000000e+00 : f32
    %288 = vector.broadcast %cst_88 : f32 to vector<16x16xf32>
    %289 = arith.select %287, %192, %288 : vector<16x16xi1>, vector<16x16xf32>
    %cst_89 = arith.constant dense<0.000000e+00> : vector<16xf32>
    %290 = vector.multi_reduction <add>, %289, %cst_89 [1] : vector<16x16xf32> to vector<16xf32>
    %291 = vector.shape_cast %290 : vector<16xf32> to vector<16x1xf32>
    %c6_i32_90 = arith.constant 6 : i32
    %292 = vector.broadcast %c6_i32_90 : i32 to vector<1x16xi32>
    %293 = arith.cmpi eq, %34, %292 : vector<1x16xi32>
    %cst_91 = arith.constant 1.000000e+00 : f32
    %cst_92 = arith.constant 0.000000e+00 : f32
    %294 = vector.broadcast %cst_91 : f32 to vector<1x16xf32>
    %295 = vector.broadcast %cst_92 : f32 to vector<1x16xf32>
    %296 = arith.select %293, %294, %295 : vector<1x16xi1>, vector<1x16xf32>
    %297 = vector.broadcast %291 : vector<16x1xf32> to vector<16x16xf32>
    %298 = vector.broadcast %296 : vector<1x16xf32> to vector<16x16xf32>
    %299 = arith.mulf %297, %298 : vector<16x16xf32>
    %300 = arith.addf %285, %299 : vector<16x16xf32>
    %c7_i32_93 = arith.constant 7 : i32
    %301 = vector.broadcast %c7_i32_93 : i32 to vector<16x16xi32>
    %302 = arith.cmpi eq, %33, %301 : vector<16x16xi32>
    %cst_94 = arith.constant 0.000000e+00 : f32
    %303 = vector.broadcast %cst_94 : f32 to vector<16x16xf32>
    %304 = arith.select %302, %192, %303 : vector<16x16xi1>, vector<16x16xf32>
    %cst_95 = arith.constant dense<0.000000e+00> : vector<16xf32>
    %305 = vector.multi_reduction <add>, %304, %cst_95 [1] : vector<16x16xf32> to vector<16xf32>
    %306 = vector.shape_cast %305 : vector<16xf32> to vector<16x1xf32>
    %c7_i32_96 = arith.constant 7 : i32
    %307 = vector.broadcast %c7_i32_96 : i32 to vector<1x16xi32>
    %308 = arith.cmpi eq, %34, %307 : vector<1x16xi32>
    %cst_97 = arith.constant 1.000000e+00 : f32
    %cst_98 = arith.constant 0.000000e+00 : f32
    %309 = vector.broadcast %cst_97 : f32 to vector<1x16xf32>
    %310 = vector.broadcast %cst_98 : f32 to vector<1x16xf32>
    %311 = arith.select %308, %309, %310 : vector<1x16xi1>, vector<1x16xf32>
    %312 = vector.broadcast %306 : vector<16x1xf32> to vector<16x16xf32>
    %313 = vector.broadcast %311 : vector<1x16xf32> to vector<16x16xf32>
    %314 = arith.mulf %312, %313 : vector<16x16xf32>
    %315 = arith.addf %300, %314 : vector<16x16xf32>
    %c8_i32_99 = arith.constant 8 : i32
    %316 = vector.broadcast %c8_i32_99 : i32 to vector<16x16xi32>
    %317 = arith.cmpi eq, %33, %316 : vector<16x16xi32>
    %cst_100 = arith.constant 0.000000e+00 : f32
    %318 = vector.broadcast %cst_100 : f32 to vector<16x16xf32>
    %319 = arith.select %317, %192, %318 : vector<16x16xi1>, vector<16x16xf32>
    %cst_101 = arith.constant dense<0.000000e+00> : vector<16xf32>
    %320 = vector.multi_reduction <add>, %319, %cst_101 [1] : vector<16x16xf32> to vector<16xf32>
    %321 = vector.shape_cast %320 : vector<16xf32> to vector<16x1xf32>
    %c8_i32_102 = arith.constant 8 : i32
    %322 = vector.broadcast %c8_i32_102 : i32 to vector<1x16xi32>
    %323 = arith.cmpi eq, %34, %322 : vector<1x16xi32>
    %cst_103 = arith.constant 1.000000e+00 : f32
    %cst_104 = arith.constant 0.000000e+00 : f32
    %324 = vector.broadcast %cst_103 : f32 to vector<1x16xf32>
    %325 = vector.broadcast %cst_104 : f32 to vector<1x16xf32>
    %326 = arith.select %323, %324, %325 : vector<1x16xi1>, vector<1x16xf32>
    %327 = vector.broadcast %321 : vector<16x1xf32> to vector<16x16xf32>
    %328 = vector.broadcast %326 : vector<1x16xf32> to vector<16x16xf32>
    %329 = arith.mulf %327, %328 : vector<16x16xf32>
    %330 = arith.addf %315, %329 : vector<16x16xf32>
    %c9_i32_105 = arith.constant 9 : i32
    %331 = vector.broadcast %c9_i32_105 : i32 to vector<16x16xi32>
    %332 = arith.cmpi eq, %33, %331 : vector<16x16xi32>
    %cst_106 = arith.constant 0.000000e+00 : f32
    %333 = vector.broadcast %cst_106 : f32 to vector<16x16xf32>
    %334 = arith.select %332, %192, %333 : vector<16x16xi1>, vector<16x16xf32>
    %cst_107 = arith.constant dense<0.000000e+00> : vector<16xf32>
    %335 = vector.multi_reduction <add>, %334, %cst_107 [1] : vector<16x16xf32> to vector<16xf32>
    %336 = vector.shape_cast %335 : vector<16xf32> to vector<16x1xf32>
    %c9_i32_108 = arith.constant 9 : i32
    %337 = vector.broadcast %c9_i32_108 : i32 to vector<1x16xi32>
    %338 = arith.cmpi eq, %34, %337 : vector<1x16xi32>
    %cst_109 = arith.constant 1.000000e+00 : f32
    %cst_110 = arith.constant 0.000000e+00 : f32
    %339 = vector.broadcast %cst_109 : f32 to vector<1x16xf32>
    %340 = vector.broadcast %cst_110 : f32 to vector<1x16xf32>
    %341 = arith.select %338, %339, %340 : vector<1x16xi1>, vector<1x16xf32>
    %342 = vector.broadcast %336 : vector<16x1xf32> to vector<16x16xf32>
    %343 = vector.broadcast %341 : vector<1x16xf32> to vector<16x16xf32>
    %344 = arith.mulf %342, %343 : vector<16x16xf32>
    %345 = arith.addf %330, %344 : vector<16x16xf32>
    %c10_i32_111 = arith.constant 10 : i32
    %346 = vector.broadcast %c10_i32_111 : i32 to vector<16x16xi32>
    %347 = arith.cmpi eq, %33, %346 : vector<16x16xi32>
    %cst_112 = arith.constant 0.000000e+00 : f32
    %348 = vector.broadcast %cst_112 : f32 to vector<16x16xf32>
    %349 = arith.select %347, %192, %348 : vector<16x16xi1>, vector<16x16xf32>
    %cst_113 = arith.constant dense<0.000000e+00> : vector<16xf32>
    %350 = vector.multi_reduction <add>, %349, %cst_113 [1] : vector<16x16xf32> to vector<16xf32>
    %351 = vector.shape_cast %350 : vector<16xf32> to vector<16x1xf32>
    %c10_i32_114 = arith.constant 10 : i32
    %352 = vector.broadcast %c10_i32_114 : i32 to vector<1x16xi32>
    %353 = arith.cmpi eq, %34, %352 : vector<1x16xi32>
    %cst_115 = arith.constant 1.000000e+00 : f32
    %cst_116 = arith.constant 0.000000e+00 : f32
    %354 = vector.broadcast %cst_115 : f32 to vector<1x16xf32>
    %355 = vector.broadcast %cst_116 : f32 to vector<1x16xf32>
    %356 = arith.select %353, %354, %355 : vector<1x16xi1>, vector<1x16xf32>
    %357 = vector.broadcast %351 : vector<16x1xf32> to vector<16x16xf32>
    %358 = vector.broadcast %356 : vector<1x16xf32> to vector<16x16xf32>
    %359 = arith.mulf %357, %358 : vector<16x16xf32>
    %360 = arith.addf %345, %359 : vector<16x16xf32>
    %c11_i32_117 = arith.constant 11 : i32
    %361 = vector.broadcast %c11_i32_117 : i32 to vector<16x16xi32>
    %362 = arith.cmpi eq, %33, %361 : vector<16x16xi32>
    %cst_118 = arith.constant 0.000000e+00 : f32
    %363 = vector.broadcast %cst_118 : f32 to vector<16x16xf32>
    %364 = arith.select %362, %192, %363 : vector<16x16xi1>, vector<16x16xf32>
    %cst_119 = arith.constant dense<0.000000e+00> : vector<16xf32>
    %365 = vector.multi_reduction <add>, %364, %cst_119 [1] : vector<16x16xf32> to vector<16xf32>
    %366 = vector.shape_cast %365 : vector<16xf32> to vector<16x1xf32>
    %c11_i32_120 = arith.constant 11 : i32
    %367 = vector.broadcast %c11_i32_120 : i32 to vector<1x16xi32>
    %368 = arith.cmpi eq, %34, %367 : vector<1x16xi32>
    %cst_121 = arith.constant 1.000000e+00 : f32
    %cst_122 = arith.constant 0.000000e+00 : f32
    %369 = vector.broadcast %cst_121 : f32 to vector<1x16xf32>
    %370 = vector.broadcast %cst_122 : f32 to vector<1x16xf32>
    %371 = arith.select %368, %369, %370 : vector<1x16xi1>, vector<1x16xf32>
    %372 = vector.broadcast %366 : vector<16x1xf32> to vector<16x16xf32>
    %373 = vector.broadcast %371 : vector<1x16xf32> to vector<16x16xf32>
    %374 = arith.mulf %372, %373 : vector<16x16xf32>
    %375 = arith.addf %360, %374 : vector<16x16xf32>
    %c12_i32_123 = arith.constant 12 : i32
    %376 = vector.broadcast %c12_i32_123 : i32 to vector<16x16xi32>
    %377 = arith.cmpi eq, %33, %376 : vector<16x16xi32>
    %cst_124 = arith.constant 0.000000e+00 : f32
    %378 = vector.broadcast %cst_124 : f32 to vector<16x16xf32>
    %379 = arith.select %377, %192, %378 : vector<16x16xi1>, vector<16x16xf32>
    %cst_125 = arith.constant dense<0.000000e+00> : vector<16xf32>
    %380 = vector.multi_reduction <add>, %379, %cst_125 [1] : vector<16x16xf32> to vector<16xf32>
    %381 = vector.shape_cast %380 : vector<16xf32> to vector<16x1xf32>
    %c12_i32_126 = arith.constant 12 : i32
    %382 = vector.broadcast %c12_i32_126 : i32 to vector<1x16xi32>
    %383 = arith.cmpi eq, %34, %382 : vector<1x16xi32>
    %cst_127 = arith.constant 1.000000e+00 : f32
    %cst_128 = arith.constant 0.000000e+00 : f32
    %384 = vector.broadcast %cst_127 : f32 to vector<1x16xf32>
    %385 = vector.broadcast %cst_128 : f32 to vector<1x16xf32>
    %386 = arith.select %383, %384, %385 : vector<1x16xi1>, vector<1x16xf32>
    %387 = vector.broadcast %381 : vector<16x1xf32> to vector<16x16xf32>
    %388 = vector.broadcast %386 : vector<1x16xf32> to vector<16x16xf32>
    %389 = arith.mulf %387, %388 : vector<16x16xf32>
    %390 = arith.addf %375, %389 : vector<16x16xf32>
    %c13_i32_129 = arith.constant 13 : i32
    %391 = vector.broadcast %c13_i32_129 : i32 to vector<16x16xi32>
    %392 = arith.cmpi eq, %33, %391 : vector<16x16xi32>
    %cst_130 = arith.constant 0.000000e+00 : f32
    %393 = vector.broadcast %cst_130 : f32 to vector<16x16xf32>
    %394 = arith.select %392, %192, %393 : vector<16x16xi1>, vector<16x16xf32>
    %cst_131 = arith.constant dense<0.000000e+00> : vector<16xf32>
    %395 = vector.multi_reduction <add>, %394, %cst_131 [1] : vector<16x16xf32> to vector<16xf32>
    %396 = vector.shape_cast %395 : vector<16xf32> to vector<16x1xf32>
    %c13_i32_132 = arith.constant 13 : i32
    %397 = vector.broadcast %c13_i32_132 : i32 to vector<1x16xi32>
    %398 = arith.cmpi eq, %34, %397 : vector<1x16xi32>
    %cst_133 = arith.constant 1.000000e+00 : f32
    %cst_134 = arith.constant 0.000000e+00 : f32
    %399 = vector.broadcast %cst_133 : f32 to vector<1x16xf32>
    %400 = vector.broadcast %cst_134 : f32 to vector<1x16xf32>
    %401 = arith.select %398, %399, %400 : vector<1x16xi1>, vector<1x16xf32>
    %402 = vector.broadcast %396 : vector<16x1xf32> to vector<16x16xf32>
    %403 = vector.broadcast %401 : vector<1x16xf32> to vector<16x16xf32>
    %404 = arith.mulf %402, %403 : vector<16x16xf32>
    %405 = arith.addf %390, %404 : vector<16x16xf32>
    %c14_i32_135 = arith.constant 14 : i32
    %406 = vector.broadcast %c14_i32_135 : i32 to vector<16x16xi32>
    %407 = arith.cmpi eq, %33, %406 : vector<16x16xi32>
    %cst_136 = arith.constant 0.000000e+00 : f32
    %408 = vector.broadcast %cst_136 : f32 to vector<16x16xf32>
    %409 = arith.select %407, %192, %408 : vector<16x16xi1>, vector<16x16xf32>
    %cst_137 = arith.constant dense<0.000000e+00> : vector<16xf32>
    %410 = vector.multi_reduction <add>, %409, %cst_137 [1] : vector<16x16xf32> to vector<16xf32>
    %411 = vector.shape_cast %410 : vector<16xf32> to vector<16x1xf32>
    %c14_i32_138 = arith.constant 14 : i32
    %412 = vector.broadcast %c14_i32_138 : i32 to vector<1x16xi32>
    %413 = arith.cmpi eq, %34, %412 : vector<1x16xi32>
    %cst_139 = arith.constant 1.000000e+00 : f32
    %cst_140 = arith.constant 0.000000e+00 : f32
    %414 = vector.broadcast %cst_139 : f32 to vector<1x16xf32>
    %415 = vector.broadcast %cst_140 : f32 to vector<1x16xf32>
    %416 = arith.select %413, %414, %415 : vector<1x16xi1>, vector<1x16xf32>
    %417 = vector.broadcast %411 : vector<16x1xf32> to vector<16x16xf32>
    %418 = vector.broadcast %416 : vector<1x16xf32> to vector<16x16xf32>
    %419 = arith.mulf %417, %418 : vector<16x16xf32>
    %420 = arith.addf %405, %419 : vector<16x16xf32>
    %421 = arith.truncf %420 : vector<16x16xf32> to vector<16x16xbf16>
    %cst_141 = arith.constant dense<0.000000e+00> : vector<16x16xf32>
    %422 = tpu.matmul %421, %28, %cst_141 {dimension_numbers = #tpu.dot_dimension_numbers<[1], [0], [0], [1], [0, 0, 1, 1], [], []>} : vector<16x16xbf16>, vector<16x16xbf16>, vector<16x16xf32> -> vector<16x16xf32>
    %423 = arith.addf %194, %422 : vector<16x16xf32>
    %424 = arith.truncf %423 : vector<16x16xf32> to vector<16x16xbf16>
    %425 = vector.extract_strided_slice %44 {offsets = [0, 0], sizes = [16, 32], strides = [1, 1]} : vector<32x32xbf16> to vector<16x32xbf16>
    %cst_142 = arith.constant dense<0.000000e+00> : vector<16x32xf32>
    %426 = tpu.matmul %424, %425, %cst_142 {dimension_numbers = #tpu.dot_dimension_numbers<[1], [0], [0], [1], [0, 0, 1, 1], [], []>} : vector<16x16xbf16>, vector<16x32xbf16>, vector<16x32xf32> -> vector<16x32xf32>
    %427 = arith.addf %45, %426 : vector<16x32xf32>
    %428 = vector.extract_strided_slice %42 {offsets = [0, 16], sizes = [16, 16], strides = [1, 1]} : vector<16x96xf32> to vector<16x16xf32>
    %429 = arith.truncf %428 : vector<16x16xf32> to vector<16x16xbf16>
    %430 = vector.extract_strided_slice %42 {offsets = [0, 48], sizes = [16, 16], strides = [1, 1]} : vector<16x96xf32> to vector<16x16xf32>
    %431 = arith.truncf %430 : vector<16x16xf32> to vector<16x16xbf16>
    %432 = vector.extract_strided_slice %42 {offsets = [0, 80], sizes = [16, 16], strides = [1, 1]} : vector<16x96xf32> to vector<16x16xf32>
    %433 = arith.truncf %432 : vector<16x16xf32> to vector<16x16xbf16>
    %cst_143 = arith.constant dense<0.000000e+00> : vector<16x16xf32>
    %434 = tpu.matmul %429, %431, %cst_143 {dimension_numbers = #tpu.dot_dimension_numbers<[1], [1], [0], [0], [0, 0, 1, 0], [], []>} : vector<16x16xbf16>, vector<16x16xbf16>, vector<16x16xf32> -> vector<16x16xf32>
    %cst_144 = arith.constant dense<0.000000e+00> : vector<16x16xf32>
    %435 = tpu.matmul %429, %28, %cst_144 {dimension_numbers = #tpu.dot_dimension_numbers<[1], [1], [0], [0], [0, 0, 1, 0], [], []>} : vector<16x16xbf16>, vector<16x16xbf16>, vector<16x16xf32> -> vector<16x16xf32>
    %cst_145 = arith.constant 0.000000e+00 : f32
    %436 = vector.broadcast %cst_145 : f32 to vector<16x16xf32>
    %c0_i32_146 = arith.constant 0 : i32
    %437 = vector.broadcast %c0_i32_146 : i32 to vector<16x16xi32>
    %438 = arith.cmpi eq, %33, %437 : vector<16x16xi32>
    %439 = vector.extract_strided_slice %435 {offsets = [0, 0], sizes = [16, 1], strides = [1, 1]} : vector<16x16xf32> to vector<16x1xf32>
    %cst_147 = arith.constant 0.000000e+00 : f32
    %440 = vector.shape_cast %439 : vector<16x1xf32> to vector<16x1xf32>
    %441 = vector.broadcast %440 : vector<16x1xf32> to vector<16x16xf32>
    %442 = vector.broadcast %cst_147 : f32 to vector<16x16xf32>
    %443 = arith.select %438, %441, %442 : vector<16x16xi1>, vector<16x16xf32>
    %444 = arith.addf %436, %443 : vector<16x16xf32>
    %c1_i32_148 = arith.constant 1 : i32
    %445 = vector.broadcast %c1_i32_148 : i32 to vector<16x16xi32>
    %446 = arith.cmpi eq, %33, %445 : vector<16x16xi32>
    %447 = vector.extract_strided_slice %435 {offsets = [0, 1], sizes = [16, 1], strides = [1, 1]} : vector<16x16xf32> to vector<16x1xf32>
    %cst_149 = arith.constant 0.000000e+00 : f32
    %448 = vector.shape_cast %447 : vector<16x1xf32> to vector<16x1xf32>
    %449 = vector.broadcast %448 : vector<16x1xf32> to vector<16x16xf32>
    %450 = vector.broadcast %cst_149 : f32 to vector<16x16xf32>
    %451 = arith.select %446, %449, %450 : vector<16x16xi1>, vector<16x16xf32>
    %452 = arith.addf %444, %451 : vector<16x16xf32>
    %c2_i32_150 = arith.constant 2 : i32
    %453 = vector.broadcast %c2_i32_150 : i32 to vector<16x16xi32>
    %454 = arith.cmpi eq, %33, %453 : vector<16x16xi32>
    %455 = vector.extract_strided_slice %435 {offsets = [0, 2], sizes = [16, 1], strides = [1, 1]} : vector<16x16xf32> to vector<16x1xf32>
    %cst_151 = arith.constant 0.000000e+00 : f32
    %456 = vector.shape_cast %455 : vector<16x1xf32> to vector<16x1xf32>
    %457 = vector.broadcast %456 : vector<16x1xf32> to vector<16x16xf32>
    %458 = vector.broadcast %cst_151 : f32 to vector<16x16xf32>
    %459 = arith.select %454, %457, %458 : vector<16x16xi1>, vector<16x16xf32>
    %460 = arith.addf %452, %459 : vector<16x16xf32>
    %c3_i32_152 = arith.constant 3 : i32
    %461 = vector.broadcast %c3_i32_152 : i32 to vector<16x16xi32>
    %462 = arith.cmpi eq, %33, %461 : vector<16x16xi32>
    %463 = vector.extract_strided_slice %435 {offsets = [0, 3], sizes = [16, 1], strides = [1, 1]} : vector<16x16xf32> to vector<16x1xf32>
    %cst_153 = arith.constant 0.000000e+00 : f32
    %464 = vector.shape_cast %463 : vector<16x1xf32> to vector<16x1xf32>
    %465 = vector.broadcast %464 : vector<16x1xf32> to vector<16x16xf32>
    %466 = vector.broadcast %cst_153 : f32 to vector<16x16xf32>
    %467 = arith.select %462, %465, %466 : vector<16x16xi1>, vector<16x16xf32>
    %468 = arith.addf %460, %467 : vector<16x16xf32>
    %c4_i32_154 = arith.constant 4 : i32
    %469 = vector.broadcast %c4_i32_154 : i32 to vector<16x16xi32>
    %470 = arith.cmpi eq, %33, %469 : vector<16x16xi32>
    %471 = vector.extract_strided_slice %435 {offsets = [0, 4], sizes = [16, 1], strides = [1, 1]} : vector<16x16xf32> to vector<16x1xf32>
    %cst_155 = arith.constant 0.000000e+00 : f32
    %472 = vector.shape_cast %471 : vector<16x1xf32> to vector<16x1xf32>
    %473 = vector.broadcast %472 : vector<16x1xf32> to vector<16x16xf32>
    %474 = vector.broadcast %cst_155 : f32 to vector<16x16xf32>
    %475 = arith.select %470, %473, %474 : vector<16x16xi1>, vector<16x16xf32>
    %476 = arith.addf %468, %475 : vector<16x16xf32>
    %c5_i32_156 = arith.constant 5 : i32
    %477 = vector.broadcast %c5_i32_156 : i32 to vector<16x16xi32>
    %478 = arith.cmpi eq, %33, %477 : vector<16x16xi32>
    %479 = vector.extract_strided_slice %435 {offsets = [0, 5], sizes = [16, 1], strides = [1, 1]} : vector<16x16xf32> to vector<16x1xf32>
    %cst_157 = arith.constant 0.000000e+00 : f32
    %480 = vector.shape_cast %479 : vector<16x1xf32> to vector<16x1xf32>
    %481 = vector.broadcast %480 : vector<16x1xf32> to vector<16x16xf32>
    %482 = vector.broadcast %cst_157 : f32 to vector<16x16xf32>
    %483 = arith.select %478, %481, %482 : vector<16x16xi1>, vector<16x16xf32>
    %484 = arith.addf %476, %483 : vector<16x16xf32>
    %c6_i32_158 = arith.constant 6 : i32
    %485 = vector.broadcast %c6_i32_158 : i32 to vector<16x16xi32>
    %486 = arith.cmpi eq, %33, %485 : vector<16x16xi32>
    %487 = vector.extract_strided_slice %435 {offsets = [0, 6], sizes = [16, 1], strides = [1, 1]} : vector<16x16xf32> to vector<16x1xf32>
    %cst_159 = arith.constant 0.000000e+00 : f32
    %488 = vector.shape_cast %487 : vector<16x1xf32> to vector<16x1xf32>
    %489 = vector.broadcast %488 : vector<16x1xf32> to vector<16x16xf32>
    %490 = vector.broadcast %cst_159 : f32 to vector<16x16xf32>
    %491 = arith.select %486, %489, %490 : vector<16x16xi1>, vector<16x16xf32>
    %492 = arith.addf %484, %491 : vector<16x16xf32>
    %c7_i32_160 = arith.constant 7 : i32
    %493 = vector.broadcast %c7_i32_160 : i32 to vector<16x16xi32>
    %494 = arith.cmpi eq, %33, %493 : vector<16x16xi32>
    %495 = vector.extract_strided_slice %435 {offsets = [0, 7], sizes = [16, 1], strides = [1, 1]} : vector<16x16xf32> to vector<16x1xf32>
    %cst_161 = arith.constant 0.000000e+00 : f32
    %496 = vector.shape_cast %495 : vector<16x1xf32> to vector<16x1xf32>
    %497 = vector.broadcast %496 : vector<16x1xf32> to vector<16x16xf32>
    %498 = vector.broadcast %cst_161 : f32 to vector<16x16xf32>
    %499 = arith.select %494, %497, %498 : vector<16x16xi1>, vector<16x16xf32>
    %500 = arith.addf %492, %499 : vector<16x16xf32>
    %c8_i32_162 = arith.constant 8 : i32
    %501 = vector.broadcast %c8_i32_162 : i32 to vector<16x16xi32>
    %502 = arith.cmpi eq, %33, %501 : vector<16x16xi32>
    %503 = vector.extract_strided_slice %435 {offsets = [0, 8], sizes = [16, 1], strides = [1, 1]} : vector<16x16xf32> to vector<16x1xf32>
    %cst_163 = arith.constant 0.000000e+00 : f32
    %504 = vector.shape_cast %503 : vector<16x1xf32> to vector<16x1xf32>
    %505 = vector.broadcast %504 : vector<16x1xf32> to vector<16x16xf32>
    %506 = vector.broadcast %cst_163 : f32 to vector<16x16xf32>
    %507 = arith.select %502, %505, %506 : vector<16x16xi1>, vector<16x16xf32>
    %508 = arith.addf %500, %507 : vector<16x16xf32>
    %c9_i32_164 = arith.constant 9 : i32
    %509 = vector.broadcast %c9_i32_164 : i32 to vector<16x16xi32>
    %510 = arith.cmpi eq, %33, %509 : vector<16x16xi32>
    %511 = vector.extract_strided_slice %435 {offsets = [0, 9], sizes = [16, 1], strides = [1, 1]} : vector<16x16xf32> to vector<16x1xf32>
    %cst_165 = arith.constant 0.000000e+00 : f32
    %512 = vector.shape_cast %511 : vector<16x1xf32> to vector<16x1xf32>
    %513 = vector.broadcast %512 : vector<16x1xf32> to vector<16x16xf32>
    %514 = vector.broadcast %cst_165 : f32 to vector<16x16xf32>
    %515 = arith.select %510, %513, %514 : vector<16x16xi1>, vector<16x16xf32>
    %516 = arith.addf %508, %515 : vector<16x16xf32>
    %c10_i32_166 = arith.constant 10 : i32
    %517 = vector.broadcast %c10_i32_166 : i32 to vector<16x16xi32>
    %518 = arith.cmpi eq, %33, %517 : vector<16x16xi32>
    %519 = vector.extract_strided_slice %435 {offsets = [0, 10], sizes = [16, 1], strides = [1, 1]} : vector<16x16xf32> to vector<16x1xf32>
    %cst_167 = arith.constant 0.000000e+00 : f32
    %520 = vector.shape_cast %519 : vector<16x1xf32> to vector<16x1xf32>
    %521 = vector.broadcast %520 : vector<16x1xf32> to vector<16x16xf32>
    %522 = vector.broadcast %cst_167 : f32 to vector<16x16xf32>
    %523 = arith.select %518, %521, %522 : vector<16x16xi1>, vector<16x16xf32>
    %524 = arith.addf %516, %523 : vector<16x16xf32>
    %c11_i32_168 = arith.constant 11 : i32
    %525 = vector.broadcast %c11_i32_168 : i32 to vector<16x16xi32>
    %526 = arith.cmpi eq, %33, %525 : vector<16x16xi32>
    %527 = vector.extract_strided_slice %435 {offsets = [0, 11], sizes = [16, 1], strides = [1, 1]} : vector<16x16xf32> to vector<16x1xf32>
    %cst_169 = arith.constant 0.000000e+00 : f32
    %528 = vector.shape_cast %527 : vector<16x1xf32> to vector<16x1xf32>
    %529 = vector.broadcast %528 : vector<16x1xf32> to vector<16x16xf32>
    %530 = vector.broadcast %cst_169 : f32 to vector<16x16xf32>
    %531 = arith.select %526, %529, %530 : vector<16x16xi1>, vector<16x16xf32>
    %532 = arith.addf %524, %531 : vector<16x16xf32>
    %c12_i32_170 = arith.constant 12 : i32
    %533 = vector.broadcast %c12_i32_170 : i32 to vector<16x16xi32>
    %534 = arith.cmpi eq, %33, %533 : vector<16x16xi32>
    %535 = vector.extract_strided_slice %435 {offsets = [0, 12], sizes = [16, 1], strides = [1, 1]} : vector<16x16xf32> to vector<16x1xf32>
    %cst_171 = arith.constant 0.000000e+00 : f32
    %536 = vector.shape_cast %535 : vector<16x1xf32> to vector<16x1xf32>
    %537 = vector.broadcast %536 : vector<16x1xf32> to vector<16x16xf32>
    %538 = vector.broadcast %cst_171 : f32 to vector<16x16xf32>
    %539 = arith.select %534, %537, %538 : vector<16x16xi1>, vector<16x16xf32>
    %540 = arith.addf %532, %539 : vector<16x16xf32>
    %c13_i32_172 = arith.constant 13 : i32
    %541 = vector.broadcast %c13_i32_172 : i32 to vector<16x16xi32>
    %542 = arith.cmpi eq, %33, %541 : vector<16x16xi32>
    %543 = vector.extract_strided_slice %435 {offsets = [0, 13], sizes = [16, 1], strides = [1, 1]} : vector<16x16xf32> to vector<16x1xf32>
    %cst_173 = arith.constant 0.000000e+00 : f32
    %544 = vector.shape_cast %543 : vector<16x1xf32> to vector<16x1xf32>
    %545 = vector.broadcast %544 : vector<16x1xf32> to vector<16x16xf32>
    %546 = vector.broadcast %cst_173 : f32 to vector<16x16xf32>
    %547 = arith.select %542, %545, %546 : vector<16x16xi1>, vector<16x16xf32>
    %548 = arith.addf %540, %547 : vector<16x16xf32>
    %c14_i32_174 = arith.constant 14 : i32
    %549 = vector.broadcast %c14_i32_174 : i32 to vector<16x16xi32>
    %550 = arith.cmpi eq, %33, %549 : vector<16x16xi32>
    %551 = vector.extract_strided_slice %435 {offsets = [0, 14], sizes = [16, 1], strides = [1, 1]} : vector<16x16xf32> to vector<16x1xf32>
    %cst_175 = arith.constant 0.000000e+00 : f32
    %552 = vector.shape_cast %551 : vector<16x1xf32> to vector<16x1xf32>
    %553 = vector.broadcast %552 : vector<16x1xf32> to vector<16x16xf32>
    %554 = vector.broadcast %cst_175 : f32 to vector<16x16xf32>
    %555 = arith.select %550, %553, %554 : vector<16x16xi1>, vector<16x16xf32>
    %556 = arith.addf %548, %555 : vector<16x16xf32>
    %557 = arith.addf %434, %556 : vector<16x16xf32>
    %cst_176 = arith.constant 2.500000e-01 : f32
    %558 = vector.broadcast %cst_176 : f32 to vector<16x16xf32>
    %559 = arith.mulf %557, %558 : vector<16x16xf32>
    %560 = arith.addf %559, %27 : vector<16x16xf32>
    %cst_177 = arith.constant dense<0xFF800000> : vector<16xf32>
    %561 = vector.multi_reduction <maximumf>, %560, %cst_177 [1] : vector<16x16xf32> to vector<16xf32>
    %562 = vector.shape_cast %561 : vector<16xf32> to vector<16x1xf32>
    %563 = vector.broadcast %562 : vector<16x1xf32> to vector<16x16xf32>
    %564 = arith.subf %560, %563 : vector<16x16xf32>
    %565 = math.exp %564 : vector<16x16xf32>
    %cst_178 = arith.constant dense<0.000000e+00> : vector<16xf32>
    %566 = vector.multi_reduction <add>, %565, %cst_178 [1] : vector<16x16xf32> to vector<16xf32>
    %567 = vector.shape_cast %566 : vector<16xf32> to vector<16x1xf32>
    %568 = tpu.reciprocal %567 {approx = true} : vector<16x1xf32> -> vector<16x1xf32>
    %569 = arith.mulf %567, %568 : vector<16x1xf32>
    %cst_179 = arith.constant 2.000000e+00 : f32
    %570 = vector.broadcast %cst_179 : f32 to vector<16x1xf32>
    %571 = arith.subf %570, %569 : vector<16x1xf32>
    %572 = arith.mulf %568, %571 : vector<16x1xf32>
    %573 = vector.broadcast %572 : vector<16x1xf32> to vector<16x16xf32>
    %574 = arith.mulf %565, %573 : vector<16x16xf32>
    %575 = arith.truncf %574 : vector<16x16xf32> to vector<16x16xbf16>
    %cst_180 = arith.constant dense<0.000000e+00> : vector<16x16xf32>
    %576 = tpu.matmul %575, %433, %cst_180 {dimension_numbers = #tpu.dot_dimension_numbers<[1], [0], [0], [1], [0, 0, 1, 1], [], []>} : vector<16x16xbf16>, vector<16x16xbf16>, vector<16x16xf32> -> vector<16x16xf32>
    %cst_181 = arith.constant 0.000000e+00 : f32
    %577 = vector.broadcast %cst_181 : f32 to vector<16x16xf32>
    %c0_i32_182 = arith.constant 0 : i32
    %578 = vector.broadcast %c0_i32_182 : i32 to vector<16x16xi32>
    %579 = arith.cmpi eq, %33, %578 : vector<16x16xi32>
    %cst_183 = arith.constant 0.000000e+00 : f32
    %580 = vector.broadcast %cst_183 : f32 to vector<16x16xf32>
    %581 = arith.select %579, %574, %580 : vector<16x16xi1>, vector<16x16xf32>
    %cst_184 = arith.constant dense<0.000000e+00> : vector<16xf32>
    %582 = vector.multi_reduction <add>, %581, %cst_184 [1] : vector<16x16xf32> to vector<16xf32>
    %583 = vector.shape_cast %582 : vector<16xf32> to vector<16x1xf32>
    %c0_i32_185 = arith.constant 0 : i32
    %584 = vector.broadcast %c0_i32_185 : i32 to vector<1x16xi32>
    %585 = arith.cmpi eq, %34, %584 : vector<1x16xi32>
    %cst_186 = arith.constant 1.000000e+00 : f32
    %cst_187 = arith.constant 0.000000e+00 : f32
    %586 = vector.broadcast %cst_186 : f32 to vector<1x16xf32>
    %587 = vector.broadcast %cst_187 : f32 to vector<1x16xf32>
    %588 = arith.select %585, %586, %587 : vector<1x16xi1>, vector<1x16xf32>
    %589 = vector.broadcast %583 : vector<16x1xf32> to vector<16x16xf32>
    %590 = vector.broadcast %588 : vector<1x16xf32> to vector<16x16xf32>
    %591 = arith.mulf %589, %590 : vector<16x16xf32>
    %592 = arith.addf %577, %591 : vector<16x16xf32>
    %c1_i32_188 = arith.constant 1 : i32
    %593 = vector.broadcast %c1_i32_188 : i32 to vector<16x16xi32>
    %594 = arith.cmpi eq, %33, %593 : vector<16x16xi32>
    %cst_189 = arith.constant 0.000000e+00 : f32
    %595 = vector.broadcast %cst_189 : f32 to vector<16x16xf32>
    %596 = arith.select %594, %574, %595 : vector<16x16xi1>, vector<16x16xf32>
    %cst_190 = arith.constant dense<0.000000e+00> : vector<16xf32>
    %597 = vector.multi_reduction <add>, %596, %cst_190 [1] : vector<16x16xf32> to vector<16xf32>
    %598 = vector.shape_cast %597 : vector<16xf32> to vector<16x1xf32>
    %c1_i32_191 = arith.constant 1 : i32
    %599 = vector.broadcast %c1_i32_191 : i32 to vector<1x16xi32>
    %600 = arith.cmpi eq, %34, %599 : vector<1x16xi32>
    %cst_192 = arith.constant 1.000000e+00 : f32
    %cst_193 = arith.constant 0.000000e+00 : f32
    %601 = vector.broadcast %cst_192 : f32 to vector<1x16xf32>
    %602 = vector.broadcast %cst_193 : f32 to vector<1x16xf32>
    %603 = arith.select %600, %601, %602 : vector<1x16xi1>, vector<1x16xf32>
    %604 = vector.broadcast %598 : vector<16x1xf32> to vector<16x16xf32>
    %605 = vector.broadcast %603 : vector<1x16xf32> to vector<16x16xf32>
    %606 = arith.mulf %604, %605 : vector<16x16xf32>
    %607 = arith.addf %592, %606 : vector<16x16xf32>
    %c2_i32_194 = arith.constant 2 : i32
    %608 = vector.broadcast %c2_i32_194 : i32 to vector<16x16xi32>
    %609 = arith.cmpi eq, %33, %608 : vector<16x16xi32>
    %cst_195 = arith.constant 0.000000e+00 : f32
    %610 = vector.broadcast %cst_195 : f32 to vector<16x16xf32>
    %611 = arith.select %609, %574, %610 : vector<16x16xi1>, vector<16x16xf32>
    %cst_196 = arith.constant dense<0.000000e+00> : vector<16xf32>
    %612 = vector.multi_reduction <add>, %611, %cst_196 [1] : vector<16x16xf32> to vector<16xf32>
    %613 = vector.shape_cast %612 : vector<16xf32> to vector<16x1xf32>
    %c2_i32_197 = arith.constant 2 : i32
    %614 = vector.broadcast %c2_i32_197 : i32 to vector<1x16xi32>
    %615 = arith.cmpi eq, %34, %614 : vector<1x16xi32>
    %cst_198 = arith.constant 1.000000e+00 : f32
    %cst_199 = arith.constant 0.000000e+00 : f32
    %616 = vector.broadcast %cst_198 : f32 to vector<1x16xf32>
    %617 = vector.broadcast %cst_199 : f32 to vector<1x16xf32>
    %618 = arith.select %615, %616, %617 : vector<1x16xi1>, vector<1x16xf32>
    %619 = vector.broadcast %613 : vector<16x1xf32> to vector<16x16xf32>
    %620 = vector.broadcast %618 : vector<1x16xf32> to vector<16x16xf32>
    %621 = arith.mulf %619, %620 : vector<16x16xf32>
    %622 = arith.addf %607, %621 : vector<16x16xf32>
    %c3_i32_200 = arith.constant 3 : i32
    %623 = vector.broadcast %c3_i32_200 : i32 to vector<16x16xi32>
    %624 = arith.cmpi eq, %33, %623 : vector<16x16xi32>
    %cst_201 = arith.constant 0.000000e+00 : f32
    %625 = vector.broadcast %cst_201 : f32 to vector<16x16xf32>
    %626 = arith.select %624, %574, %625 : vector<16x16xi1>, vector<16x16xf32>
    %cst_202 = arith.constant dense<0.000000e+00> : vector<16xf32>
    %627 = vector.multi_reduction <add>, %626, %cst_202 [1] : vector<16x16xf32> to vector<16xf32>
    %628 = vector.shape_cast %627 : vector<16xf32> to vector<16x1xf32>
    %c3_i32_203 = arith.constant 3 : i32
    %629 = vector.broadcast %c3_i32_203 : i32 to vector<1x16xi32>
    %630 = arith.cmpi eq, %34, %629 : vector<1x16xi32>
    %cst_204 = arith.constant 1.000000e+00 : f32
    %cst_205 = arith.constant 0.000000e+00 : f32
    %631 = vector.broadcast %cst_204 : f32 to vector<1x16xf32>
    %632 = vector.broadcast %cst_205 : f32 to vector<1x16xf32>
    %633 = arith.select %630, %631, %632 : vector<1x16xi1>, vector<1x16xf32>
    %634 = vector.broadcast %628 : vector<16x1xf32> to vector<16x16xf32>
    %635 = vector.broadcast %633 : vector<1x16xf32> to vector<16x16xf32>
    %636 = arith.mulf %634, %635 : vector<16x16xf32>
    %637 = arith.addf %622, %636 : vector<16x16xf32>
    %c4_i32_206 = arith.constant 4 : i32
    %638 = vector.broadcast %c4_i32_206 : i32 to vector<16x16xi32>
    %639 = arith.cmpi eq, %33, %638 : vector<16x16xi32>
    %cst_207 = arith.constant 0.000000e+00 : f32
    %640 = vector.broadcast %cst_207 : f32 to vector<16x16xf32>
    %641 = arith.select %639, %574, %640 : vector<16x16xi1>, vector<16x16xf32>
    %cst_208 = arith.constant dense<0.000000e+00> : vector<16xf32>
    %642 = vector.multi_reduction <add>, %641, %cst_208 [1] : vector<16x16xf32> to vector<16xf32>
    %643 = vector.shape_cast %642 : vector<16xf32> to vector<16x1xf32>
    %c4_i32_209 = arith.constant 4 : i32
    %644 = vector.broadcast %c4_i32_209 : i32 to vector<1x16xi32>
    %645 = arith.cmpi eq, %34, %644 : vector<1x16xi32>
    %cst_210 = arith.constant 1.000000e+00 : f32
    %cst_211 = arith.constant 0.000000e+00 : f32
    %646 = vector.broadcast %cst_210 : f32 to vector<1x16xf32>
    %647 = vector.broadcast %cst_211 : f32 to vector<1x16xf32>
    %648 = arith.select %645, %646, %647 : vector<1x16xi1>, vector<1x16xf32>
    %649 = vector.broadcast %643 : vector<16x1xf32> to vector<16x16xf32>
    %650 = vector.broadcast %648 : vector<1x16xf32> to vector<16x16xf32>
    %651 = arith.mulf %649, %650 : vector<16x16xf32>
    %652 = arith.addf %637, %651 : vector<16x16xf32>
    %c5_i32_212 = arith.constant 5 : i32
    %653 = vector.broadcast %c5_i32_212 : i32 to vector<16x16xi32>
    %654 = arith.cmpi eq, %33, %653 : vector<16x16xi32>
    %cst_213 = arith.constant 0.000000e+00 : f32
    %655 = vector.broadcast %cst_213 : f32 to vector<16x16xf32>
    %656 = arith.select %654, %574, %655 : vector<16x16xi1>, vector<16x16xf32>
    %cst_214 = arith.constant dense<0.000000e+00> : vector<16xf32>
    %657 = vector.multi_reduction <add>, %656, %cst_214 [1] : vector<16x16xf32> to vector<16xf32>
    %658 = vector.shape_cast %657 : vector<16xf32> to vector<16x1xf32>
    %c5_i32_215 = arith.constant 5 : i32
    %659 = vector.broadcast %c5_i32_215 : i32 to vector<1x16xi32>
    %660 = arith.cmpi eq, %34, %659 : vector<1x16xi32>
    %cst_216 = arith.constant 1.000000e+00 : f32
    %cst_217 = arith.constant 0.000000e+00 : f32
    %661 = vector.broadcast %cst_216 : f32 to vector<1x16xf32>
    %662 = vector.broadcast %cst_217 : f32 to vector<1x16xf32>
    %663 = arith.select %660, %661, %662 : vector<1x16xi1>, vector<1x16xf32>
    %664 = vector.broadcast %658 : vector<16x1xf32> to vector<16x16xf32>
    %665 = vector.broadcast %663 : vector<1x16xf32> to vector<16x16xf32>
    %666 = arith.mulf %664, %665 : vector<16x16xf32>
    %667 = arith.addf %652, %666 : vector<16x16xf32>
    %c6_i32_218 = arith.constant 6 : i32
    %668 = vector.broadcast %c6_i32_218 : i32 to vector<16x16xi32>
    %669 = arith.cmpi eq, %33, %668 : vector<16x16xi32>
    %cst_219 = arith.constant 0.000000e+00 : f32
    %670 = vector.broadcast %cst_219 : f32 to vector<16x16xf32>
    %671 = arith.select %669, %574, %670 : vector<16x16xi1>, vector<16x16xf32>
    %cst_220 = arith.constant dense<0.000000e+00> : vector<16xf32>
    %672 = vector.multi_reduction <add>, %671, %cst_220 [1] : vector<16x16xf32> to vector<16xf32>
    %673 = vector.shape_cast %672 : vector<16xf32> to vector<16x1xf32>
    %c6_i32_221 = arith.constant 6 : i32
    %674 = vector.broadcast %c6_i32_221 : i32 to vector<1x16xi32>
    %675 = arith.cmpi eq, %34, %674 : vector<1x16xi32>
    %cst_222 = arith.constant 1.000000e+00 : f32
    %cst_223 = arith.constant 0.000000e+00 : f32
    %676 = vector.broadcast %cst_222 : f32 to vector<1x16xf32>
    %677 = vector.broadcast %cst_223 : f32 to vector<1x16xf32>
    %678 = arith.select %675, %676, %677 : vector<1x16xi1>, vector<1x16xf32>
    %679 = vector.broadcast %673 : vector<16x1xf32> to vector<16x16xf32>
    %680 = vector.broadcast %678 : vector<1x16xf32> to vector<16x16xf32>
    %681 = arith.mulf %679, %680 : vector<16x16xf32>
    %682 = arith.addf %667, %681 : vector<16x16xf32>
    %c7_i32_224 = arith.constant 7 : i32
    %683 = vector.broadcast %c7_i32_224 : i32 to vector<16x16xi32>
    %684 = arith.cmpi eq, %33, %683 : vector<16x16xi32>
    %cst_225 = arith.constant 0.000000e+00 : f32
    %685 = vector.broadcast %cst_225 : f32 to vector<16x16xf32>
    %686 = arith.select %684, %574, %685 : vector<16x16xi1>, vector<16x16xf32>
    %cst_226 = arith.constant dense<0.000000e+00> : vector<16xf32>
    %687 = vector.multi_reduction <add>, %686, %cst_226 [1] : vector<16x16xf32> to vector<16xf32>
    %688 = vector.shape_cast %687 : vector<16xf32> to vector<16x1xf32>
    %c7_i32_227 = arith.constant 7 : i32
    %689 = vector.broadcast %c7_i32_227 : i32 to vector<1x16xi32>
    %690 = arith.cmpi eq, %34, %689 : vector<1x16xi32>
    %cst_228 = arith.constant 1.000000e+00 : f32
    %cst_229 = arith.constant 0.000000e+00 : f32
    %691 = vector.broadcast %cst_228 : f32 to vector<1x16xf32>
    %692 = vector.broadcast %cst_229 : f32 to vector<1x16xf32>
    %693 = arith.select %690, %691, %692 : vector<1x16xi1>, vector<1x16xf32>
    %694 = vector.broadcast %688 : vector<16x1xf32> to vector<16x16xf32>
    %695 = vector.broadcast %693 : vector<1x16xf32> to vector<16x16xf32>
    %696 = arith.mulf %694, %695 : vector<16x16xf32>
    %697 = arith.addf %682, %696 : vector<16x16xf32>
    %c8_i32_230 = arith.constant 8 : i32
    %698 = vector.broadcast %c8_i32_230 : i32 to vector<16x16xi32>
    %699 = arith.cmpi eq, %33, %698 : vector<16x16xi32>
    %cst_231 = arith.constant 0.000000e+00 : f32
    %700 = vector.broadcast %cst_231 : f32 to vector<16x16xf32>
    %701 = arith.select %699, %574, %700 : vector<16x16xi1>, vector<16x16xf32>
    %cst_232 = arith.constant dense<0.000000e+00> : vector<16xf32>
    %702 = vector.multi_reduction <add>, %701, %cst_232 [1] : vector<16x16xf32> to vector<16xf32>
    %703 = vector.shape_cast %702 : vector<16xf32> to vector<16x1xf32>
    %c8_i32_233 = arith.constant 8 : i32
    %704 = vector.broadcast %c8_i32_233 : i32 to vector<1x16xi32>
    %705 = arith.cmpi eq, %34, %704 : vector<1x16xi32>
    %cst_234 = arith.constant 1.000000e+00 : f32
    %cst_235 = arith.constant 0.000000e+00 : f32
    %706 = vector.broadcast %cst_234 : f32 to vector<1x16xf32>
    %707 = vector.broadcast %cst_235 : f32 to vector<1x16xf32>
    %708 = arith.select %705, %706, %707 : vector<1x16xi1>, vector<1x16xf32>
    %709 = vector.broadcast %703 : vector<16x1xf32> to vector<16x16xf32>
    %710 = vector.broadcast %708 : vector<1x16xf32> to vector<16x16xf32>
    %711 = arith.mulf %709, %710 : vector<16x16xf32>
    %712 = arith.addf %697, %711 : vector<16x16xf32>
    %c9_i32_236 = arith.constant 9 : i32
    %713 = vector.broadcast %c9_i32_236 : i32 to vector<16x16xi32>
    %714 = arith.cmpi eq, %33, %713 : vector<16x16xi32>
    %cst_237 = arith.constant 0.000000e+00 : f32
    %715 = vector.broadcast %cst_237 : f32 to vector<16x16xf32>
    %716 = arith.select %714, %574, %715 : vector<16x16xi1>, vector<16x16xf32>
    %cst_238 = arith.constant dense<0.000000e+00> : vector<16xf32>
    %717 = vector.multi_reduction <add>, %716, %cst_238 [1] : vector<16x16xf32> to vector<16xf32>
    %718 = vector.shape_cast %717 : vector<16xf32> to vector<16x1xf32>
    %c9_i32_239 = arith.constant 9 : i32
    %719 = vector.broadcast %c9_i32_239 : i32 to vector<1x16xi32>
    %720 = arith.cmpi eq, %34, %719 : vector<1x16xi32>
    %cst_240 = arith.constant 1.000000e+00 : f32
    %cst_241 = arith.constant 0.000000e+00 : f32
    %721 = vector.broadcast %cst_240 : f32 to vector<1x16xf32>
    %722 = vector.broadcast %cst_241 : f32 to vector<1x16xf32>
    %723 = arith.select %720, %721, %722 : vector<1x16xi1>, vector<1x16xf32>
    %724 = vector.broadcast %718 : vector<16x1xf32> to vector<16x16xf32>
    %725 = vector.broadcast %723 : vector<1x16xf32> to vector<16x16xf32>
    %726 = arith.mulf %724, %725 : vector<16x16xf32>
    %727 = arith.addf %712, %726 : vector<16x16xf32>
    %c10_i32_242 = arith.constant 10 : i32
    %728 = vector.broadcast %c10_i32_242 : i32 to vector<16x16xi32>
    %729 = arith.cmpi eq, %33, %728 : vector<16x16xi32>
    %cst_243 = arith.constant 0.000000e+00 : f32
    %730 = vector.broadcast %cst_243 : f32 to vector<16x16xf32>
    %731 = arith.select %729, %574, %730 : vector<16x16xi1>, vector<16x16xf32>
    %cst_244 = arith.constant dense<0.000000e+00> : vector<16xf32>
    %732 = vector.multi_reduction <add>, %731, %cst_244 [1] : vector<16x16xf32> to vector<16xf32>
    %733 = vector.shape_cast %732 : vector<16xf32> to vector<16x1xf32>
    %c10_i32_245 = arith.constant 10 : i32
    %734 = vector.broadcast %c10_i32_245 : i32 to vector<1x16xi32>
    %735 = arith.cmpi eq, %34, %734 : vector<1x16xi32>
    %cst_246 = arith.constant 1.000000e+00 : f32
    %cst_247 = arith.constant 0.000000e+00 : f32
    %736 = vector.broadcast %cst_246 : f32 to vector<1x16xf32>
    %737 = vector.broadcast %cst_247 : f32 to vector<1x16xf32>
    %738 = arith.select %735, %736, %737 : vector<1x16xi1>, vector<1x16xf32>
    %739 = vector.broadcast %733 : vector<16x1xf32> to vector<16x16xf32>
    %740 = vector.broadcast %738 : vector<1x16xf32> to vector<16x16xf32>
    %741 = arith.mulf %739, %740 : vector<16x16xf32>
    %742 = arith.addf %727, %741 : vector<16x16xf32>
    %c11_i32_248 = arith.constant 11 : i32
    %743 = vector.broadcast %c11_i32_248 : i32 to vector<16x16xi32>
    %744 = arith.cmpi eq, %33, %743 : vector<16x16xi32>
    %cst_249 = arith.constant 0.000000e+00 : f32
    %745 = vector.broadcast %cst_249 : f32 to vector<16x16xf32>
    %746 = arith.select %744, %574, %745 : vector<16x16xi1>, vector<16x16xf32>
    %cst_250 = arith.constant dense<0.000000e+00> : vector<16xf32>
    %747 = vector.multi_reduction <add>, %746, %cst_250 [1] : vector<16x16xf32> to vector<16xf32>
    %748 = vector.shape_cast %747 : vector<16xf32> to vector<16x1xf32>
    %c11_i32_251 = arith.constant 11 : i32
    %749 = vector.broadcast %c11_i32_251 : i32 to vector<1x16xi32>
    %750 = arith.cmpi eq, %34, %749 : vector<1x16xi32>
    %cst_252 = arith.constant 1.000000e+00 : f32
    %cst_253 = arith.constant 0.000000e+00 : f32
    %751 = vector.broadcast %cst_252 : f32 to vector<1x16xf32>
    %752 = vector.broadcast %cst_253 : f32 to vector<1x16xf32>
    %753 = arith.select %750, %751, %752 : vector<1x16xi1>, vector<1x16xf32>
    %754 = vector.broadcast %748 : vector<16x1xf32> to vector<16x16xf32>
    %755 = vector.broadcast %753 : vector<1x16xf32> to vector<16x16xf32>
    %756 = arith.mulf %754, %755 : vector<16x16xf32>
    %757 = arith.addf %742, %756 : vector<16x16xf32>
    %c12_i32_254 = arith.constant 12 : i32
    %758 = vector.broadcast %c12_i32_254 : i32 to vector<16x16xi32>
    %759 = arith.cmpi eq, %33, %758 : vector<16x16xi32>
    %cst_255 = arith.constant 0.000000e+00 : f32
    %760 = vector.broadcast %cst_255 : f32 to vector<16x16xf32>
    %761 = arith.select %759, %574, %760 : vector<16x16xi1>, vector<16x16xf32>
    %cst_256 = arith.constant dense<0.000000e+00> : vector<16xf32>
    %762 = vector.multi_reduction <add>, %761, %cst_256 [1] : vector<16x16xf32> to vector<16xf32>
    %763 = vector.shape_cast %762 : vector<16xf32> to vector<16x1xf32>
    %c12_i32_257 = arith.constant 12 : i32
    %764 = vector.broadcast %c12_i32_257 : i32 to vector<1x16xi32>
    %765 = arith.cmpi eq, %34, %764 : vector<1x16xi32>
    %cst_258 = arith.constant 1.000000e+00 : f32
    %cst_259 = arith.constant 0.000000e+00 : f32
    %766 = vector.broadcast %cst_258 : f32 to vector<1x16xf32>
    %767 = vector.broadcast %cst_259 : f32 to vector<1x16xf32>
    %768 = arith.select %765, %766, %767 : vector<1x16xi1>, vector<1x16xf32>
    %769 = vector.broadcast %763 : vector<16x1xf32> to vector<16x16xf32>
    %770 = vector.broadcast %768 : vector<1x16xf32> to vector<16x16xf32>
    %771 = arith.mulf %769, %770 : vector<16x16xf32>
    %772 = arith.addf %757, %771 : vector<16x16xf32>
    %c13_i32_260 = arith.constant 13 : i32
    %773 = vector.broadcast %c13_i32_260 : i32 to vector<16x16xi32>
    %774 = arith.cmpi eq, %33, %773 : vector<16x16xi32>
    %cst_261 = arith.constant 0.000000e+00 : f32
    %775 = vector.broadcast %cst_261 : f32 to vector<16x16xf32>
    %776 = arith.select %774, %574, %775 : vector<16x16xi1>, vector<16x16xf32>
    %cst_262 = arith.constant dense<0.000000e+00> : vector<16xf32>
    %777 = vector.multi_reduction <add>, %776, %cst_262 [1] : vector<16x16xf32> to vector<16xf32>
    %778 = vector.shape_cast %777 : vector<16xf32> to vector<16x1xf32>
    %c13_i32_263 = arith.constant 13 : i32
    %779 = vector.broadcast %c13_i32_263 : i32 to vector<1x16xi32>
    %780 = arith.cmpi eq, %34, %779 : vector<1x16xi32>
    %cst_264 = arith.constant 1.000000e+00 : f32
    %cst_265 = arith.constant 0.000000e+00 : f32
    %781 = vector.broadcast %cst_264 : f32 to vector<1x16xf32>
    %782 = vector.broadcast %cst_265 : f32 to vector<1x16xf32>
    %783 = arith.select %780, %781, %782 : vector<1x16xi1>, vector<1x16xf32>
    %784 = vector.broadcast %778 : vector<16x1xf32> to vector<16x16xf32>
    %785 = vector.broadcast %783 : vector<1x16xf32> to vector<16x16xf32>
    %786 = arith.mulf %784, %785 : vector<16x16xf32>
    %787 = arith.addf %772, %786 : vector<16x16xf32>
    %c14_i32_266 = arith.constant 14 : i32
    %788 = vector.broadcast %c14_i32_266 : i32 to vector<16x16xi32>
    %789 = arith.cmpi eq, %33, %788 : vector<16x16xi32>
    %cst_267 = arith.constant 0.000000e+00 : f32
    %790 = vector.broadcast %cst_267 : f32 to vector<16x16xf32>
    %791 = arith.select %789, %574, %790 : vector<16x16xi1>, vector<16x16xf32>
    %cst_268 = arith.constant dense<0.000000e+00> : vector<16xf32>
    %792 = vector.multi_reduction <add>, %791, %cst_268 [1] : vector<16x16xf32> to vector<16xf32>
    %793 = vector.shape_cast %792 : vector<16xf32> to vector<16x1xf32>
    %c14_i32_269 = arith.constant 14 : i32
    %794 = vector.broadcast %c14_i32_269 : i32 to vector<1x16xi32>
    %795 = arith.cmpi eq, %34, %794 : vector<1x16xi32>
    %cst_270 = arith.constant 1.000000e+00 : f32
    %cst_271 = arith.constant 0.000000e+00 : f32
    %796 = vector.broadcast %cst_270 : f32 to vector<1x16xf32>
    %797 = vector.broadcast %cst_271 : f32 to vector<1x16xf32>
    %798 = arith.select %795, %796, %797 : vector<1x16xi1>, vector<1x16xf32>
    %799 = vector.broadcast %793 : vector<16x1xf32> to vector<16x16xf32>
    %800 = vector.broadcast %798 : vector<1x16xf32> to vector<16x16xf32>
    %801 = arith.mulf %799, %800 : vector<16x16xf32>
    %802 = arith.addf %787, %801 : vector<16x16xf32>
    %803 = arith.truncf %802 : vector<16x16xf32> to vector<16x16xbf16>
    %cst_272 = arith.constant dense<0.000000e+00> : vector<16x16xf32>
    %804 = tpu.matmul %803, %28, %cst_272 {dimension_numbers = #tpu.dot_dimension_numbers<[1], [0], [0], [1], [0, 0, 1, 1], [], []>} : vector<16x16xbf16>, vector<16x16xbf16>, vector<16x16xf32> -> vector<16x16xf32>
    %805 = arith.addf %576, %804 : vector<16x16xf32>
    %806 = arith.truncf %805 : vector<16x16xf32> to vector<16x16xbf16>
    %807 = vector.extract_strided_slice %44 {offsets = [16, 0], sizes = [16, 32], strides = [1, 1]} : vector<32x32xbf16> to vector<16x32xbf16>
    %cst_273 = arith.constant dense<0.000000e+00> : vector<16x32xf32>
    %808 = tpu.matmul %806, %807, %cst_273 {dimension_numbers = #tpu.dot_dimension_numbers<[1], [0], [0], [1], [0, 0, 1, 1], [], []>} : vector<16x16xbf16>, vector<16x32xbf16>, vector<16x32xf32> -> vector<16x32xf32>
    %809 = arith.addf %427, %808 : vector<16x32xf32>
    %c0_274 = arith.constant 0 : index
    %c0_275 = arith.constant 0 : index
    %c0_276 = arith.constant 0 : index
    %810 = vector.load %arg10[%c0_274, %c0_275, %c0_276] : memref<2x1x32xf32, #tpu.memory_space<vmem>>, vector<1x1x32xf32>
    %811 = vector.shape_cast %810 : vector<1x1x32xf32> to vector<1x32xf32>
    %812 = vector.broadcast %811 : vector<1x32xf32> to vector<16x32xf32>
    %813 = arith.addf %809, %812 : vector<16x32xf32>
    %814 = arith.addf %813, %26 : vector<16x32xf32>
    %c0_277 = arith.constant 0 : index
    %c0_278 = arith.constant 0 : index
    %c0_279 = arith.constant 0 : index
    %815 = vector.load %arg11[%c0_277, %c0_278, %c0_279] : memref<2x1x32xf32, #tpu.memory_space<vmem>>, vector<1x1x32xf32>
    %816 = vector.shape_cast %815 : vector<1x1x32xf32> to vector<1x32xf32>
    %c0_280 = arith.constant 0 : index
    %c0_281 = arith.constant 0 : index
    %c0_282 = arith.constant 0 : index
    %817 = vector.load %arg12[%c0_280, %c0_281, %c0_282] : memref<2x1x32xf32, #tpu.memory_space<vmem>>, vector<1x1x32xf32>
    %818 = vector.shape_cast %817 : vector<1x1x32xf32> to vector<1x32xf32>
    %cst_283 = arith.constant dense<0.000000e+00> : vector<16xf32>
    %819 = vector.multi_reduction <add>, %814, %cst_283 [1] : vector<16x32xf32> to vector<16xf32>
    %820 = vector.shape_cast %819 : vector<16xf32> to vector<16x1xf32>
    %cst_284 = arith.constant 3.200000e+01 : f32
    %821 = vector.broadcast %cst_284 : f32 to vector<16x1xf32>
    %822 = arith.divf %820, %821 : vector<16x1xf32>
    %823 = vector.broadcast %822 : vector<16x1xf32> to vector<16x32xf32>
    %824 = arith.subf %814, %823 : vector<16x32xf32>
    %825 = arith.mulf %824, %824 : vector<16x32xf32>
    %cst_285 = arith.constant dense<0.000000e+00> : vector<16xf32>
    %826 = vector.multi_reduction <add>, %825, %cst_285 [1] : vector<16x32xf32> to vector<16xf32>
    %827 = vector.shape_cast %826 : vector<16xf32> to vector<16x1xf32>
    %cst_286 = arith.constant 3.200000e+01 : f32
    %828 = vector.broadcast %cst_286 : f32 to vector<16x1xf32>
    %829 = arith.divf %827, %828 : vector<16x1xf32>
    %830 = vector.broadcast %822 : vector<16x1xf32> to vector<16x32xf32>
    %831 = arith.subf %814, %830 : vector<16x32xf32>
    %cst_287 = arith.constant 9.99999996E-13 : f32
    %832 = vector.broadcast %cst_287 : f32 to vector<16x1xf32>
    %833 = arith.addf %829, %832 : vector<16x1xf32>
    %834 = math.rsqrt %833 : vector<16x1xf32>
    %835 = vector.broadcast %834 : vector<16x1xf32> to vector<16x32xf32>
    %836 = arith.mulf %831, %835 : vector<16x32xf32>
    %837 = vector.broadcast %816 : vector<1x32xf32> to vector<16x32xf32>
    %838 = arith.mulf %836, %837 : vector<16x32xf32>
    %839 = vector.broadcast %818 : vector<1x32xf32> to vector<16x32xf32>
    %840 = arith.addf %838, %839 : vector<16x32xf32>
    %841 = arith.truncf %840 : vector<16x32xf32> to vector<16x32xbf16>
    %c0_288 = arith.constant 0 : index
    %c0_289 = arith.constant 0 : index
    %c0_290 = arith.constant 0 : index
    %842 = vector.load %arg13[%c0_288, %c0_289, %c0_290] : memref<2x32x64xbf16, #tpu.memory_space<vmem>>, vector<1x32x64xbf16>
    %843 = vector.shape_cast %842 : vector<1x32x64xbf16> to vector<32x64xbf16>
    %cst_291 = arith.constant dense<0.000000e+00> : vector<16x64xf32>
    %844 = tpu.matmul %841, %843, %cst_291 {dimension_numbers = #tpu.dot_dimension_numbers<[1], [0], [0], [1], [0, 0, 1, 1], [], []>} : vector<16x32xbf16>, vector<32x64xbf16>, vector<16x64xf32> -> vector<16x64xf32>
    %c0_292 = arith.constant 0 : index
    %c0_293 = arith.constant 0 : index
    %c0_294 = arith.constant 0 : index
    %845 = vector.load %arg14[%c0_292, %c0_293, %c0_294] : memref<2x1x64xf32, #tpu.memory_space<vmem>>, vector<1x1x64xf32>
    %846 = vector.shape_cast %845 : vector<1x1x64xf32> to vector<1x64xf32>
    %847 = vector.broadcast %846 : vector<1x64xf32> to vector<16x64xf32>
    %848 = arith.addf %844, %847 : vector<16x64xf32>
    %cst_295 = arith.constant 5.000000e-01 : f32
    %849 = vector.broadcast %cst_295 : f32 to vector<16x64xf32>
    %850 = arith.mulf %849, %848 : vector<16x64xf32>
    %cst_296 = arith.constant 4.471500e-02 : f32
    %851 = vector.broadcast %cst_296 : f32 to vector<16x64xf32>
    %852 = arith.mulf %851, %848 : vector<16x64xf32>
    %853 = arith.mulf %852, %848 : vector<16x64xf32>
    %854 = arith.mulf %853, %848 : vector<16x64xf32>
    %855 = arith.addf %848, %854 : vector<16x64xf32>
    %cst_297 = arith.constant 0.797884583 : f32
    %856 = vector.broadcast %cst_297 : f32 to vector<16x64xf32>
    %857 = arith.mulf %856, %855 : vector<16x64xf32>
    %858 = math.tanh %857 : vector<16x64xf32>
    %cst_298 = arith.constant 1.000000e+00 : f32
    %859 = vector.broadcast %cst_298 : f32 to vector<16x64xf32>
    %860 = arith.addf %859, %858 : vector<16x64xf32>
    %861 = arith.mulf %850, %860 : vector<16x64xf32>
    %862 = arith.truncf %861 : vector<16x64xf32> to vector<16x64xbf16>
    %c0_299 = arith.constant 0 : index
    %c0_300 = arith.constant 0 : index
    %c0_301 = arith.constant 0 : index
    %863 = vector.load %arg15[%c0_299, %c0_300, %c0_301] : memref<2x64x32xbf16, #tpu.memory_space<vmem>>, vector<1x64x32xbf16>
    %864 = vector.shape_cast %863 : vector<1x64x32xbf16> to vector<64x32xbf16>
    %cst_302 = arith.constant dense<0.000000e+00> : vector<16x32xf32>
    %865 = tpu.matmul %862, %864, %cst_302 {dimension_numbers = #tpu.dot_dimension_numbers<[1], [0], [0], [1], [0, 0, 1, 1], [], []>} : vector<16x64xbf16>, vector<64x32xbf16>, vector<16x32xf32> -> vector<16x32xf32>
    %c0_303 = arith.constant 0 : index
    %c0_304 = arith.constant 0 : index
    %c0_305 = arith.constant 0 : index
    %866 = vector.load %arg16[%c0_303, %c0_304, %c0_305] : memref<2x1x32xf32, #tpu.memory_space<vmem>>, vector<1x1x32xf32>
    %867 = vector.shape_cast %866 : vector<1x1x32xf32> to vector<1x32xf32>
    %868 = vector.broadcast %867 : vector<1x32xf32> to vector<16x32xf32>
    %869 = arith.addf %865, %868 : vector<16x32xf32>
    %870 = arith.addf %869, %840 : vector<16x32xf32>
    %c0_306 = arith.constant 0 : index
    %c0_307 = arith.constant 0 : index
    %c0_308 = arith.constant 0 : index
    %871 = vector.load %arg17[%c0_306, %c0_307, %c0_308] : memref<2x1x32xf32, #tpu.memory_space<vmem>>, vector<1x1x32xf32>
    %872 = vector.shape_cast %871 : vector<1x1x32xf32> to vector<1x32xf32>
    %c0_309 = arith.constant 0 : index
    %c0_310 = arith.constant 0 : index
    %c0_311 = arith.constant 0 : index
    %873 = vector.load %arg18[%c0_309, %c0_310, %c0_311] : memref<2x1x32xf32, #tpu.memory_space<vmem>>, vector<1x1x32xf32>
    %874 = vector.shape_cast %873 : vector<1x1x32xf32> to vector<1x32xf32>
    %cst_312 = arith.constant dense<0.000000e+00> : vector<16xf32>
    %875 = vector.multi_reduction <add>, %870, %cst_312 [1] : vector<16x32xf32> to vector<16xf32>
    %876 = vector.shape_cast %875 : vector<16xf32> to vector<16x1xf32>
    %cst_313 = arith.constant 3.200000e+01 : f32
    %877 = vector.broadcast %cst_313 : f32 to vector<16x1xf32>
    %878 = arith.divf %876, %877 : vector<16x1xf32>
    %879 = vector.broadcast %878 : vector<16x1xf32> to vector<16x32xf32>
    %880 = arith.subf %870, %879 : vector<16x32xf32>
    %881 = arith.mulf %880, %880 : vector<16x32xf32>
    %cst_314 = arith.constant dense<0.000000e+00> : vector<16xf32>
    %882 = vector.multi_reduction <add>, %881, %cst_314 [1] : vector<16x32xf32> to vector<16xf32>
    %883 = vector.shape_cast %882 : vector<16xf32> to vector<16x1xf32>
    %cst_315 = arith.constant 3.200000e+01 : f32
    %884 = vector.broadcast %cst_315 : f32 to vector<16x1xf32>
    %885 = arith.divf %883, %884 : vector<16x1xf32>
    %886 = vector.broadcast %878 : vector<16x1xf32> to vector<16x32xf32>
    %887 = arith.subf %870, %886 : vector<16x32xf32>
    %cst_316 = arith.constant 9.99999996E-13 : f32
    %888 = vector.broadcast %cst_316 : f32 to vector<16x1xf32>
    %889 = arith.addf %885, %888 : vector<16x1xf32>
    %890 = math.rsqrt %889 : vector<16x1xf32>
    %891 = vector.broadcast %890 : vector<16x1xf32> to vector<16x32xf32>
    %892 = arith.mulf %887, %891 : vector<16x32xf32>
    %893 = vector.broadcast %872 : vector<1x32xf32> to vector<16x32xf32>
    %894 = arith.mulf %892, %893 : vector<16x32xf32>
    %895 = vector.broadcast %874 : vector<1x32xf32> to vector<16x32xf32>
    %896 = arith.addf %894, %895 : vector<16x32xf32>
    %897 = arith.truncf %896 : vector<16x32xf32> to vector<16x32xbf16>
    %c1 = arith.constant 1 : index
    %c0_317 = arith.constant 0 : index
    %c0_318 = arith.constant 0 : index
    %898 = vector.load %arg7[%c1, %c0_317, %c0_318] : memref<2x32x96xbf16, #tpu.memory_space<vmem>>, vector<1x32x96xbf16>
    %899 = vector.shape_cast %898 : vector<1x32x96xbf16> to vector<32x96xbf16>
    %cst_319 = arith.constant dense<0.000000e+00> : vector<16x96xf32>
    %900 = tpu.matmul %897, %899, %cst_319 {dimension_numbers = #tpu.dot_dimension_numbers<[1], [0], [0], [1], [0, 0, 1, 1], [], []>} : vector<16x32xbf16>, vector<32x96xbf16>, vector<16x96xf32> -> vector<16x96xf32>
    %c1_320 = arith.constant 1 : index
    %c0_321 = arith.constant 0 : index
    %c0_322 = arith.constant 0 : index
    %901 = vector.load %arg8[%c1_320, %c0_321, %c0_322] : memref<2x1x96xf32, #tpu.memory_space<vmem>>, vector<1x1x96xf32>
    %902 = vector.shape_cast %901 : vector<1x1x96xf32> to vector<1x96xf32>
    %903 = vector.broadcast %902 : vector<1x96xf32> to vector<16x96xf32>
    %904 = arith.addf %900, %903 : vector<16x96xf32>
    %c1_323 = arith.constant 1 : index
    %c0_324 = arith.constant 0 : index
    %c0_325 = arith.constant 0 : index
    %905 = vector.load %arg9[%c1_323, %c0_324, %c0_325] : memref<2x32x32xbf16, #tpu.memory_space<vmem>>, vector<1x32x32xbf16>
    %906 = vector.shape_cast %905 : vector<1x32x32xbf16> to vector<32x32xbf16>
    %cst_326 = arith.constant 0.000000e+00 : f32
    %907 = vector.broadcast %cst_326 : f32 to vector<16x32xf32>
    %908 = vector.extract_strided_slice %904 {offsets = [0, 0], sizes = [16, 16], strides = [1, 1]} : vector<16x96xf32> to vector<16x16xf32>
    %909 = arith.truncf %908 : vector<16x16xf32> to vector<16x16xbf16>
    %910 = vector.extract_strided_slice %904 {offsets = [0, 32], sizes = [16, 16], strides = [1, 1]} : vector<16x96xf32> to vector<16x16xf32>
    %911 = arith.truncf %910 : vector<16x16xf32> to vector<16x16xbf16>
    %912 = vector.extract_strided_slice %904 {offsets = [0, 64], sizes = [16, 16], strides = [1, 1]} : vector<16x96xf32> to vector<16x16xf32>
    %913 = arith.truncf %912 : vector<16x16xf32> to vector<16x16xbf16>
    %cst_327 = arith.constant dense<0.000000e+00> : vector<16x16xf32>
    %914 = tpu.matmul %909, %911, %cst_327 {dimension_numbers = #tpu.dot_dimension_numbers<[1], [1], [0], [0], [0, 0, 1, 0], [], []>} : vector<16x16xbf16>, vector<16x16xbf16>, vector<16x16xf32> -> vector<16x16xf32>
    %cst_328 = arith.constant dense<0.000000e+00> : vector<16x16xf32>
    %915 = tpu.matmul %909, %28, %cst_328 {dimension_numbers = #tpu.dot_dimension_numbers<[1], [1], [0], [0], [0, 0, 1, 0], [], []>} : vector<16x16xbf16>, vector<16x16xbf16>, vector<16x16xf32> -> vector<16x16xf32>
    %cst_329 = arith.constant 0.000000e+00 : f32
    %916 = vector.broadcast %cst_329 : f32 to vector<16x16xf32>
    %c0_i32_330 = arith.constant 0 : i32
    %917 = vector.broadcast %c0_i32_330 : i32 to vector<16x16xi32>
    %918 = arith.cmpi eq, %33, %917 : vector<16x16xi32>
    %919 = vector.extract_strided_slice %915 {offsets = [0, 0], sizes = [16, 1], strides = [1, 1]} : vector<16x16xf32> to vector<16x1xf32>
    %cst_331 = arith.constant 0.000000e+00 : f32
    %920 = vector.shape_cast %919 : vector<16x1xf32> to vector<16x1xf32>
    %921 = vector.broadcast %920 : vector<16x1xf32> to vector<16x16xf32>
    %922 = vector.broadcast %cst_331 : f32 to vector<16x16xf32>
    %923 = arith.select %918, %921, %922 : vector<16x16xi1>, vector<16x16xf32>
    %924 = arith.addf %916, %923 : vector<16x16xf32>
    %c1_i32_332 = arith.constant 1 : i32
    %925 = vector.broadcast %c1_i32_332 : i32 to vector<16x16xi32>
    %926 = arith.cmpi eq, %33, %925 : vector<16x16xi32>
    %927 = vector.extract_strided_slice %915 {offsets = [0, 1], sizes = [16, 1], strides = [1, 1]} : vector<16x16xf32> to vector<16x1xf32>
    %cst_333 = arith.constant 0.000000e+00 : f32
    %928 = vector.shape_cast %927 : vector<16x1xf32> to vector<16x1xf32>
    %929 = vector.broadcast %928 : vector<16x1xf32> to vector<16x16xf32>
    %930 = vector.broadcast %cst_333 : f32 to vector<16x16xf32>
    %931 = arith.select %926, %929, %930 : vector<16x16xi1>, vector<16x16xf32>
    %932 = arith.addf %924, %931 : vector<16x16xf32>
    %c2_i32_334 = arith.constant 2 : i32
    %933 = vector.broadcast %c2_i32_334 : i32 to vector<16x16xi32>
    %934 = arith.cmpi eq, %33, %933 : vector<16x16xi32>
    %935 = vector.extract_strided_slice %915 {offsets = [0, 2], sizes = [16, 1], strides = [1, 1]} : vector<16x16xf32> to vector<16x1xf32>
    %cst_335 = arith.constant 0.000000e+00 : f32
    %936 = vector.shape_cast %935 : vector<16x1xf32> to vector<16x1xf32>
    %937 = vector.broadcast %936 : vector<16x1xf32> to vector<16x16xf32>
    %938 = vector.broadcast %cst_335 : f32 to vector<16x16xf32>
    %939 = arith.select %934, %937, %938 : vector<16x16xi1>, vector<16x16xf32>
    %940 = arith.addf %932, %939 : vector<16x16xf32>
    %c3_i32_336 = arith.constant 3 : i32
    %941 = vector.broadcast %c3_i32_336 : i32 to vector<16x16xi32>
    %942 = arith.cmpi eq, %33, %941 : vector<16x16xi32>
    %943 = vector.extract_strided_slice %915 {offsets = [0, 3], sizes = [16, 1], strides = [1, 1]} : vector<16x16xf32> to vector<16x1xf32>
    %cst_337 = arith.constant 0.000000e+00 : f32
    %944 = vector.shape_cast %943 : vector<16x1xf32> to vector<16x1xf32>
    %945 = vector.broadcast %944 : vector<16x1xf32> to vector<16x16xf32>
    %946 = vector.broadcast %cst_337 : f32 to vector<16x16xf32>
    %947 = arith.select %942, %945, %946 : vector<16x16xi1>, vector<16x16xf32>
    %948 = arith.addf %940, %947 : vector<16x16xf32>
    %c4_i32_338 = arith.constant 4 : i32
    %949 = vector.broadcast %c4_i32_338 : i32 to vector<16x16xi32>
    %950 = arith.cmpi eq, %33, %949 : vector<16x16xi32>
    %951 = vector.extract_strided_slice %915 {offsets = [0, 4], sizes = [16, 1], strides = [1, 1]} : vector<16x16xf32> to vector<16x1xf32>
    %cst_339 = arith.constant 0.000000e+00 : f32
    %952 = vector.shape_cast %951 : vector<16x1xf32> to vector<16x1xf32>
    %953 = vector.broadcast %952 : vector<16x1xf32> to vector<16x16xf32>
    %954 = vector.broadcast %cst_339 : f32 to vector<16x16xf32>
    %955 = arith.select %950, %953, %954 : vector<16x16xi1>, vector<16x16xf32>
    %956 = arith.addf %948, %955 : vector<16x16xf32>
    %c5_i32_340 = arith.constant 5 : i32
    %957 = vector.broadcast %c5_i32_340 : i32 to vector<16x16xi32>
    %958 = arith.cmpi eq, %33, %957 : vector<16x16xi32>
    %959 = vector.extract_strided_slice %915 {offsets = [0, 5], sizes = [16, 1], strides = [1, 1]} : vector<16x16xf32> to vector<16x1xf32>
    %cst_341 = arith.constant 0.000000e+00 : f32
    %960 = vector.shape_cast %959 : vector<16x1xf32> to vector<16x1xf32>
    %961 = vector.broadcast %960 : vector<16x1xf32> to vector<16x16xf32>
    %962 = vector.broadcast %cst_341 : f32 to vector<16x16xf32>
    %963 = arith.select %958, %961, %962 : vector<16x16xi1>, vector<16x16xf32>
    %964 = arith.addf %956, %963 : vector<16x16xf32>
    %c6_i32_342 = arith.constant 6 : i32
    %965 = vector.broadcast %c6_i32_342 : i32 to vector<16x16xi32>
    %966 = arith.cmpi eq, %33, %965 : vector<16x16xi32>
    %967 = vector.extract_strided_slice %915 {offsets = [0, 6], sizes = [16, 1], strides = [1, 1]} : vector<16x16xf32> to vector<16x1xf32>
    %cst_343 = arith.constant 0.000000e+00 : f32
    %968 = vector.shape_cast %967 : vector<16x1xf32> to vector<16x1xf32>
    %969 = vector.broadcast %968 : vector<16x1xf32> to vector<16x16xf32>
    %970 = vector.broadcast %cst_343 : f32 to vector<16x16xf32>
    %971 = arith.select %966, %969, %970 : vector<16x16xi1>, vector<16x16xf32>
    %972 = arith.addf %964, %971 : vector<16x16xf32>
    %c7_i32_344 = arith.constant 7 : i32
    %973 = vector.broadcast %c7_i32_344 : i32 to vector<16x16xi32>
    %974 = arith.cmpi eq, %33, %973 : vector<16x16xi32>
    %975 = vector.extract_strided_slice %915 {offsets = [0, 7], sizes = [16, 1], strides = [1, 1]} : vector<16x16xf32> to vector<16x1xf32>
    %cst_345 = arith.constant 0.000000e+00 : f32
    %976 = vector.shape_cast %975 : vector<16x1xf32> to vector<16x1xf32>
    %977 = vector.broadcast %976 : vector<16x1xf32> to vector<16x16xf32>
    %978 = vector.broadcast %cst_345 : f32 to vector<16x16xf32>
    %979 = arith.select %974, %977, %978 : vector<16x16xi1>, vector<16x16xf32>
    %980 = arith.addf %972, %979 : vector<16x16xf32>
    %c8_i32_346 = arith.constant 8 : i32
    %981 = vector.broadcast %c8_i32_346 : i32 to vector<16x16xi32>
    %982 = arith.cmpi eq, %33, %981 : vector<16x16xi32>
    %983 = vector.extract_strided_slice %915 {offsets = [0, 8], sizes = [16, 1], strides = [1, 1]} : vector<16x16xf32> to vector<16x1xf32>
    %cst_347 = arith.constant 0.000000e+00 : f32
    %984 = vector.shape_cast %983 : vector<16x1xf32> to vector<16x1xf32>
    %985 = vector.broadcast %984 : vector<16x1xf32> to vector<16x16xf32>
    %986 = vector.broadcast %cst_347 : f32 to vector<16x16xf32>
    %987 = arith.select %982, %985, %986 : vector<16x16xi1>, vector<16x16xf32>
    %988 = arith.addf %980, %987 : vector<16x16xf32>
    %c9_i32_348 = arith.constant 9 : i32
    %989 = vector.broadcast %c9_i32_348 : i32 to vector<16x16xi32>
    %990 = arith.cmpi eq, %33, %989 : vector<16x16xi32>
    %991 = vector.extract_strided_slice %915 {offsets = [0, 9], sizes = [16, 1], strides = [1, 1]} : vector<16x16xf32> to vector<16x1xf32>
    %cst_349 = arith.constant 0.000000e+00 : f32
    %992 = vector.shape_cast %991 : vector<16x1xf32> to vector<16x1xf32>
    %993 = vector.broadcast %992 : vector<16x1xf32> to vector<16x16xf32>
    %994 = vector.broadcast %cst_349 : f32 to vector<16x16xf32>
    %995 = arith.select %990, %993, %994 : vector<16x16xi1>, vector<16x16xf32>
    %996 = arith.addf %988, %995 : vector<16x16xf32>
    %c10_i32_350 = arith.constant 10 : i32
    %997 = vector.broadcast %c10_i32_350 : i32 to vector<16x16xi32>
    %998 = arith.cmpi eq, %33, %997 : vector<16x16xi32>
    %999 = vector.extract_strided_slice %915 {offsets = [0, 10], sizes = [16, 1], strides = [1, 1]} : vector<16x16xf32> to vector<16x1xf32>
    %cst_351 = arith.constant 0.000000e+00 : f32
    %1000 = vector.shape_cast %999 : vector<16x1xf32> to vector<16x1xf32>
    %1001 = vector.broadcast %1000 : vector<16x1xf32> to vector<16x16xf32>
    %1002 = vector.broadcast %cst_351 : f32 to vector<16x16xf32>
    %1003 = arith.select %998, %1001, %1002 : vector<16x16xi1>, vector<16x16xf32>
    %1004 = arith.addf %996, %1003 : vector<16x16xf32>
    %c11_i32_352 = arith.constant 11 : i32
    %1005 = vector.broadcast %c11_i32_352 : i32 to vector<16x16xi32>
    %1006 = arith.cmpi eq, %33, %1005 : vector<16x16xi32>
    %1007 = vector.extract_strided_slice %915 {offsets = [0, 11], sizes = [16, 1], strides = [1, 1]} : vector<16x16xf32> to vector<16x1xf32>
    %cst_353 = arith.constant 0.000000e+00 : f32
    %1008 = vector.shape_cast %1007 : vector<16x1xf32> to vector<16x1xf32>
    %1009 = vector.broadcast %1008 : vector<16x1xf32> to vector<16x16xf32>
    %1010 = vector.broadcast %cst_353 : f32 to vector<16x16xf32>
    %1011 = arith.select %1006, %1009, %1010 : vector<16x16xi1>, vector<16x16xf32>
    %1012 = arith.addf %1004, %1011 : vector<16x16xf32>
    %c12_i32_354 = arith.constant 12 : i32
    %1013 = vector.broadcast %c12_i32_354 : i32 to vector<16x16xi32>
    %1014 = arith.cmpi eq, %33, %1013 : vector<16x16xi32>
    %1015 = vector.extract_strided_slice %915 {offsets = [0, 12], sizes = [16, 1], strides = [1, 1]} : vector<16x16xf32> to vector<16x1xf32>
    %cst_355 = arith.constant 0.000000e+00 : f32
    %1016 = vector.shape_cast %1015 : vector<16x1xf32> to vector<16x1xf32>
    %1017 = vector.broadcast %1016 : vector<16x1xf32> to vector<16x16xf32>
    %1018 = vector.broadcast %cst_355 : f32 to vector<16x16xf32>
    %1019 = arith.select %1014, %1017, %1018 : vector<16x16xi1>, vector<16x16xf32>
    %1020 = arith.addf %1012, %1019 : vector<16x16xf32>
    %c13_i32_356 = arith.constant 13 : i32
    %1021 = vector.broadcast %c13_i32_356 : i32 to vector<16x16xi32>
    %1022 = arith.cmpi eq, %33, %1021 : vector<16x16xi32>
    %1023 = vector.extract_strided_slice %915 {offsets = [0, 13], sizes = [16, 1], strides = [1, 1]} : vector<16x16xf32> to vector<16x1xf32>
    %cst_357 = arith.constant 0.000000e+00 : f32
    %1024 = vector.shape_cast %1023 : vector<16x1xf32> to vector<16x1xf32>
    %1025 = vector.broadcast %1024 : vector<16x1xf32> to vector<16x16xf32>
    %1026 = vector.broadcast %cst_357 : f32 to vector<16x16xf32>
    %1027 = arith.select %1022, %1025, %1026 : vector<16x16xi1>, vector<16x16xf32>
    %1028 = arith.addf %1020, %1027 : vector<16x16xf32>
    %c14_i32_358 = arith.constant 14 : i32
    %1029 = vector.broadcast %c14_i32_358 : i32 to vector<16x16xi32>
    %1030 = arith.cmpi eq, %33, %1029 : vector<16x16xi32>
    %1031 = vector.extract_strided_slice %915 {offsets = [0, 14], sizes = [16, 1], strides = [1, 1]} : vector<16x16xf32> to vector<16x1xf32>
    %cst_359 = arith.constant 0.000000e+00 : f32
    %1032 = vector.shape_cast %1031 : vector<16x1xf32> to vector<16x1xf32>
    %1033 = vector.broadcast %1032 : vector<16x1xf32> to vector<16x16xf32>
    %1034 = vector.broadcast %cst_359 : f32 to vector<16x16xf32>
    %1035 = arith.select %1030, %1033, %1034 : vector<16x16xi1>, vector<16x16xf32>
    %1036 = arith.addf %1028, %1035 : vector<16x16xf32>
    %1037 = arith.addf %914, %1036 : vector<16x16xf32>
    %cst_360 = arith.constant 2.500000e-01 : f32
    %1038 = vector.broadcast %cst_360 : f32 to vector<16x16xf32>
    %1039 = arith.mulf %1037, %1038 : vector<16x16xf32>
    %1040 = arith.addf %1039, %27 : vector<16x16xf32>
    %cst_361 = arith.constant dense<0xFF800000> : vector<16xf32>
    %1041 = vector.multi_reduction <maximumf>, %1040, %cst_361 [1] : vector<16x16xf32> to vector<16xf32>
    %1042 = vector.shape_cast %1041 : vector<16xf32> to vector<16x1xf32>
    %1043 = vector.broadcast %1042 : vector<16x1xf32> to vector<16x16xf32>
    %1044 = arith.subf %1040, %1043 : vector<16x16xf32>
    %1045 = math.exp %1044 : vector<16x16xf32>
    %cst_362 = arith.constant dense<0.000000e+00> : vector<16xf32>
    %1046 = vector.multi_reduction <add>, %1045, %cst_362 [1] : vector<16x16xf32> to vector<16xf32>
    %1047 = vector.shape_cast %1046 : vector<16xf32> to vector<16x1xf32>
    %1048 = tpu.reciprocal %1047 {approx = true} : vector<16x1xf32> -> vector<16x1xf32>
    %1049 = arith.mulf %1047, %1048 : vector<16x1xf32>
    %cst_363 = arith.constant 2.000000e+00 : f32
    %1050 = vector.broadcast %cst_363 : f32 to vector<16x1xf32>
    %1051 = arith.subf %1050, %1049 : vector<16x1xf32>
    %1052 = arith.mulf %1048, %1051 : vector<16x1xf32>
    %1053 = vector.broadcast %1052 : vector<16x1xf32> to vector<16x16xf32>
    %1054 = arith.mulf %1045, %1053 : vector<16x16xf32>
    %1055 = arith.truncf %1054 : vector<16x16xf32> to vector<16x16xbf16>
    %cst_364 = arith.constant dense<0.000000e+00> : vector<16x16xf32>
    %1056 = tpu.matmul %1055, %913, %cst_364 {dimension_numbers = #tpu.dot_dimension_numbers<[1], [0], [0], [1], [0, 0, 1, 1], [], []>} : vector<16x16xbf16>, vector<16x16xbf16>, vector<16x16xf32> -> vector<16x16xf32>
    %cst_365 = arith.constant 0.000000e+00 : f32
    %1057 = vector.broadcast %cst_365 : f32 to vector<16x16xf32>
    %c0_i32_366 = arith.constant 0 : i32
    %1058 = vector.broadcast %c0_i32_366 : i32 to vector<16x16xi32>
    %1059 = arith.cmpi eq, %33, %1058 : vector<16x16xi32>
    %cst_367 = arith.constant 0.000000e+00 : f32
    %1060 = vector.broadcast %cst_367 : f32 to vector<16x16xf32>
    %1061 = arith.select %1059, %1054, %1060 : vector<16x16xi1>, vector<16x16xf32>
    %cst_368 = arith.constant dense<0.000000e+00> : vector<16xf32>
    %1062 = vector.multi_reduction <add>, %1061, %cst_368 [1] : vector<16x16xf32> to vector<16xf32>
    %1063 = vector.shape_cast %1062 : vector<16xf32> to vector<16x1xf32>
    %c0_i32_369 = arith.constant 0 : i32
    %1064 = vector.broadcast %c0_i32_369 : i32 to vector<1x16xi32>
    %1065 = arith.cmpi eq, %34, %1064 : vector<1x16xi32>
    %cst_370 = arith.constant 1.000000e+00 : f32
    %cst_371 = arith.constant 0.000000e+00 : f32
    %1066 = vector.broadcast %cst_370 : f32 to vector<1x16xf32>
    %1067 = vector.broadcast %cst_371 : f32 to vector<1x16xf32>
    %1068 = arith.select %1065, %1066, %1067 : vector<1x16xi1>, vector<1x16xf32>
    %1069 = vector.broadcast %1063 : vector<16x1xf32> to vector<16x16xf32>
    %1070 = vector.broadcast %1068 : vector<1x16xf32> to vector<16x16xf32>
    %1071 = arith.mulf %1069, %1070 : vector<16x16xf32>
    %1072 = arith.addf %1057, %1071 : vector<16x16xf32>
    %c1_i32_372 = arith.constant 1 : i32
    %1073 = vector.broadcast %c1_i32_372 : i32 to vector<16x16xi32>
    %1074 = arith.cmpi eq, %33, %1073 : vector<16x16xi32>
    %cst_373 = arith.constant 0.000000e+00 : f32
    %1075 = vector.broadcast %cst_373 : f32 to vector<16x16xf32>
    %1076 = arith.select %1074, %1054, %1075 : vector<16x16xi1>, vector<16x16xf32>
    %cst_374 = arith.constant dense<0.000000e+00> : vector<16xf32>
    %1077 = vector.multi_reduction <add>, %1076, %cst_374 [1] : vector<16x16xf32> to vector<16xf32>
    %1078 = vector.shape_cast %1077 : vector<16xf32> to vector<16x1xf32>
    %c1_i32_375 = arith.constant 1 : i32
    %1079 = vector.broadcast %c1_i32_375 : i32 to vector<1x16xi32>
    %1080 = arith.cmpi eq, %34, %1079 : vector<1x16xi32>
    %cst_376 = arith.constant 1.000000e+00 : f32
    %cst_377 = arith.constant 0.000000e+00 : f32
    %1081 = vector.broadcast %cst_376 : f32 to vector<1x16xf32>
    %1082 = vector.broadcast %cst_377 : f32 to vector<1x16xf32>
    %1083 = arith.select %1080, %1081, %1082 : vector<1x16xi1>, vector<1x16xf32>
    %1084 = vector.broadcast %1078 : vector<16x1xf32> to vector<16x16xf32>
    %1085 = vector.broadcast %1083 : vector<1x16xf32> to vector<16x16xf32>
    %1086 = arith.mulf %1084, %1085 : vector<16x16xf32>
    %1087 = arith.addf %1072, %1086 : vector<16x16xf32>
    %c2_i32_378 = arith.constant 2 : i32
    %1088 = vector.broadcast %c2_i32_378 : i32 to vector<16x16xi32>
    %1089 = arith.cmpi eq, %33, %1088 : vector<16x16xi32>
    %cst_379 = arith.constant 0.000000e+00 : f32
    %1090 = vector.broadcast %cst_379 : f32 to vector<16x16xf32>
    %1091 = arith.select %1089, %1054, %1090 : vector<16x16xi1>, vector<16x16xf32>
    %cst_380 = arith.constant dense<0.000000e+00> : vector<16xf32>
    %1092 = vector.multi_reduction <add>, %1091, %cst_380 [1] : vector<16x16xf32> to vector<16xf32>
    %1093 = vector.shape_cast %1092 : vector<16xf32> to vector<16x1xf32>
    %c2_i32_381 = arith.constant 2 : i32
    %1094 = vector.broadcast %c2_i32_381 : i32 to vector<1x16xi32>
    %1095 = arith.cmpi eq, %34, %1094 : vector<1x16xi32>
    %cst_382 = arith.constant 1.000000e+00 : f32
    %cst_383 = arith.constant 0.000000e+00 : f32
    %1096 = vector.broadcast %cst_382 : f32 to vector<1x16xf32>
    %1097 = vector.broadcast %cst_383 : f32 to vector<1x16xf32>
    %1098 = arith.select %1095, %1096, %1097 : vector<1x16xi1>, vector<1x16xf32>
    %1099 = vector.broadcast %1093 : vector<16x1xf32> to vector<16x16xf32>
    %1100 = vector.broadcast %1098 : vector<1x16xf32> to vector<16x16xf32>
    %1101 = arith.mulf %1099, %1100 : vector<16x16xf32>
    %1102 = arith.addf %1087, %1101 : vector<16x16xf32>
    %c3_i32_384 = arith.constant 3 : i32
    %1103 = vector.broadcast %c3_i32_384 : i32 to vector<16x16xi32>
    %1104 = arith.cmpi eq, %33, %1103 : vector<16x16xi32>
    %cst_385 = arith.constant 0.000000e+00 : f32
    %1105 = vector.broadcast %cst_385 : f32 to vector<16x16xf32>
    %1106 = arith.select %1104, %1054, %1105 : vector<16x16xi1>, vector<16x16xf32>
    %cst_386 = arith.constant dense<0.000000e+00> : vector<16xf32>
    %1107 = vector.multi_reduction <add>, %1106, %cst_386 [1] : vector<16x16xf32> to vector<16xf32>
    %1108 = vector.shape_cast %1107 : vector<16xf32> to vector<16x1xf32>
    %c3_i32_387 = arith.constant 3 : i32
    %1109 = vector.broadcast %c3_i32_387 : i32 to vector<1x16xi32>
    %1110 = arith.cmpi eq, %34, %1109 : vector<1x16xi32>
    %cst_388 = arith.constant 1.000000e+00 : f32
    %cst_389 = arith.constant 0.000000e+00 : f32
    %1111 = vector.broadcast %cst_388 : f32 to vector<1x16xf32>
    %1112 = vector.broadcast %cst_389 : f32 to vector<1x16xf32>
    %1113 = arith.select %1110, %1111, %1112 : vector<1x16xi1>, vector<1x16xf32>
    %1114 = vector.broadcast %1108 : vector<16x1xf32> to vector<16x16xf32>
    %1115 = vector.broadcast %1113 : vector<1x16xf32> to vector<16x16xf32>
    %1116 = arith.mulf %1114, %1115 : vector<16x16xf32>
    %1117 = arith.addf %1102, %1116 : vector<16x16xf32>
    %c4_i32_390 = arith.constant 4 : i32
    %1118 = vector.broadcast %c4_i32_390 : i32 to vector<16x16xi32>
    %1119 = arith.cmpi eq, %33, %1118 : vector<16x16xi32>
    %cst_391 = arith.constant 0.000000e+00 : f32
    %1120 = vector.broadcast %cst_391 : f32 to vector<16x16xf32>
    %1121 = arith.select %1119, %1054, %1120 : vector<16x16xi1>, vector<16x16xf32>
    %cst_392 = arith.constant dense<0.000000e+00> : vector<16xf32>
    %1122 = vector.multi_reduction <add>, %1121, %cst_392 [1] : vector<16x16xf32> to vector<16xf32>
    %1123 = vector.shape_cast %1122 : vector<16xf32> to vector<16x1xf32>
    %c4_i32_393 = arith.constant 4 : i32
    %1124 = vector.broadcast %c4_i32_393 : i32 to vector<1x16xi32>
    %1125 = arith.cmpi eq, %34, %1124 : vector<1x16xi32>
    %cst_394 = arith.constant 1.000000e+00 : f32
    %cst_395 = arith.constant 0.000000e+00 : f32
    %1126 = vector.broadcast %cst_394 : f32 to vector<1x16xf32>
    %1127 = vector.broadcast %cst_395 : f32 to vector<1x16xf32>
    %1128 = arith.select %1125, %1126, %1127 : vector<1x16xi1>, vector<1x16xf32>
    %1129 = vector.broadcast %1123 : vector<16x1xf32> to vector<16x16xf32>
    %1130 = vector.broadcast %1128 : vector<1x16xf32> to vector<16x16xf32>
    %1131 = arith.mulf %1129, %1130 : vector<16x16xf32>
    %1132 = arith.addf %1117, %1131 : vector<16x16xf32>
    %c5_i32_396 = arith.constant 5 : i32
    %1133 = vector.broadcast %c5_i32_396 : i32 to vector<16x16xi32>
    %1134 = arith.cmpi eq, %33, %1133 : vector<16x16xi32>
    %cst_397 = arith.constant 0.000000e+00 : f32
    %1135 = vector.broadcast %cst_397 : f32 to vector<16x16xf32>
    %1136 = arith.select %1134, %1054, %1135 : vector<16x16xi1>, vector<16x16xf32>
    %cst_398 = arith.constant dense<0.000000e+00> : vector<16xf32>
    %1137 = vector.multi_reduction <add>, %1136, %cst_398 [1] : vector<16x16xf32> to vector<16xf32>
    %1138 = vector.shape_cast %1137 : vector<16xf32> to vector<16x1xf32>
    %c5_i32_399 = arith.constant 5 : i32
    %1139 = vector.broadcast %c5_i32_399 : i32 to vector<1x16xi32>
    %1140 = arith.cmpi eq, %34, %1139 : vector<1x16xi32>
    %cst_400 = arith.constant 1.000000e+00 : f32
    %cst_401 = arith.constant 0.000000e+00 : f32
    %1141 = vector.broadcast %cst_400 : f32 to vector<1x16xf32>
    %1142 = vector.broadcast %cst_401 : f32 to vector<1x16xf32>
    %1143 = arith.select %1140, %1141, %1142 : vector<1x16xi1>, vector<1x16xf32>
    %1144 = vector.broadcast %1138 : vector<16x1xf32> to vector<16x16xf32>
    %1145 = vector.broadcast %1143 : vector<1x16xf32> to vector<16x16xf32>
    %1146 = arith.mulf %1144, %1145 : vector<16x16xf32>
    %1147 = arith.addf %1132, %1146 : vector<16x16xf32>
    %c6_i32_402 = arith.constant 6 : i32
    %1148 = vector.broadcast %c6_i32_402 : i32 to vector<16x16xi32>
    %1149 = arith.cmpi eq, %33, %1148 : vector<16x16xi32>
    %cst_403 = arith.constant 0.000000e+00 : f32
    %1150 = vector.broadcast %cst_403 : f32 to vector<16x16xf32>
    %1151 = arith.select %1149, %1054, %1150 : vector<16x16xi1>, vector<16x16xf32>
    %cst_404 = arith.constant dense<0.000000e+00> : vector<16xf32>
    %1152 = vector.multi_reduction <add>, %1151, %cst_404 [1] : vector<16x16xf32> to vector<16xf32>
    %1153 = vector.shape_cast %1152 : vector<16xf32> to vector<16x1xf32>
    %c6_i32_405 = arith.constant 6 : i32
    %1154 = vector.broadcast %c6_i32_405 : i32 to vector<1x16xi32>
    %1155 = arith.cmpi eq, %34, %1154 : vector<1x16xi32>
    %cst_406 = arith.constant 1.000000e+00 : f32
    %cst_407 = arith.constant 0.000000e+00 : f32
    %1156 = vector.broadcast %cst_406 : f32 to vector<1x16xf32>
    %1157 = vector.broadcast %cst_407 : f32 to vector<1x16xf32>
    %1158 = arith.select %1155, %1156, %1157 : vector<1x16xi1>, vector<1x16xf32>
    %1159 = vector.broadcast %1153 : vector<16x1xf32> to vector<16x16xf32>
    %1160 = vector.broadcast %1158 : vector<1x16xf32> to vector<16x16xf32>
    %1161 = arith.mulf %1159, %1160 : vector<16x16xf32>
    %1162 = arith.addf %1147, %1161 : vector<16x16xf32>
    %c7_i32_408 = arith.constant 7 : i32
    %1163 = vector.broadcast %c7_i32_408 : i32 to vector<16x16xi32>
    %1164 = arith.cmpi eq, %33, %1163 : vector<16x16xi32>
    %cst_409 = arith.constant 0.000000e+00 : f32
    %1165 = vector.broadcast %cst_409 : f32 to vector<16x16xf32>
    %1166 = arith.select %1164, %1054, %1165 : vector<16x16xi1>, vector<16x16xf32>
    %cst_410 = arith.constant dense<0.000000e+00> : vector<16xf32>
    %1167 = vector.multi_reduction <add>, %1166, %cst_410 [1] : vector<16x16xf32> to vector<16xf32>
    %1168 = vector.shape_cast %1167 : vector<16xf32> to vector<16x1xf32>
    %c7_i32_411 = arith.constant 7 : i32
    %1169 = vector.broadcast %c7_i32_411 : i32 to vector<1x16xi32>
    %1170 = arith.cmpi eq, %34, %1169 : vector<1x16xi32>
    %cst_412 = arith.constant 1.000000e+00 : f32
    %cst_413 = arith.constant 0.000000e+00 : f32
    %1171 = vector.broadcast %cst_412 : f32 to vector<1x16xf32>
    %1172 = vector.broadcast %cst_413 : f32 to vector<1x16xf32>
    %1173 = arith.select %1170, %1171, %1172 : vector<1x16xi1>, vector<1x16xf32>
    %1174 = vector.broadcast %1168 : vector<16x1xf32> to vector<16x16xf32>
    %1175 = vector.broadcast %1173 : vector<1x16xf32> to vector<16x16xf32>
    %1176 = arith.mulf %1174, %1175 : vector<16x16xf32>
    %1177 = arith.addf %1162, %1176 : vector<16x16xf32>
    %c8_i32_414 = arith.constant 8 : i32
    %1178 = vector.broadcast %c8_i32_414 : i32 to vector<16x16xi32>
    %1179 = arith.cmpi eq, %33, %1178 : vector<16x16xi32>
    %cst_415 = arith.constant 0.000000e+00 : f32
    %1180 = vector.broadcast %cst_415 : f32 to vector<16x16xf32>
    %1181 = arith.select %1179, %1054, %1180 : vector<16x16xi1>, vector<16x16xf32>
    %cst_416 = arith.constant dense<0.000000e+00> : vector<16xf32>
    %1182 = vector.multi_reduction <add>, %1181, %cst_416 [1] : vector<16x16xf32> to vector<16xf32>
    %1183 = vector.shape_cast %1182 : vector<16xf32> to vector<16x1xf32>
    %c8_i32_417 = arith.constant 8 : i32
    %1184 = vector.broadcast %c8_i32_417 : i32 to vector<1x16xi32>
    %1185 = arith.cmpi eq, %34, %1184 : vector<1x16xi32>
    %cst_418 = arith.constant 1.000000e+00 : f32
    %cst_419 = arith.constant 0.000000e+00 : f32
    %1186 = vector.broadcast %cst_418 : f32 to vector<1x16xf32>
    %1187 = vector.broadcast %cst_419 : f32 to vector<1x16xf32>
    %1188 = arith.select %1185, %1186, %1187 : vector<1x16xi1>, vector<1x16xf32>
    %1189 = vector.broadcast %1183 : vector<16x1xf32> to vector<16x16xf32>
    %1190 = vector.broadcast %1188 : vector<1x16xf32> to vector<16x16xf32>
    %1191 = arith.mulf %1189, %1190 : vector<16x16xf32>
    %1192 = arith.addf %1177, %1191 : vector<16x16xf32>
    %c9_i32_420 = arith.constant 9 : i32
    %1193 = vector.broadcast %c9_i32_420 : i32 to vector<16x16xi32>
    %1194 = arith.cmpi eq, %33, %1193 : vector<16x16xi32>
    %cst_421 = arith.constant 0.000000e+00 : f32
    %1195 = vector.broadcast %cst_421 : f32 to vector<16x16xf32>
    %1196 = arith.select %1194, %1054, %1195 : vector<16x16xi1>, vector<16x16xf32>
    %cst_422 = arith.constant dense<0.000000e+00> : vector<16xf32>
    %1197 = vector.multi_reduction <add>, %1196, %cst_422 [1] : vector<16x16xf32> to vector<16xf32>
    %1198 = vector.shape_cast %1197 : vector<16xf32> to vector<16x1xf32>
    %c9_i32_423 = arith.constant 9 : i32
    %1199 = vector.broadcast %c9_i32_423 : i32 to vector<1x16xi32>
    %1200 = arith.cmpi eq, %34, %1199 : vector<1x16xi32>
    %cst_424 = arith.constant 1.000000e+00 : f32
    %cst_425 = arith.constant 0.000000e+00 : f32
    %1201 = vector.broadcast %cst_424 : f32 to vector<1x16xf32>
    %1202 = vector.broadcast %cst_425 : f32 to vector<1x16xf32>
    %1203 = arith.select %1200, %1201, %1202 : vector<1x16xi1>, vector<1x16xf32>
    %1204 = vector.broadcast %1198 : vector<16x1xf32> to vector<16x16xf32>
    %1205 = vector.broadcast %1203 : vector<1x16xf32> to vector<16x16xf32>
    %1206 = arith.mulf %1204, %1205 : vector<16x16xf32>
    %1207 = arith.addf %1192, %1206 : vector<16x16xf32>
    %c10_i32_426 = arith.constant 10 : i32
    %1208 = vector.broadcast %c10_i32_426 : i32 to vector<16x16xi32>
    %1209 = arith.cmpi eq, %33, %1208 : vector<16x16xi32>
    %cst_427 = arith.constant 0.000000e+00 : f32
    %1210 = vector.broadcast %cst_427 : f32 to vector<16x16xf32>
    %1211 = arith.select %1209, %1054, %1210 : vector<16x16xi1>, vector<16x16xf32>
    %cst_428 = arith.constant dense<0.000000e+00> : vector<16xf32>
    %1212 = vector.multi_reduction <add>, %1211, %cst_428 [1] : vector<16x16xf32> to vector<16xf32>
    %1213 = vector.shape_cast %1212 : vector<16xf32> to vector<16x1xf32>
    %c10_i32_429 = arith.constant 10 : i32
    %1214 = vector.broadcast %c10_i32_429 : i32 to vector<1x16xi32>
    %1215 = arith.cmpi eq, %34, %1214 : vector<1x16xi32>
    %cst_430 = arith.constant 1.000000e+00 : f32
    %cst_431 = arith.constant 0.000000e+00 : f32
    %1216 = vector.broadcast %cst_430 : f32 to vector<1x16xf32>
    %1217 = vector.broadcast %cst_431 : f32 to vector<1x16xf32>
    %1218 = arith.select %1215, %1216, %1217 : vector<1x16xi1>, vector<1x16xf32>
    %1219 = vector.broadcast %1213 : vector<16x1xf32> to vector<16x16xf32>
    %1220 = vector.broadcast %1218 : vector<1x16xf32> to vector<16x16xf32>
    %1221 = arith.mulf %1219, %1220 : vector<16x16xf32>
    %1222 = arith.addf %1207, %1221 : vector<16x16xf32>
    %c11_i32_432 = arith.constant 11 : i32
    %1223 = vector.broadcast %c11_i32_432 : i32 to vector<16x16xi32>
    %1224 = arith.cmpi eq, %33, %1223 : vector<16x16xi32>
    %cst_433 = arith.constant 0.000000e+00 : f32
    %1225 = vector.broadcast %cst_433 : f32 to vector<16x16xf32>
    %1226 = arith.select %1224, %1054, %1225 : vector<16x16xi1>, vector<16x16xf32>
    %cst_434 = arith.constant dense<0.000000e+00> : vector<16xf32>
    %1227 = vector.multi_reduction <add>, %1226, %cst_434 [1] : vector<16x16xf32> to vector<16xf32>
    %1228 = vector.shape_cast %1227 : vector<16xf32> to vector<16x1xf32>
    %c11_i32_435 = arith.constant 11 : i32
    %1229 = vector.broadcast %c11_i32_435 : i32 to vector<1x16xi32>
    %1230 = arith.cmpi eq, %34, %1229 : vector<1x16xi32>
    %cst_436 = arith.constant 1.000000e+00 : f32
    %cst_437 = arith.constant 0.000000e+00 : f32
    %1231 = vector.broadcast %cst_436 : f32 to vector<1x16xf32>
    %1232 = vector.broadcast %cst_437 : f32 to vector<1x16xf32>
    %1233 = arith.select %1230, %1231, %1232 : vector<1x16xi1>, vector<1x16xf32>
    %1234 = vector.broadcast %1228 : vector<16x1xf32> to vector<16x16xf32>
    %1235 = vector.broadcast %1233 : vector<1x16xf32> to vector<16x16xf32>
    %1236 = arith.mulf %1234, %1235 : vector<16x16xf32>
    %1237 = arith.addf %1222, %1236 : vector<16x16xf32>
    %c12_i32_438 = arith.constant 12 : i32
    %1238 = vector.broadcast %c12_i32_438 : i32 to vector<16x16xi32>
    %1239 = arith.cmpi eq, %33, %1238 : vector<16x16xi32>
    %cst_439 = arith.constant 0.000000e+00 : f32
    %1240 = vector.broadcast %cst_439 : f32 to vector<16x16xf32>
    %1241 = arith.select %1239, %1054, %1240 : vector<16x16xi1>, vector<16x16xf32>
    %cst_440 = arith.constant dense<0.000000e+00> : vector<16xf32>
    %1242 = vector.multi_reduction <add>, %1241, %cst_440 [1] : vector<16x16xf32> to vector<16xf32>
    %1243 = vector.shape_cast %1242 : vector<16xf32> to vector<16x1xf32>
    %c12_i32_441 = arith.constant 12 : i32
    %1244 = vector.broadcast %c12_i32_441 : i32 to vector<1x16xi32>
    %1245 = arith.cmpi eq, %34, %1244 : vector<1x16xi32>
    %cst_442 = arith.constant 1.000000e+00 : f32
    %cst_443 = arith.constant 0.000000e+00 : f32
    %1246 = vector.broadcast %cst_442 : f32 to vector<1x16xf32>
    %1247 = vector.broadcast %cst_443 : f32 to vector<1x16xf32>
    %1248 = arith.select %1245, %1246, %1247 : vector<1x16xi1>, vector<1x16xf32>
    %1249 = vector.broadcast %1243 : vector<16x1xf32> to vector<16x16xf32>
    %1250 = vector.broadcast %1248 : vector<1x16xf32> to vector<16x16xf32>
    %1251 = arith.mulf %1249, %1250 : vector<16x16xf32>
    %1252 = arith.addf %1237, %1251 : vector<16x16xf32>
    %c13_i32_444 = arith.constant 13 : i32
    %1253 = vector.broadcast %c13_i32_444 : i32 to vector<16x16xi32>
    %1254 = arith.cmpi eq, %33, %1253 : vector<16x16xi32>
    %cst_445 = arith.constant 0.000000e+00 : f32
    %1255 = vector.broadcast %cst_445 : f32 to vector<16x16xf32>
    %1256 = arith.select %1254, %1054, %1255 : vector<16x16xi1>, vector<16x16xf32>
    %cst_446 = arith.constant dense<0.000000e+00> : vector<16xf32>
    %1257 = vector.multi_reduction <add>, %1256, %cst_446 [1] : vector<16x16xf32> to vector<16xf32>
    %1258 = vector.shape_cast %1257 : vector<16xf32> to vector<16x1xf32>
    %c13_i32_447 = arith.constant 13 : i32
    %1259 = vector.broadcast %c13_i32_447 : i32 to vector<1x16xi32>
    %1260 = arith.cmpi eq, %34, %1259 : vector<1x16xi32>
    %cst_448 = arith.constant 1.000000e+00 : f32
    %cst_449 = arith.constant 0.000000e+00 : f32
    %1261 = vector.broadcast %cst_448 : f32 to vector<1x16xf32>
    %1262 = vector.broadcast %cst_449 : f32 to vector<1x16xf32>
    %1263 = arith.select %1260, %1261, %1262 : vector<1x16xi1>, vector<1x16xf32>
    %1264 = vector.broadcast %1258 : vector<16x1xf32> to vector<16x16xf32>
    %1265 = vector.broadcast %1263 : vector<1x16xf32> to vector<16x16xf32>
    %1266 = arith.mulf %1264, %1265 : vector<16x16xf32>
    %1267 = arith.addf %1252, %1266 : vector<16x16xf32>
    %c14_i32_450 = arith.constant 14 : i32
    %1268 = vector.broadcast %c14_i32_450 : i32 to vector<16x16xi32>
    %1269 = arith.cmpi eq, %33, %1268 : vector<16x16xi32>
    %cst_451 = arith.constant 0.000000e+00 : f32
    %1270 = vector.broadcast %cst_451 : f32 to vector<16x16xf32>
    %1271 = arith.select %1269, %1054, %1270 : vector<16x16xi1>, vector<16x16xf32>
    %cst_452 = arith.constant dense<0.000000e+00> : vector<16xf32>
    %1272 = vector.multi_reduction <add>, %1271, %cst_452 [1] : vector<16x16xf32> to vector<16xf32>
    %1273 = vector.shape_cast %1272 : vector<16xf32> to vector<16x1xf32>
    %c14_i32_453 = arith.constant 14 : i32
    %1274 = vector.broadcast %c14_i32_453 : i32 to vector<1x16xi32>
    %1275 = arith.cmpi eq, %34, %1274 : vector<1x16xi32>
    %cst_454 = arith.constant 1.000000e+00 : f32
    %cst_455 = arith.constant 0.000000e+00 : f32
    %1276 = vector.broadcast %cst_454 : f32 to vector<1x16xf32>
    %1277 = vector.broadcast %cst_455 : f32 to vector<1x16xf32>
    %1278 = arith.select %1275, %1276, %1277 : vector<1x16xi1>, vector<1x16xf32>
    %1279 = vector.broadcast %1273 : vector<16x1xf32> to vector<16x16xf32>
    %1280 = vector.broadcast %1278 : vector<1x16xf32> to vector<16x16xf32>
    %1281 = arith.mulf %1279, %1280 : vector<16x16xf32>
    %1282 = arith.addf %1267, %1281 : vector<16x16xf32>
    %1283 = arith.truncf %1282 : vector<16x16xf32> to vector<16x16xbf16>
    %cst_456 = arith.constant dense<0.000000e+00> : vector<16x16xf32>
    %1284 = tpu.matmul %1283, %28, %cst_456 {dimension_numbers = #tpu.dot_dimension_numbers<[1], [0], [0], [1], [0, 0, 1, 1], [], []>} : vector<16x16xbf16>, vector<16x16xbf16>, vector<16x16xf32> -> vector<16x16xf32>
    %1285 = arith.addf %1056, %1284 : vector<16x16xf32>
    %1286 = arith.truncf %1285 : vector<16x16xf32> to vector<16x16xbf16>
    %1287 = vector.extract_strided_slice %906 {offsets = [0, 0], sizes = [16, 32], strides = [1, 1]} : vector<32x32xbf16> to vector<16x32xbf16>
    %cst_457 = arith.constant dense<0.000000e+00> : vector<16x32xf32>
    %1288 = tpu.matmul %1286, %1287, %cst_457 {dimension_numbers = #tpu.dot_dimension_numbers<[1], [0], [0], [1], [0, 0, 1, 1], [], []>} : vector<16x16xbf16>, vector<16x32xbf16>, vector<16x32xf32> -> vector<16x32xf32>
    %1289 = arith.addf %907, %1288 : vector<16x32xf32>
    %1290 = vector.extract_strided_slice %904 {offsets = [0, 16], sizes = [16, 16], strides = [1, 1]} : vector<16x96xf32> to vector<16x16xf32>
    %1291 = arith.truncf %1290 : vector<16x16xf32> to vector<16x16xbf16>
    %1292 = vector.extract_strided_slice %904 {offsets = [0, 48], sizes = [16, 16], strides = [1, 1]} : vector<16x96xf32> to vector<16x16xf32>
    %1293 = arith.truncf %1292 : vector<16x16xf32> to vector<16x16xbf16>
    %1294 = vector.extract_strided_slice %904 {offsets = [0, 80], sizes = [16, 16], strides = [1, 1]} : vector<16x96xf32> to vector<16x16xf32>
    %1295 = arith.truncf %1294 : vector<16x16xf32> to vector<16x16xbf16>
    %cst_458 = arith.constant dense<0.000000e+00> : vector<16x16xf32>
    %1296 = tpu.matmul %1291, %1293, %cst_458 {dimension_numbers = #tpu.dot_dimension_numbers<[1], [1], [0], [0], [0, 0, 1, 0], [], []>} : vector<16x16xbf16>, vector<16x16xbf16>, vector<16x16xf32> -> vector<16x16xf32>
    %cst_459 = arith.constant dense<0.000000e+00> : vector<16x16xf32>
    %1297 = tpu.matmul %1291, %28, %cst_459 {dimension_numbers = #tpu.dot_dimension_numbers<[1], [1], [0], [0], [0, 0, 1, 0], [], []>} : vector<16x16xbf16>, vector<16x16xbf16>, vector<16x16xf32> -> vector<16x16xf32>
    %cst_460 = arith.constant 0.000000e+00 : f32
    %1298 = vector.broadcast %cst_460 : f32 to vector<16x16xf32>
    %c0_i32_461 = arith.constant 0 : i32
    %1299 = vector.broadcast %c0_i32_461 : i32 to vector<16x16xi32>
    %1300 = arith.cmpi eq, %33, %1299 : vector<16x16xi32>
    %1301 = vector.extract_strided_slice %1297 {offsets = [0, 0], sizes = [16, 1], strides = [1, 1]} : vector<16x16xf32> to vector<16x1xf32>
    %cst_462 = arith.constant 0.000000e+00 : f32
    %1302 = vector.shape_cast %1301 : vector<16x1xf32> to vector<16x1xf32>
    %1303 = vector.broadcast %1302 : vector<16x1xf32> to vector<16x16xf32>
    %1304 = vector.broadcast %cst_462 : f32 to vector<16x16xf32>
    %1305 = arith.select %1300, %1303, %1304 : vector<16x16xi1>, vector<16x16xf32>
    %1306 = arith.addf %1298, %1305 : vector<16x16xf32>
    %c1_i32_463 = arith.constant 1 : i32
    %1307 = vector.broadcast %c1_i32_463 : i32 to vector<16x16xi32>
    %1308 = arith.cmpi eq, %33, %1307 : vector<16x16xi32>
    %1309 = vector.extract_strided_slice %1297 {offsets = [0, 1], sizes = [16, 1], strides = [1, 1]} : vector<16x16xf32> to vector<16x1xf32>
    %cst_464 = arith.constant 0.000000e+00 : f32
    %1310 = vector.shape_cast %1309 : vector<16x1xf32> to vector<16x1xf32>
    %1311 = vector.broadcast %1310 : vector<16x1xf32> to vector<16x16xf32>
    %1312 = vector.broadcast %cst_464 : f32 to vector<16x16xf32>
    %1313 = arith.select %1308, %1311, %1312 : vector<16x16xi1>, vector<16x16xf32>
    %1314 = arith.addf %1306, %1313 : vector<16x16xf32>
    %c2_i32_465 = arith.constant 2 : i32
    %1315 = vector.broadcast %c2_i32_465 : i32 to vector<16x16xi32>
    %1316 = arith.cmpi eq, %33, %1315 : vector<16x16xi32>
    %1317 = vector.extract_strided_slice %1297 {offsets = [0, 2], sizes = [16, 1], strides = [1, 1]} : vector<16x16xf32> to vector<16x1xf32>
    %cst_466 = arith.constant 0.000000e+00 : f32
    %1318 = vector.shape_cast %1317 : vector<16x1xf32> to vector<16x1xf32>
    %1319 = vector.broadcast %1318 : vector<16x1xf32> to vector<16x16xf32>
    %1320 = vector.broadcast %cst_466 : f32 to vector<16x16xf32>
    %1321 = arith.select %1316, %1319, %1320 : vector<16x16xi1>, vector<16x16xf32>
    %1322 = arith.addf %1314, %1321 : vector<16x16xf32>
    %c3_i32_467 = arith.constant 3 : i32
    %1323 = vector.broadcast %c3_i32_467 : i32 to vector<16x16xi32>
    %1324 = arith.cmpi eq, %33, %1323 : vector<16x16xi32>
    %1325 = vector.extract_strided_slice %1297 {offsets = [0, 3], sizes = [16, 1], strides = [1, 1]} : vector<16x16xf32> to vector<16x1xf32>
    %cst_468 = arith.constant 0.000000e+00 : f32
    %1326 = vector.shape_cast %1325 : vector<16x1xf32> to vector<16x1xf32>
    %1327 = vector.broadcast %1326 : vector<16x1xf32> to vector<16x16xf32>
    %1328 = vector.broadcast %cst_468 : f32 to vector<16x16xf32>
    %1329 = arith.select %1324, %1327, %1328 : vector<16x16xi1>, vector<16x16xf32>
    %1330 = arith.addf %1322, %1329 : vector<16x16xf32>
    %c4_i32_469 = arith.constant 4 : i32
    %1331 = vector.broadcast %c4_i32_469 : i32 to vector<16x16xi32>
    %1332 = arith.cmpi eq, %33, %1331 : vector<16x16xi32>
    %1333 = vector.extract_strided_slice %1297 {offsets = [0, 4], sizes = [16, 1], strides = [1, 1]} : vector<16x16xf32> to vector<16x1xf32>
    %cst_470 = arith.constant 0.000000e+00 : f32
    %1334 = vector.shape_cast %1333 : vector<16x1xf32> to vector<16x1xf32>
    %1335 = vector.broadcast %1334 : vector<16x1xf32> to vector<16x16xf32>
    %1336 = vector.broadcast %cst_470 : f32 to vector<16x16xf32>
    %1337 = arith.select %1332, %1335, %1336 : vector<16x16xi1>, vector<16x16xf32>
    %1338 = arith.addf %1330, %1337 : vector<16x16xf32>
    %c5_i32_471 = arith.constant 5 : i32
    %1339 = vector.broadcast %c5_i32_471 : i32 to vector<16x16xi32>
    %1340 = arith.cmpi eq, %33, %1339 : vector<16x16xi32>
    %1341 = vector.extract_strided_slice %1297 {offsets = [0, 5], sizes = [16, 1], strides = [1, 1]} : vector<16x16xf32> to vector<16x1xf32>
    %cst_472 = arith.constant 0.000000e+00 : f32
    %1342 = vector.shape_cast %1341 : vector<16x1xf32> to vector<16x1xf32>
    %1343 = vector.broadcast %1342 : vector<16x1xf32> to vector<16x16xf32>
    %1344 = vector.broadcast %cst_472 : f32 to vector<16x16xf32>
    %1345 = arith.select %1340, %1343, %1344 : vector<16x16xi1>, vector<16x16xf32>
    %1346 = arith.addf %1338, %1345 : vector<16x16xf32>
    %c6_i32_473 = arith.constant 6 : i32
    %1347 = vector.broadcast %c6_i32_473 : i32 to vector<16x16xi32>
    %1348 = arith.cmpi eq, %33, %1347 : vector<16x16xi32>
    %1349 = vector.extract_strided_slice %1297 {offsets = [0, 6], sizes = [16, 1], strides = [1, 1]} : vector<16x16xf32> to vector<16x1xf32>
    %cst_474 = arith.constant 0.000000e+00 : f32
    %1350 = vector.shape_cast %1349 : vector<16x1xf32> to vector<16x1xf32>
    %1351 = vector.broadcast %1350 : vector<16x1xf32> to vector<16x16xf32>
    %1352 = vector.broadcast %cst_474 : f32 to vector<16x16xf32>
    %1353 = arith.select %1348, %1351, %1352 : vector<16x16xi1>, vector<16x16xf32>
    %1354 = arith.addf %1346, %1353 : vector<16x16xf32>
    %c7_i32_475 = arith.constant 7 : i32
    %1355 = vector.broadcast %c7_i32_475 : i32 to vector<16x16xi32>
    %1356 = arith.cmpi eq, %33, %1355 : vector<16x16xi32>
    %1357 = vector.extract_strided_slice %1297 {offsets = [0, 7], sizes = [16, 1], strides = [1, 1]} : vector<16x16xf32> to vector<16x1xf32>
    %cst_476 = arith.constant 0.000000e+00 : f32
    %1358 = vector.shape_cast %1357 : vector<16x1xf32> to vector<16x1xf32>
    %1359 = vector.broadcast %1358 : vector<16x1xf32> to vector<16x16xf32>
    %1360 = vector.broadcast %cst_476 : f32 to vector<16x16xf32>
    %1361 = arith.select %1356, %1359, %1360 : vector<16x16xi1>, vector<16x16xf32>
    %1362 = arith.addf %1354, %1361 : vector<16x16xf32>
    %c8_i32_477 = arith.constant 8 : i32
    %1363 = vector.broadcast %c8_i32_477 : i32 to vector<16x16xi32>
    %1364 = arith.cmpi eq, %33, %1363 : vector<16x16xi32>
    %1365 = vector.extract_strided_slice %1297 {offsets = [0, 8], sizes = [16, 1], strides = [1, 1]} : vector<16x16xf32> to vector<16x1xf32>
    %cst_478 = arith.constant 0.000000e+00 : f32
    %1366 = vector.shape_cast %1365 : vector<16x1xf32> to vector<16x1xf32>
    %1367 = vector.broadcast %1366 : vector<16x1xf32> to vector<16x16xf32>
    %1368 = vector.broadcast %cst_478 : f32 to vector<16x16xf32>
    %1369 = arith.select %1364, %1367, %1368 : vector<16x16xi1>, vector<16x16xf32>
    %1370 = arith.addf %1362, %1369 : vector<16x16xf32>
    %c9_i32_479 = arith.constant 9 : i32
    %1371 = vector.broadcast %c9_i32_479 : i32 to vector<16x16xi32>
    %1372 = arith.cmpi eq, %33, %1371 : vector<16x16xi32>
    %1373 = vector.extract_strided_slice %1297 {offsets = [0, 9], sizes = [16, 1], strides = [1, 1]} : vector<16x16xf32> to vector<16x1xf32>
    %cst_480 = arith.constant 0.000000e+00 : f32
    %1374 = vector.shape_cast %1373 : vector<16x1xf32> to vector<16x1xf32>
    %1375 = vector.broadcast %1374 : vector<16x1xf32> to vector<16x16xf32>
    %1376 = vector.broadcast %cst_480 : f32 to vector<16x16xf32>
    %1377 = arith.select %1372, %1375, %1376 : vector<16x16xi1>, vector<16x16xf32>
    %1378 = arith.addf %1370, %1377 : vector<16x16xf32>
    %c10_i32_481 = arith.constant 10 : i32
    %1379 = vector.broadcast %c10_i32_481 : i32 to vector<16x16xi32>
    %1380 = arith.cmpi eq, %33, %1379 : vector<16x16xi32>
    %1381 = vector.extract_strided_slice %1297 {offsets = [0, 10], sizes = [16, 1], strides = [1, 1]} : vector<16x16xf32> to vector<16x1xf32>
    %cst_482 = arith.constant 0.000000e+00 : f32
    %1382 = vector.shape_cast %1381 : vector<16x1xf32> to vector<16x1xf32>
    %1383 = vector.broadcast %1382 : vector<16x1xf32> to vector<16x16xf32>
    %1384 = vector.broadcast %cst_482 : f32 to vector<16x16xf32>
    %1385 = arith.select %1380, %1383, %1384 : vector<16x16xi1>, vector<16x16xf32>
    %1386 = arith.addf %1378, %1385 : vector<16x16xf32>
    %c11_i32_483 = arith.constant 11 : i32
    %1387 = vector.broadcast %c11_i32_483 : i32 to vector<16x16xi32>
    %1388 = arith.cmpi eq, %33, %1387 : vector<16x16xi32>
    %1389 = vector.extract_strided_slice %1297 {offsets = [0, 11], sizes = [16, 1], strides = [1, 1]} : vector<16x16xf32> to vector<16x1xf32>
    %cst_484 = arith.constant 0.000000e+00 : f32
    %1390 = vector.shape_cast %1389 : vector<16x1xf32> to vector<16x1xf32>
    %1391 = vector.broadcast %1390 : vector<16x1xf32> to vector<16x16xf32>
    %1392 = vector.broadcast %cst_484 : f32 to vector<16x16xf32>
    %1393 = arith.select %1388, %1391, %1392 : vector<16x16xi1>, vector<16x16xf32>
    %1394 = arith.addf %1386, %1393 : vector<16x16xf32>
    %c12_i32_485 = arith.constant 12 : i32
    %1395 = vector.broadcast %c12_i32_485 : i32 to vector<16x16xi32>
    %1396 = arith.cmpi eq, %33, %1395 : vector<16x16xi32>
    %1397 = vector.extract_strided_slice %1297 {offsets = [0, 12], sizes = [16, 1], strides = [1, 1]} : vector<16x16xf32> to vector<16x1xf32>
    %cst_486 = arith.constant 0.000000e+00 : f32
    %1398 = vector.shape_cast %1397 : vector<16x1xf32> to vector<16x1xf32>
    %1399 = vector.broadcast %1398 : vector<16x1xf32> to vector<16x16xf32>
    %1400 = vector.broadcast %cst_486 : f32 to vector<16x16xf32>
    %1401 = arith.select %1396, %1399, %1400 : vector<16x16xi1>, vector<16x16xf32>
    %1402 = arith.addf %1394, %1401 : vector<16x16xf32>
    %c13_i32_487 = arith.constant 13 : i32
    %1403 = vector.broadcast %c13_i32_487 : i32 to vector<16x16xi32>
    %1404 = arith.cmpi eq, %33, %1403 : vector<16x16xi32>
    %1405 = vector.extract_strided_slice %1297 {offsets = [0, 13], sizes = [16, 1], strides = [1, 1]} : vector<16x16xf32> to vector<16x1xf32>
    %cst_488 = arith.constant 0.000000e+00 : f32
    %1406 = vector.shape_cast %1405 : vector<16x1xf32> to vector<16x1xf32>
    %1407 = vector.broadcast %1406 : vector<16x1xf32> to vector<16x16xf32>
    %1408 = vector.broadcast %cst_488 : f32 to vector<16x16xf32>
    %1409 = arith.select %1404, %1407, %1408 : vector<16x16xi1>, vector<16x16xf32>
    %1410 = arith.addf %1402, %1409 : vector<16x16xf32>
    %c14_i32_489 = arith.constant 14 : i32
    %1411 = vector.broadcast %c14_i32_489 : i32 to vector<16x16xi32>
    %1412 = arith.cmpi eq, %33, %1411 : vector<16x16xi32>
    %1413 = vector.extract_strided_slice %1297 {offsets = [0, 14], sizes = [16, 1], strides = [1, 1]} : vector<16x16xf32> to vector<16x1xf32>
    %cst_490 = arith.constant 0.000000e+00 : f32
    %1414 = vector.shape_cast %1413 : vector<16x1xf32> to vector<16x1xf32>
    %1415 = vector.broadcast %1414 : vector<16x1xf32> to vector<16x16xf32>
    %1416 = vector.broadcast %cst_490 : f32 to vector<16x16xf32>
    %1417 = arith.select %1412, %1415, %1416 : vector<16x16xi1>, vector<16x16xf32>
    %1418 = arith.addf %1410, %1417 : vector<16x16xf32>
    %1419 = arith.addf %1296, %1418 : vector<16x16xf32>
    %cst_491 = arith.constant 2.500000e-01 : f32
    %1420 = vector.broadcast %cst_491 : f32 to vector<16x16xf32>
    %1421 = arith.mulf %1419, %1420 : vector<16x16xf32>
    %1422 = arith.addf %1421, %27 : vector<16x16xf32>
    %cst_492 = arith.constant dense<0xFF800000> : vector<16xf32>
    %1423 = vector.multi_reduction <maximumf>, %1422, %cst_492 [1] : vector<16x16xf32> to vector<16xf32>
    %1424 = vector.shape_cast %1423 : vector<16xf32> to vector<16x1xf32>
    %1425 = vector.broadcast %1424 : vector<16x1xf32> to vector<16x16xf32>
    %1426 = arith.subf %1422, %1425 : vector<16x16xf32>
    %1427 = math.exp %1426 : vector<16x16xf32>
    %cst_493 = arith.constant dense<0.000000e+00> : vector<16xf32>
    %1428 = vector.multi_reduction <add>, %1427, %cst_493 [1] : vector<16x16xf32> to vector<16xf32>
    %1429 = vector.shape_cast %1428 : vector<16xf32> to vector<16x1xf32>
    %1430 = tpu.reciprocal %1429 {approx = true} : vector<16x1xf32> -> vector<16x1xf32>
    %1431 = arith.mulf %1429, %1430 : vector<16x1xf32>
    %cst_494 = arith.constant 2.000000e+00 : f32
    %1432 = vector.broadcast %cst_494 : f32 to vector<16x1xf32>
    %1433 = arith.subf %1432, %1431 : vector<16x1xf32>
    %1434 = arith.mulf %1430, %1433 : vector<16x1xf32>
    %1435 = vector.broadcast %1434 : vector<16x1xf32> to vector<16x16xf32>
    %1436 = arith.mulf %1427, %1435 : vector<16x16xf32>
    %1437 = arith.truncf %1436 : vector<16x16xf32> to vector<16x16xbf16>
    %cst_495 = arith.constant dense<0.000000e+00> : vector<16x16xf32>
    %1438 = tpu.matmul %1437, %1295, %cst_495 {dimension_numbers = #tpu.dot_dimension_numbers<[1], [0], [0], [1], [0, 0, 1, 1], [], []>} : vector<16x16xbf16>, vector<16x16xbf16>, vector<16x16xf32> -> vector<16x16xf32>
    %cst_496 = arith.constant 0.000000e+00 : f32
    %1439 = vector.broadcast %cst_496 : f32 to vector<16x16xf32>
    %c0_i32_497 = arith.constant 0 : i32
    %1440 = vector.broadcast %c0_i32_497 : i32 to vector<16x16xi32>
    %1441 = arith.cmpi eq, %33, %1440 : vector<16x16xi32>
    %cst_498 = arith.constant 0.000000e+00 : f32
    %1442 = vector.broadcast %cst_498 : f32 to vector<16x16xf32>
    %1443 = arith.select %1441, %1436, %1442 : vector<16x16xi1>, vector<16x16xf32>
    %cst_499 = arith.constant dense<0.000000e+00> : vector<16xf32>
    %1444 = vector.multi_reduction <add>, %1443, %cst_499 [1] : vector<16x16xf32> to vector<16xf32>
    %1445 = vector.shape_cast %1444 : vector<16xf32> to vector<16x1xf32>
    %c0_i32_500 = arith.constant 0 : i32
    %1446 = vector.broadcast %c0_i32_500 : i32 to vector<1x16xi32>
    %1447 = arith.cmpi eq, %34, %1446 : vector<1x16xi32>
    %cst_501 = arith.constant 1.000000e+00 : f32
    %cst_502 = arith.constant 0.000000e+00 : f32
    %1448 = vector.broadcast %cst_501 : f32 to vector<1x16xf32>
    %1449 = vector.broadcast %cst_502 : f32 to vector<1x16xf32>
    %1450 = arith.select %1447, %1448, %1449 : vector<1x16xi1>, vector<1x16xf32>
    %1451 = vector.broadcast %1445 : vector<16x1xf32> to vector<16x16xf32>
    %1452 = vector.broadcast %1450 : vector<1x16xf32> to vector<16x16xf32>
    %1453 = arith.mulf %1451, %1452 : vector<16x16xf32>
    %1454 = arith.addf %1439, %1453 : vector<16x16xf32>
    %c1_i32_503 = arith.constant 1 : i32
    %1455 = vector.broadcast %c1_i32_503 : i32 to vector<16x16xi32>
    %1456 = arith.cmpi eq, %33, %1455 : vector<16x16xi32>
    %cst_504 = arith.constant 0.000000e+00 : f32
    %1457 = vector.broadcast %cst_504 : f32 to vector<16x16xf32>
    %1458 = arith.select %1456, %1436, %1457 : vector<16x16xi1>, vector<16x16xf32>
    %cst_505 = arith.constant dense<0.000000e+00> : vector<16xf32>
    %1459 = vector.multi_reduction <add>, %1458, %cst_505 [1] : vector<16x16xf32> to vector<16xf32>
    %1460 = vector.shape_cast %1459 : vector<16xf32> to vector<16x1xf32>
    %c1_i32_506 = arith.constant 1 : i32
    %1461 = vector.broadcast %c1_i32_506 : i32 to vector<1x16xi32>
    %1462 = arith.cmpi eq, %34, %1461 : vector<1x16xi32>
    %cst_507 = arith.constant 1.000000e+00 : f32
    %cst_508 = arith.constant 0.000000e+00 : f32
    %1463 = vector.broadcast %cst_507 : f32 to vector<1x16xf32>
    %1464 = vector.broadcast %cst_508 : f32 to vector<1x16xf32>
    %1465 = arith.select %1462, %1463, %1464 : vector<1x16xi1>, vector<1x16xf32>
    %1466 = vector.broadcast %1460 : vector<16x1xf32> to vector<16x16xf32>
    %1467 = vector.broadcast %1465 : vector<1x16xf32> to vector<16x16xf32>
    %1468 = arith.mulf %1466, %1467 : vector<16x16xf32>
    %1469 = arith.addf %1454, %1468 : vector<16x16xf32>
    %c2_i32_509 = arith.constant 2 : i32
    %1470 = vector.broadcast %c2_i32_509 : i32 to vector<16x16xi32>
    %1471 = arith.cmpi eq, %33, %1470 : vector<16x16xi32>
    %cst_510 = arith.constant 0.000000e+00 : f32
    %1472 = vector.broadcast %cst_510 : f32 to vector<16x16xf32>
    %1473 = arith.select %1471, %1436, %1472 : vector<16x16xi1>, vector<16x16xf32>
    %cst_511 = arith.constant dense<0.000000e+00> : vector<16xf32>
    %1474 = vector.multi_reduction <add>, %1473, %cst_511 [1] : vector<16x16xf32> to vector<16xf32>
    %1475 = vector.shape_cast %1474 : vector<16xf32> to vector<16x1xf32>
    %c2_i32_512 = arith.constant 2 : i32
    %1476 = vector.broadcast %c2_i32_512 : i32 to vector<1x16xi32>
    %1477 = arith.cmpi eq, %34, %1476 : vector<1x16xi32>
    %cst_513 = arith.constant 1.000000e+00 : f32
    %cst_514 = arith.constant 0.000000e+00 : f32
    %1478 = vector.broadcast %cst_513 : f32 to vector<1x16xf32>
    %1479 = vector.broadcast %cst_514 : f32 to vector<1x16xf32>
    %1480 = arith.select %1477, %1478, %1479 : vector<1x16xi1>, vector<1x16xf32>
    %1481 = vector.broadcast %1475 : vector<16x1xf32> to vector<16x16xf32>
    %1482 = vector.broadcast %1480 : vector<1x16xf32> to vector<16x16xf32>
    %1483 = arith.mulf %1481, %1482 : vector<16x16xf32>
    %1484 = arith.addf %1469, %1483 : vector<16x16xf32>
    %c3_i32_515 = arith.constant 3 : i32
    %1485 = vector.broadcast %c3_i32_515 : i32 to vector<16x16xi32>
    %1486 = arith.cmpi eq, %33, %1485 : vector<16x16xi32>
    %cst_516 = arith.constant 0.000000e+00 : f32
    %1487 = vector.broadcast %cst_516 : f32 to vector<16x16xf32>
    %1488 = arith.select %1486, %1436, %1487 : vector<16x16xi1>, vector<16x16xf32>
    %cst_517 = arith.constant dense<0.000000e+00> : vector<16xf32>
    %1489 = vector.multi_reduction <add>, %1488, %cst_517 [1] : vector<16x16xf32> to vector<16xf32>
    %1490 = vector.shape_cast %1489 : vector<16xf32> to vector<16x1xf32>
    %c3_i32_518 = arith.constant 3 : i32
    %1491 = vector.broadcast %c3_i32_518 : i32 to vector<1x16xi32>
    %1492 = arith.cmpi eq, %34, %1491 : vector<1x16xi32>
    %cst_519 = arith.constant 1.000000e+00 : f32
    %cst_520 = arith.constant 0.000000e+00 : f32
    %1493 = vector.broadcast %cst_519 : f32 to vector<1x16xf32>
    %1494 = vector.broadcast %cst_520 : f32 to vector<1x16xf32>
    %1495 = arith.select %1492, %1493, %1494 : vector<1x16xi1>, vector<1x16xf32>
    %1496 = vector.broadcast %1490 : vector<16x1xf32> to vector<16x16xf32>
    %1497 = vector.broadcast %1495 : vector<1x16xf32> to vector<16x16xf32>
    %1498 = arith.mulf %1496, %1497 : vector<16x16xf32>
    %1499 = arith.addf %1484, %1498 : vector<16x16xf32>
    %c4_i32_521 = arith.constant 4 : i32
    %1500 = vector.broadcast %c4_i32_521 : i32 to vector<16x16xi32>
    %1501 = arith.cmpi eq, %33, %1500 : vector<16x16xi32>
    %cst_522 = arith.constant 0.000000e+00 : f32
    %1502 = vector.broadcast %cst_522 : f32 to vector<16x16xf32>
    %1503 = arith.select %1501, %1436, %1502 : vector<16x16xi1>, vector<16x16xf32>
    %cst_523 = arith.constant dense<0.000000e+00> : vector<16xf32>
    %1504 = vector.multi_reduction <add>, %1503, %cst_523 [1] : vector<16x16xf32> to vector<16xf32>
    %1505 = vector.shape_cast %1504 : vector<16xf32> to vector<16x1xf32>
    %c4_i32_524 = arith.constant 4 : i32
    %1506 = vector.broadcast %c4_i32_524 : i32 to vector<1x16xi32>
    %1507 = arith.cmpi eq, %34, %1506 : vector<1x16xi32>
    %cst_525 = arith.constant 1.000000e+00 : f32
    %cst_526 = arith.constant 0.000000e+00 : f32
    %1508 = vector.broadcast %cst_525 : f32 to vector<1x16xf32>
    %1509 = vector.broadcast %cst_526 : f32 to vector<1x16xf32>
    %1510 = arith.select %1507, %1508, %1509 : vector<1x16xi1>, vector<1x16xf32>
    %1511 = vector.broadcast %1505 : vector<16x1xf32> to vector<16x16xf32>
    %1512 = vector.broadcast %1510 : vector<1x16xf32> to vector<16x16xf32>
    %1513 = arith.mulf %1511, %1512 : vector<16x16xf32>
    %1514 = arith.addf %1499, %1513 : vector<16x16xf32>
    %c5_i32_527 = arith.constant 5 : i32
    %1515 = vector.broadcast %c5_i32_527 : i32 to vector<16x16xi32>
    %1516 = arith.cmpi eq, %33, %1515 : vector<16x16xi32>
    %cst_528 = arith.constant 0.000000e+00 : f32
    %1517 = vector.broadcast %cst_528 : f32 to vector<16x16xf32>
    %1518 = arith.select %1516, %1436, %1517 : vector<16x16xi1>, vector<16x16xf32>
    %cst_529 = arith.constant dense<0.000000e+00> : vector<16xf32>
    %1519 = vector.multi_reduction <add>, %1518, %cst_529 [1] : vector<16x16xf32> to vector<16xf32>
    %1520 = vector.shape_cast %1519 : vector<16xf32> to vector<16x1xf32>
    %c5_i32_530 = arith.constant 5 : i32
    %1521 = vector.broadcast %c5_i32_530 : i32 to vector<1x16xi32>
    %1522 = arith.cmpi eq, %34, %1521 : vector<1x16xi32>
    %cst_531 = arith.constant 1.000000e+00 : f32
    %cst_532 = arith.constant 0.000000e+00 : f32
    %1523 = vector.broadcast %cst_531 : f32 to vector<1x16xf32>
    %1524 = vector.broadcast %cst_532 : f32 to vector<1x16xf32>
    %1525 = arith.select %1522, %1523, %1524 : vector<1x16xi1>, vector<1x16xf32>
    %1526 = vector.broadcast %1520 : vector<16x1xf32> to vector<16x16xf32>
    %1527 = vector.broadcast %1525 : vector<1x16xf32> to vector<16x16xf32>
    %1528 = arith.mulf %1526, %1527 : vector<16x16xf32>
    %1529 = arith.addf %1514, %1528 : vector<16x16xf32>
    %c6_i32_533 = arith.constant 6 : i32
    %1530 = vector.broadcast %c6_i32_533 : i32 to vector<16x16xi32>
    %1531 = arith.cmpi eq, %33, %1530 : vector<16x16xi32>
    %cst_534 = arith.constant 0.000000e+00 : f32
    %1532 = vector.broadcast %cst_534 : f32 to vector<16x16xf32>
    %1533 = arith.select %1531, %1436, %1532 : vector<16x16xi1>, vector<16x16xf32>
    %cst_535 = arith.constant dense<0.000000e+00> : vector<16xf32>
    %1534 = vector.multi_reduction <add>, %1533, %cst_535 [1] : vector<16x16xf32> to vector<16xf32>
    %1535 = vector.shape_cast %1534 : vector<16xf32> to vector<16x1xf32>
    %c6_i32_536 = arith.constant 6 : i32
    %1536 = vector.broadcast %c6_i32_536 : i32 to vector<1x16xi32>
    %1537 = arith.cmpi eq, %34, %1536 : vector<1x16xi32>
    %cst_537 = arith.constant 1.000000e+00 : f32
    %cst_538 = arith.constant 0.000000e+00 : f32
    %1538 = vector.broadcast %cst_537 : f32 to vector<1x16xf32>
    %1539 = vector.broadcast %cst_538 : f32 to vector<1x16xf32>
    %1540 = arith.select %1537, %1538, %1539 : vector<1x16xi1>, vector<1x16xf32>
    %1541 = vector.broadcast %1535 : vector<16x1xf32> to vector<16x16xf32>
    %1542 = vector.broadcast %1540 : vector<1x16xf32> to vector<16x16xf32>
    %1543 = arith.mulf %1541, %1542 : vector<16x16xf32>
    %1544 = arith.addf %1529, %1543 : vector<16x16xf32>
    %c7_i32_539 = arith.constant 7 : i32
    %1545 = vector.broadcast %c7_i32_539 : i32 to vector<16x16xi32>
    %1546 = arith.cmpi eq, %33, %1545 : vector<16x16xi32>
    %cst_540 = arith.constant 0.000000e+00 : f32
    %1547 = vector.broadcast %cst_540 : f32 to vector<16x16xf32>
    %1548 = arith.select %1546, %1436, %1547 : vector<16x16xi1>, vector<16x16xf32>
    %cst_541 = arith.constant dense<0.000000e+00> : vector<16xf32>
    %1549 = vector.multi_reduction <add>, %1548, %cst_541 [1] : vector<16x16xf32> to vector<16xf32>
    %1550 = vector.shape_cast %1549 : vector<16xf32> to vector<16x1xf32>
    %c7_i32_542 = arith.constant 7 : i32
    %1551 = vector.broadcast %c7_i32_542 : i32 to vector<1x16xi32>
    %1552 = arith.cmpi eq, %34, %1551 : vector<1x16xi32>
    %cst_543 = arith.constant 1.000000e+00 : f32
    %cst_544 = arith.constant 0.000000e+00 : f32
    %1553 = vector.broadcast %cst_543 : f32 to vector<1x16xf32>
    %1554 = vector.broadcast %cst_544 : f32 to vector<1x16xf32>
    %1555 = arith.select %1552, %1553, %1554 : vector<1x16xi1>, vector<1x16xf32>
    %1556 = vector.broadcast %1550 : vector<16x1xf32> to vector<16x16xf32>
    %1557 = vector.broadcast %1555 : vector<1x16xf32> to vector<16x16xf32>
    %1558 = arith.mulf %1556, %1557 : vector<16x16xf32>
    %1559 = arith.addf %1544, %1558 : vector<16x16xf32>
    %c8_i32_545 = arith.constant 8 : i32
    %1560 = vector.broadcast %c8_i32_545 : i32 to vector<16x16xi32>
    %1561 = arith.cmpi eq, %33, %1560 : vector<16x16xi32>
    %cst_546 = arith.constant 0.000000e+00 : f32
    %1562 = vector.broadcast %cst_546 : f32 to vector<16x16xf32>
    %1563 = arith.select %1561, %1436, %1562 : vector<16x16xi1>, vector<16x16xf32>
    %cst_547 = arith.constant dense<0.000000e+00> : vector<16xf32>
    %1564 = vector.multi_reduction <add>, %1563, %cst_547 [1] : vector<16x16xf32> to vector<16xf32>
    %1565 = vector.shape_cast %1564 : vector<16xf32> to vector<16x1xf32>
    %c8_i32_548 = arith.constant 8 : i32
    %1566 = vector.broadcast %c8_i32_548 : i32 to vector<1x16xi32>
    %1567 = arith.cmpi eq, %34, %1566 : vector<1x16xi32>
    %cst_549 = arith.constant 1.000000e+00 : f32
    %cst_550 = arith.constant 0.000000e+00 : f32
    %1568 = vector.broadcast %cst_549 : f32 to vector<1x16xf32>
    %1569 = vector.broadcast %cst_550 : f32 to vector<1x16xf32>
    %1570 = arith.select %1567, %1568, %1569 : vector<1x16xi1>, vector<1x16xf32>
    %1571 = vector.broadcast %1565 : vector<16x1xf32> to vector<16x16xf32>
    %1572 = vector.broadcast %1570 : vector<1x16xf32> to vector<16x16xf32>
    %1573 = arith.mulf %1571, %1572 : vector<16x16xf32>
    %1574 = arith.addf %1559, %1573 : vector<16x16xf32>
    %c9_i32_551 = arith.constant 9 : i32
    %1575 = vector.broadcast %c9_i32_551 : i32 to vector<16x16xi32>
    %1576 = arith.cmpi eq, %33, %1575 : vector<16x16xi32>
    %cst_552 = arith.constant 0.000000e+00 : f32
    %1577 = vector.broadcast %cst_552 : f32 to vector<16x16xf32>
    %1578 = arith.select %1576, %1436, %1577 : vector<16x16xi1>, vector<16x16xf32>
    %cst_553 = arith.constant dense<0.000000e+00> : vector<16xf32>
    %1579 = vector.multi_reduction <add>, %1578, %cst_553 [1] : vector<16x16xf32> to vector<16xf32>
    %1580 = vector.shape_cast %1579 : vector<16xf32> to vector<16x1xf32>
    %c9_i32_554 = arith.constant 9 : i32
    %1581 = vector.broadcast %c9_i32_554 : i32 to vector<1x16xi32>
    %1582 = arith.cmpi eq, %34, %1581 : vector<1x16xi32>
    %cst_555 = arith.constant 1.000000e+00 : f32
    %cst_556 = arith.constant 0.000000e+00 : f32
    %1583 = vector.broadcast %cst_555 : f32 to vector<1x16xf32>
    %1584 = vector.broadcast %cst_556 : f32 to vector<1x16xf32>
    %1585 = arith.select %1582, %1583, %1584 : vector<1x16xi1>, vector<1x16xf32>
    %1586 = vector.broadcast %1580 : vector<16x1xf32> to vector<16x16xf32>
    %1587 = vector.broadcast %1585 : vector<1x16xf32> to vector<16x16xf32>
    %1588 = arith.mulf %1586, %1587 : vector<16x16xf32>
    %1589 = arith.addf %1574, %1588 : vector<16x16xf32>
    %c10_i32_557 = arith.constant 10 : i32
    %1590 = vector.broadcast %c10_i32_557 : i32 to vector<16x16xi32>
    %1591 = arith.cmpi eq, %33, %1590 : vector<16x16xi32>
    %cst_558 = arith.constant 0.000000e+00 : f32
    %1592 = vector.broadcast %cst_558 : f32 to vector<16x16xf32>
    %1593 = arith.select %1591, %1436, %1592 : vector<16x16xi1>, vector<16x16xf32>
    %cst_559 = arith.constant dense<0.000000e+00> : vector<16xf32>
    %1594 = vector.multi_reduction <add>, %1593, %cst_559 [1] : vector<16x16xf32> to vector<16xf32>
    %1595 = vector.shape_cast %1594 : vector<16xf32> to vector<16x1xf32>
    %c10_i32_560 = arith.constant 10 : i32
    %1596 = vector.broadcast %c10_i32_560 : i32 to vector<1x16xi32>
    %1597 = arith.cmpi eq, %34, %1596 : vector<1x16xi32>
    %cst_561 = arith.constant 1.000000e+00 : f32
    %cst_562 = arith.constant 0.000000e+00 : f32
    %1598 = vector.broadcast %cst_561 : f32 to vector<1x16xf32>
    %1599 = vector.broadcast %cst_562 : f32 to vector<1x16xf32>
    %1600 = arith.select %1597, %1598, %1599 : vector<1x16xi1>, vector<1x16xf32>
    %1601 = vector.broadcast %1595 : vector<16x1xf32> to vector<16x16xf32>
    %1602 = vector.broadcast %1600 : vector<1x16xf32> to vector<16x16xf32>
    %1603 = arith.mulf %1601, %1602 : vector<16x16xf32>
    %1604 = arith.addf %1589, %1603 : vector<16x16xf32>
    %c11_i32_563 = arith.constant 11 : i32
    %1605 = vector.broadcast %c11_i32_563 : i32 to vector<16x16xi32>
    %1606 = arith.cmpi eq, %33, %1605 : vector<16x16xi32>
    %cst_564 = arith.constant 0.000000e+00 : f32
    %1607 = vector.broadcast %cst_564 : f32 to vector<16x16xf32>
    %1608 = arith.select %1606, %1436, %1607 : vector<16x16xi1>, vector<16x16xf32>
    %cst_565 = arith.constant dense<0.000000e+00> : vector<16xf32>
    %1609 = vector.multi_reduction <add>, %1608, %cst_565 [1] : vector<16x16xf32> to vector<16xf32>
    %1610 = vector.shape_cast %1609 : vector<16xf32> to vector<16x1xf32>
    %c11_i32_566 = arith.constant 11 : i32
    %1611 = vector.broadcast %c11_i32_566 : i32 to vector<1x16xi32>
    %1612 = arith.cmpi eq, %34, %1611 : vector<1x16xi32>
    %cst_567 = arith.constant 1.000000e+00 : f32
    %cst_568 = arith.constant 0.000000e+00 : f32
    %1613 = vector.broadcast %cst_567 : f32 to vector<1x16xf32>
    %1614 = vector.broadcast %cst_568 : f32 to vector<1x16xf32>
    %1615 = arith.select %1612, %1613, %1614 : vector<1x16xi1>, vector<1x16xf32>
    %1616 = vector.broadcast %1610 : vector<16x1xf32> to vector<16x16xf32>
    %1617 = vector.broadcast %1615 : vector<1x16xf32> to vector<16x16xf32>
    %1618 = arith.mulf %1616, %1617 : vector<16x16xf32>
    %1619 = arith.addf %1604, %1618 : vector<16x16xf32>
    %c12_i32_569 = arith.constant 12 : i32
    %1620 = vector.broadcast %c12_i32_569 : i32 to vector<16x16xi32>
    %1621 = arith.cmpi eq, %33, %1620 : vector<16x16xi32>
    %cst_570 = arith.constant 0.000000e+00 : f32
    %1622 = vector.broadcast %cst_570 : f32 to vector<16x16xf32>
    %1623 = arith.select %1621, %1436, %1622 : vector<16x16xi1>, vector<16x16xf32>
    %cst_571 = arith.constant dense<0.000000e+00> : vector<16xf32>
    %1624 = vector.multi_reduction <add>, %1623, %cst_571 [1] : vector<16x16xf32> to vector<16xf32>
    %1625 = vector.shape_cast %1624 : vector<16xf32> to vector<16x1xf32>
    %c12_i32_572 = arith.constant 12 : i32
    %1626 = vector.broadcast %c12_i32_572 : i32 to vector<1x16xi32>
    %1627 = arith.cmpi eq, %34, %1626 : vector<1x16xi32>
    %cst_573 = arith.constant 1.000000e+00 : f32
    %cst_574 = arith.constant 0.000000e+00 : f32
    %1628 = vector.broadcast %cst_573 : f32 to vector<1x16xf32>
    %1629 = vector.broadcast %cst_574 : f32 to vector<1x16xf32>
    %1630 = arith.select %1627, %1628, %1629 : vector<1x16xi1>, vector<1x16xf32>
    %1631 = vector.broadcast %1625 : vector<16x1xf32> to vector<16x16xf32>
    %1632 = vector.broadcast %1630 : vector<1x16xf32> to vector<16x16xf32>
    %1633 = arith.mulf %1631, %1632 : vector<16x16xf32>
    %1634 = arith.addf %1619, %1633 : vector<16x16xf32>
    %c13_i32_575 = arith.constant 13 : i32
    %1635 = vector.broadcast %c13_i32_575 : i32 to vector<16x16xi32>
    %1636 = arith.cmpi eq, %33, %1635 : vector<16x16xi32>
    %cst_576 = arith.constant 0.000000e+00 : f32
    %1637 = vector.broadcast %cst_576 : f32 to vector<16x16xf32>
    %1638 = arith.select %1636, %1436, %1637 : vector<16x16xi1>, vector<16x16xf32>
    %cst_577 = arith.constant dense<0.000000e+00> : vector<16xf32>
    %1639 = vector.multi_reduction <add>, %1638, %cst_577 [1] : vector<16x16xf32> to vector<16xf32>
    %1640 = vector.shape_cast %1639 : vector<16xf32> to vector<16x1xf32>
    %c13_i32_578 = arith.constant 13 : i32
    %1641 = vector.broadcast %c13_i32_578 : i32 to vector<1x16xi32>
    %1642 = arith.cmpi eq, %34, %1641 : vector<1x16xi32>
    %cst_579 = arith.constant 1.000000e+00 : f32
    %cst_580 = arith.constant 0.000000e+00 : f32
    %1643 = vector.broadcast %cst_579 : f32 to vector<1x16xf32>
    %1644 = vector.broadcast %cst_580 : f32 to vector<1x16xf32>
    %1645 = arith.select %1642, %1643, %1644 : vector<1x16xi1>, vector<1x16xf32>
    %1646 = vector.broadcast %1640 : vector<16x1xf32> to vector<16x16xf32>
    %1647 = vector.broadcast %1645 : vector<1x16xf32> to vector<16x16xf32>
    %1648 = arith.mulf %1646, %1647 : vector<16x16xf32>
    %1649 = arith.addf %1634, %1648 : vector<16x16xf32>
    %c14_i32_581 = arith.constant 14 : i32
    %1650 = vector.broadcast %c14_i32_581 : i32 to vector<16x16xi32>
    %1651 = arith.cmpi eq, %33, %1650 : vector<16x16xi32>
    %cst_582 = arith.constant 0.000000e+00 : f32
    %1652 = vector.broadcast %cst_582 : f32 to vector<16x16xf32>
    %1653 = arith.select %1651, %1436, %1652 : vector<16x16xi1>, vector<16x16xf32>
    %cst_583 = arith.constant dense<0.000000e+00> : vector<16xf32>
    %1654 = vector.multi_reduction <add>, %1653, %cst_583 [1] : vector<16x16xf32> to vector<16xf32>
    %1655 = vector.shape_cast %1654 : vector<16xf32> to vector<16x1xf32>
    %c14_i32_584 = arith.constant 14 : i32
    %1656 = vector.broadcast %c14_i32_584 : i32 to vector<1x16xi32>
    %1657 = arith.cmpi eq, %34, %1656 : vector<1x16xi32>
    %cst_585 = arith.constant 1.000000e+00 : f32
    %cst_586 = arith.constant 0.000000e+00 : f32
    %1658 = vector.broadcast %cst_585 : f32 to vector<1x16xf32>
    %1659 = vector.broadcast %cst_586 : f32 to vector<1x16xf32>
    %1660 = arith.select %1657, %1658, %1659 : vector<1x16xi1>, vector<1x16xf32>
    %1661 = vector.broadcast %1655 : vector<16x1xf32> to vector<16x16xf32>
    %1662 = vector.broadcast %1660 : vector<1x16xf32> to vector<16x16xf32>
    %1663 = arith.mulf %1661, %1662 : vector<16x16xf32>
    %1664 = arith.addf %1649, %1663 : vector<16x16xf32>
    %1665 = arith.truncf %1664 : vector<16x16xf32> to vector<16x16xbf16>
    %cst_587 = arith.constant dense<0.000000e+00> : vector<16x16xf32>
    %1666 = tpu.matmul %1665, %28, %cst_587 {dimension_numbers = #tpu.dot_dimension_numbers<[1], [0], [0], [1], [0, 0, 1, 1], [], []>} : vector<16x16xbf16>, vector<16x16xbf16>, vector<16x16xf32> -> vector<16x16xf32>
    %1667 = arith.addf %1438, %1666 : vector<16x16xf32>
    %1668 = arith.truncf %1667 : vector<16x16xf32> to vector<16x16xbf16>
    %1669 = vector.extract_strided_slice %906 {offsets = [16, 0], sizes = [16, 32], strides = [1, 1]} : vector<32x32xbf16> to vector<16x32xbf16>
    %cst_588 = arith.constant dense<0.000000e+00> : vector<16x32xf32>
    %1670 = tpu.matmul %1668, %1669, %cst_588 {dimension_numbers = #tpu.dot_dimension_numbers<[1], [0], [0], [1], [0, 0, 1, 1], [], []>} : vector<16x16xbf16>, vector<16x32xbf16>, vector<16x32xf32> -> vector<16x32xf32>
    %1671 = arith.addf %1289, %1670 : vector<16x32xf32>
    %c1_589 = arith.constant 1 : index
    %c0_590 = arith.constant 0 : index
    %c0_591 = arith.constant 0 : index
    %1672 = vector.load %arg10[%c1_589, %c0_590, %c0_591] : memref<2x1x32xf32, #tpu.memory_space<vmem>>, vector<1x1x32xf32>
    %1673 = vector.shape_cast %1672 : vector<1x1x32xf32> to vector<1x32xf32>
    %1674 = vector.broadcast %1673 : vector<1x32xf32> to vector<16x32xf32>
    %1675 = arith.addf %1671, %1674 : vector<16x32xf32>
    %1676 = arith.addf %1675, %896 : vector<16x32xf32>
    %c1_592 = arith.constant 1 : index
    %c0_593 = arith.constant 0 : index
    %c0_594 = arith.constant 0 : index
    %1677 = vector.load %arg11[%c1_592, %c0_593, %c0_594] : memref<2x1x32xf32, #tpu.memory_space<vmem>>, vector<1x1x32xf32>
    %1678 = vector.shape_cast %1677 : vector<1x1x32xf32> to vector<1x32xf32>
    %c1_595 = arith.constant 1 : index
    %c0_596 = arith.constant 0 : index
    %c0_597 = arith.constant 0 : index
    %1679 = vector.load %arg12[%c1_595, %c0_596, %c0_597] : memref<2x1x32xf32, #tpu.memory_space<vmem>>, vector<1x1x32xf32>
    %1680 = vector.shape_cast %1679 : vector<1x1x32xf32> to vector<1x32xf32>
    %cst_598 = arith.constant dense<0.000000e+00> : vector<16xf32>
    %1681 = vector.multi_reduction <add>, %1676, %cst_598 [1] : vector<16x32xf32> to vector<16xf32>
    %1682 = vector.shape_cast %1681 : vector<16xf32> to vector<16x1xf32>
    %cst_599 = arith.constant 3.200000e+01 : f32
    %1683 = vector.broadcast %cst_599 : f32 to vector<16x1xf32>
    %1684 = arith.divf %1682, %1683 : vector<16x1xf32>
    %1685 = vector.broadcast %1684 : vector<16x1xf32> to vector<16x32xf32>
    %1686 = arith.subf %1676, %1685 : vector<16x32xf32>
    %1687 = arith.mulf %1686, %1686 : vector<16x32xf32>
    %cst_600 = arith.constant dense<0.000000e+00> : vector<16xf32>
    %1688 = vector.multi_reduction <add>, %1687, %cst_600 [1] : vector<16x32xf32> to vector<16xf32>
    %1689 = vector.shape_cast %1688 : vector<16xf32> to vector<16x1xf32>
    %cst_601 = arith.constant 3.200000e+01 : f32
    %1690 = vector.broadcast %cst_601 : f32 to vector<16x1xf32>
    %1691 = arith.divf %1689, %1690 : vector<16x1xf32>
    %1692 = vector.broadcast %1684 : vector<16x1xf32> to vector<16x32xf32>
    %1693 = arith.subf %1676, %1692 : vector<16x32xf32>
    %cst_602 = arith.constant 9.99999996E-13 : f32
    %1694 = vector.broadcast %cst_602 : f32 to vector<16x1xf32>
    %1695 = arith.addf %1691, %1694 : vector<16x1xf32>
    %1696 = math.rsqrt %1695 : vector<16x1xf32>
    %1697 = vector.broadcast %1696 : vector<16x1xf32> to vector<16x32xf32>
    %1698 = arith.mulf %1693, %1697 : vector<16x32xf32>
    %1699 = vector.broadcast %1678 : vector<1x32xf32> to vector<16x32xf32>
    %1700 = arith.mulf %1698, %1699 : vector<16x32xf32>
    %1701 = vector.broadcast %1680 : vector<1x32xf32> to vector<16x32xf32>
    %1702 = arith.addf %1700, %1701 : vector<16x32xf32>
    %1703 = arith.truncf %1702 : vector<16x32xf32> to vector<16x32xbf16>
    %c1_603 = arith.constant 1 : index
    %c0_604 = arith.constant 0 : index
    %c0_605 = arith.constant 0 : index
    %1704 = vector.load %arg13[%c1_603, %c0_604, %c0_605] : memref<2x32x64xbf16, #tpu.memory_space<vmem>>, vector<1x32x64xbf16>
    %1705 = vector.shape_cast %1704 : vector<1x32x64xbf16> to vector<32x64xbf16>
    %cst_606 = arith.constant dense<0.000000e+00> : vector<16x64xf32>
    %1706 = tpu.matmul %1703, %1705, %cst_606 {dimension_numbers = #tpu.dot_dimension_numbers<[1], [0], [0], [1], [0, 0, 1, 1], [], []>} : vector<16x32xbf16>, vector<32x64xbf16>, vector<16x64xf32> -> vector<16x64xf32>
    %c1_607 = arith.constant 1 : index
    %c0_608 = arith.constant 0 : index
    %c0_609 = arith.constant 0 : index
    %1707 = vector.load %arg14[%c1_607, %c0_608, %c0_609] : memref<2x1x64xf32, #tpu.memory_space<vmem>>, vector<1x1x64xf32>
    %1708 = vector.shape_cast %1707 : vector<1x1x64xf32> to vector<1x64xf32>
    %1709 = vector.broadcast %1708 : vector<1x64xf32> to vector<16x64xf32>
    %1710 = arith.addf %1706, %1709 : vector<16x64xf32>
    %cst_610 = arith.constant 5.000000e-01 : f32
    %1711 = vector.broadcast %cst_610 : f32 to vector<16x64xf32>
    %1712 = arith.mulf %1711, %1710 : vector<16x64xf32>
    %cst_611 = arith.constant 4.471500e-02 : f32
    %1713 = vector.broadcast %cst_611 : f32 to vector<16x64xf32>
    %1714 = arith.mulf %1713, %1710 : vector<16x64xf32>
    %1715 = arith.mulf %1714, %1710 : vector<16x64xf32>
    %1716 = arith.mulf %1715, %1710 : vector<16x64xf32>
    %1717 = arith.addf %1710, %1716 : vector<16x64xf32>
    %cst_612 = arith.constant 0.797884583 : f32
    %1718 = vector.broadcast %cst_612 : f32 to vector<16x64xf32>
    %1719 = arith.mulf %1718, %1717 : vector<16x64xf32>
    %1720 = math.tanh %1719 : vector<16x64xf32>
    %cst_613 = arith.constant 1.000000e+00 : f32
    %1721 = vector.broadcast %cst_613 : f32 to vector<16x64xf32>
    %1722 = arith.addf %1721, %1720 : vector<16x64xf32>
    %1723 = arith.mulf %1712, %1722 : vector<16x64xf32>
    %1724 = arith.truncf %1723 : vector<16x64xf32> to vector<16x64xbf16>
    %c1_614 = arith.constant 1 : index
    %c0_615 = arith.constant 0 : index
    %c0_616 = arith.constant 0 : index
    %1725 = vector.load %arg15[%c1_614, %c0_615, %c0_616] : memref<2x64x32xbf16, #tpu.memory_space<vmem>>, vector<1x64x32xbf16>
    %1726 = vector.shape_cast %1725 : vector<1x64x32xbf16> to vector<64x32xbf16>
    %cst_617 = arith.constant dense<0.000000e+00> : vector<16x32xf32>
    %1727 = tpu.matmul %1724, %1726, %cst_617 {dimension_numbers = #tpu.dot_dimension_numbers<[1], [0], [0], [1], [0, 0, 1, 1], [], []>} : vector<16x64xbf16>, vector<64x32xbf16>, vector<16x32xf32> -> vector<16x32xf32>
    %c1_618 = arith.constant 1 : index
    %c0_619 = arith.constant 0 : index
    %c0_620 = arith.constant 0 : index
    %1728 = vector.load %arg16[%c1_618, %c0_619, %c0_620] : memref<2x1x32xf32, #tpu.memory_space<vmem>>, vector<1x1x32xf32>
    %1729 = vector.shape_cast %1728 : vector<1x1x32xf32> to vector<1x32xf32>
    %1730 = vector.broadcast %1729 : vector<1x32xf32> to vector<16x32xf32>
    %1731 = arith.addf %1727, %1730 : vector<16x32xf32>
    %1732 = arith.addf %1731, %1702 : vector<16x32xf32>
    %c1_621 = arith.constant 1 : index
    %c0_622 = arith.constant 0 : index
    %c0_623 = arith.constant 0 : index
    %1733 = vector.load %arg17[%c1_621, %c0_622, %c0_623] : memref<2x1x32xf32, #tpu.memory_space<vmem>>, vector<1x1x32xf32>
    %1734 = vector.shape_cast %1733 : vector<1x1x32xf32> to vector<1x32xf32>
    %c1_624 = arith.constant 1 : index
    %c0_625 = arith.constant 0 : index
    %c0_626 = arith.constant 0 : index
    %1735 = vector.load %arg18[%c1_624, %c0_625, %c0_626] : memref<2x1x32xf32, #tpu.memory_space<vmem>>, vector<1x1x32xf32>
    %1736 = vector.shape_cast %1735 : vector<1x1x32xf32> to vector<1x32xf32>
    %cst_627 = arith.constant dense<0.000000e+00> : vector<16xf32>
    %1737 = vector.multi_reduction <add>, %1732, %cst_627 [1] : vector<16x32xf32> to vector<16xf32>
    %1738 = vector.shape_cast %1737 : vector<16xf32> to vector<16x1xf32>
    %cst_628 = arith.constant 3.200000e+01 : f32
    %1739 = vector.broadcast %cst_628 : f32 to vector<16x1xf32>
    %1740 = arith.divf %1738, %1739 : vector<16x1xf32>
    %1741 = vector.broadcast %1740 : vector<16x1xf32> to vector<16x32xf32>
    %1742 = arith.subf %1732, %1741 : vector<16x32xf32>
    %1743 = arith.mulf %1742, %1742 : vector<16x32xf32>
    %cst_629 = arith.constant dense<0.000000e+00> : vector<16xf32>
    %1744 = vector.multi_reduction <add>, %1743, %cst_629 [1] : vector<16x32xf32> to vector<16xf32>
    %1745 = vector.shape_cast %1744 : vector<16xf32> to vector<16x1xf32>
    %cst_630 = arith.constant 3.200000e+01 : f32
    %1746 = vector.broadcast %cst_630 : f32 to vector<16x1xf32>
    %1747 = arith.divf %1745, %1746 : vector<16x1xf32>
    %1748 = vector.broadcast %1740 : vector<16x1xf32> to vector<16x32xf32>
    %1749 = arith.subf %1732, %1748 : vector<16x32xf32>
    %cst_631 = arith.constant 9.99999996E-13 : f32
    %1750 = vector.broadcast %cst_631 : f32 to vector<16x1xf32>
    %1751 = arith.addf %1747, %1750 : vector<16x1xf32>
    %1752 = math.rsqrt %1751 : vector<16x1xf32>
    %1753 = vector.broadcast %1752 : vector<16x1xf32> to vector<16x32xf32>
    %1754 = arith.mulf %1749, %1753 : vector<16x32xf32>
    %1755 = vector.broadcast %1734 : vector<1x32xf32> to vector<16x32xf32>
    %1756 = arith.mulf %1754, %1755 : vector<16x32xf32>
    %1757 = vector.broadcast %1736 : vector<1x32xf32> to vector<16x32xf32>
    %1758 = arith.addf %1756, %1757 : vector<16x32xf32>
    %cst_632 = arith.constant 0.000000e+00 : f32
    %1759 = vector.broadcast %cst_632 : f32 to vector<16x96xf32>
    %1760 = tpu.concatenate %1758, %1759 in 1 : vector<16x32xf32>, vector<16x96xf32> -> vector<16x128xf32>
    %c0_633 = arith.constant 0 : index
    %c0_634 = arith.constant 0 : index
    %1761 = vector.load %arg19[%c0_633, %c0_634] : memref<16x128xf32, #tpu.memory_space<vmem>>, vector<16x128xf32>
    tpu.vector_store %arg19[%c0_633, %c0_634], %1760 {strides = array<i32>} : memref<16x128xf32, #tpu.memory_space<vmem>>, vector<16x128xf32>,
    return
  }
  func.func @transform_0(%arg0: i32) -> (i32, i32) {
    %c0_i32 = arith.constant 0 : i32
    %c0_i32_0 = arith.constant 0 : i32
    %c0_i32_1 = arith.constant 0 : i32
    return %c0_i32, %c0_i32_0 : i32, i32
  }
  func.func @transform_1(%arg0: i32) -> (i32, i32) {
    %c0_i32 = arith.constant 0 : i32
    %c0_i32_0 = arith.constant 0 : i32
    %c0_i32_1 = arith.constant 0 : i32
    return %c0_i32, %c0_i32_0 : i32, i32
  }
  func.func @transform_2(%arg0: i32) -> (i32, i32) {
    %c0_i32 = arith.constant 0 : i32
    %c0_i32_0 = arith.constant 0 : i32
    %c0_i32_1 = arith.constant 0 : i32
    return %c0_i32, %c0_i32_0 : i32, i32
  }
  func.func @transform_3(%arg0: i32) -> (i32, i32) {
    %c0_i32 = arith.constant 0 : i32
    %c0_i32_0 = arith.constant 0 : i32
    %c0_i32_1 = arith.constant 0 : i32
    return %c0_i32, %c0_i32_0 : i32, i32
  }
  func.func @transform_4(%arg0: i32) -> (i32, i32) {
    %c0_i32 = arith.constant 0 : i32
    %c0_i32_0 = arith.constant 0 : i32
    %c0_i32_1 = arith.constant 0 : i32
    return %c0_i32, %c0_i32_0 : i32, i32
  }
  func.func @transform_5(%arg0: i32) -> (i32, i32) {
    %c0_i32 = arith.constant 0 : i32
    %c0_i32_0 = arith.constant 0 : i32
    %c0_i32_1 = arith.constant 0 : i32
    return %c0_i32, %c0_i32_0 : i32, i32
  }
  func.func @transform_6(%arg0: i32) -> (i32, i32, i32) {
    %c0_i32 = arith.constant 0 : i32
    %c0_i32_0 = arith.constant 0 : i32
    %c0_i32_1 = arith.constant 0 : i32
    %c0_i32_2 = arith.constant 0 : i32
    return %c0_i32, %c0_i32_0, %c0_i32_1 : i32, i32, i32
  }
  func.func @transform_7(%arg0: i32) -> (i32, i32, i32) {
    %c0_i32 = arith.constant 0 : i32
    %c0_i32_0 = arith.constant 0 : i32
    %c0_i32_1 = arith.constant 0 : i32
    %c0_i32_2 = arith.constant 0 : i32
    return %c0_i32, %c0_i32_0, %c0_i32_1 : i32, i32, i32
  }
  func.func @transform_8(%arg0: i32) -> (i32, i32, i32) {
    %c0_i32 = arith.constant 0 : i32
    %c0_i32_0 = arith.constant 0 : i32
    %c0_i32_1 = arith.constant 0 : i32
    %c0_i32_2 = arith.constant 0 : i32
    return %c0_i32, %c0_i32_0, %c0_i32_1 : i32, i32, i32
  }
  func.func @transform_9(%arg0: i32) -> (i32, i32, i32) {
    %c0_i32 = arith.constant 0 : i32
    %c0_i32_0 = arith.constant 0 : i32
    %c0_i32_1 = arith.constant 0 : i32
    %c0_i32_2 = arith.constant 0 : i32
    return %c0_i32, %c0_i32_0, %c0_i32_1 : i32, i32, i32
  }
  func.func @transform_10(%arg0: i32) -> (i32, i32, i32) {
    %c0_i32 = arith.constant 0 : i32
    %c0_i32_0 = arith.constant 0 : i32
    %c0_i32_1 = arith.constant 0 : i32
    %c0_i32_2 = arith.constant 0 : i32
    return %c0_i32, %c0_i32_0, %c0_i32_1 : i32, i32, i32
  }
  func.func @transform_11(%arg0: i32) -> (i32, i32, i32) {
    %c0_i32 = arith.constant 0 : i32
    %c0_i32_0 = arith.constant 0 : i32
    %c0_i32_1 = arith.constant 0 : i32
    %c0_i32_2 = arith.constant 0 : i32
    return %c0_i32, %c0_i32_0, %c0_i32_1 : i32, i32, i32
  }
  func.func @transform_12(%arg0: i32) -> (i32, i32, i32) {
    %c0_i32 = arith.constant 0 : i32
    %c0_i32_0 = arith.constant 0 : i32
    %c0_i32_1 = arith.constant 0 : i32
    %c0_i32_2 = arith.constant 0 : i32
    return %c0_i32, %c0_i32_0, %c0_i32_1 : i32, i32, i32
  }
  func.func @transform_13(%arg0: i32) -> (i32, i32, i32) {
    %c0_i32 = arith.constant 0 : i32
    %c0_i32_0 = arith.constant 0 : i32
    %c0_i32_1 = arith.constant 0 : i32
    %c0_i32_2 = arith.constant 0 : i32
    return %c0_i32, %c0_i32_0, %c0_i32_1 : i32, i32, i32
  }
  func.func @transform_14(%arg0: i32) -> (i32, i32, i32) {
    %c0_i32 = arith.constant 0 : i32
    %c0_i32_0 = arith.constant 0 : i32
    %c0_i32_1 = arith.constant 0 : i32
    %c0_i32_2 = arith.constant 0 : i32
    return %c0_i32, %c0_i32_0, %c0_i32_1 : i32, i32, i32
  }
  func.func @transform_15(%arg0: i32) -> (i32, i32, i32) {
    %c0_i32 = arith.constant 0 : i32
    %c0_i32_0 = arith.constant 0 : i32
    %c0_i32_1 = arith.constant 0 : i32
    %c0_i32_2 = arith.constant 0 : i32
    return %c0_i32, %c0_i32_0, %c0_i32_1 : i32, i32, i32
  }
  func.func @transform_16(%arg0: i32) -> (i32, i32, i32) {
    %c0_i32 = arith.constant 0 : i32
    %c0_i32_0 = arith.constant 0 : i32
    %c0_i32_1 = arith.constant 0 : i32
    %c0_i32_2 = arith.constant 0 : i32
    return %c0_i32, %c0_i32_0, %c0_i32_1 : i32, i32, i32
  }
  func.func @transform_17(%arg0: i32) -> (i32, i32, i32) {
    %c0_i32 = arith.constant 0 : i32
    %c0_i32_0 = arith.constant 0 : i32
    %c0_i32_1 = arith.constant 0 : i32
    %c0_i32_2 = arith.constant 0 : i32
    return %c0_i32, %c0_i32_0, %c0_i32_1 : i32, i32, i32
  }
  func.func @transform_18(%arg0: i32) -> (i32, i32) {
    %c0_i32 = arith.constant 0 : i32
    %c0_i32_0 = arith.constant 0 : i32
    %c0_i32_1 = arith.constant 0 : i32
    return %c0_i32, %c0_i32_0 : i32, i32
  }
}

</mosaic_0001>

<bundles_post_ra>
// kernel: tpu_custom_call.1
= control target key start
LH: loop header
LB: loop body
LE: loop exit
PB: predicated region body
PF: predicated region fallthrough
CT: control target
= control target key end

     0   :  { %s5940_s0 = inlined_call_operand.hbm [shape: f32[16,32], index: 0, kind: input, shape index: {}]   ;;  %s5941_s1 = inlined_call_operand.hbm [shape: f32[16,32], index: 1, kind: input, shape index: {}]   ;;  %s5942_s2 = inlined_call_operand.hbm [shape: f32[16,16], index: 2, kind: input, shape index: {}]   ;;  %s5943_s3 = inlined_call_operand.hbm [shape: bf16[16,16], index: 3, kind: input, shape index: {}]   ;;  %s5944_s4 = inlined_call_operand.hbm [shape: f32[1,32], index: 4, kind: input, shape index: {}]   ;;  %s5945_s5 = inlined_call_operand.hbm [shape: f32[1,32], index: 5, kind: input, shape index: {}]   ;;  %s5946_s6 = inlined_call_operand.vmem [shape: bf16[2,32,96], index: 6, kind: input, shape index: {}]   ;;  %s5947_s7 = inlined_call_operand.vmem [shape: f32[2,1,96], index: 7, kind: input, shape index: {}]   ;;  %s5948_s8 = inlined_call_operand.vmem [shape: bf16[2,32,32], index: 8, kind: input, shape index: {}]   ;;  %s5949_s9 = inlined_call_operand.vmem [shape: f32[2,1,32], index: 9, kind: input, shape index: {}]   ;;  %s5950_s10 = inlined_call_operand.vmem [shape: f32[2,1,32], index: 10, kind: input, shape index: {}]   ;;  %s5951_s11 = inlined_call_operand.vmem [shape: f32[2,1,32], index: 11, kind: input, shape index: {}]   ;;  %s5952_s12 = inlined_call_operand.vmem [shape: bf16[2,32,64], index: 12, kind: input, shape index: {}]   ;;  %s5953_s13 = inlined_call_operand.vmem [shape: f32[2,1,64], index: 13, kind: input, shape index: {}]   ;;  %s5954_s14 = inlined_call_operand.vmem [shape: bf16[2,64,32], index: 14, kind: input, shape index: {}]   ;;  %s5955_s15 = inlined_call_operand.vmem [shape: f32[2,1,32], index: 15, kind: input, shape index: {}]   ;;  %s5956_s16 = inlined_call_operand.vmem [shape: f32[2,1,32], index: 16, kind: input, shape index: {}]   ;;  %s5957_s17 = inlined_call_operand.vmem [shape: f32[2,1,32], index: 17, kind: input, shape index: {}]   ;;  %s5958_s18 = inlined_call_operand.hbm [shape: f32[16,128], index: 18, kind: output, shape index: {}]  }
   0x1   :  { %6026 = sst [smem:[#allocation24_spill]] %s5940_s0 }
   0x2   :  { %6027 = sst [smem:[#allocation25_spill]] %s5941_s1 }
   0x3   :  { %6028 = sst [smem:[#allocation26_spill]] %s5942_s2 }
   0x4   :  { %23 = vsyncpa [#allocation3], 0 }
   0x5   :  { %24 = vsyncpa [#allocation6], 0 }
   0x6   :  { %25 = vsyncpa [#allocation9], 0 }
   0x7   :  { %26 = vsyncpa [#allocation12], 0 }
   0x8   :  { %27 = vsyncpa [#allocation4], 0  ;;  %s4233_s27 = smov [#allocation5]   ;;  %s4234_s29 = smov [#allocation8]  }
   0x9   :  { %s45_s28 = sshll.u32 %s4233_s27, 4  ;;  %s69_s30 = sshll.u32 %s4234_s29, 4  ;;  %s46_s28 = int_to_ptr.vmem [resolvable:$true] %s45_s28  ;;  %s70_s30 = int_to_ptr.vmem [resolvable:$true] %s69_s30 }
   0xa   :  { %s4091_s0 = scalar_lea.vmem %s46_s28, 256  ;;  %p4096_p1 = scmp.lt.s32.totalorder %s46_s28, %s46_s28 }
   0xb   :  { %p4092_p0 = scmp.ne.s32.totalorder %s46_s28, %s4091_s0  ;;  %p4097_p2 = scmp.lt.s32.totalorder %s4091_s0, %s4091_s0 }
   0xd   :  { %p4098_p3 = por %p4097_p2, %p4096_p1 }
   0xf   :  { %p4099_p4 = pnand %p4098_p3, %p4092_p0 }
  0x11   :  { %4102 = shalt.err (!%p4099_p4)
}
  0x12   :  { %s4235_s19 = smov 128   ;;  %s4236_s1 = smov 8  }
  0x13   :  { %s6029_s22 = sld [smem:[#allocation25_spill]]  ;;  %s4111_s2 = scalar_lea.vmem %s70_s30, 128 }
  0x14   :  { %p4112_p5 = scmp.ne.s32.totalorder %s70_s30, %s4111_s2  ;;  %p4116_p6 = scmp.lt.s32.totalorder %s70_s30, %s70_s30 }
  0x15   :  { %p4117_p7 = scmp.lt.s32.totalorder %s4111_s2, %s4111_s2 }
  0x17   :  { %p4118_p8 = por %p4117_p7, %p4116_p6 }
  0x19   :  { %51 = dma.hbm_to_vmem [thread:$0]  %s6029_s22, 256, %s46_s28, [#allocation6], %s4235_s19, %s4235_s19, %s4236_s1  }
  0x1a   :  { %p4119_p9 = pnand %p4118_p8, %p4112_p5 }
  0x1c   :  { %4122 = shalt.err (!%p4119_p9)
}
  0x1d   :  { %s4237_s23 = smov 64   ;;  %s4238_s24 = smov 4  }
  0x1e   :  { %75 = dma.hbm_to_vmem [thread:$0]  %s5943_s3, 128, %s70_s30, [#allocation9], %s4237_s23, %s4237_s23, %s4238_s24  }
  0x1f   :  { %s4239_s27 = smov [#allocation2]   ;;  %s4240_s0 = smov [#allocation7]  }
  0x20   :  { %s33_s29 = sshll.u32 %s4239_s27, 4  ;;  %s57_s20 = sshll.u32 %s4240_s0, 4  ;;  %s34_s29 = int_to_ptr.vmem [resolvable:$true] %s33_s29  ;;  %s58_s20 = int_to_ptr.vmem [resolvable:$true] %s57_s20 }
  0x21   :  { %s4131_s28 = scalar_lea.vmem %s34_s29, 256  ;;  %p4136_p11 = scmp.lt.s32.totalorder %s34_s29, %s34_s29 }
  0x22   :  { %p4132_p10 = scmp.ne.s32.totalorder %s34_s29, %s4131_s28  ;;  %p4137_p12 = scmp.lt.s32.totalorder %s4131_s28, %s4131_s28 }
  0x24   :  { %p4138_p13 = por %p4137_p12, %p4136_p11 }
  0x26   :  { %p4139_p0 = pnand %p4138_p13, %p4132_p10 }
  0x28   :  { %4142 = shalt.err (!%p4139_p0)
}
  0x29   :  { %s6030_s2 = sld [smem:[#allocation24_spill]]  ;;  %s4151_s3 = scalar_lea.vmem %s58_s20, 256 }
  0x2a   :  { %p4152_p1 = scmp.ne.s32.totalorder %s58_s20, %s4151_s3  ;;  %p4156_p2 = scmp.lt.s32.totalorder %s58_s20, %s58_s20 }
  0x2b   :  { %p4157_p3 = scmp.lt.s32.totalorder %s4151_s3, %s4151_s3 }
  0x2d   :  { %p4158_p4 = por %p4157_p3, %p4156_p2 }
  0x2f   :  { %39 = dma.hbm_to_vmem [thread:$0]  %s6030_s2, 256, %s34_s29, [#allocation3], %s4235_s19, %s4235_s19, %s4236_s1  }
  0x30   :  { %p4159_p5 = pnand %p4158_p4, %p4152_p1 }
  0x32   :  { %4162 = shalt.err (!%p4159_p5)
}
  0x33   :  { %s6031_s25 = sld [smem:[#allocation26_spill]]  ;;  %s4241_s26 = smov [#allocation10]  }
  0x34   :  { %s82_s27 = sshll.u32 %s4241_s26, 4  ;;  %s4242_s0 = smov [#allocation11]   ;;  %s83_s27 = int_to_ptr.vmem [resolvable:$true] %s82_s27 }
  0x35   :  { %s92_s28 = sshll.u32 %s4242_s0, 4  ;;  %s4171_s29 = scalar_lea.vmem %s83_s27, 16  ;;  %s93_s28 = int_to_ptr.vmem [resolvable:$true] %s92_s28 }
  0x36   :  { %p4172_p6 = scmp.ne.s32.totalorder %s83_s27, %s4171_s29  ;;  %s4175_s21 = scalar_lea.vmem %s83_s27, 32 }
  0x37   :  { %p4176_p7 = scmp.lt.s32.totalorder %s83_s27, %s83_s27  ;;  %p4177_p8 = scmp.lt.s32.totalorder %s4175_s21, %s4171_s29 }
  0x39   :  { %63 = dma.hbm_to_vmem [thread:$0]  %s6031_s25, 256, %s58_s20, [#allocation6], %s4235_s19, %s4235_s19, %s4236_s1  }
  0x3a   :  { %p4178_p9 = por %p4177_p8, %p4176_p7 }
  0x3c   :  { %p4179_p10 = pnand %p4178_p9, %p4172_p6 }
  0x3e   :  { %4182 = shalt.err (!%p4179_p10)
}
  0x3f   :  { %85 = dma.hbm_to_vmem [thread:$0]  %s5944_s4, 16, %s83_s27, [#allocation9]  }
  0x40   :  { %s4191_s3 = scalar_lea.vmem %s93_s28, 16  ;;  %s4195_s20 = scalar_lea.vmem %s93_s28, 32 }
  0x41   :  { %p4192_p11 = scmp.ne.s32.totalorder %s93_s28, %s4191_s3  ;;  %p4196_p12 = scmp.lt.s32.totalorder %s93_s28, %s93_s28 }
  0x42   :  { %p4197_p13 = scmp.lt.s32.totalorder %s4195_s20, %s4191_s3 }
  0x44   :  { %p4198_p0 = por %p4197_p13, %p4196_p12 }
  0x46   :  { %p4199_p1 = pnand %p4198_p0, %p4192_p11 }
  0x48   :  { %4202 = shalt.err (!%p4199_p1)
}
  0x49   :  { %95 = dma.hbm_to_vmem [thread:$0]  %s5945_s5, 16, %s93_s28, [#allocation12]  }
  0x4a   :  { %4223 = dma.done.wait [#allocation3], 256  }
  0x4b   :  { %4224 = vsyncadd [#allocation3], 4294967040 }
  0x4c   :  { %4225 = dma.done.wait [#allocation6], 512  }
  0x4d   :  { %4226 = vsyncadd [#allocation6], 4294966784 }
  0x4e   :  { %4227 = dma.done.wait [#allocation9], 144  }
  0x4f   :  { %4228 = vsyncadd [#allocation9], 4294967152 }
  0x50   :  { %4229 = dma.done.wait [#allocation12], 16  }
  0x51   :  { %4230 = vsyncadd [#allocation12], 4294967280  ;;  %v139_v0 = vld [vmem:[#allocation2] sm:$0xff]  ;;  %v141_v1 = vld [vmem:[#allocation5] sm:$0xff]  ;;  %vm5959_vm0 = vcmask 261120   ;;  %v6013_v19 = vmov 0.0  }
  0x52   :  { %v140_v2 = vld [vmem:[#allocation2 + $0x8] sm:$0xff]  ;;  %v143_v3 = vadd.f32 %v141_v1, %v139_v0  ;;  %v142_v4 = vld [vmem:[#allocation5 + $0x8] sm:$0xff]  ;;  %3672 = vmatprep.subr.bf16.mxu1 %v6013_v19  ;;  %vm5960_vm1 = vmmov 0   ;;  %v4000_v20 = vld [vmem:[%s5946_s6] sm:$0xff]   ;;  %3686 = vmatprep.subr.bf16.mxu0 %v6013_v19  ;;  %vm282_vm2 = vcmask 130048   ;;  %v6007_v46 = vmov 3  }
  0x53   :  { %v144_v5 = vadd.f32 %v142_v4, %v140_v2  ;;  %v3999_v18 = vld [vmem:[%s5946_s6 + $0x8] sm:$0xff]   ;;  %3676 = vmatprep.mubr.msk.bf16.mxu1 %vm5960_vm1, %v6013_v19  ;;  %3688 = vmatprep.mubr.msk.bf16.mxu0 %vm5960_vm1, %v6013_v19  ;;  %v3517_v29 = vld [vmem:[#allocation10] ss:$0 sm:$0xff]  ;;  %v3518_v33 = vld [vmem:[#allocation11] ss:$0 sm:$0xff]  ;;  %v5999_v47 = vmov 0  }
  0x54   :  { %v148_v6 = vsel %vm5959_vm0, %v143_v3, 0.0  ;;  %3673 = vmatpush3.bf16.msra.mxu1 %v3999_v18  ;;  %v4416_v38 = vld [vmem:[#allocation8] sm:$0xff]   ;;  %v3519_v41 = vld [vmem:[%s5947_s7] ss:$0 sm:$0xff]  ;;  %3883 = vset.pattern.permute.xlu0 %v6007_v46  ;;  %s4247_s28 = smov 96   ;;  %v6001_v55 = vmov 6  }
  0x55   :  { %149 = vadd.xlane.f32.xlu0 %v148_v6  ;;  %v151_v7 = vsel %vm5959_vm0, %v144_v5, 0.0  ;;  %3674 = vmatprep.subr.bf16.mxu1 %v6013_v19  ;;  %v4420_v39 = vsel %vm282_vm2, %v4416_v38, 0  ;;  %v5993_v56 = vmov 1   ;;  %v5995_v58 = vmov 9   ;;  %s4261_s29 = smov 112   ;;  %s4262_s21 = smov 80  }
  0x56   :  { %3880 = vset.pattern.permute.xlu1 %v5999_v47  ;;  %v5982_v59 = vmov 2   ;;  %v5989_v60 = vmov 12   ;;  %v6011_v61 = vmov 4   ;;  %v6003_v62 = vmov 5   ;;  %s4263_s22 = smov 48  }
  0x57   :  { %v6009_v63 = vmov 7   ;;  %v5997_v0 = vmov 8   ;;  %v6005_v1 = vmov 10   ;;  %v5991_v2 = vmov 11  }
  0x58   :  { %3675 = vmatpush3.bf16.msra.mxu1 %v4000_v20  ;;  %v5984_v4 = vmov 14  }
  0x59   :  { %152 = vadd.xlane.f32.xlu0 %v151_v7  ;;  %3680 = vmatprep.subr.bf16.mxu1 %v6013_v19 }
  0xde   :  { %v150_v8 = vpop.xlane.xlu0 %149 }
  0xdf   :  { %v155_v9 = vmul.f32 0.03125, %v150_v8 }
  0xe1   :  { %v157_v10 = vsub.f32 %v143_v3, %v155_v9  ;;  %v5986_v3 = vmov 13  }
  0xe2   :  { %v153_v11 = vpop.xlane.xlu0 %152 }
  0xe3   :  { %v156_v12 = vmul.f32 0.03125, %v153_v11  ;;  %v159_v13 = vmul.f32 %v157_v10, %v157_v10 }
  0xe5   :  { %v158_v14 = vsub.f32 %v144_v5, %v156_v12  ;;  %v161_v15 = vsel %vm5959_vm0, %v159_v13, 0.0 }
  0xe6   :  { %162 = vadd.xlane.f32.xlu1 %v161_v15 }
  0xe7   :  { %v160_v16 = vmul.f32 %v158_v14, %v158_v14 }
  0xe9   :  { %v164_v17 = vsel %vm5959_vm0, %v160_v16, 0.0 }
  0xea   :  { %165 = vadd.xlane.f32.xlu1 %v164_v17  ;;  %v195_v17 = vlaneseq }
  0xec   :  { %v196_v20 = vshrl.u32 %v195_v17, 7 }
 0x16f   :  { %v163_v21 = vpop.xlane.xlu1 %162 }
 0x170   :  { %v167_v22 = vmul.f32 0.03125, %v163_v21  ;;  %v4518_v21 = vand.u32 127, %v195_v17 }
 0x172   :  { %v169_v23 = vadd.f32 1e-12, %v167_v22 }
 0x173   :  { %v166_v24 = vpop.xlane.xlu1 %165 }
 0x174   :  { %4020 = vrsqrt.f32 %v169_v23  ;;  %v168_v25 = vmul.f32 0.03125, %v166_v24  ;;  %v200_v24 = vsub.s32 %v4518_v21, %v196_v20 }
 0x176   :  { %v170_v26 = vadd.f32 1e-12, %v168_v25 }
 0x178   :  { %4022 = vrsqrt.f32 %v170_v26  ;;  %v197_v26 = vadd.s32 8, %v196_v20 }
 0x181   :  { %v4021_v27 = vpop.eup %4020 }
 0x182   :  { %v173_v28 = vmul.f32 %v4021_v27, %v157_v10 }
 0x184   :  { %v181_v32 = vmul.f32 %v3517_v29, %v173_v28  ;;  %v4527_v28 = vadd.s32 7, %v200_v24 }
 0x185   :  { %v4023_v30 = vpop.eup %4022 }
 0x186   :  { %v174_v31 = vmul.f32 %v4023_v30, %v158_v14  ;;  %v4407_v35 = vadd.f32 %v3518_v33, %v181_v32  ;;  %vm346_vm3 = vcmp.eq.s32.totalorder %v4527_v28, 1  ;;  %vm330_vm4 = vcmp.eq.s32.totalorder %v4527_v28, 0 }
 0x187   :  { %vm360_vm5 = vcmp.eq.s32.totalorder %v4527_v28, 2  ;;  %vm6020_vm7 = vcmp.eq.s32.totalorder %v4527_v28, 3  ;;  %vm5988_vm10 = vcmp.eq.s32.totalorder %v4527_v28, 4  ;;  %vm5962_vm12 = vcmp.eq.s32.totalorder %v4527_v28, 5 }
 0x188   :  { %v182_v34 = vmul.f32 %v3517_v29, %v174_v31  ;;  %v201_v29 = vsub.s32 %v4518_v21, %v197_v26  ;;  %vm5963_vm14 = vcmp.eq.s32.totalorder %v4527_v28, 6 }
 0x18a   :  { %v4409_v36 = vadd.f32 %v3518_v33, %v182_v34  ;;  %v4537_v33 = vadd.s32 7, %v201_v29 }
 0x18c   :  { %v204_v37 = vpack.c.bf16 %v4409_v36, %v4407_v35  ;;  %vm5978_vm6 = vcmp.eq.s32.totalorder %v4537_v33, 0  ;;  %vm5980_vm8 = vcmp.eq.s32.totalorder %v4537_v33, 1  ;;  %vm5977_vm9 = vcmp.eq.s32.totalorder %v4537_v33, 2 }
 0x18d   :  { %vm5979_vm11 = vcmp.eq.s32.totalorder %v4537_v33, 3  ;;  %vm5965_vm13 = vcmp.eq.s32.totalorder %v4537_v33, 4  ;;  %vm5964_vm15 = vcmp.eq.s32.totalorder %v4537_v33, 5 }
 0x18e   :  { %3677 = vmatmul.mubr.msk.bf16.vlgmr.msra.gmra.mxu1 %vm5959_vm0, %v204_v37  ;;  %vm5967_vm0 = vcmp.eq.s32.totalorder %v4527_v28, 7 }
 0x18f   :  { %3682 = vmatprep.mubr.msk.bf16.mxu1 %vm5960_vm1, %v6013_v19  ;;  %3681 = vmatpush3.bf16.xpose.msra.mxu1 %v4420_v39 }
 0x190   :  { %3692 = vmatprep.subr.bf16.mxu1 %v6013_v19 }
 0x24e   :  { %v265_v40 = vpop.f32.mrf.mxu1 }
 0x24f   :  { %v266_v44 = vadd.f32 %v3519_v41, %v265_v40 }
 0x250   :  { %v3678_v42 = vpop.f32.mrf.mxu1 }
 0x252   :  { %v268_v43 = vpop.f32.mrf.mxu1 }
 0x253   :  { %v269_v45 = vadd.f32 %v3519_v41, %v268_v43 }
 0x254   :  { %v3679_v48 = vpop.f32.mrf.mxu1 }
 0x255   :  { %v4429_v49 = vpack.c.bf16 %v269_v45, %v266_v44 }
 0x257   :  { %543 = vrot.lane.b32.xlu0 %v4429_v49, %s4247_s28  ;;  %3683 = vmatmul.mubr.msk.bf16.vlgmr.msra.gmra.mxu1 %vm282_vm2, %v4429_v49 }
 0x258   :  { %3693 = vmatpush3.bf16.msra.mxu1 %v4416_v38  ;;  %3694 = vmatprep.mubr.msk.bf16.mxu1 %vm5960_vm1, %v6013_v19 }
 0x259   :  { %3704 = vmatprep.subr.bf16.mxu1 %v6013_v19 }
 0x2c9   :  { %v544_v50 = vpop.permute.xlu0 %543 }
 0x2ca   :  { %v546_v51 = vsel %vm282_vm2, %v544_v50, 0 }
 0x2cb   :  { %3687 = vmatpush3.bf16.xpose.msra.mxu0 %v546_v51 }
 0x2cc   :  { %3698 = vmatprep.subr.bf16.mxu0 %v6013_v19 }
 0x2d2   :  { %3689 = vmatmul.mubr.msk.bf16.vlgmr.msra.gmra.mxu0 %vm282_vm2, %v4429_v49 }
 0x2d3   :  { %3700 = vmatprep.mubr.msk.bf16.mxu0 %vm5960_vm1, %v6013_v19  ;;  %vm5966_vm1 = vcmp.eq.s32.totalorder %v4537_v33, 6 }
 0x317   :  { %v4445_v52 = vpop.f32.mrf.mxu1 }
 0x318   :  { %377 = vperm.xlu0 %3883, %v4445_v52   ;;  %334 = vperm.xlu1 %3880, %v4445_v52  }
 0x319   :  { %v3684_v53 = vpop.f32.mrf.mxu1 }
 0x31b   :  { %v4449_v54 = vpop.f32.mrf.mxu1 }
 0x31c   :  { %3886 = vset.pattern.permute.xlu0 %v6001_v55  ;;  %3881 = vset.pattern.permute.xlu1 %v5993_v56 }
 0x31d   :  { %419 = vperm.xlu0 %3886, %v4445_v52   ;;  %349 = vperm.xlu1 %3881, %v4445_v52   ;;  %v3685_v57 = vpop.f32.mrf.mxu1 }
 0x321   :  { %3889 = vset.pattern.permute.xlu0 %v5995_v58  ;;  %3882 = vset.pattern.permute.xlu1 %v5982_v59 }
 0x322   :  { %461 = vperm.xlu0 %3889, %v4445_v52   ;;  %363 = vperm.xlu1 %3882, %v4445_v52  }
 0x326   :  { %3892 = vset.pattern.permute.xlu0 %v5989_v60  ;;  %3884 = vset.pattern.permute.xlu1 %v6011_v61 }
 0x327   :  { %503 = vperm.xlu0 %3892, %v4445_v52   ;;  %391 = vperm.xlu1 %3884, %v4445_v52  }
 0x32b   :  { %3895 = vset.pattern.permute.xlu0 %v5993_v56  ;;  %3885 = vset.pattern.permute.xlu1 %v6003_v62 }
 0x32c   :  { %405 = vperm.xlu1 %3885, %v4445_v52   ;;  %353 = vperm.xlu0 %3895, %v4449_v54  }
 0x330   :  { %3887 = vset.pattern.permute.xlu1 %v6009_v63  ;;  %3898 = vset.pattern.permute.xlu0 %v6011_v61 }
 0x331   :  { %433 = vperm.xlu1 %3887, %v4445_v52   ;;  %395 = vperm.xlu0 %3898, %v4449_v54  }
 0x335   :  { %3888 = vset.pattern.permute.xlu1 %v5997_v0  ;;  %3901 = vset.pattern.permute.xlu0 %v6009_v63 }
 0x336   :  { %447 = vperm.xlu1 %3888, %v4445_v52   ;;  %437 = vperm.xlu0 %3901, %v4449_v54  }
 0x33a   :  { %3890 = vset.pattern.permute.xlu1 %v6005_v1  ;;  %3904 = vset.pattern.permute.xlu0 %v6005_v1 }
 0x33b   :  { %475 = vperm.xlu1 %3890, %v4445_v52   ;;  %479 = vperm.xlu0 %3904, %v4449_v54  }
 0x33f   :  { %3891 = vset.pattern.permute.xlu1 %v5991_v2  ;;  %3907 = vset.pattern.permute.xlu0 %v5986_v3 }
 0x340   :  { %489 = vperm.xlu1 %3891, %v4445_v52   ;;  %521 = vperm.xlu0 %3907, %v4449_v54  }
 0x344   :  { %3893 = vset.pattern.permute.xlu1 %v5986_v3  ;;  %3911 = vset.pattern.permute.xlu0 %v5982_v59 }
 0x345   :  { %517 = vperm.xlu1 %3893, %v4445_v52  }
 0x349   :  { %3894 = vset.pattern.permute.xlu1 %v5999_v47 }
 0x34a   :  { %339 = vperm.xlu1 %3894, %v4449_v54  }
 0x34e   :  { %3896 = vset.pattern.permute.xlu1 %v5982_v59 }
 0x34f   :  { %367 = vperm.xlu1 %3896, %v4449_v54  }
 0x353   :  { %3897 = vset.pattern.permute.xlu1 %v6007_v46 }
 0x354   :  { %381 = vperm.xlu1 %3897, %v4449_v54  }
 0x358   :  { %3899 = vset.pattern.permute.xlu1 %v6003_v62 }
 0x359   :  { %409 = vperm.xlu1 %3899, %v4449_v54  }
 0x35d   :  { %3900 = vset.pattern.permute.xlu1 %v6001_v55 }
 0x35e   :  { %423 = vperm.xlu1 %3900, %v4449_v54  }
 0x362   :  { %3902 = vset.pattern.permute.xlu1 %v5997_v0 }
 0x363   :  { %451 = vperm.xlu1 %3902, %v4449_v54  }
 0x367   :  { %3903 = vset.pattern.permute.xlu1 %v5995_v58 }
 0x368   :  { %465 = vperm.xlu1 %3903, %v4449_v54  }
 0x36c   :  { %3905 = vset.pattern.permute.xlu1 %v5991_v2 }
 0x36d   :  { %493 = vperm.xlu1 %3905, %v4449_v54  }
 0x371   :  { %3906 = vset.pattern.permute.xlu1 %v5989_v60 }
 0x372   :  { %507 = vperm.xlu1 %3906, %v4449_v54  }
 0x376   :  { %3908 = vset.pattern.permute.xlu1 %v5984_v4 }
 0x377   :  { %531 = vperm.xlu1 %3908, %v4445_v52  }
 0x37b   :  { %535 = vperm.xlu1 %3908, %v4449_v54  }
 0x37f   :  { %3909 = vset.pattern.permute.xlu1 %v5999_v47 }
 0x392   :  { %v4508_v5 = vpop.f32.mrf.mxu0 }
 0x393   :  { %v335_v6 = vpop.permute.xlu1 %334  ;;  %v378_v16 = vpop.permute.xlu0 %377 }
 0x394   :  { %v3690_v7 = vpop.f32.mrf.mxu0  ;;  %v342_v34 = vsel %vm330_vm4, %v335_v6, 0.0  ;;  %v384_v45 = vsel %vm6020_vm7, %v378_v16, 0.0 }
 0x396   :  { %v4510_v8 = vpop.f32.mrf.mxu0 }
 0x398   :  { %v3691_v9 = vpop.f32.mrf.mxu0  ;;  %v350_v10 = vpop.permute.xlu1 %349 }
 0x399   :  { %v420_v22 = vpop.permute.xlu0 %419  ;;  %v356_v32 = vsel %vm346_vm3, %v350_v10, 0.0 }
 0x39a   :  { %v358_v40 = vadd.f32 %v356_v32, %v342_v34 }
 0x39d   :  { %v364_v11 = vpop.permute.xlu1 %363  ;;  %v4523_v25 = vpop.permute.xlu0 %461 }
 0x39e   :  { %v370_v37 = vsel %vm360_vm5, %v364_v11, 0.0 }
 0x39f   :  { %v372_v42 = vadd.f32 %v370_v37, %v358_v40 }
 0x3a1   :  { %v386_v52 = vadd.f32 %v384_v45, %v372_v42 }
 0x3a2   :  { %v392_v12 = vpop.permute.xlu1 %391  ;;  %v4533_v31 = vpop.permute.xlu0 %503 }
 0x3a3   :  { %v398_v54 = vsel %vm5988_vm10, %v392_v12, 0.0 }
 0x3a4   :  { %v400_v9 = vadd.f32 %v398_v54, %v386_v52 }
 0x3a7   :  { %v406_v13 = vpop.permute.xlu1 %405  ;;  %v354_v43 = vpop.permute.xlu0 %353 }
 0x3a8   :  { %v357_v48 = vsel %vm5980_vm8, %v354_v43, 0.0  ;;  %v412_v7 = vsel %vm5962_vm12, %v406_v13, 0.0  ;;  %v426_v13 = vsel %vm5963_vm14, %v420_v22, 0.0  ;;  %vm5968_vm12 = vcmp.eq.s32.totalorder %v4527_v28, 8 }
 0x3a9   :  { %v414_v17 = vadd.f32 %v412_v7, %v400_v9  ;;  %vm5971_vm14 = vcmp.eq.s32.totalorder %v4537_v33, 7 }
 0x3ab   :  { %v428_v29 = vadd.f32 %v426_v13, %v414_v17 }
 0x3ac   :  { %v4512_v14 = vpop.permute.xlu1 %433  ;;  %v396_v10 = vpop.permute.xlu0 %395 }
 0x3ad   :  { %v399_v12 = vsel %vm5965_vm13, %v396_v10, 0.0  ;;  %vm5970_vm13 = vcmp.eq.s32.totalorder %v4537_v33, 8 }
 0x3b1   :  { %v4514_v15 = vpop.permute.xlu1 %447  ;;  %v438_v40 = vpop.permute.xlu0 %437 }
 0x3b2   :  { %v454_v37 = vsel %vm5968_vm12, %v4514_v15, 0.0  ;;  %vm5975_vm12 = vcmp.eq.s32.totalorder %v4527_v28, 11 }
 0x3b6   :  { %v4516_v18 = vpop.permute.xlu1 %475 }
 0x3bb   :  { %v4520_v23 = vpop.permute.xlu1 %489 }
 0x3bc   :  { %v496_v54 = vsel %vm5975_vm12, %v4520_v23, 0.0  ;;  %vm515_vm12 = vcmp.eq.s32.totalorder %v4537_v33, 13 }
 0x3c0   :  { %v4525_v27 = vpop.permute.xlu1 %517 }
 0x3c5   :  { %v340_v30 = vpop.permute.xlu1 %339 }
 0x3c6   :  { %v343_v44 = vsel %vm5978_vm6, %v340_v30, 0.0  ;;  %v440_v30 = vsel %vm5967_vm0, %v4512_v14, 0.0  ;;  %v441_v14 = vsel %vm5971_vm14, %v438_v40, 0.0  ;;  %vm5972_vm0 = vcmp.eq.s32.totalorder %v4537_v33, 9 }
 0x3c7   :  { %v359_v53 = vadd.f32 %v357_v48, %v343_v44  ;;  %v442_v22 = vadd.f32 %v440_v30, %v428_v29  ;;  %vm5976_vm14 = vcmp.eq.s32.totalorder %v4537_v33, 11 }
 0x3c9   :  { %v456_v43 = vadd.f32 %v454_v37, %v442_v22 }
 0x3ca   :  { %v368_v41 = vpop.permute.xlu1 %367 }
 0x3cb   :  { %v371_v50 = vsel %vm5977_vm9, %v368_v41, 0.0 }
 0x3cc   :  { %v373_v6 = vadd.f32 %v371_v50, %v359_v53 }
 0x3cf   :  { %v382_v51 = vpop.permute.xlu1 %381 }
 0x3d0   :  { %v385_v57 = vsel %vm5979_vm11, %v382_v51, 0.0 }
 0x3d1   :  { %v387_v11 = vadd.f32 %v385_v57, %v373_v6  ;;  %v480_v57 = vpop.permute.xlu0 %479 }
 0x3d3   :  { %v401_v20 = vadd.f32 %v399_v12, %v387_v11 }
 0x3d4   :  { %v410_v16 = vpop.permute.xlu1 %409 }
 0x3d5   :  { %v413_v24 = vsel %vm5964_vm15, %v410_v16, 0.0  ;;  %vm5969_vm15 = vcmp.eq.s32.totalorder %v4527_v28, 9 }
 0x3d6   :  { %v415_v34 = vadd.f32 %v413_v24, %v401_v20  ;;  %v468_v15 = vsel %vm5969_vm15, %v4523_v25, 0.0  ;;  %vm5974_vm15 = vcmp.eq.s32.totalorder %v4537_v33, 10  ;;  %v522_v24 = vpop.permute.xlu0 %521 }
 0x3d7   :  { %v470_v50 = vadd.f32 %v468_v15, %v456_v43  ;;  %v4636_v15 = vld [vmem:[#allocation7 + $0x8] sm:$0xff] }
 0x3d9   :  { %v424_v26 = vpop.permute.xlu1 %423 }
 0x3da   :  { %v427_v32 = vsel %vm5966_vm1, %v424_v26, 0.0  ;;  %vm5973_vm1 = vcmp.eq.s32.totalorder %v4527_v28, 10 }
 0x3db   :  { %v429_v41 = vadd.f32 %v427_v32, %v415_v34  ;;  %v482_v51 = vsel %vm5973_vm1, %v4516_v18, 0.0  ;;  %v483_v18 = vsel %vm5974_vm15, %v480_v57, 0.0  ;;  %vm501_vm1 = vcmp.eq.s32.totalorder %v4537_v33, 12 }
 0x3dc   :  { %v484_v25 = vadd.f32 %v482_v51, %v470_v50  ;;  %vm528_vm15 = vcmp.eq.s32.totalorder %v4527_v28, 14 }
 0x3dd   :  { %v443_v44 = vadd.f32 %v441_v14, %v429_v41  ;;  %v4632_v41 = vld [vmem:[#allocation7] sm:$0xff] }
 0x3de   :  { %v452_v42 = vpop.permute.xlu1 %451  ;;  %v498_v9 = vadd.f32 %v496_v54, %v484_v25 }
 0x3df   :  { %v455_v45 = vsel %vm5970_vm13, %v452_v42, 0.0  ;;  %vm500_vm13 = vcmp.eq.s32.totalorder %v4527_v28, 12 }
 0x3e0   :  { %v457_v53 = vadd.f32 %v455_v45, %v443_v44  ;;  %v510_v23 = vsel %vm500_vm13, %v4533_v31, 0.0 }
 0x3e1   :  { %v512_v17 = vadd.f32 %v510_v23, %v498_v9 }
 0x3e3   :  { %v466_v48 = vpop.permute.xlu1 %465 }
 0x3e4   :  { %v469_v52 = vsel %vm5972_vm0, %v466_v48, 0.0  ;;  %vm514_vm0 = vcmp.eq.s32.totalorder %v4527_v28, 13 }
 0x3e5   :  { %v471_v6 = vadd.f32 %v469_v52, %v457_v53  ;;  %v524_v12 = vsel %vm514_vm0, %v4525_v27, 0.0  ;;  %v525_v27 = vsel %vm515_vm12, %v522_v24, 0.0 }
 0x3e6   :  { %v526_v26 = vadd.f32 %v524_v12, %v512_v17 }
 0x3e7   :  { %v485_v10 = vadd.f32 %v483_v18, %v471_v6 }
 0x3e8   :  { %v494_v7 = vpop.permute.xlu1 %493 }
 0x3e9   :  { %v497_v11 = vsel %vm5976_vm14, %v494_v7, 0.0  ;;  %vm5981_vm14 = vcmp.eq.s32.totalorder %v4537_v33, 14 }
 0x3ea   :  { %v499_v13 = vadd.f32 %v497_v11, %v485_v10 }
 0x3ed   :  { %v508_v16 = vpop.permute.xlu1 %507 }
 0x3ee   :  { %v511_v20 = vsel %vm501_vm1, %v508_v16, 0.0 }
 0x3ef   :  { %v513_v31 = vadd.f32 %v511_v20, %v499_v13 }
 0x3f1   :  { %v527_v37 = vadd.f32 %v525_v27, %v513_v31 }
 0x3f2   :  { %v532_v29 = vpop.permute.xlu1 %531 }
 0x3f3   :  { %v538_v30 = vsel %vm528_vm15, %v532_v29, 0.0 }
 0x3f4   :  { %v540_v32 = vadd.f32 %v538_v30, %v526_v26 }
 0x3f6   :  { %v583_v34 = vadd.f32 %v4508_v5, %v540_v32  ;;  %v536_v22 = vpop.permute.xlu1 %535 }
 0x3f7   :  { %v539_v40 = vsel %vm5981_vm14, %v536_v22, 0.0 }
 0x3f8   :  { %v541_v42 = vadd.f32 %v539_v40, %v527_v37  ;;  %v589_v43 = vmul.f32 0.25, %v583_v34 }
 0x3fa   :  { %v586_v14 = vadd.f32 %v4510_v8, %v541_v42  ;;  %v591_v44 = vadd.f32 %v589_v43, %v4632_v41 }
 0x3fc   :  { %v593_v45 = vsel %vm282_vm2, %v591_v44, -inf  ;;  %v590_v48 = vmul.f32 0.25, %v586_v14 }
 0x3fd   :  { %594 = vmax.xlane.f32.xlu0 %v593_v45 }
 0x3fe   :  { %v592_v5 = vadd.f32 %v590_v48, %v4636_v15 }
 0x400   :  { %v596_v50 = vsel %vm282_vm2, %v592_v5, -inf }
 0x401   :  { %597 = vmax.xlane.f32.xlu1 %v596_v50 }
 0x486   :  { %v595_v51 = vpop.xlane.xlu0 %594 }
 0x487   :  { %v599_v52 = vsub.f32 %v591_v44, %v595_v51 }
 0x489   :  { %v601_v53 = vmul.f32 1.442695, %v599_v52 }
 0x48a   :  { %v598_v54 = vpop.xlane.xlu1 %597 }
 0x48b   :  { %4024 = vpow2.f32 %v601_v53  ;;  %v600_v25 = vsub.f32 %v592_v5, %v598_v54 }
 0x48d   :  { %v603_v8 = vmul.f32 1.442695, %v600_v25 }
 0x48f   :  { %4026 = vpow2.f32 %v603_v8 }
 0x498   :  { %v4025_v57 = vpop.eup %4024 }
 0x499   :  { %v605_v6 = vsel %vm282_vm2, %v4025_v57, 0.0 }
 0x49a   :  { %606 = vadd.xlane.f32.xlu0 %v605_v6 }
 0x49c   :  { %v4027_v7 = vpop.eup %4026 }
 0x49d   :  { %v608_v9 = vsel %vm282_vm2, %v4027_v7, 0.0 }
 0x49e   :  { %609 = vadd.xlane.f32.xlu0 %v608_v9 }
 0x523   :  { %v607_v18 = vpop.xlane.xlu0 %606 }
 0x524   :  { %4028 = vrcp.f32 %v607_v18 }
 0x527   :  { %v610_v10 = vpop.xlane.xlu0 %609 }
 0x528   :  { %4030 = vrcp.f32 %v610_v10 }
 0x531   :  { %v4029_v23 = vpop.eup %4028 }
 0x532   :  { %v613_v11 = vmul.f32 %v4029_v23, %v607_v18 }
 0x534   :  { %v615_v16 = vsub.f32 2.0, %v613_v11 }
 0x535   :  { %v4031_v17 = vpop.eup %4030 }
 0x536   :  { %v617_v12 = vmul.f32 %v4029_v23, %v615_v16  ;;  %v614_v20 = vmul.f32 %v4031_v17, %v610_v10 }
 0x538   :  { %v4643_v13 = vmul.f32 %v4025_v57, %v617_v12  ;;  %v616_v24 = vsub.f32 2.0, %v614_v20 }
 0x53a   :  { %v618_v26 = vmul.f32 %v4031_v17, %v616_v24  ;;  %v622_v31 = vsel %vm330_vm4, %v4643_v13, 0.0  ;;  %v636_v32 = vsel %vm346_vm3, %v4643_v13, 0.0  ;;  %v650_v22 = vsel %vm360_vm5, %v4643_v13, 0.0 }
 0x53b   :  { %v624_v29 = vsel %vm282_vm2, %v622_v31, 0.0  ;;  %v638_v34 = vsel %vm282_vm2, %v636_v32, 0.0  ;;  %v652_v42 = vsel %vm282_vm2, %v650_v22, 0.0  ;;  %v664_v14 = vsel %vm6020_vm7, %v4643_v13, 0.0 }
 0x53c   :  { %v4649_v30 = vmul.f32 %v4027_v7, %v618_v26  ;;  %625 = vadd.xlane.f32.xlu0 %v624_v29  ;;  %v666_v45 = vsel %vm282_vm2, %v664_v14, 0.0  ;;  %v678_v5 = vsel %vm5988_vm10, %v4643_v13, 0.0 }
 0x53d   :  { %v680_v52 = vsel %vm282_vm2, %v678_v5, 0.0 }
 0x53e   :  { %v623_v27 = vsel %vm5978_vm6, %v4649_v30, 0.0  ;;  %v637_v40 = vsel %vm5980_vm8, %v4649_v30, 0.0  ;;  %v651_v44 = vsel %vm5977_vm9, %v4649_v30, 0.0  ;;  %v665_v50 = vsel %vm5979_vm11, %v4649_v30, 0.0 }
 0x53f   :  { %v627_v37 = vsel %vm282_vm2, %v623_v27, 0.0  ;;  %v641_v43 = vsel %vm282_vm2, %v637_v40, 0.0  ;;  %v655_v48 = vsel %vm282_vm2, %v651_v44, 0.0  ;;  %v621_v51 = vpack.c.bf16 %v4649_v30, %v4643_v13 }
 0x540   :  { %639 = vadd.xlane.f32.xlu0 %v638_v34  ;;  %628 = vadd.xlane.f32.xlu1 %v627_v37  ;;  %v669_v53 = vsel %vm282_vm2, %v665_v50, 0.0  ;;  %vm6032_vm9 = vcmp.eq.s32.totalorder %v4527_v28, 5  ;;  %vm6033_vm6 = vcmp.eq.s32.totalorder %v4537_v33, 4  ;;  %vm6034_vm11 = vcmp.eq.s32.totalorder %v4527_v28, 6 }
 0x541   :  { %v692_v54 = vsel %vm6032_vm9, %v4643_v13, 0.0  ;;  %v679_v25 = vsel %vm6033_vm6, %v4649_v30, 0.0  ;;  %v706_v6 = vsel %vm6034_vm11, %v4643_v13, 0.0  ;;  %vm6035_vm8 = vcmp.eq.s32.totalorder %v4537_v33, 5 }
 0x542   :  { %v694_v8 = vsel %vm282_vm2, %v692_v54, 0.0  ;;  %v683_v57 = vsel %vm282_vm2, %v679_v25, 0.0  ;;  %v693_v7 = vsel %vm6035_vm8, %v4649_v30, 0.0  ;;  %v708_v9 = vsel %vm282_vm2, %v706_v6, 0.0 }
 0x543   :  { %v697_v18 = vsel %vm282_vm2, %v693_v7, 0.0  ;;  %vm6036_vm6 = vcmp.eq.s32.totalorder %v4527_v28, 7  ;;  %vm6037_vm9 = vcmp.eq.s32.totalorder %v4537_v33, 6  ;;  %vm6038_vm8 = vcmp.eq.s32.totalorder %v4527_v28, 8 }
 0x544   :  { %653 = vadd.xlane.f32.xlu0 %v652_v42  ;;  %642 = vadd.xlane.f32.xlu1 %v641_v43  ;;  %v720_v10 = vsel %vm6036_vm6, %v4643_v13, 0.0  ;;  %v707_v23 = vsel %vm6037_vm9, %v4649_v30, 0.0  ;;  %v734_v17 = vsel %vm6038_vm8, %v4643_v13, 0.0  ;;  %vm6039_vm11 = vcmp.eq.s32.totalorder %v4537_v33, 7 }
 0x545   :  { %v722_v11 = vsel %vm282_vm2, %v720_v10, 0.0  ;;  %v711_v16 = vsel %vm282_vm2, %v707_v23, 0.0  ;;  %v721_v12 = vsel %vm6039_vm11, %v4649_v30, 0.0  ;;  %v736_v20 = vsel %vm282_vm2, %v734_v17, 0.0 }
 0x546   :  { %v725_v24 = vsel %vm282_vm2, %v721_v12, 0.0  ;;  %vm6040_vm6 = vcmp.eq.s32.totalorder %v4527_v28, 9  ;;  %vm6041_vm9 = vcmp.eq.s32.totalorder %v4537_v33, 8  ;;  %vm6042_vm8 = vcmp.eq.s32.totalorder %v4527_v28, 10 }
 0x547   :  { %v748_v26 = vsel %vm6040_vm6, %v4643_v13, 0.0  ;;  %v735_v31 = vsel %vm6041_vm9, %v4649_v30, 0.0  ;;  %v762_v27 = vsel %vm6042_vm8, %v4643_v13, 0.0  ;;  %vm6043_vm11 = vcmp.eq.s32.totalorder %v4537_v33, 9 }
 0x548   :  { %667 = vadd.xlane.f32.xlu0 %v666_v45  ;;  %656 = vadd.xlane.f32.xlu1 %v655_v48  ;;  %v750_v29 = vsel %vm282_vm2, %v748_v26, 0.0  ;;  %v739_v32 = vsel %vm282_vm2, %v735_v31, 0.0  ;;  %v749_v34 = vsel %vm6043_vm11, %v4649_v30, 0.0  ;;  %v764_v37 = vsel %vm282_vm2, %v762_v27, 0.0 }
 0x549   :  { %v753_v22 = vsel %vm282_vm2, %v749_v34, 0.0  ;;  %vm6044_vm6 = vcmp.eq.s32.totalorder %v4527_v28, 11  ;;  %vm6045_vm9 = vcmp.eq.s32.totalorder %v4537_v33, 10  ;;  %v790_v44 = vsel %vm500_vm13, %v4643_v13, 0.0 }
 0x54a   :  { %v776_v40 = vsel %vm6044_vm6, %v4643_v13, 0.0  ;;  %v763_v42 = vsel %vm6045_vm9, %v4649_v30, 0.0  ;;  %vm6046_vm8 = vcmp.eq.s32.totalorder %v4537_v33, 11  ;;  %v792_v48 = vsel %vm282_vm2, %v790_v44, 0.0 }
 0x54b   :  { %v778_v43 = vsel %vm282_vm2, %v776_v40, 0.0  ;;  %v767_v14 = vsel %vm282_vm2, %v763_v42, 0.0  ;;  %v777_v45 = vsel %vm6046_vm8, %v4649_v30, 0.0  ;;  %v804_v50 = vsel %vm514_vm0, %v4643_v13, 0.0 }
 0x54c   :  { %681 = vadd.xlane.f32.xlu0 %v680_v52  ;;  %670 = vadd.xlane.f32.xlu1 %v669_v53  ;;  %v781_v5 = vsel %vm282_vm2, %v777_v45, 0.0  ;;  %v791_v52 = vsel %vm501_vm1, %v4649_v30, 0.0  ;;  %v806_v53 = vsel %vm282_vm2, %v804_v50, 0.0  ;;  %v818_v25 = vsel %vm528_vm15, %v4643_v13, 0.0 }
 0x54d   :  { %v795_v54 = vsel %vm282_vm2, %v791_v52, 0.0  ;;  %v819_v7 = vsel %vm5981_vm14, %v4649_v30, 0.0  ;;  %vm644_vm11 = vcmp.eq.s32.totalorder %v4518_v21, 1  ;;  %vm630_vm6 = vcmp.eq.s32.totalorder %v4518_v21, 0 }
 0x54e   :  { %vm658_vm9 = vcmp.eq.s32.totalorder %v4518_v21, 2  ;;  %vm672_vm8 = vcmp.eq.s32.totalorder %v4518_v21, 3  ;;  %vm686_vm14 = vcmp.eq.s32.totalorder %v4518_v21, 4 }
 0x54f   :  { %v4786_v40 = vsel %vm658_vm9, 1.0, %v6013_v19  ;;  %v4792_v45 = vsel %vm672_vm8, 1.0, %v6013_v19  ;;  %vm728_vm9 = vcmp.eq.s32.totalorder %v4518_v21, 7  ;;  %vm756_vm8 = vcmp.eq.s32.totalorder %v4518_v21, 9 }
 0x550   :  { %695 = vadd.xlane.f32.xlu0 %v694_v8  ;;  %684 = vadd.xlane.f32.xlu1 %v683_v57  ;;  %v805_v8 = vsel %vm515_vm12, %v4649_v30, 0.0  ;;  %v820_v57 = vsel %vm282_vm2, %v818_v25, 0.0 }
 0x551   :  { %v809_v6 = vsel %vm282_vm2, %v805_v8, 0.0 }
 0x554   :  { %709 = vadd.xlane.f32.xlu0 %v708_v9  ;;  %698 = vadd.xlane.f32.xlu1 %v697_v18  ;;  %v823_v9 = vsel %vm282_vm2, %v819_v7, 0.0 }
 0x558   :  { %723 = vadd.xlane.f32.xlu0 %v722_v11  ;;  %712 = vadd.xlane.f32.xlu1 %v711_v16 }
 0x55c   :  { %737 = vadd.xlane.f32.xlu0 %v736_v20  ;;  %726 = vadd.xlane.f32.xlu1 %v725_v24 }
 0x560   :  { %751 = vadd.xlane.f32.xlu0 %v750_v29  ;;  %740 = vadd.xlane.f32.xlu1 %v739_v32 }
 0x564   :  { %765 = vadd.xlane.f32.xlu0 %v764_v37  ;;  %754 = vadd.xlane.f32.xlu1 %v753_v22  ;;  %v4779_v37 = vsel %vm644_vm11, 1.0, %v6013_v19  ;;  %v4783_v22 = vsel %vm630_vm6, 1.0, %v6013_v19  ;;  %vm700_vm11 = vcmp.eq.s32.totalorder %v4518_v21, 5  ;;  %vm714_vm6 = vcmp.eq.s32.totalorder %v4518_v21, 6 }
 0x565   :  { %6047 = vst [vmem:[#allocation19_spill] sm:$0xff] %v4779_v37  ;;  %6048 = vst [vmem:[#allocation20_spill] sm:$0xff] %v4783_v22 }
 0x568   :  { %779 = vadd.xlane.f32.xlu0 %v778_v43  ;;  %768 = vadd.xlane.f32.xlu1 %v767_v14 }
 0x56c   :  { %793 = vadd.xlane.f32.xlu0 %v792_v48  ;;  %782 = vadd.xlane.f32.xlu1 %v781_v5 }
 0x570   :  { %807 = vadd.xlane.f32.xlu0 %v806_v53  ;;  %796 = vadd.xlane.f32.xlu1 %v795_v54  ;;  %v4800_v53 = vsel %vm686_vm14, 1.0, %v6013_v19  ;;  %vm742_vm14 = vcmp.eq.s32.totalorder %v4518_v21, 8 }
 0x574   :  { %821 = vadd.xlane.f32.xlu0 %v820_v57  ;;  %810 = vadd.xlane.f32.xlu1 %v809_v6 }
 0x578   :  { %824 = vadd.xlane.f32.xlu1 %v823_v9  ;;  %v4806_v9 = vsel %vm700_vm11, 1.0, %v6013_v19  ;;  %vm770_vm11 = vcmp.eq.s32.totalorder %v4518_v21, 10 }
 0x589   :  { %878 = vrot.lane.b32.xlu1 %v4429_v49, %s4237_s23 }
 0x58a   :  { %926 = vrot.lane.b32.xlu0 %v4429_v49, %s4261_s29 }
 0x58d   :  { %1154 = vrot.lane.b32.xlu1 %v4429_v49, %s4262_s21 }
 0x5c5   :  { %v626_v18 = vpop.xlane.xlu0 %625 }
 0x5c6   :  { %v632_v48 = vmul.f32 %v4783_v22, %v626_v18 }
 0x5c9   :  { %v629_v10 = vpop.xlane.xlu1 %628  ;;  %v640_v23 = vpop.xlane.xlu0 %639 }
 0x5ca   :  { %v646_v14 = vmul.f32 %v4779_v37, %v640_v23  ;;  %v633_v5 = vmul.f32 %v4783_v22, %v629_v10 }
 0x5cc   :  { %v648_v8 = vadd.f32 %v646_v14, %v632_v48 }
 0x5cd   :  { %v643_v11 = vpop.xlane.xlu1 %642  ;;  %v654_v16 = vpop.xlane.xlu0 %653 }
 0x5ce   :  { %v647_v44 = vmul.f32 %v4779_v37, %v643_v11  ;;  %v660_v50 = vmul.f32 %v4786_v40, %v654_v16  ;;  %v4812_v16 = vsel %vm714_vm6, 1.0, %v6013_v19  ;;  %vm784_vm6 = vcmp.eq.s32.totalorder %v4518_v21, 11 }
 0x5d0   :  { %v649_v57 = vadd.f32 %v647_v44, %v633_v5  ;;  %v662_v18 = vadd.f32 %v660_v50, %v648_v8  ;;  %v4818_v5 = vsel %vm728_vm9, 1.0, %v6013_v19  ;;  %v4824_v8 = vsel %vm742_vm14, 1.0, %v6013_v19 }
 0x5d1   :  { %v657_v17 = vpop.xlane.xlu1 %656  ;;  %v668_v12 = vpop.xlane.xlu0 %667  ;;  %vm798_vm9 = vcmp.eq.s32.totalorder %v4518_v21, 12  ;;  %vm812_vm14 = vcmp.eq.s32.totalorder %v4518_v21, 13 }
 0x5d2   :  { %v661_v52 = vmul.f32 %v4786_v40, %v657_v17  ;;  %v674_v6 = vmul.f32 %v4792_v45, %v668_v12 }
 0x5d4   :  { %v663_v10 = vadd.f32 %v661_v52, %v649_v57  ;;  %v676_v14 = vadd.f32 %v674_v6, %v662_v18 }
 0x5d5   :  { %v671_v20 = vpop.xlane.xlu1 %670  ;;  %v682_v24 = vpop.xlane.xlu0 %681 }
 0x5d6   :  { %v675_v7 = vmul.f32 %v4792_v45, %v671_v20  ;;  %v688_v23 = vmul.f32 %v4800_v53, %v682_v24 }
 0x5d8   :  { %v677_v20 = vadd.f32 %v675_v7, %v663_v10  ;;  %v690_v24 = vadd.f32 %v688_v23, %v676_v14  ;;  %v4830_v10 = vsel %vm756_vm8, 1.0, %v6013_v19  ;;  %v4836_v14 = vsel %vm770_vm11, 1.0, %v6013_v19 }
 0x5d9   :  { %v685_v26 = vpop.xlane.xlu1 %684  ;;  %v696_v31 = vpop.xlane.xlu0 %695  ;;  %vm826_vm8 = vcmp.eq.s32.totalorder %v4518_v21, 14  ;;  %vm6049_vm11 = vmmov 0  }
 0x5da   :  { %v689_v11 = vmul.f32 %v4800_v53, %v685_v26  ;;  %v702_v44 = vmul.f32 %v4806_v9, %v696_v31 }
 0x5dc   :  { %v691_v26 = vadd.f32 %v689_v11, %v677_v20  ;;  %v704_v6 = vadd.f32 %v702_v44, %v690_v24 }
 0x5dd   :  { %v699_v29 = vpop.xlane.xlu1 %698  ;;  %v710_v32 = vpop.xlane.xlu0 %709 }
 0x5de   :  { %v703_v48 = vmul.f32 %v4806_v9, %v699_v29  ;;  %v716_v50 = vmul.f32 %v4812_v16, %v710_v32 }
 0x5e0   :  { %v705_v29 = vadd.f32 %v703_v48, %v691_v26  ;;  %v718_v32 = vadd.f32 %v716_v50, %v704_v6  ;;  %v4842_v26 = vsel %vm784_vm6, 1.0, %v6013_v19  ;;  %v4848_v6 = vsel %vm798_vm9, 1.0, %v6013_v19 }
 0x5e1   :  { %v713_v27 = vpop.xlane.xlu1 %712  ;;  %v724_v34 = vpop.xlane.xlu0 %723  ;;  %vm6053_vm6 = vcmp.eq.s32.totalorder %v4527_v28, 5  ;;  %vm6054_vm9 = vcmp.eq.s32.totalorder %v4527_v28, 6 }
 0x5e2   :  { %v717_v52 = vmul.f32 %v4812_v16, %v713_v27  ;;  %v730_v7 = vmul.f32 %v4818_v5, %v724_v34 }
 0x5e4   :  { %v719_v27 = vadd.f32 %v717_v52, %v705_v29  ;;  %v732_v44 = vadd.f32 %v730_v7, %v718_v32 }
 0x5e5   :  { %v727_v42 = vpop.xlane.xlu1 %726  ;;  %v738_v43 = vpop.xlane.xlu0 %737 }
 0x5e6   :  { %v731_v18 = vmul.f32 %v4818_v5, %v727_v42  ;;  %v744_v23 = vmul.f32 %v4824_v8, %v738_v43 }
 0x5e8   :  { %v733_v42 = vadd.f32 %v731_v18, %v719_v27  ;;  %v746_v43 = vadd.f32 %v744_v23, %v732_v44  ;;  %v4854_v27 = vsel %vm812_vm14, 1.0, %v6013_v19  ;;  %vm6055_vm14 = vcmp.eq.s32.totalorder %v4527_v28, 7 }
 0x5e9   :  { %v741_v54 = vpop.xlane.xlu1 %740  ;;  %v752_v25 = vpop.xlane.xlu0 %751 }
 0x5ea   :  { %v745_v11 = vmul.f32 %v4824_v8, %v741_v54  ;;  %v758_v48 = vmul.f32 %v4830_v10, %v752_v25 }
 0x5ec   :  { %v747_v54 = vadd.f32 %v745_v11, %v733_v42  ;;  %v760_v25 = vadd.f32 %v758_v48, %v746_v43  ;;  %v4859_v42 = vsel %vm826_vm8, 1.0, %v6013_v19  ;;  %vm6056_vm8 = vcmp.eq.s32.totalorder %v4527_v28, 8 }
 0x5ed   :  { %v755_v17 = vpop.xlane.xlu1 %754  ;;  %v766_v12 = vpop.xlane.xlu0 %765 }
 0x5ee   :  { %v759_v24 = vmul.f32 %v4830_v10, %v755_v17  ;;  %v772_v50 = vmul.f32 %v4836_v14, %v766_v12 }
 0x5f0   :  { %v761_v17 = vadd.f32 %v759_v24, %v747_v54  ;;  %v774_v23 = vadd.f32 %v772_v50, %v760_v25 }
 0x5f1   :  { %v769_v57 = vpop.xlane.xlu1 %768  ;;  %v780_v31 = vpop.xlane.xlu0 %779 }
 0x5f2   :  { %v773_v52 = vmul.f32 %v4836_v14, %v769_v57  ;;  %v786_v18 = vmul.f32 %v4842_v26, %v780_v31 }
 0x5f4   :  { %v775_v12 = vadd.f32 %v773_v52, %v761_v17  ;;  %v788_v48 = vadd.f32 %v786_v18, %v774_v23 }
 0x5f5   :  { %v783_v20 = vpop.xlane.xlu1 %782  ;;  %v794_v34 = vpop.xlane.xlu0 %793 }
 0x5f6   :  { %v787_v32 = vmul.f32 %v4842_v26, %v783_v20  ;;  %v800_v57 = vmul.f32 %v4848_v6, %v794_v34 }
 0x5f8   :  { %v789_v24 = vadd.f32 %v787_v32, %v775_v12  ;;  %v802_v43 = vadd.f32 %v800_v57, %v788_v48 }
 0x5f9   :  { %v797_v29 = vpop.xlane.xlu1 %796  ;;  %v808_v7 = vpop.xlane.xlu0 %807 }
 0x5fa   :  { %v801_v11 = vmul.f32 %v4848_v6, %v797_v29  ;;  %v814_v31 = vmul.f32 %v4854_v27, %v808_v7 }
 0x5fc   :  { %v803_v54 = vadd.f32 %v801_v11, %v789_v24  ;;  %v816_v25 = vadd.f32 %v814_v31, %v802_v43 }
 0x5fd   :  { %v811_v44 = vpop.xlane.xlu1 %810  ;;  %v822_v21 = vpop.xlane.xlu0 %821 }
 0x5fe   :  { %v815_v20 = vmul.f32 %v4854_v27, %v811_v44  ;;  %v828_v50 = vmul.f32 %v4859_v42, %v822_v21 }
 0x600   :  { %v817_v34 = vadd.f32 %v815_v20, %v803_v54  ;;  %v830_v17 = vadd.f32 %v828_v50, %v816_v25  ;;  %v6050_v50 = vmov 13   ;;  %v6052_v25 = vmov 2  }
 0x601   :  { %v825_v52 = vpop.xlane.xlu1 %824 }
 0x602   :  { %v829_v29 = vmul.f32 %v4859_v42, %v825_v52  ;;  %v6051_v52 = vmov 14  }
 0x604   :  { %v831_v59 = vadd.f32 %v829_v29, %v817_v34 }
 0x605   :  { %v879_v4 = vpop.permute.xlu1 %878 }
 0x606   :  { %v832_v3 = vpack.c.bf16 %v831_v59, %v830_v17  ;;  %3699 = vmatpush3.bf16.msra.mxu0 %v879_v4  ;;  %v927_v59 = vpop.permute.xlu0 %926 }
 0x607   :  { %3710 = vmatprep.subr.bf16.mxu0 %v6013_v19 }
 0x608   :  { %3695 = vmatmul.mubr.msk.bf16.vlgmr.msra.gmra.mxu1 %vm282_vm2, %v832_v3 }
 0x609   :  { %3705 = vmatpush3.bf16.xpose.msra.mxu1 %v4420_v39  ;;  %v1155_v7 = vpop.permute.xlu1 %1154  ;;  %3701 = vmatmul.mubr.msk.bf16.vlgmr.msra.gmra.mxu0 %vm282_vm2, %v621_v51 }
 0x60a   :  { %v1157_v18 = vsel %vm282_vm2, %v1155_v7, 0  ;;  %3706 = vmatprep.mubr.msk.bf16.mxu1 %vm6049_vm11, %v6013_v19  ;;  %3712 = vmatprep.mubr.msk.bf16.mxu0 %vm6049_vm11, %v6013_v19 }
 0x60b   :  { %3711 = vmatpush3.bf16.xpose.msra.mxu0 %v1157_v18  ;;  %3716 = vmatprep.subr.bf16.mxu1 %v6013_v19 }
 0x60c   :  { %3722 = vmatprep.subr.bf16.mxu0 %v6013_v19 }
 0x610   :  { %3707 = vmatmul.mubr.msk.bf16.vlgmr.msra.gmra.mxu1 %vm282_vm2, %v927_v59 }
 0x611   :  { %3717 = vmatpush3.bf16.msra.mxu1 %v4416_v38  ;;  %3718 = vmatprep.mubr.msk.bf16.mxu1 %vm6049_vm11, %v6013_v19 }
 0x612   :  { %3713 = vmatmul.mubr.msk.bf16.vlgmr.msra.gmra.mxu0 %vm282_vm2, %v927_v59  ;;  %3728 = vmatprep.subr.bf16.mxu1 %v6013_v19 }
 0x613   :  { %3724 = vmatprep.mubr.msk.bf16.mxu0 %vm6049_vm11, %v6013_v19 }
 0x6c8   :  { %v871_v3 = vpop.f32.mrf.mxu1 }
 0x6c9   :  { %v918_v4 = vpop.f32.mrf.mxu0 }
 0x6ca   :  { %v4887_v13 = vadd.f32 %v918_v4, %v871_v3  ;;  %v3696_v30 = vpop.f32.mrf.mxu1 }
 0x6cb   :  { %v3702_v51 = vpop.f32.mrf.mxu0 }
 0x6cc   :  { %v874_v32 = vpop.f32.mrf.mxu1 }
 0x6cd   :  { %v921_v23 = vpop.f32.mrf.mxu0 }
 0x6ce   :  { %v4889_v12 = vadd.f32 %v921_v23, %v874_v32  ;;  %v3697_v38 = vpop.f32.mrf.mxu1 }
 0x6cf   :  { %v3703_v57 = vpop.f32.mrf.mxu0 }
 0x6d0   :  { %v925_v11 = vpack.c.bf16 %v4889_v12, %v4887_v13  ;;  %v965_v44 = vpop.f32.mrf.mxu1 }
 0x6d1   :  { %999 = vperm.xlu0 %3911, %v965_v44   ;;  %974 = vperm.xlu1 %3909, %v965_v44  }
 0x6d2   :  { %v3708_v21 = vpop.f32.mrf.mxu1  ;;  %v4893_v48 = vpop.f32.mrf.mxu0 }
 0x6d4   :  { %v968_v24 = vpop.f32.mrf.mxu1  ;;  %v3714_v31 = vpop.f32.mrf.mxu0 }
 0x6d5   :  { %3914 = vset.pattern.permute.xlu0 %v6003_v62  ;;  %3910 = vset.pattern.permute.xlu1 %v5993_v56 }
 0x6d6   :  { %v4897_v20 = vpop.f32.mrf.mxu0  ;;  %1035 = vperm.xlu0 %3914, %v965_v44   ;;  %987 = vperm.xlu1 %3910, %v965_v44   ;;  %v3709_v43 = vpop.f32.mrf.mxu1 }
 0x6d8   :  { %v3715_v54 = vpop.f32.mrf.mxu0 }
 0x6da   :  { %3917 = vset.pattern.permute.xlu0 %v5997_v0  ;;  %3912 = vset.pattern.permute.xlu1 %v6007_v46 }
 0x6db   :  { %1071 = vperm.xlu0 %3917, %v965_v44   ;;  %1011 = vperm.xlu1 %3912, %v965_v44  }
 0x6df   :  { %3920 = vset.pattern.permute.xlu0 %v5991_v2  ;;  %3913 = vset.pattern.permute.xlu1 %v6011_v61 }
 0x6e0   :  { %1107 = vperm.xlu0 %3920, %v965_v44   ;;  %1023 = vperm.xlu1 %3913, %v965_v44  }
 0x6e4   :  { %3923 = vset.pattern.permute.xlu0 %v5999_v47  ;;  %3915 = vset.pattern.permute.xlu1 %v6001_v55 }
 0x6e5   :  { %1047 = vperm.xlu1 %3915, %v965_v44   ;;  %979 = vperm.xlu0 %3923, %v968_v24  }
 0x6e9   :  { %3916 = vset.pattern.permute.xlu1 %v6009_v63  ;;  %3926 = vset.pattern.permute.xlu0 %v6007_v46 }
 0x6ea   :  { %1059 = vperm.xlu1 %3916, %v965_v44   ;;  %1015 = vperm.xlu0 %3926, %v968_v24  }
 0x6ee   :  { %3918 = vset.pattern.permute.xlu1 %v5995_v58  ;;  %3929 = vset.pattern.permute.xlu0 %v6001_v55 }
 0x6ef   :  { %1083 = vperm.xlu1 %3918, %v965_v44   ;;  %1051 = vperm.xlu0 %3929, %v968_v24  }
 0x6f3   :  { %3919 = vset.pattern.permute.xlu1 %v6005_v1  ;;  %3932 = vset.pattern.permute.xlu0 %v5995_v58 }
 0x6f4   :  { %1095 = vperm.xlu1 %3919, %v965_v44   ;;  %1087 = vperm.xlu0 %3932, %v968_v24  }
 0x6f8   :  { %3921 = vset.pattern.permute.xlu1 %v5989_v60  ;;  %3935 = vset.pattern.permute.xlu0 %v5989_v60 }
 0x6f9   :  { %1119 = vperm.xlu1 %3921, %v965_v44   ;;  %1123 = vperm.xlu0 %3935, %v968_v24  }
 0x6fd   :  { %3922 = vset.pattern.permute.xlu1 %v6050_v50  ;;  %3936 = vset.pattern.permute.xlu0 %v6051_v52 }
 0x6fe   :  { %1131 = vperm.xlu1 %3922, %v965_v44   ;;  %1143 = vperm.xlu0 %3936, %v965_v44  }
 0x702   :  { %3924 = vset.pattern.permute.xlu1 %v5993_v56  ;;  %3940 = vset.pattern.permute.xlu0 %v5993_v56 }
 0x703   :  { %991 = vperm.xlu1 %3924, %v968_v24  }
 0x707   :  { %3925 = vset.pattern.permute.xlu1 %v6052_v25 }
 0x708   :  { %1003 = vperm.xlu1 %3925, %v968_v24  }
 0x70c   :  { %3927 = vset.pattern.permute.xlu1 %v6011_v61 }
 0x70d   :  { %1027 = vperm.xlu1 %3927, %v968_v24  }
 0x711   :  { %3928 = vset.pattern.permute.xlu1 %v6003_v62 }
 0x712   :  { %1039 = vperm.xlu1 %3928, %v968_v24  }
 0x716   :  { %3930 = vset.pattern.permute.xlu1 %v6009_v63 }
 0x717   :  { %1063 = vperm.xlu1 %3930, %v968_v24  }
 0x71b   :  { %3931 = vset.pattern.permute.xlu1 %v5997_v0 }
 0x71c   :  { %1075 = vperm.xlu1 %3931, %v968_v24  }
 0x720   :  { %3933 = vset.pattern.permute.xlu1 %v6005_v1 }
 0x721   :  { %1099 = vperm.xlu1 %3933, %v968_v24  }
 0x725   :  { %3934 = vset.pattern.permute.xlu1 %v5991_v2 }
 0x726   :  { %1111 = vperm.xlu1 %3934, %v968_v24  }
 0x72a   :  { %3937 = vset.pattern.permute.xlu1 %v6050_v50 }
 0x72b   :  { %1135 = vperm.xlu1 %3937, %v968_v24  }
 0x72f   :  { %3938 = vset.pattern.permute.xlu1 %v6051_v52 }
 0x730   :  { %1147 = vperm.xlu1 %3938, %v968_v24  }
 0x734   :  { %3939 = vset.pattern.permute.xlu1 %v5999_v47 }
 0x74c   :  { %v1000_v34 = vpop.permute.xlu0 %999  ;;  %v975_v29 = vpop.permute.xlu1 %974 }
 0x74d   :  { %v982_v18 = vsel %vm330_vm4, %v975_v29, 0.0  ;;  %v1006_v4 = vsel %vm360_vm5, %v1000_v34, 0.0 }
 0x751   :  { %v1036_v17 = vpop.permute.xlu0 %1035  ;;  %v988_v7 = vpop.permute.xlu1 %987 }
 0x752   :  { %v994_v59 = vsel %vm346_vm3, %v988_v7, 0.0  ;;  %v1042_v31 = vsel %vm6053_vm6, %v1036_v17, 0.0  ;;  %vm6057_vm6 = vcmp.eq.s32.totalorder %v4527_v28, 9 }
 0x753   :  { %v996_v3 = vadd.f32 %v994_v59, %v982_v18 }
 0x755   :  { %v1008_v32 = vadd.f32 %v1006_v4, %v996_v3 }
 0x756   :  { %v1072_v30 = vpop.permute.xlu0 %1071  ;;  %v1012_v51 = vpop.permute.xlu1 %1011 }
 0x757   :  { %v1018_v23 = vsel %vm6020_vm7, %v1012_v51, 0.0  ;;  %v1078_v51 = vsel %vm6056_vm8, %v1072_v30, 0.0  ;;  %vm6062_vm8 = vcmp.eq.s32.totalorder %v4537_v33, 2 }
 0x758   :  { %v1020_v38 = vadd.f32 %v1018_v23, %v1008_v32 }
 0x75b   :  { %v1108_v57 = vpop.permute.xlu0 %1107  ;;  %v1024_v44 = vpop.permute.xlu1 %1023 }
 0x75c   :  { %v1030_v21 = vsel %vm5988_vm10, %v1024_v44, 0.0  ;;  %vm6059_vm10 = vcmp.eq.s32.totalorder %v4527_v28, 11 }
 0x75d   :  { %v1032_v24 = vadd.f32 %v1030_v21, %v1020_v38 }
 0x75f   :  { %v1044_v29 = vadd.f32 %v1042_v31, %v1032_v24 }
 0x760   :  { %v1048_v43 = vpop.permute.xlu1 %1047  ;;  %v980_v54 = vpop.permute.xlu0 %979 }
 0x761   :  { %v1054_v34 = vsel %vm6054_vm9, %v1048_v43, 0.0  ;;  %vm6058_vm9 = vcmp.eq.s32.totalorder %v4527_v28, 10 }
 0x762   :  { %v1056_v7 = vadd.f32 %v1054_v34, %v1044_v29  ;;  %v1114_v29 = vsel %vm6059_vm10, %v1108_v57, 0.0  ;;  %vm6060_vm10 = vcmp.eq.s32.totalorder %v4537_v33, 1 }
 0x765   :  { %v1060_v18 = vpop.permute.xlu1 %1059  ;;  %v1016_v59 = vpop.permute.xlu0 %1015 }
 0x766   :  { %v1066_v3 = vsel %vm6055_vm14, %v1060_v18, 0.0  ;;  %vm6061_vm14 = vcmp.eq.s32.totalorder %v4537_v33, 0 }
 0x767   :  { %v1068_v4 = vadd.f32 %v1066_v3, %v1056_v7 }
 0x769   :  { %v1080_v38 = vadd.f32 %v1078_v51, %v1068_v4 }
 0x76a   :  { %v1084_v32 = vpop.permute.xlu1 %1083  ;;  %v1052_v23 = vpop.permute.xlu0 %1051 }
 0x76b   :  { %v1090_v17 = vsel %vm6057_vm6, %v1084_v32, 0.0  ;;  %vm6063_vm6 = vcmp.eq.s32.totalorder %v4537_v33, 3 }
 0x76c   :  { %v1092_v44 = vadd.f32 %v1090_v17, %v1080_v38 }
 0x76f   :  { %v1096_v21 = vpop.permute.xlu1 %1095  ;;  %v1088_v24 = vpop.permute.xlu0 %1087 }
 0x770   :  { %v1102_v31 = vsel %vm6058_vm9, %v1096_v21, 0.0  ;;  %vm6064_vm9 = vcmp.eq.s32.totalorder %v4537_v33, 4 }
 0x771   :  { %v1104_v43 = vadd.f32 %v1102_v31, %v1092_v44 }
 0x773   :  { %v1116_v18 = vadd.f32 %v1114_v29, %v1104_v43  ;;  %v983_v29 = vsel %vm6061_vm14, %v980_v54, 0.0  ;;  %vm6066_vm14 = vcmp.eq.s32.totalorder %v4537_v33, 6 }
 0x774   :  { %v1120_v34 = vpop.permute.xlu1 %1119  ;;  %v1124_v7 = vpop.permute.xlu0 %1123 }
 0x775   :  { %v1126_v30 = vsel %vm500_vm13, %v1120_v34, 0.0 }
 0x776   :  { %v1128_v3 = vadd.f32 %v1126_v30, %v1116_v18 }
 0x779   :  { %v1132_v4 = vpop.permute.xlu1 %1131  ;;  %v1144_v51 = vpop.permute.xlu0 %1143 }
 0x77a   :  { %v1138_v32 = vsel %vm514_vm0, %v1132_v4, 0.0  ;;  %v1150_v17 = vsel %vm528_vm15, %v1144_v51, 0.0 }
 0x77b   :  { %v1140_v38 = vadd.f32 %v1138_v32, %v1128_v3 }
 0x77d   :  { %v1152_v44 = vadd.f32 %v1150_v17, %v1140_v38 }
 0x77e   :  { %v992_v21 = vpop.permute.xlu1 %991 }
 0x77f   :  { %v1194_v57 = vadd.f32 %v4893_v48, %v1152_v44  ;;  %v995_v31 = vsel %vm6060_vm10, %v992_v21, 0.0  ;;  %v1019_v48 = vsel %vm6063_vm6, %v1016_v59, 0.0  ;;  %vm6065_vm10 = vcmp.eq.s32.totalorder %v4537_v33, 5 }
 0x780   :  { %v997_v34 = vadd.f32 %v995_v31, %v983_v29  ;;  %vm6068_vm6 = vcmp.eq.s32.totalorder %v4537_v33, 8 }
 0x781   :  { %v1200_v43 = vmul.f32 0.25, %v1194_v57  ;;  %v1055_v57 = vsel %vm6066_vm14, %v1052_v23, 0.0  ;;  %vm6071_vm14 = vcmp.eq.s32.totalorder %v4537_v33, 11 }
 0x783   :  { %v1004_v18 = vpop.permute.xlu1 %1003  ;;  %v1202_v30 = vadd.f32 %v1200_v43, %v4632_v41 }
 0x784   :  { %v1007_v3 = vsel %vm6062_vm8, %v1004_v18, 0.0  ;;  %vm6067_vm8 = vcmp.eq.s32.totalorder %v4537_v33, 7 }
 0x785   :  { %v1009_v4 = vadd.f32 %v1007_v3, %v997_v34  ;;  %v1204_v51 = vsel %vm282_vm2, %v1202_v30, -inf }
 0x786   :  { %1205 = vmax.xlane.f32.xlu1 %v1204_v51 }
 0x787   :  { %v1021_v38 = vadd.f32 %v1019_v48, %v1009_v4 }
 0x788   :  { %v1028_v32 = vpop.permute.xlu1 %1027 }
 0x789   :  { %v1031_v17 = vsel %vm6064_vm9, %v1028_v32, 0.0  ;;  %vm6069_vm9 = vcmp.eq.s32.totalorder %v4537_v33, 9 }
 0x78a   :  { %v1033_v54 = vadd.f32 %v1031_v17, %v1021_v38  ;;  %v1091_v4 = vsel %vm6069_vm9, %v1088_v24, 0.0  ;;  %vm6074_vm9 = vcmp.eq.s32.totalorder %v4527_v28, 5 }
 0x78d   :  { %v1040_v44 = vpop.permute.xlu1 %1039 }
 0x78e   :  { %v1043_v41 = vsel %vm6065_vm10, %v1040_v44, 0.0  ;;  %vm6070_vm10 = vcmp.eq.s32.totalorder %v4537_v33, 10  ;;  %v1127_v44 = vsel %vm501_vm1, %v1124_v7, 0.0 }
 0x78f   :  { %v1045_v21 = vadd.f32 %v1043_v41, %v1033_v54 }
 0x791   :  { %v1057_v43 = vadd.f32 %v1055_v57, %v1045_v21 }
 0x792   :  { %v1064_v31 = vpop.permute.xlu1 %1063 }
 0x793   :  { %v1067_v29 = vsel %vm6067_vm8, %v1064_v31, 0.0  ;;  %vm6072_vm8 = vcmp.eq.s32.totalorder %v4537_v33, 14 }
 0x794   :  { %v1069_v59 = vadd.f32 %v1067_v29, %v1057_v43 }
 0x797   :  { %v1076_v34 = vpop.permute.xlu1 %1075 }
 0x798   :  { %v1079_v18 = vsel %vm6068_vm6, %v1076_v34, 0.0  ;;  %vm6073_vm6 = vcmp.eq.s32.totalorder %v4527_v28, 4 }
 0x799   :  { %v1081_v3 = vadd.f32 %v1079_v18, %v1069_v59 }
 0x79b   :  { %v1093_v48 = vadd.f32 %v1091_v4, %v1081_v3 }
 0x79c   :  { %v1100_v51 = vpop.permute.xlu1 %1099 }
 0x79d   :  { %v1103_v32 = vsel %vm6070_vm10, %v1100_v51, 0.0  ;;  %vm6075_vm10 = vcmp.eq.s32.totalorder %v4527_v28, 6 }
 0x79e   :  { %v1105_v23 = vadd.f32 %v1103_v32, %v1093_v48 }
 0x7a1   :  { %v1112_v38 = vpop.permute.xlu1 %1111 }
 0x7a2   :  { %v1115_v17 = vsel %vm6071_vm14, %v1112_v38, 0.0  ;;  %vm6076_vm14 = vcmp.eq.s32.totalorder %v4527_v28, 7 }
 0x7a3   :  { %v1117_v54 = vadd.f32 %v1115_v17, %v1105_v23 }
 0x7a5   :  { %v1129_v21 = vadd.f32 %v1127_v44, %v1117_v54 }
 0x7a6   :  { %v1136_v41 = vpop.permute.xlu1 %1135 }
 0x7a7   :  { %v1139_v57 = vsel %vm515_vm12, %v1136_v41, 0.0 }
 0x7a8   :  { %v1141_v24 = vadd.f32 %v1139_v57, %v1129_v21 }
 0x7ab   :  { %v1148_v31 = vpop.permute.xlu1 %1147 }
 0x7ac   :  { %v1151_v43 = vsel %vm6072_vm8, %v1148_v31, 0.0  ;;  %vm6077_vm8 = vcmp.eq.s32.totalorder %v4527_v28, 8 }
 0x7ad   :  { %v1153_v29 = vadd.f32 %v1151_v43, %v1141_v24 }
 0x7af   :  { %v1197_v59 = vadd.f32 %v4897_v20, %v1153_v29 }
 0x7b1   :  { %v1201_v34 = vmul.f32 0.25, %v1197_v59 }
 0x7b3   :  { %v1203_v18 = vadd.f32 %v1201_v34, %v4636_v15 }
 0x7b5   :  { %v1207_v3 = vsel %vm282_vm2, %v1203_v18, -inf }
 0x7b6   :  { %1208 = vmax.xlane.f32.xlu0 %v1207_v3 }
 0x80f   :  { %v1206_v7 = vpop.xlane.xlu1 %1205 }
 0x810   :  { %v1210_v4 = vsub.f32 %v1202_v30, %v1206_v7 }
 0x812   :  { %v1212_v51 = vmul.f32 1.442695, %v1210_v4 }
 0x814   :  { %4032 = vpow2.f32 %v1212_v51 }
 0x821   :  { %v4033_v48 = vpop.eup %4032 }
 0x822   :  { %v1216_v32 = vsel %vm282_vm2, %v4033_v48, 0.0 }
 0x823   :  { %1217 = vadd.xlane.f32.xlu0 %v1216_v32 }
 0x83f   :  { %v1209_v23 = vpop.xlane.xlu0 %1208 }
 0x840   :  { %v1211_v38 = vsub.f32 %v1203_v18, %v1209_v23 }
 0x842   :  { %v1214_v17 = vmul.f32 1.442695, %v1211_v38 }
 0x844   :  { %4034 = vpow2.f32 %v1214_v17 }
 0x851   :  { %v4035_v54 = vpop.eup %4034 }
 0x852   :  { %v1219_v20 = vsel %vm282_vm2, %v4035_v54, 0.0 }
 0x853   :  { %1220 = vadd.xlane.f32.xlu0 %v1219_v20 }
 0x8ac   :  { %v1218_v15 = vpop.xlane.xlu0 %1217 }
 0x8ad   :  { %4036 = vrcp.f32 %v1218_v15 }
 0x8ba   :  { %v4037_v44 = vpop.eup %4036 }
 0x8bb   :  { %v1224_v41 = vmul.f32 %v4037_v44, %v1218_v15 }
 0x8bd   :  { %v1226_v21 = vsub.f32 2.0, %v1224_v41 }
 0x8bf   :  { %v1228_v30 = vmul.f32 %v4037_v44, %v1226_v21 }
 0x8c1   :  { %v4995_v57 = vmul.f32 %v4033_v48, %v1228_v30 }
 0x8c3   :  { %v1233_v24 = vsel %vm330_vm4, %v4995_v57, 0.0  ;;  %v1245_v43 = vsel %vm346_vm3, %v4995_v57, 0.0  ;;  %v1257_v59 = vsel %vm360_vm5, %v4995_v57, 0.0  ;;  %v1269_v18 = vsel %vm6020_vm7, %v4995_v57, 0.0 }
 0x8c4   :  { %v1235_v31 = vsel %vm282_vm2, %v1233_v24, 0.0  ;;  %v1247_v29 = vsel %vm282_vm2, %v1245_v43, 0.0  ;;  %v1259_v34 = vsel %vm282_vm2, %v1257_v59, 0.0  ;;  %v1271_v3 = vsel %vm282_vm2, %v1269_v18, 0.0 }
 0x8c5   :  { %1236 = vadd.xlane.f32.xlu1 %v1235_v31  ;;  %v1281_v7 = vsel %vm6073_vm6, %v4995_v57, 0.0  ;;  %v1293_v51 = vsel %vm6074_vm9, %v4995_v57, 0.0  ;;  %v1305_v32 = vsel %vm6075_vm10, %v4995_v57, 0.0  ;;  %v1317_v17 = vsel %vm6076_vm14, %v4995_v57, 0.0 }
 0x8c6   :  { %v1283_v4 = vsel %vm282_vm2, %v1281_v7, 0.0  ;;  %v1295_v48 = vsel %vm282_vm2, %v1293_v51, 0.0  ;;  %v1307_v38 = vsel %vm282_vm2, %v1305_v32, 0.0  ;;  %v1319_v20 = vsel %vm282_vm2, %v1317_v17, 0.0 }
 0x8c7   :  { %v1329_v15 = vsel %vm6077_vm8, %v4995_v57, 0.0  ;;  %vm6078_vm6 = vcmp.eq.s32.totalorder %v4527_v28, 9  ;;  %vm6079_vm9 = vcmp.eq.s32.totalorder %v4527_v28, 10  ;;  %vm6080_vm10 = vcmp.eq.s32.totalorder %v4527_v28, 11 }
 0x8c8   :  { %v1331_v44 = vsel %vm282_vm2, %v1329_v15, 0.0  ;;  %v1341_v41 = vsel %vm6078_vm6, %v4995_v57, 0.0  ;;  %v1353_v30 = vsel %vm6079_vm9, %v4995_v57, 0.0  ;;  %v1365_v59 = vsel %vm6080_vm10, %v4995_v57, 0.0 }
 0x8c9   :  { %1248 = vadd.xlane.f32.xlu1 %v1247_v29  ;;  %v1343_v21 = vsel %vm282_vm2, %v1341_v41, 0.0  ;;  %v1355_v43 = vsel %vm282_vm2, %v1353_v30, 0.0  ;;  %v1367_v18 = vsel %vm282_vm2, %v1365_v59, 0.0  ;;  %v1377_v7 = vsel %vm500_vm13, %v4995_v57, 0.0 }
 0x8ca   :  { %vm6081_vm14 = vcmp.eq.s32.totalorder %v4537_v33, 0  ;;  %v1379_v51 = vsel %vm282_vm2, %v1377_v7, 0.0  ;;  %vm6082_vm8 = vcmp.eq.s32.totalorder %v4537_v33, 1  ;;  %v1401_v17 = vsel %vm528_vm15, %v4995_v57, 0.0 }
 0x8cb   :  { %vm6083_vm6 = vcmp.eq.s32.totalorder %v4537_v33, 2  ;;  %vm6084_vm9 = vcmp.eq.s32.totalorder %v4537_v33, 3  ;;  %vm6085_vm10 = vcmp.eq.s32.totalorder %v4537_v33, 4 }
 0x8cd   :  { %1260 = vadd.xlane.f32.xlu1 %v1259_v34 }
 0x8d1   :  { %1272 = vadd.xlane.f32.xlu1 %v1271_v3 }
 0x8d5   :  { %1284 = vadd.xlane.f32.xlu1 %v1283_v4 }
 0x8d9   :  { %1296 = vadd.xlane.f32.xlu1 %v1295_v48 }
 0x8dc   :  { %v1221_v23 = vpop.xlane.xlu0 %1220 }
 0x8dd   :  { %4038 = vrcp.f32 %v1221_v23  ;;  %1308 = vadd.xlane.f32.xlu1 %v1307_v38 }
 0x8e1   :  { %1320 = vadd.xlane.f32.xlu1 %v1319_v20 }
 0x8e5   :  { %1332 = vadd.xlane.f32.xlu1 %v1331_v44  ;;  %v1403_v44 = vsel %vm282_vm2, %v1401_v17, 0.0 }
 0x8e9   :  { %1344 = vadd.xlane.f32.xlu1 %v1343_v21 }
 0x8ea   :  { %v4039_v24 = vpop.eup %4038 }
 0x8eb   :  { %v1225_v31 = vmul.f32 %v4039_v24, %v1221_v23 }
 0x8ed   :  { %v1227_v29 = vsub.f32 2.0, %v1225_v31  ;;  %1356 = vadd.xlane.f32.xlu1 %v1355_v43 }
 0x8ef   :  { %v1229_v34 = vmul.f32 %v4039_v24, %v1227_v29 }
 0x8f1   :  { %v5045_v3 = vmul.f32 %v4035_v54, %v1229_v34  ;;  %1368 = vadd.xlane.f32.xlu1 %v1367_v18  ;;  %v1389_v54 = vsel %vm514_vm0, %v4995_v57, 0.0 }
 0x8f2   :  { %v1391_v23 = vsel %vm282_vm2, %v1389_v54, 0.0 }
 0x8f3   :  { %v1234_v4 = vsel %vm6081_vm14, %v5045_v3, 0.0  ;;  %v1246_v32 = vsel %vm6082_vm8, %v5045_v3, 0.0  ;;  %v1258_v20 = vsel %vm6083_vm6, %v5045_v3, 0.0  ;;  %v1232_v15 = vpack.c.bf16 %v5045_v3, %v4995_v57 }
 0x8f4   :  { %v1238_v48 = vsel %vm282_vm2, %v1234_v4, 0.0  ;;  %v1250_v38 = vsel %vm282_vm2, %v1246_v32, 0.0  ;;  %v1262_v41 = vsel %vm282_vm2, %v1258_v20, 0.0  ;;  %v1270_v21 = vsel %vm6084_vm9, %v5045_v3, 0.0 }
 0x8f5   :  { %1380 = vadd.xlane.f32.xlu1 %v1379_v51  ;;  %1239 = vadd.xlane.f32.xlu0 %v1238_v48  ;;  %v1274_v30 = vsel %vm282_vm2, %v1270_v21, 0.0  ;;  %v1282_v24 = vsel %vm6085_vm10, %v5045_v3, 0.0  ;;  %vm6086_vm14 = vcmp.eq.s32.totalorder %v4537_v33, 5  ;;  %vm6087_vm8 = vcmp.eq.s32.totalorder %v4537_v33, 6 }
 0x8f6   :  { %v1286_v31 = vsel %vm282_vm2, %v1282_v24, 0.0  ;;  %v1294_v43 = vsel %vm6086_vm14, %v5045_v3, 0.0  ;;  %v1306_v59 = vsel %vm6087_vm8, %v5045_v3, 0.0  ;;  %vm6088_vm6 = vcmp.eq.s32.totalorder %v4537_v33, 7 }
 0x8f7   :  { %v1298_v29 = vsel %vm282_vm2, %v1294_v43, 0.0  ;;  %v1310_v34 = vsel %vm282_vm2, %v1306_v59, 0.0  ;;  %v1318_v18 = vsel %vm6088_vm6, %v5045_v3, 0.0  ;;  %vm6089_vm9 = vcmp.eq.s32.totalorder %v4537_v33, 8 }
 0x8f8   :  { %v1322_v7 = vsel %vm282_vm2, %v1318_v18, 0.0  ;;  %v1330_v4 = vsel %vm6089_vm9, %v5045_v3, 0.0  ;;  %vm6090_vm10 = vcmp.eq.s32.totalorder %v4537_v33, 9  ;;  %vm6091_vm14 = vcmp.eq.s32.totalorder %v4537_v33, 10 }
 0x8f9   :  { %1392 = vadd.xlane.f32.xlu1 %v1391_v23  ;;  %1251 = vadd.xlane.f32.xlu0 %v1250_v38  ;;  %v1334_v51 = vsel %vm282_vm2, %v1330_v4, 0.0  ;;  %v1342_v48 = vsel %vm6090_vm10, %v5045_v3, 0.0  ;;  %vm6092_vm8 = vcmp.eq.s32.totalorder %v4537_v33, 11  ;;  %v1378_v17 = vsel %vm501_vm1, %v5045_v3, 0.0 }
 0x8fa   :  { %v1346_v54 = vsel %vm282_vm2, %v1342_v48, 0.0  ;;  %v1366_v23 = vsel %vm6092_vm8, %v5045_v3, 0.0  ;;  %v1382_v20 = vsel %vm282_vm2, %v1378_v17, 0.0  ;;  %vm6093_vm6 = vcmp.eq.s32.totalorder %v4537_v33, 14 }
 0x8fb   :  { %v1370_v38 = vsel %vm282_vm2, %v1366_v23, 0.0  ;;  %v1402_v21 = vsel %vm6093_vm6, %v5045_v3, 0.0  ;;  %vm6094_vm9 = vcmask 261120  }
 0x8fc   :  { %vm6095_vm10 = vmmov %vm6094_vm9 }
 0x8fd   :  { %1404 = vadd.xlane.f32.xlu1 %v1403_v44  ;;  %1263 = vadd.xlane.f32.xlu0 %v1262_v41  ;;  %v1390_v44 = vsel %vm515_vm12, %v5045_v3, 0.0  ;;  %vm6097_vm8 = vmmov %vm6094_vm9 }
 0x8fe   :  { %v1394_v41 = vsel %vm282_vm2, %v1390_v44, 0.0  ;;  %vm6098_vm6 = vmmov %vm6097_vm8 }
 0x901   :  { %1275 = vadd.xlane.f32.xlu0 %v1274_v30  ;;  %v1406_v30 = vsel %vm282_vm2, %v1402_v21, 0.0  ;;  %v4002_v21 = vld [vmem:[%s5948_s8] sm:$0xff]  }
 0x905   :  { %1287 = vadd.xlane.f32.xlu0 %v1286_v31 }
 0x909   :  { %1299 = vadd.xlane.f32.xlu0 %v1298_v29 }
 0x90d   :  { %1311 = vadd.xlane.f32.xlu0 %v1310_v34 }
 0x90e   :  { %1458 = vrot.lane.b32.xlu1 %v4429_v49, %s4263_s22  ;;  %v1354_v49 = vsel %vm6091_vm14, %v5045_v3, 0.0  ;;  %vm6096_vm14 = vmmov %vm6094_vm9 }
 0x90f   :  { %v1358_v32 = vsel %vm282_vm2, %v1354_v49, 0.0 }
 0x911   :  { %1323 = vadd.xlane.f32.xlu0 %v1322_v7 }
 0x915   :  { %1335 = vadd.xlane.f32.xlu0 %v1334_v51 }
 0x919   :  { %1347 = vadd.xlane.f32.xlu0 %v1346_v54 }
 0x91d   :  { %1359 = vadd.xlane.f32.xlu0 %v1358_v32 }
 0x921   :  { %1371 = vadd.xlane.f32.xlu0 %v1370_v38 }
 0x925   :  { %1383 = vadd.xlane.f32.xlu0 %v1382_v20 }
 0x929   :  { %1395 = vadd.xlane.f32.xlu0 %v1394_v41 }
 0x92d   :  { %1407 = vadd.xlane.f32.xlu0 %v1406_v30 }
 0x94e   :  { %v1237_v24 = vpop.xlane.xlu1 %1236 }
 0x952   :  { %v1249_v31 = vpop.xlane.xlu1 %1248 }
 0x953   :  { %v1253_v57 = vmul.f32 %v1249_v31, %v4779_v37 }
 0x956   :  { %v1261_v43 = vpop.xlane.xlu1 %1260 }
 0x95a   :  { %v1273_v29 = vpop.xlane.xlu1 %1272 }
 0x95b   :  { %v1277_v12 = vmul.f32 %v1273_v29, %v4792_v45 }
 0x95e   :  { %v1285_v59 = vpop.xlane.xlu1 %1284 }
 0x95f   :  { %v1289_v31 = vmul.f32 %v1285_v59, %v4800_v53 }
 0x962   :  { %v1297_v34 = vpop.xlane.xlu1 %1296 }
 0x966   :  { %v1309_v18 = vpop.xlane.xlu1 %1308 }
 0x96a   :  { %v1321_v7 = vpop.xlane.xlu1 %1320 }
 0x96b   :  { %v1325_v59 = vmul.f32 %v1321_v7, %v4818_v5 }
 0x96e   :  { %v1333_v4 = vpop.xlane.xlu1 %1332 }
 0x972   :  { %v1345_v51 = vpop.xlane.xlu1 %1344 }
 0x976   :  { %v1357_v48 = vpop.xlane.xlu1 %1356 }
 0x97a   :  { %v5123_v54 = vpop.xlane.xlu1 %1368 }
 0x97e   :  { %v5125_v49 = vpop.xlane.xlu1 %1380  ;;  %v1240_v32 = vpop.xlane.xlu0 %1239 }
 0x97f   :  { %v1242_v56 = vmul.f32 %v1240_v32, %v4783_v22 }
 0x982   :  { %v5127_v23 = vpop.xlane.xlu1 %1392  ;;  %v1252_v38 = vpop.xlane.xlu0 %1251 }
 0x983   :  { %v1254_v3 = vmul.f32 %v1252_v38, %v4779_v37 }
 0x986   :  { %v5129_v17 = vpop.xlane.xlu1 %1404  ;;  %v1264_v20 = vpop.xlane.xlu0 %1263 }
 0x987   :  { %v1266_v58 = vmul.f32 %v1264_v20, %v4786_v40 }
 0x98a   :  { %v1459_v44 = vpop.permute.xlu1 %1458  ;;  %v1276_v41 = vpop.xlane.xlu0 %1275 }
 0x98b   :  { %3723 = vmatpush3.bf16.msra.mxu0 %v1459_v44  ;;  %v1278_v47 = vmul.f32 %v1276_v41, %v4792_v45 }
 0x98c   :  { %3734 = vmatprep.subr.bf16.mxu0 %v6013_v19 }
 0x98e   :  { %v1288_v30 = vpop.xlane.xlu0 %1287  ;;  %3725 = vmatmul.mubr.msk.bf16.vlgmr.msra.gmra.mxu0 %vm282_vm2, %v1232_v15  ;;  %v1241_v15 = vmul.f32 %v1237_v24, %v4783_v22 }
 0x98f   :  { %3735 = vmatpush3.bf16.msra.mxu0 %v4002_v21  ;;  %3736 = vmatprep.mubr.msk.bf16.mxu0 %vm6049_vm11, %v6013_v19  ;;  %v1265_v21 = vmul.f32 %v1261_v43, %v4786_v40  ;;  %v1290_v38 = vmul.f32 %v1288_v30, %v4800_v53  ;;  %v1301_v43 = vmul.f32 %v1297_v34, %v4806_v9 }
 0x990   :  { %3748 = vmatprep.subr.bf16.mxu0 %v6013_v19  ;;  %v1255_v13 = vadd.f32 %v1253_v57, %v1241_v15  ;;  %v1313_v57 = vmul.f32 %v1309_v18, %v4812_v16 }
 0x992   :  { %v1300_v60 = vpop.xlane.xlu0 %1299  ;;  %v1267_v55 = vadd.f32 %v1265_v21, %v1255_v13 }
 0x993   :  { %v1302_v20 = vmul.f32 %v1300_v60, %v4806_v9 }
 0x994   :  { %v1279_v1 = vadd.f32 %v1277_v12, %v1267_v55  ;;  %v1337_v55 = vmul.f32 %v1333_v4, %v4824_v8  ;;  %v1373_v4 = vmul.f32 %v5123_v54, %v4842_v26  ;;  %v1409_v54 = vmul.f32 %v5129_v17, %v4859_v42 }
 0x996   :  { %v1312_v44 = vpop.xlane.xlu0 %1311  ;;  %3737 = vmatmul.mubr.msk.bf16.vlgmr.msra.gmra.mxu0 %vm282_vm2, %v925_v11  ;;  %v1256_v11 = vadd.f32 %v1254_v3, %v1242_v56  ;;  %v1291_v46 = vadd.f32 %v1289_v31, %v1279_v1  ;;  %v1349_v1 = vmul.f32 %v1345_v51, %v4830_v10  ;;  %v1385_v51 = vmul.f32 %v5125_v49, %v4848_v6 }
 0x997   :  { %3756 = vmatprep.mubr.msk.bf16.mxu0 %vm6049_vm11, %v6013_v19  ;;  %v1314_v56 = vmul.f32 %v1312_v44, %v4812_v16 }
 0x998   :  { %v1268_v62 = vadd.f32 %v1266_v58, %v1256_v11  ;;  %v1303_v3 = vadd.f32 %v1301_v43, %v1291_v46  ;;  %v1361_v46 = vmul.f32 %v1357_v48, %v4836_v14 }
 0x99a   :  { %v1324_v2 = vpop.xlane.xlu0 %1323  ;;  %v1280_v32 = vadd.f32 %v1278_v47, %v1268_v62  ;;  %v1315_v15 = vadd.f32 %v1313_v57, %v1303_v3 }
 0x99b   :  { %v1326_v30 = vmul.f32 %v1324_v2, %v4818_v5 }
 0x99c   :  { %v1292_v29 = vadd.f32 %v1290_v38, %v1280_v32  ;;  %v1327_v62 = vadd.f32 %v1325_v59, %v1315_v15  ;;  %v1397_v32 = vmul.f32 %v5127_v23, %v4854_v27  ;;  %v4003_v23 = vld [vmem:[%s5948_s8 + $0x8] sm:$0xff]  }
 0x99e   :  { %v1336_v0 = vpop.xlane.xlu0 %1335  ;;  %v1304_v58 = vadd.f32 %v1302_v20, %v1292_v29  ;;  %v1339_v21 = vadd.f32 %v1337_v55, %v1327_v62 }
 0x99f   :  { %v1338_v47 = vmul.f32 %v1336_v0, %v4824_v8 }
 0x9a0   :  { %v1316_v34 = vadd.f32 %v1314_v56, %v1304_v58  ;;  %v1351_v12 = vadd.f32 %v1349_v1, %v1339_v21 }
 0x9a2   :  { %v1348_v24 = vpop.xlane.xlu0 %1347  ;;  %v1328_v18 = vadd.f32 %v1326_v30, %v1316_v34  ;;  %v1363_v31 = vadd.f32 %v1361_v46, %v1351_v12 }
 0x9a3   :  { %v1350_v44 = vmul.f32 %v1348_v24, %v4830_v10 }
 0x9a4   :  { %v1340_v7 = vadd.f32 %v1338_v47, %v1328_v18  ;;  %v1375_v48 = vadd.f32 %v1373_v4, %v1363_v31 }
 0x9a6   :  { %v1360_v41 = vpop.xlane.xlu0 %1359  ;;  %v1352_v11 = vadd.f32 %v1350_v44, %v1340_v7  ;;  %v1387_v29 = vadd.f32 %v1385_v51, %v1375_v48 }
 0x9a7   :  { %v1362_v13 = vmul.f32 %v1360_v41, %v4836_v14 }
 0x9a8   :  { %v1399_v3 = vadd.f32 %v1397_v32, %v1387_v29 }
 0x9a9   :  { %v1364_v38 = vadd.f32 %v1362_v13, %v1352_v11  ;;  %v3536_v11 = vld [vmem:[%s5949_s9] ss:$0 sm:$0xff] }
 0x9aa   :  { %v1372_v60 = vpop.xlane.xlu0 %1371  ;;  %v1411_v58 = vadd.f32 %v1409_v54, %v1399_v3 }
 0x9ab   :  { %v1374_v0 = vmul.f32 %v1372_v60, %v4842_v26 }
 0x9ad   :  { %v1376_v20 = vadd.f32 %v1374_v0, %v1364_v38 }
 0x9ae   :  { %v1384_v2 = vpop.xlane.xlu0 %1383 }
 0x9af   :  { %v1386_v24 = vmul.f32 %v1384_v2, %v4848_v6 }
 0x9b1   :  { %v1388_v56 = vadd.f32 %v1386_v24, %v1376_v20 }
 0x9b2   :  { %v1396_v43 = vpop.xlane.xlu0 %1395 }
 0x9b3   :  { %v1398_v57 = vmul.f32 %v1396_v43, %v4854_v27 }
 0x9b5   :  { %v1400_v59 = vadd.f32 %v1398_v57, %v1388_v56 }
 0x9b6   :  { %v1408_v41 = vpop.xlane.xlu0 %1407 }
 0x9b7   :  { %v1410_v49 = vmul.f32 %v1408_v41, %v4859_v42 }
 0x9b9   :  { %v1412_v30 = vadd.f32 %v1410_v49, %v1400_v59 }
 0x9bb   :  { %v1413_v15 = vpack.c.bf16 %v1412_v30, %v1411_v58 }
 0x9bd   :  { %3719 = vmatmul.mubr.msk.bf16.vlgmr.msra.gmra.mxu1 %vm282_vm2, %v1413_v15 }
 0x9be   :  { %3730 = vmatprep.mubr.msk.bf16.mxu1 %vm6049_vm11, %v6013_v19  ;;  %3729 = vmatpush3.bf16.msra.mxu1 %v4003_v23  ;;  %v4005_v23 = vld [vmem:[%s5952_s12] sm:$0xff]  }
 0x9bf   :  { %3740 = vmatprep.subr.bf16.mxu1 %v6013_v19 }
 0xa4e   :  { %v1498_v17 = vpop.f32.mrf.mxu0 }
 0xa50   :  { %v3726_v55 = vpop.f32.mrf.mxu0 }
 0xa52   :  { %v1501_v34 = vpop.f32.mrf.mxu0 }
 0xa54   :  { %v3727_v47 = vpop.f32.mrf.mxu0 }
 0xa56   :  { %v1599_v60 = vpop.f32.mrf.mxu0 }
 0xa58   :  { %v3738_v62 = vpop.f32.mrf.mxu0 }
 0xa5a   :  { %v1602_v1 = vpop.f32.mrf.mxu0 }
 0xa5c   :  { %v3739_v18 = vpop.f32.mrf.mxu0 }
 0xa7d   :  { %v1451_v44 = vpop.f32.mrf.mxu1 }
 0xa7e   :  { %v1499_v7 = vadd.f32 %v1498_v17, %v1451_v44  ;;  %v3537_v44 = vld [vmem:[%s5950_s10] ss:$0 sm:$0xff] }
 0xa7f   :  { %v3720_v21 = vpop.f32.mrf.mxu1 }
 0xa81   :  { %v1454_v46 = vpop.f32.mrf.mxu1 }
 0xa82   :  { %v1502_v13 = vadd.f32 %v1501_v34, %v1454_v46 }
 0xa83   :  { %v3721_v2 = vpop.f32.mrf.mxu1 }
 0xa84   :  { %v1505_v12 = vpack.c.bf16 %v1502_v13, %v1499_v7  ;;  %v3538_v13 = vld [vmem:[%s5951_s11] ss:$0 sm:$0xff] }
 0xa86   :  { %3731 = vmatmul.mubr.msk.bf16.vlgmr.msra.gmra.mxu1 %vm282_vm2, %v1505_v12 }
 0xa87   :  { %3744 = vmatprep.mubr.msk.bf16.mxu1 %vm6049_vm11, %v6013_v19 }
 0xb46   :  { %v1549_v4 = vpop.f32.mrf.mxu1 }
 0xb47   :  { %v1600_v0 = vadd.f32 %v1599_v60, %v1549_v4 }
 0xb48   :  { %v3732_v31 = vpop.f32.mrf.mxu1 }
 0xb49   :  { %v1613_v51 = vadd.f32 %v3536_v11, %v1600_v0  ;;  %v4006_v0 = vld [vmem:[%s5954_s14 + $0x18] sm:$0xff]   ;;  %v4007_v31 = vld [vmem:[%s5954_s14 + $0x10] sm:$0xff]  }
 0xb4a   :  { %v1552_v38 = vpop.f32.mrf.mxu1  ;;  %3749 = vmatpush3.bf16.msra.mxu0 %v4006_v0 }
 0xb4b   :  { %v1603_v24 = vadd.f32 %v1602_v1, %v1552_v38  ;;  %v1615_v43 = vadd.f32 %v1613_v51, %v4407_v35  ;;  %3750 = vmatprep.subr.bf16.mxu0 %v6013_v19  ;;  %v4008_v51 = vld [vmem:[%s5954_s14 + $0x8] sm:$0xff]   ;;  %v4009_v38 = vld [vmem:[%s5954_s14] sm:$0xff]  }
 0xb4c   :  { %v3733_v48 = vpop.f32.mrf.mxu1 }
 0xb4d   :  { %v1614_v32 = vadd.f32 %v3536_v11, %v1603_v24  ;;  %v1619_v20 = vsel %vm6094_vm9, %v1615_v43, 0.0  ;;  %v3539_v24 = vld [vmem:[%s5953_s13] ss:$0 sm:$0xff]  ;;  %vm6019_vm9 = vcmask 523264  }
 0xb4e   :  { %1620 = vadd.xlane.f32.xlu0 %v1619_v20  ;;  %3751 = vmatpush3.bf16.msra.mxu0 %v4007_v31 }
 0xb4f   :  { %v1616_v57 = vadd.f32 %v1614_v32, %v4409_v36  ;;  %v4004_v36 = vld [vmem:[%s5952_s12 + $0x8] sm:$0xff]   ;;  %3752 = vmatprep.subr.bf16.mxu0 %v6013_v19 }
 0xb50   :  { %3741 = vmatpush3.bf16.msra.mxu1 %v4004_v36 }
 0xb51   :  { %v1622_v29 = vsel %vm6095_vm10, %v1616_v57, 0.0  ;;  %3742 = vmatprep.subr.bf16.mxu1 %v6013_v19  ;;  %vm6099_vm10 = vmmov %vm6098_vm6 }
 0xb52   :  { %1623 = vadd.xlane.f32.xlu0 %v1622_v29  ;;  %3753 = vmatpush3.bf16.msra.mxu0 %v4008_v51 }
 0xb53   :  { %3754 = vmatprep.subr.bf16.mxu0 %v6013_v19 }
 0xb54   :  { %3743 = vmatpush3.bf16.msra.mxu1 %v4005_v23 }
 0xb55   :  { %3760 = vmatprep.subr.bf16.mxu1 %v6013_v19 }
 0xb56   :  { %3755 = vmatpush3.bf16.msra.mxu0 %v4009_v38 }
 0xb57   :  { %3774 = vmatprep.subr.bf16.mxu0 %v6013_v19 }
 0xbd7   :  { %v1621_v54 = vpop.xlane.xlu0 %1620 }
 0xbd8   :  { %v1625_v56 = vmul.f32 0.03125, %v1621_v54 }
 0xbda   :  { %v1627_v41 = vsub.f32 %v1615_v43, %v1625_v56 }
 0xbdb   :  { %v1624_v3 = vpop.xlane.xlu0 %1623 }
 0xbdc   :  { %v1626_v59 = vmul.f32 0.03125, %v1624_v3  ;;  %v1629_v49 = vmul.f32 %v1627_v41, %v1627_v41 }
 0xbde   :  { %v1628_v58 = vsub.f32 %v1616_v57, %v1626_v59  ;;  %v1631_v30 = vsel %vm6096_vm14, %v1629_v49, 0.0  ;;  %vm6100_vm14 = vmmov %vm6098_vm6 }
 0xbdf   :  { %1632 = vadd.xlane.f32.xlu0 %v1631_v30 }
 0xbe0   :  { %v1630_v35 = vmul.f32 %v1628_v58, %v1628_v58 }
 0xbe2   :  { %v1634_v15 = vsel %vm6097_vm8, %v1630_v35, 0.0  ;;  %vm6101_vm8 = vmmov %vm6098_vm6 }
 0xbe3   :  { %1635 = vadd.xlane.f32.xlu0 %v1634_v15 }
 0xc68   :  { %v1633_v17 = vpop.xlane.xlu0 %1632 }
 0xc69   :  { %v1637_v55 = vmul.f32 0.03125, %v1633_v17 }
 0xc6b   :  { %v1639_v34 = vadd.f32 1e-12, %v1637_v55 }
 0xc6c   :  { %v1636_v47 = vpop.xlane.xlu0 %1635 }
 0xc6d   :  { %4040 = vrsqrt.f32 %v1639_v34  ;;  %v1638_v60 = vmul.f32 0.03125, %v1636_v47 }
 0xc6f   :  { %v1640_v62 = vadd.f32 1e-12, %v1638_v60 }
 0xc71   :  { %4042 = vrsqrt.f32 %v1640_v62 }
 0xc7a   :  { %v4041_v1 = vpop.eup %4040 }
 0xc7b   :  { %v1643_v18 = vmul.f32 %v4041_v1, %v1627_v41 }
 0xc7d   :  { %v1651_v7 = vmul.f32 %v3537_v44, %v1643_v18  ;;  %v3543_v18 = vld [vmem:[%s5955_s15] ss:$0 sm:$0xff] }
 0xc7e   :  { %v4043_v21 = vpop.eup %4042 }
 0xc7f   :  { %v1644_v46 = vmul.f32 %v4043_v21, %v1628_v58  ;;  %v1659_v12 = vadd.f32 %v3538_v13, %v1651_v7 }
 0xc81   :  { %v1652_v2 = vmul.f32 %v3537_v44, %v1644_v46 }
 0xc83   :  { %v1660_v4 = vadd.f32 %v3538_v13, %v1652_v2 }
 0xc85   :  { %v1661_v11 = vpack.c.bf16 %v1660_v4, %v1659_v12 }
 0xc87   :  { %3745 = vmatmul.mubr.msk.bf16.vlgmr.msra.gmra.mxu1 %vm6098_vm6, %v1661_v11 }
 0xc88   :  { %3764 = vmatprep.mubr.msk.bf16.mxu1 %vm6049_vm11, %v6013_v19 }
 0xd47   :  { %v1722_v43 = vpop.f32.mrf.mxu1 }
 0xd48   :  { %v1723_v48 = vadd.f32 %v3539_v24, %v1722_v43 }
 0xd49   :  { %v3746_v32 = vpop.f32.mrf.mxu1 }
 0xd4a   :  { %v1731_v20 = vmul.f32 0.044715, %v1723_v48  ;;  %v1729_v55 = vmul.f32 0.5, %v1723_v48 }
 0xd4b   :  { %v1725_v57 = vpop.f32.mrf.mxu1 }
 0xd4c   :  { %v1733_v29 = vmul.f32 %v1731_v20, %v1723_v48  ;;  %v1726_v54 = vadd.f32 %v3539_v24, %v1725_v57 }
 0xd4d   :  { %v3747_v56 = vpop.f32.mrf.mxu1 }
 0xd4e   :  { %v1735_v41 = vmul.f32 %v1733_v29, %v1723_v48  ;;  %v1732_v3 = vmul.f32 0.044715, %v1726_v54  ;;  %v1730_v34 = vmul.f32 0.5, %v1726_v54  ;;  %v4011_v56 = vld [vmem:[%s5946_s6 + $0x10] sm:$0xff]  }
 0xd50   :  { %v1737_v59 = vadd.f32 %v1735_v41, %v1723_v48  ;;  %v1734_v49 = vmul.f32 %v1732_v3, %v1726_v54 }
 0xd52   :  { %v1739_v58 = vmul.f32 0.7978846, %v1737_v59  ;;  %v1736_v30 = vmul.f32 %v1734_v49, %v1726_v54 }
 0xd54   :  { %4044 = vtanh.f32 %v1739_v58  ;;  %v1738_v35 = vadd.f32 %v1736_v30, %v1726_v54 }
 0xd56   :  { %v1740_v15 = vmul.f32 0.7978846, %v1738_v35 }
 0xd58   :  { %4046 = vtanh.f32 %v1740_v15 }
 0xd61   :  { %v4045_v36 = vpop.eup %4044 }
 0xd62   :  { %v1743_v23 = vadd.f32 1.0, %v4045_v36  ;;  %v3549_v36 = vld [vmem:[%s5956_s16] ss:$0 sm:$0xff] }
 0xd64   :  { %v1745_v60 = vmul.f32 %v1743_v23, %v1729_v55 }
 0xd65   :  { %v4047_v17 = vpop.eup %4046 }
 0xd66   :  { %v1744_v47 = vadd.f32 1.0, %v4047_v17 }
 0xd68   :  { %v1746_v62 = vmul.f32 %v1744_v47, %v1730_v34  ;;  %v3550_v34 = vld [vmem:[%s5957_s17] ss:$0 sm:$0xff] }
 0xd6a   :  { %v1747_v1 = vpack.c.bf16 %v1746_v62, %v1745_v60 }
 0xd6c   :  { %3757 = vmatmul.mubr.msk.bf16.vlgmr.msra.gmra.mxu0 %vm6019_vm9, %v1747_v1  ;;  %vm6124_vm9 = vcmp.eq.s32.totalorder %v4537_v33, 6 }
 0xd6d   :  { %3776 = vmatprep.mubr.msk.bf16.mxu0 %vm6049_vm11, %v6013_v19 }
 0xe2c   :  { %v1825_v44 = vpop.f32.mrf.mxu0 }
 0xe2d   :  { %v1826_v21 = vadd.f32 %v3543_v18, %v1825_v44  ;;  %v3556_v44 = vld [vmem:[%s5947_s7 + $0x1] ss:$0 sm:$0xff] }
 0xe2e   :  { %v3758_v46 = vpop.f32.mrf.mxu0 }
 0xe2f   :  { %v1832_v7 = vadd.f32 %v1826_v21, %v1659_v12 }
 0xe30   :  { %v1828_v13 = vpop.f32.mrf.mxu0 }
 0xe31   :  { %v1829_v2 = vadd.f32 %v3543_v18, %v1828_v13  ;;  %v1836_v11 = vsel %vm6099_vm10, %v1832_v7, 0.0  ;;  %vm6104_vm10 = vmmov %vm6098_vm6 }
 0xe32   :  { %1837 = vadd.xlane.f32.xlu1 %v1836_v11  ;;  %v3759_v0 = vpop.f32.mrf.mxu0 }
 0xe33   :  { %v1833_v31 = vadd.f32 %v1829_v2, %v1660_v4  ;;  %v4010_v4 = vld [vmem:[%s5946_s6 + $0x18] sm:$0xff]   ;;  %v5281_v0 = vld [vmem:[#allocation8] sm:$0xff]  }
 0xe34   :  { %3761 = vmatpush3.bf16.msra.mxu1 %v4010_v4  ;;  %v6112_v4 = vmov 9  }
 0xe35   :  { %v1839_v51 = vsel %vm6100_vm14, %v1833_v31, 0.0  ;;  %3762 = vmatprep.subr.bf16.mxu1 %v6013_v19  ;;  %vm6116_vm14 = vcmp.eq.s32.totalorder %v4537_v33, 1 }
 0xe36   :  { %1840 = vadd.xlane.f32.xlu0 %v1839_v51 }
 0xe38   :  { %3763 = vmatpush3.bf16.msra.mxu1 %v4011_v56  ;;  %v6113_v56 = vmov 1  }
 0xe39   :  { %3768 = vmatprep.subr.bf16.mxu1 %v6013_v19 }
 0xebb   :  { %v1838_v38 = vpop.xlane.xlu1 %1837 }
 0xebc   :  { %v1842_v24 = vmul.f32 0.03125, %v1838_v38 }
 0xebe   :  { %v1844_v43 = vsub.f32 %v1832_v7, %v1842_v24 }
 0xebf   :  { %v1841_v48 = vpop.xlane.xlu0 %1840 }
 0xec0   :  { %v1843_v32 = vmul.f32 0.03125, %v1841_v48  ;;  %v1846_v20 = vmul.f32 %v1844_v43, %v1844_v43 }
 0xec2   :  { %v1845_v57 = vsub.f32 %v1833_v31, %v1843_v32  ;;  %v1848_v29 = vsel %vm6101_vm8, %v1846_v20, 0.0  ;;  %v6106_v32 = vmov 3   ;;  %v6107_v20 = vmov 10  }
 0xec3   :  { %1849 = vadd.xlane.f32.xlu0 %v1848_v29  ;;  %v6109_v29 = vmov 6   ;;  %vm6117_vm8 = vcmp.eq.s32.totalorder %v4537_v33, 0 }
 0xec4   :  { %v1847_v12 = vmul.f32 %v1845_v57, %v1845_v57 }
 0xec6   :  { %v1851_v54 = vsel %vm6098_vm6, %v1847_v12, 0.0  ;;  %v6110_v12 = vmov 0   ;;  %vm6118_vm6 = vcmp.eq.s32.totalorder %v4537_v33, 2 }
 0xec7   :  { %1852 = vadd.xlane.f32.xlu0 %v1851_v54  ;;  %v6111_v54 = vmov 8  }
 0xf4c   :  { %v1850_v41 = vpop.xlane.xlu0 %1849 }
 0xf4d   :  { %v1854_v3 = vmul.f32 0.03125, %v1850_v41  ;;  %v6114_v41 = vmov 11  }
 0xf4f   :  { %v1856_v59 = vadd.f32 1e-12, %v1854_v3  ;;  %v6115_v3 = vmov 12  }
 0xf50   :  { %v1853_v49 = vpop.xlane.xlu0 %1852 }
 0xf51   :  { %4048 = vrsqrt.f32 %v1856_v59  ;;  %v1855_v58 = vmul.f32 0.03125, %v1853_v49 }
 0xf53   :  { %v1857_v30 = vadd.f32 1e-12, %v1855_v58 }
 0xf55   :  { %4050 = vrsqrt.f32 %v1857_v30 }
 0xf5e   :  { %v4049_v35 = vpop.eup %4048 }
 0xf5f   :  { %v1860_v15 = vmul.f32 %v4049_v35, %v1844_v43 }
 0xf61   :  { %v1868_v55 = vmul.f32 %v3549_v36, %v1860_v15 }
 0xf62   :  { %v4051_v23 = vpop.eup %4050 }
 0xf63   :  { %v1861_v17 = vmul.f32 %v4051_v23, %v1845_v57  ;;  %v5261_v60 = vadd.f32 %v3550_v34, %v1868_v55  ;;  %v6108_v57 = vmov 5  }
 0xf65   :  { %v1869_v47 = vmul.f32 %v3549_v36, %v1861_v17  ;;  %6102 = vst [vmem:[#allocation21_spill] sm:$0xff] %v5261_v60 }
 0xf67   :  { %v5263_v62 = vadd.f32 %v3550_v34, %v1869_v47 }
 0xf69   :  { %6103 = vst [vmem:[#allocation22_spill] sm:$0xff] %v5263_v62  ;;  %v1878_v1 = vpack.c.bf16 %v5263_v62, %v5261_v60 }
 0xf6b   :  { %3765 = vmatmul.mubr.msk.bf16.vlgmr.msra.gmra.mxu1 %vm6104_vm10, %v1878_v1  ;;  %vm6119_vm10 = vcmp.eq.s32.totalorder %v4537_v33, 3 }
 0xf6c   :  { %3769 = vmatpush3.bf16.xpose.msra.mxu1 %v4420_v39  ;;  %3770 = vmatprep.mubr.msk.bf16.mxu1 %vm6049_vm11, %v6013_v19 }
 0xf6d   :  { %3780 = vmatprep.subr.bf16.mxu1 %v6013_v19 }
0x102b   :  { %v1941_v18 = vpop.f32.mrf.mxu1 }
0x102c   :  { %v1942_v7 = vadd.f32 %v3556_v44, %v1941_v18 }
0x102d   :  { %v3766_v21 = vpop.f32.mrf.mxu1 }
0x102f   :  { %v1944_v46 = vpop.f32.mrf.mxu1 }
0x1030   :  { %v1945_v13 = vadd.f32 %v3556_v44, %v1944_v46 }
0x1031   :  { %v3767_v2 = vpop.f32.mrf.mxu1 }
0x1032   :  { %v5275_v11 = vpack.c.bf16 %v1945_v13, %v1942_v7 }
0x1034   :  { %6105 = vst [vmem:[#allocation23_spill] sm:$0xff] %v5275_v11  ;;  %2181 = vrot.lane.b32.xlu0 %v5275_v11, %s4247_s28  ;;  %3771 = vmatmul.mubr.msk.bf16.vlgmr.msra.gmra.mxu1 %vm282_vm2, %v5275_v11 }
0x1035   :  { %3781 = vmatpush3.bf16.msra.mxu1 %v5281_v0  ;;  %3782 = vmatprep.mubr.msk.bf16.mxu1 %vm6049_vm11, %v6013_v19 }
0x1036   :  { %3792 = vmatprep.subr.bf16.mxu1 %v6013_v19 }
0x10a6   :  { %v2182_v31 = vpop.permute.xlu0 %2181 }
0x10a7   :  { %v2184_v51 = vsel %vm282_vm2, %v2182_v31, 0 }
0x10a8   :  { %3775 = vmatpush3.bf16.xpose.msra.mxu0 %v2184_v51 }
0x10a9   :  { %3786 = vmatprep.subr.bf16.mxu0 %v6013_v19 }
0x10af   :  { %3777 = vmatmul.mubr.msk.bf16.vlgmr.msra.gmra.mxu0 %vm282_vm2, %v5275_v11 }
0x10b0   :  { %3788 = vmatprep.mubr.msk.bf16.mxu0 %vm6049_vm11, %v6013_v19 }
0x10f4   :  { %v1991_v38 = vpop.f32.mrf.mxu1 }
0x10f5   :  { %2013 = vperm.xlu0 %3940, %v1991_v38   ;;  %2000 = vperm.xlu1 %3939, %v1991_v38  }
0x10f6   :  { %v3772_v24 = vpop.f32.mrf.mxu1 }
0x10f8   :  { %v1994_v43 = vpop.f32.mrf.mxu1 }
0x10f9   :  { %3943 = vset.pattern.permute.xlu0 %v6011_v61  ;;  %3941 = vset.pattern.permute.xlu1 %v6052_v25 }
0x10fa   :  { %2049 = vperm.xlu0 %3943, %v1991_v38   ;;  %2025 = vperm.xlu1 %3941, %v1991_v38   ;;  %v3773_v48 = vpop.f32.mrf.mxu1 }
0x10fe   :  { %3946 = vset.pattern.permute.xlu0 %v6009_v63  ;;  %3942 = vset.pattern.permute.xlu1 %v6106_v32 }
0x10ff   :  { %2085 = vperm.xlu0 %3946, %v1991_v38   ;;  %2037 = vperm.xlu1 %3942, %v1991_v38  }
0x1103   :  { %3949 = vset.pattern.permute.xlu0 %v6107_v20  ;;  %3944 = vset.pattern.permute.xlu1 %v6108_v57 }
0x1104   :  { %2121 = vperm.xlu0 %3949, %v1991_v38   ;;  %2061 = vperm.xlu1 %3944, %v1991_v38  }
0x1108   :  { %3952 = vset.pattern.permute.xlu0 %v6050_v50  ;;  %3945 = vset.pattern.permute.xlu1 %v6109_v29 }
0x1109   :  { %2157 = vperm.xlu0 %3952, %v1991_v38   ;;  %2073 = vperm.xlu1 %3945, %v1991_v38  }
0x110d   :  { %3953 = vset.pattern.permute.xlu0 %v6110_v12  ;;  %3947 = vset.pattern.permute.xlu1 %v6111_v54 }
0x110e   :  { %2097 = vperm.xlu1 %3947, %v1991_v38   ;;  %2005 = vperm.xlu0 %3953, %v1994_v43  }
0x1112   :  { %3948 = vset.pattern.permute.xlu1 %v6112_v4  ;;  %3954 = vset.pattern.permute.xlu0 %v6113_v56 }
0x1113   :  { %2109 = vperm.xlu1 %3948, %v1991_v38   ;;  %2017 = vperm.xlu0 %3954, %v1994_v43  }
0x1117   :  { %3950 = vset.pattern.permute.xlu1 %v6114_v41  ;;  %3955 = vset.pattern.permute.xlu0 %v6052_v25 }
0x1118   :  { %2133 = vperm.xlu1 %3950, %v1991_v38   ;;  %2029 = vperm.xlu0 %3955, %v1994_v43  }
0x111c   :  { %3951 = vset.pattern.permute.xlu1 %v6115_v3  ;;  %3958 = vset.pattern.permute.xlu0 %v6108_v57 }
0x111d   :  { %2145 = vperm.xlu1 %3951, %v1991_v38   ;;  %2065 = vperm.xlu0 %3958, %v1994_v43  }
0x1121   :  { %3956 = vset.pattern.permute.xlu1 %v6106_v32  ;;  %3961 = vset.pattern.permute.xlu0 %v6111_v54 }
0x1122   :  { %2041 = vperm.xlu1 %3956, %v1994_v43   ;;  %2101 = vperm.xlu0 %3961, %v1994_v43  }
0x1126   :  { %3957 = vset.pattern.permute.xlu1 %v6011_v61  ;;  %3964 = vset.pattern.permute.xlu0 %v6114_v41 }
0x1127   :  { %2053 = vperm.xlu1 %3957, %v1994_v43   ;;  %2137 = vperm.xlu0 %3964, %v1994_v43  }
0x112b   :  { %3959 = vset.pattern.permute.xlu1 %v6109_v29  ;;  %3968 = vset.pattern.permute.xlu0 %v6051_v52 }
0x112c   :  { %2077 = vperm.xlu1 %3959, %v1994_v43   ;;  %2173 = vperm.xlu0 %3968, %v1994_v43  }
0x1130   :  { %3960 = vset.pattern.permute.xlu1 %v6009_v63  ;;  %3971 = vset.pattern.permute.xlu0 %v6052_v25 }
0x1131   :  { %2089 = vperm.xlu1 %3960, %v1994_v43  }
0x1135   :  { %3962 = vset.pattern.permute.xlu1 %v6112_v4 }
0x1136   :  { %2113 = vperm.xlu1 %3962, %v1994_v43  }
0x113a   :  { %3963 = vset.pattern.permute.xlu1 %v6107_v20 }
0x113b   :  { %2125 = vperm.xlu1 %3963, %v1994_v43  }
0x113f   :  { %3965 = vset.pattern.permute.xlu1 %v6115_v3 }
0x1140   :  { %2149 = vperm.xlu1 %3965, %v1994_v43  }
0x1144   :  { %3966 = vset.pattern.permute.xlu1 %v6050_v50 }
0x1145   :  { %2161 = vperm.xlu1 %3966, %v1994_v43  }
0x1149   :  { %3967 = vset.pattern.permute.xlu1 %v6051_v52 }
0x114a   :  { %2169 = vperm.xlu1 %3967, %v1991_v38  }
0x114e   :  { %3969 = vset.pattern.permute.xlu1 %v6110_v12 }
0x116f   :  { %v5323_v59 = vpop.f32.mrf.mxu0 }
0x1170   :  { %v2014_v49 = vpop.permute.xlu0 %2013  ;;  %v2001_v58 = vpop.permute.xlu1 %2000 }
0x1171   :  { %v3778_v30 = vpop.f32.mrf.mxu0  ;;  %v2020_v38 = vsel %vm346_vm3, %v2014_v49, 0.0  ;;  %v2008_v24 = vsel %vm330_vm4, %v2001_v58, 0.0 }
0x1172   :  { %v2022_v61 = vadd.f32 %v2020_v38, %v2008_v24 }
0x1173   :  { %v5325_v35 = vpop.f32.mrf.mxu0 }
0x1175   :  { %v3779_v15 = vpop.f32.mrf.mxu0  ;;  %v2050_v36 = vpop.permute.xlu0 %2049 }
0x1176   :  { %v2026_v23 = vpop.permute.xlu1 %2025 }
0x1177   :  { %v2032_v15 = vsel %vm360_vm5, %v2026_v23, 0.0 }
0x1178   :  { %v2034_v58 = vadd.f32 %v2032_v15, %v2022_v61 }
0x117a   :  { %v2038_v17 = vpop.permute.xlu1 %2037  ;;  %v2086_v55 = vpop.permute.xlu0 %2085 }
0x117b   :  { %v2044_v49 = vsel %vm6020_vm7, %v2038_v17, 0.0  ;;  %vm6125_vm7 = vcmp.eq.s32.totalorder %v4527_v28, 6 }
0x117f   :  { %v2062_v34 = vpop.permute.xlu1 %2061  ;;  %v2122_v47 = vpop.permute.xlu0 %2121 }
0x1184   :  { %v2074_v1 = vpop.permute.xlu1 %2073  ;;  %v5327_v18 = vpop.permute.xlu0 %2157 }
0x1189   :  { %v2098_v44 = vpop.permute.xlu1 %2097  ;;  %v2006_v21 = vpop.permute.xlu0 %2005 }
0x118a   :  { %v2009_v43 = vsel %vm6117_vm8, %v2006_v21, 0.0  ;;  %v2046_v21 = vadd.f32 %v2044_v49, %v2034_v58  ;;  %vm6121_vm8 = vcmp.eq.s32.totalorder %v4527_v28, 4 }
0x118b   :  { %v2056_v23 = vsel %vm6121_vm8, %v2050_v36, 0.0  ;;  %vm6127_vm8 = vcmp.eq.s32.totalorder %v4527_v28, 7 }
0x118c   :  { %v2092_v15 = vsel %vm6127_vm8, %v2086_v55, 0.0  ;;  %vm6133_vm8 = vcmp.eq.s32.totalorder %v4527_v28, 10 }
0x118e   :  { %v2110_v46 = vpop.permute.xlu1 %2109  ;;  %v2018_v13 = vpop.permute.xlu0 %2017 }
0x118f   :  { %v2021_v51 = vsel %vm6116_vm14, %v2018_v13, 0.0  ;;  %vm6120_vm14 = vcmp.eq.s32.totalorder %v4537_v33, 4 }
0x1190   :  { %v2023_v63 = vadd.f32 %v2021_v51, %v2009_v43  ;;  %v2058_v51 = vadd.f32 %v2056_v23, %v2046_v21 }
0x1193   :  { %v2134_v7 = vpop.permute.xlu1 %2133  ;;  %v2030_v31 = vpop.permute.xlu0 %2029 }
0x1194   :  { %v2033_v48 = vsel %vm6118_vm6, %v2030_v31, 0.0  ;;  %vm6122_vm6 = vcmp.eq.s32.totalorder %v4537_v33, 5 }
0x1195   :  { %v2035_v19 = vadd.f32 %v2033_v48, %v2023_v63 }
0x1198   :  { %v2146_v2 = vpop.permute.xlu1 %2145  ;;  %v2066_v25 = vpop.permute.xlu0 %2065 }
0x1199   :  { %v2069_v38 = vsel %vm6122_vm6, %v2066_v25, 0.0  ;;  %vm6128_vm6 = vcmp.eq.s32.totalorder %v4537_v33, 8 }
0x119d   :  { %v2042_v30 = vpop.permute.xlu1 %2041 }
0x119e   :  { %v2045_v13 = vsel %vm6119_vm10, %v2042_v30, 0.0  ;;  %vm6123_vm10 = vcmp.eq.s32.totalorder %v4527_v28, 5  ;;  %v2102_v30 = vpop.permute.xlu0 %2101 }
0x119f   :  { %v2047_v62 = vadd.f32 %v2045_v13, %v2035_v19  ;;  %v2068_v63 = vsel %vm6123_vm10, %v2062_v34, 0.0  ;;  %vm6131_vm10 = vcmp.eq.s32.totalorder %v4527_v28, 9 }
0x11a0   :  { %v2070_v17 = vadd.f32 %v2068_v63, %v2058_v51  ;;  %v2116_v21 = vsel %vm6131_vm10, %v2110_v46, 0.0  ;;  %vm6137_vm10 = vcmp.eq.s32.totalorder %v4537_v33, 0 }
0x11a2   :  { %v2054_v60 = vpop.permute.xlu1 %2053 }
0x11a3   :  { %v2057_v31 = vsel %vm6120_vm14, %v2054_v60, 0.0  ;;  %v2080_v60 = vsel %vm6125_vm7, %v2074_v1, 0.0  ;;  %vm6126_vm14 = vcmp.eq.s32.totalorder %v4537_v33, 7  ;;  %vm6130_vm7 = vcmp.eq.s32.totalorder %v4537_v33, 9 }
0x11a4   :  { %v2059_v52 = vadd.f32 %v2057_v31, %v2047_v62  ;;  %v2082_v48 = vadd.f32 %v2080_v60, %v2070_v17 }
0x11a6   :  { %v2071_v61 = vadd.f32 %v2069_v38, %v2059_v52  ;;  %v2094_v34 = vadd.f32 %v2092_v15, %v2082_v48  ;;  %v2105_v52 = vsel %vm6128_vm6, %v2102_v30, 0.0  ;;  %vm6134_vm6 = vcmp.eq.s32.totalorder %v4537_v33, 11 }
0x11a7   :  { %v2078_v24 = vpop.permute.xlu1 %2077 }
0x11a8   :  { %v2081_v19 = vsel %vm6124_vm9, %v2078_v24, 0.0  ;;  %vm6129_vm9 = vcmp.eq.s32.totalorder %v4527_v28, 8  ;;  %v2138_v24 = vpop.permute.xlu0 %2137 }
0x11a9   :  { %v2083_v62 = vadd.f32 %v2081_v19, %v2071_v61  ;;  %v2104_v1 = vsel %vm6129_vm9, %v2098_v44, 0.0  ;;  %v2128_v61 = vsel %vm6133_vm8, %v2122_v47, 0.0  ;;  %v2141_v19 = vsel %vm6134_vm6, %v2138_v24, 0.0 }
0x11aa   :  { %v2106_v31 = vadd.f32 %v2104_v1, %v2094_v34  ;;  %vm6135_vm9 = vcmp.eq.s32.totalorder %v4527_v28, 11  ;;  %vm6139_vm8 = vcmp.eq.s32.totalorder %v4537_v33, 2  ;;  %vm6140_vm6 = vcmp.eq.s32.totalorder %v4537_v33, 3 }
0x11ab   :  { %v2140_v46 = vsel %vm6135_vm9, %v2134_v7, 0.0  ;;  %v2164_v7 = vsel %vm514_vm0, %v5327_v18, 0.0  ;;  %v5396_v18 = vld [vmem:[#allocation7] sm:$0xff]  ;;  %vm6141_vm9 = vcmp.eq.s32.totalorder %v4527_v28, 3 }
0x11ac   :  { %v2090_v43 = vpop.permute.xlu1 %2089  ;;  %v2118_v38 = vadd.f32 %v2116_v21, %v2106_v31 }
0x11ad   :  { %v2093_v36 = vsel %vm6126_vm14, %v2090_v43, 0.0  ;;  %vm6132_vm14 = vcmp.eq.s32.totalorder %v4537_v33, 10  ;;  %v2152_v43 = vsel %vm500_vm13, %v2146_v2, 0.0 }
0x11ae   :  { %v2095_v25 = vadd.f32 %v2093_v36, %v2083_v62  ;;  %v2130_v44 = vadd.f32 %v2128_v61, %v2118_v38  ;;  %v2174_v36 = vpop.permute.xlu0 %2173 }
0x11b0   :  { %v2107_v49 = vadd.f32 %v2105_v52, %v2095_v25  ;;  %v2142_v48 = vadd.f32 %v2140_v46, %v2130_v44 }
0x11b1   :  { %v2114_v13 = vpop.permute.xlu1 %2113 }
0x11b2   :  { %v2117_v58 = vsel %vm6130_vm7, %v2114_v13, 0.0  ;;  %v2154_v47 = vadd.f32 %v2152_v43, %v2142_v48  ;;  %vm6136_vm7 = vcmp.eq.s32.totalorder %v4537_v33, 14 }
0x11b3   :  { %v2119_v23 = vadd.f32 %v2117_v58, %v2107_v49  ;;  %v2177_v52 = vsel %vm6136_vm7, %v2174_v36, 0.0  ;;  %vm6142_vm7 = vcmp.eq.s32.totalorder %v4537_v33, 4 }
0x11b4   :  { %v2166_v1 = vadd.f32 %v2164_v7, %v2154_v47 }
0x11b6   :  { %v2126_v51 = vpop.permute.xlu1 %2125 }
0x11b7   :  { %v2129_v55 = vsel %vm6132_vm14, %v2126_v51, 0.0  ;;  %v5392_v51 = vld [vmem:[#allocation7 + $0x8] sm:$0xff]  ;;  %vm6138_vm14 = vcmp.eq.s32.totalorder %v4537_v33, 1 }
0x11b8   :  { %v2131_v63 = vadd.f32 %v2129_v55, %v2119_v23 }
0x11ba   :  { %v2143_v17 = vadd.f32 %v2141_v19, %v2131_v63 }
0x11bb   :  { %v2150_v60 = vpop.permute.xlu1 %2149 }
0x11bc   :  { %v2153_v62 = vsel %vm501_vm1, %v2150_v60, 0.0 }
0x11bd   :  { %v2155_v30 = vadd.f32 %v2153_v62, %v2143_v17 }
0x11c0   :  { %v2162_v25 = vpop.permute.xlu1 %2161 }
0x11c1   :  { %v2165_v15 = vsel %vm515_vm12, %v2162_v25, 0.0 }
0x11c2   :  { %v2167_v34 = vadd.f32 %v2165_v15, %v2155_v30 }
0x11c4   :  { %v2179_v13 = vadd.f32 %v2177_v52, %v2167_v34 }
0x11c5   :  { %v2170_v49 = vpop.permute.xlu1 %2169 }
0x11c6   :  { %v2176_v2 = vsel %vm528_vm15, %v2170_v49, 0.0  ;;  %v2224_v58 = vadd.f32 %v5325_v35, %v2179_v13 }
0x11c7   :  { %v2178_v21 = vadd.f32 %v2176_v2, %v2166_v1 }
0x11c8   :  { %v2228_v31 = vmul.f32 0.25, %v2224_v58 }
0x11c9   :  { %v2221_v23 = vadd.f32 %v5323_v59, %v2178_v21 }
0x11ca   :  { %v2230_v38 = vadd.f32 %v5392_v51, %v2228_v31 }
0x11cb   :  { %v2227_v55 = vmul.f32 0.25, %v2221_v23 }
0x11cc   :  { %v2234_v24 = vsel %vm282_vm2, %v2230_v38, -inf }
0x11cd   :  { %2235 = vmax.xlane.f32.xlu0 %v2234_v24  ;;  %v2229_v63 = vadd.f32 %v5396_v18, %v2227_v55 }
0x11cf   :  { %v2231_v61 = vsel %vm282_vm2, %v2229_v63, -inf }
0x11d0   :  { %2232 = vmax.xlane.f32.xlu1 %v2231_v61 }
0x1256   :  { %v2236_v35 = vpop.xlane.xlu0 %2235 }
0x1257   :  { %v2238_v44 = vsub.f32 %v2230_v38, %v2236_v35 }
0x1259   :  { %v2241_v19 = vmul.f32 1.442695, %v2238_v44  ;;  %v2233_v60 = vpop.xlane.xlu1 %2232 }
0x125a   :  { %v2237_v59 = vsub.f32 %v2229_v63, %v2233_v60 }
0x125b   :  { %4052 = vpow2.f32 %v2241_v19 }
0x125c   :  { %v2239_v46 = vmul.f32 1.442695, %v2237_v59 }
0x125e   :  { %4054 = vpow2.f32 %v2239_v46 }
0x1268   :  { %v4053_v17 = vpop.eup %4052 }
0x1269   :  { %v2246_v62 = vsel %vm282_vm2, %v4053_v17, 0.0 }
0x126a   :  { %2247 = vadd.xlane.f32.xlu0 %v2246_v62 }
0x126b   :  { %v4055_v43 = vpop.eup %4054 }
0x126c   :  { %v2243_v48 = vsel %vm282_vm2, %v4055_v43, 0.0 }
0x126d   :  { %2244 = vadd.xlane.f32.xlu1 %v2243_v48 }
0x12f3   :  { %v2248_v36 = vpop.xlane.xlu0 %2247 }
0x12f4   :  { %4056 = vrcp.f32 %v2248_v36 }
0x12f6   :  { %v2245_v30 = vpop.xlane.xlu1 %2244 }
0x12f7   :  { %4058 = vrcp.f32 %v2245_v30 }
0x1301   :  { %v4057_v25 = vpop.eup %4056 }
0x1302   :  { %v2252_v47 = vmul.f32 %v4057_v25, %v2248_v36 }
0x1304   :  { %v4059_v15 = vpop.eup %4058  ;;  %v2254_v34 = vsub.f32 2.0, %v2252_v47 }
0x1305   :  { %v2251_v52 = vmul.f32 %v4059_v15, %v2245_v30 }
0x1306   :  { %v2256_v7 = vmul.f32 %v4057_v25, %v2254_v34 }
0x1307   :  { %v2253_v13 = vsub.f32 2.0, %v2251_v52 }
0x1308   :  { %v5402_v1 = vmul.f32 %v4053_v17, %v2256_v7 }
0x1309   :  { %v2255_v49 = vmul.f32 %v4059_v15, %v2253_v13 }
0x130a   :  { %v2261_v2 = vsel %vm6137_vm10, %v5402_v1, 0.0  ;;  %v2273_v31 = vsel %vm6138_vm14, %v5402_v1, 0.0  ;;  %v2285_v63 = vsel %vm6139_vm8, %v5402_v1, 0.0  ;;  %v2297_v19 = vsel %vm6140_vm6, %v5402_v1, 0.0 }
0x130b   :  { %v5407_v58 = vmul.f32 %v4055_v43, %v2255_v49  ;;  %v2265_v21 = vsel %vm282_vm2, %v2261_v2, 0.0  ;;  %v2277_v55 = vsel %vm282_vm2, %v2273_v31, 0.0  ;;  %v2289_v35 = vsel %vm282_vm2, %v2285_v63, 0.0 }
0x130c   :  { %2266 = vadd.xlane.f32.xlu0 %v2265_v21  ;;  %v2301_v59 = vsel %vm282_vm2, %v2297_v19, 0.0  ;;  %v2309_v17 = vsel %vm6142_vm7, %v5402_v1, 0.0  ;;  %vm6143_vm10 = vcmp.eq.s32.totalorder %v4527_v28, 4  ;;  %vm6144_vm14 = vcmp.eq.s32.totalorder %v4537_v33, 5 }
0x130d   :  { %v2260_v23 = vsel %vm330_vm4, %v5407_v58, 0.0  ;;  %v2272_v24 = vsel %vm346_vm3, %v5407_v58, 0.0  ;;  %v2284_v44 = vsel %vm360_vm5, %v5407_v58, 0.0  ;;  %v2296_v46 = vsel %vm6141_vm9, %v5407_v58, 0.0 }
0x130e   :  { %v2262_v38 = vsel %vm282_vm2, %v2260_v23, 0.0  ;;  %v2274_v61 = vsel %vm282_vm2, %v2272_v24, 0.0  ;;  %v2286_v60 = vsel %vm282_vm2, %v2284_v44, 0.0  ;;  %v2298_v43 = vsel %vm282_vm2, %v2296_v46, 0.0 }
0x130f   :  { %2263 = vadd.xlane.f32.xlu1 %v2262_v38  ;;  %v2313_v48 = vsel %vm282_vm2, %v2309_v17, 0.0  ;;  %v2308_v36 = vsel %vm6143_vm10, %v5407_v58, 0.0  ;;  %v2321_v30 = vsel %vm6144_vm14, %v5402_v1, 0.0  ;;  %vm6145_vm8 = vcmp.eq.s32.totalorder %v4527_v28, 5 }
0x1310   :  { %2278 = vadd.xlane.f32.xlu0 %v2277_v55  ;;  %v2310_v25 = vsel %vm282_vm2, %v2308_v36, 0.0  ;;  %v2325_v47 = vsel %vm282_vm2, %v2321_v30, 0.0  ;;  %v2320_v15 = vsel %vm6145_vm8, %v5407_v58, 0.0  ;;  %vm6146_vm6 = vcmp.eq.s32.totalorder %v4537_v33, 6 }
0x1311   :  { %v2333_v34 = vsel %vm6146_vm6, %v5402_v1, 0.0  ;;  %v2322_v52 = vsel %vm282_vm2, %v2320_v15, 0.0  ;;  %vm6147_vm9 = vcmp.eq.s32.totalorder %v4527_v28, 6  ;;  %vm6148_vm7 = vcmp.eq.s32.totalorder %v4537_v33, 7 }
0x1312   :  { %v2337_v7 = vsel %vm282_vm2, %v2333_v34, 0.0  ;;  %v2332_v13 = vsel %vm6147_vm9, %v5407_v58, 0.0  ;;  %v2345_v49 = vsel %vm6148_vm7, %v5402_v1, 0.0  ;;  %vm6149_vm10 = vcmp.eq.s32.totalorder %v4527_v28, 7 }
0x1313   :  { %2275 = vadd.xlane.f32.xlu1 %v2274_v61  ;;  %v2334_v2 = vsel %vm282_vm2, %v2332_v13, 0.0  ;;  %v2349_v21 = vsel %vm282_vm2, %v2345_v49, 0.0  ;;  %v2344_v31 = vsel %vm6149_vm10, %v5407_v58, 0.0  ;;  %vm6150_vm14 = vcmp.eq.s32.totalorder %v4537_v33, 8 }
0x1314   :  { %2290 = vadd.xlane.f32.xlu0 %v2289_v35  ;;  %v2357_v23 = vsel %vm6150_vm14, %v5402_v1, 0.0  ;;  %v2346_v38 = vsel %vm282_vm2, %v2344_v31, 0.0  ;;  %vm6151_vm8 = vcmp.eq.s32.totalorder %v4527_v28, 8  ;;  %vm6152_vm6 = vcmp.eq.s32.totalorder %v4537_v33, 9 }
0x1315   :  { %v2361_v55 = vsel %vm282_vm2, %v2357_v23, 0.0  ;;  %v2356_v24 = vsel %vm6151_vm8, %v5407_v58, 0.0  ;;  %v2369_v63 = vsel %vm6152_vm6, %v5402_v1, 0.0  ;;  %vm6153_vm9 = vcmp.eq.s32.totalorder %v4527_v28, 9 }
0x1316   :  { %v2358_v61 = vsel %vm282_vm2, %v2356_v24, 0.0  ;;  %v2373_v35 = vsel %vm282_vm2, %v2369_v63, 0.0  ;;  %v2368_v44 = vsel %vm6153_vm9, %v5407_v58, 0.0  ;;  %vm6154_vm7 = vcmp.eq.s32.totalorder %v4537_v33, 10 }
0x1317   :  { %2287 = vadd.xlane.f32.xlu1 %v2286_v60  ;;  %v2381_v19 = vsel %vm6154_vm7, %v5402_v1, 0.0  ;;  %v2370_v60 = vsel %vm282_vm2, %v2368_v44, 0.0  ;;  %vm6155_vm10 = vcmp.eq.s32.totalorder %v4527_v28, 10  ;;  %vm6156_vm14 = vcmp.eq.s32.totalorder %v4537_v33, 11 }
0x1318   :  { %2302 = vadd.xlane.f32.xlu0 %v2301_v59  ;;  %v2385_v59 = vsel %vm282_vm2, %v2381_v19, 0.0  ;;  %v2380_v46 = vsel %vm6155_vm10, %v5407_v58, 0.0  ;;  %v2393_v17 = vsel %vm6156_vm14, %v5402_v1, 0.0  ;;  %vm6157_vm8 = vcmp.eq.s32.totalorder %v4527_v28, 11 }
0x1319   :  { %v2392_v36 = vsel %vm6157_vm8, %v5407_v58, 0.0  ;;  %v2405_v30 = vsel %vm501_vm1, %v5402_v1, 0.0  ;;  %v2404_v15 = vsel %vm500_vm13, %v5407_v58, 0.0  ;;  %v2417_v34 = vsel %vm515_vm12, %v5402_v1, 0.0 }
0x131a   :  { %v2416_v13 = vsel %vm514_vm0, %v5407_v58, 0.0  ;;  %vm6158_vm6 = vcmp.eq.s32.totalorder %v4537_v33, 14  ;;  %v2428_v31 = vsel %vm528_vm15, %v5407_v58, 0.0  ;;  %vm6165_vm9 = vcmp.eq.s32.totalorder %v4527_v28, 3 }
0x131b   :  { %2299 = vadd.xlane.f32.xlu1 %v2298_v43  ;;  %v2382_v43 = vsel %vm282_vm2, %v2380_v46, 0.0  ;;  %v2429_v49 = vsel %vm6158_vm6, %v5402_v1, 0.0  ;;  %v2430_v23 = vsel %vm282_vm2, %v2428_v31, 0.0  ;;  %vm6166_vm7 = vcmp.eq.s32.totalorder %v4527_v28, 4 }
0x131c   :  { %2314 = vadd.xlane.f32.xlu0 %v2313_v48  ;;  %v2397_v48 = vsel %vm282_vm2, %v2393_v17, 0.0  ;;  %vm6167_vm10 = vcmp.eq.s32.totalorder %v4527_v28, 5  ;;  %vm6168_vm14 = vcmp.eq.s32.totalorder %v4527_v28, 6  ;;  %vm6169_vm8 = vcmp.eq.s32.totalorder %v4527_v28, 7 }
0x131d   :  { %vm6170_vm6 = vcmp.eq.s32.totalorder %v4527_v28, 8 }
0x131f   :  { %2311 = vadd.xlane.f32.xlu1 %v2310_v25  ;;  %v2394_v25 = vsel %vm282_vm2, %v2392_v36, 0.0 }
0x1320   :  { %2326 = vadd.xlane.f32.xlu0 %v2325_v47  ;;  %v2409_v47 = vsel %vm282_vm2, %v2405_v30, 0.0 }
0x1323   :  { %2323 = vadd.xlane.f32.xlu1 %v2322_v52  ;;  %v2406_v52 = vsel %vm282_vm2, %v2404_v15, 0.0 }
0x1324   :  { %2338 = vadd.xlane.f32.xlu0 %v2337_v7  ;;  %v2421_v7 = vsel %vm282_vm2, %v2417_v34, 0.0 }
0x1327   :  { %2335 = vadd.xlane.f32.xlu1 %v2334_v2  ;;  %v2418_v2 = vsel %vm282_vm2, %v2416_v13, 0.0 }
0x1328   :  { %2350 = vadd.xlane.f32.xlu0 %v2349_v21  ;;  %v2433_v21 = vsel %vm282_vm2, %v2429_v49, 0.0 }
0x132b   :  { %2347 = vadd.xlane.f32.xlu1 %v2346_v38 }
0x132c   :  { %2362 = vadd.xlane.f32.xlu0 %v2361_v55 }
0x132f   :  { %2359 = vadd.xlane.f32.xlu1 %v2358_v61 }
0x1330   :  { %2374 = vadd.xlane.f32.xlu0 %v2373_v35 }
0x1333   :  { %2371 = vadd.xlane.f32.xlu1 %v2370_v60 }
0x1334   :  { %2386 = vadd.xlane.f32.xlu0 %v2385_v59 }
0x1337   :  { %2383 = vadd.xlane.f32.xlu1 %v2382_v43 }
0x1338   :  { %2398 = vadd.xlane.f32.xlu0 %v2397_v48 }
0x133b   :  { %2395 = vadd.xlane.f32.xlu1 %v2394_v25 }
0x133c   :  { %2410 = vadd.xlane.f32.xlu0 %v2409_v47 }
0x133f   :  { %2407 = vadd.xlane.f32.xlu1 %v2406_v52 }
0x1340   :  { %2422 = vadd.xlane.f32.xlu0 %v2421_v7 }
0x1343   :  { %2419 = vadd.xlane.f32.xlu1 %v2418_v2 }
0x1344   :  { %2434 = vadd.xlane.f32.xlu0 %v2433_v21 }
0x1347   :  { %2431 = vadd.xlane.f32.xlu1 %v2430_v23 }
0x1358   :  { %2533 = vrot.lane.b32.xlu1 %v5275_v11, %s4261_s29 }
0x135a   :  { %2485 = vrot.lane.b32.xlu0 %v5275_v11, %s4237_s23 }
0x135c   :  { %2761 = vrot.lane.b32.xlu1 %v5275_v11, %s4262_s21 }
0x1395   :  { %v2267_v38 = vpop.xlane.xlu0 %2266 }
0x1396   :  { %v2269_v34 = vmul.f32 %v2267_v38, %v4783_v22 }
0x1398   :  { %v2264_v55 = vpop.xlane.xlu1 %2263 }
0x1399   :  { %v2279_v24 = vpop.xlane.xlu0 %2278  ;;  %v2268_v52 = vmul.f32 %v2264_v55, %v4783_v22 }
0x139a   :  { %v2281_v25 = vmul.f32 %v2279_v24, %v4779_v37 }
0x139c   :  { %v2276_v63 = vpop.xlane.xlu1 %2275  ;;  %v2283_v2 = vadd.f32 %v2281_v25, %v2269_v34 }
0x139d   :  { %v2291_v61 = vpop.xlane.xlu0 %2290  ;;  %v2280_v47 = vmul.f32 %v2276_v63, %v4779_v37 }
0x139e   :  { %v2293_v7 = vmul.f32 %v2291_v61, %v4786_v40 }
0x139f   :  { %v2282_v21 = vadd.f32 %v2280_v47, %v2268_v52 }
0x13a0   :  { %v2288_v35 = vpop.xlane.xlu1 %2287  ;;  %v2295_v24 = vadd.f32 %v2293_v7, %v2283_v2 }
0x13a1   :  { %v2303_v44 = vpop.xlane.xlu0 %2302  ;;  %v2292_v13 = vmul.f32 %v2288_v35, %v4786_v40 }
0x13a2   :  { %v2305_v31 = vmul.f32 %v2303_v44, %v4792_v45 }
0x13a3   :  { %v2294_v11 = vadd.f32 %v2292_v13, %v2282_v21 }
0x13a4   :  { %v2300_v19 = vpop.xlane.xlu1 %2299  ;;  %v2307_v55 = vadd.f32 %v2305_v31, %v2295_v24 }
0x13a5   :  { %v2315_v60 = vpop.xlane.xlu0 %2314  ;;  %v2304_v23 = vmul.f32 %v2300_v19, %v4792_v45 }
0x13a6   :  { %v2317_v63 = vmul.f32 %v2315_v60, %v4800_v53 }
0x13a7   :  { %v2306_v22 = vadd.f32 %v2304_v23, %v2294_v11 }
0x13a8   :  { %v2312_v59 = vpop.xlane.xlu1 %2311  ;;  %v2319_v47 = vadd.f32 %v2317_v63, %v2307_v55 }
0x13a9   :  { %v2327_v46 = vpop.xlane.xlu0 %2326  ;;  %v2316_v38 = vmul.f32 %v2312_v59, %v4800_v53 }
0x13aa   :  { %v2329_v61 = vmul.f32 %v2327_v46, %v4806_v9 }
0x13ab   :  { %v2318_v34 = vadd.f32 %v2316_v38, %v2306_v22 }
0x13ac   :  { %v2324_v17 = vpop.xlane.xlu1 %2323  ;;  %v2331_v7 = vadd.f32 %v2329_v61, %v2319_v47 }
0x13ad   :  { %v2339_v43 = vpop.xlane.xlu0 %2338  ;;  %v2328_v35 = vmul.f32 %v2324_v17, %v4806_v9 }
0x13ae   :  { %v2341_v44 = vmul.f32 %v2339_v43, %v4812_v16 }
0x13af   :  { %v2330_v13 = vadd.f32 %v2328_v35, %v2318_v34 }
0x13b0   :  { %v2336_v48 = vpop.xlane.xlu1 %2335  ;;  %v2343_v11 = vadd.f32 %v2341_v44, %v2331_v7 }
0x13b1   :  { %v2351_v36 = vpop.xlane.xlu0 %2350  ;;  %v2340_v19 = vmul.f32 %v2336_v48, %v4812_v16 }
0x13b2   :  { %v2353_v60 = vmul.f32 %v2351_v36, %v4818_v5 }
0x13b3   :  { %v2342_v21 = vadd.f32 %v2340_v19, %v2330_v13 }
0x13b4   :  { %v2348_v30 = vpop.xlane.xlu1 %2347  ;;  %v2355_v22 = vadd.f32 %v2353_v60, %v2343_v11 }
0x13b5   :  { %v2363_v15 = vpop.xlane.xlu0 %2362  ;;  %v2352_v59 = vmul.f32 %v2348_v30, %v4818_v5 }
0x13b6   :  { %v2365_v46 = vmul.f32 %v2363_v15, %v4824_v8 }
0x13b7   :  { %v2354_v23 = vadd.f32 %v2352_v59, %v2342_v21 }
0x13b8   :  { %v2360_v49 = vpop.xlane.xlu1 %2359  ;;  %v2367_v63 = vadd.f32 %v2365_v46, %v2355_v22 }
0x13b9   :  { %v2375_v62 = vpop.xlane.xlu0 %2374  ;;  %v2364_v17 = vmul.f32 %v2360_v49, %v4824_v8 }
0x13ba   :  { %v2377_v43 = vmul.f32 %v2375_v62, %v4830_v10 }
0x13bb   :  { %v2366_v38 = vadd.f32 %v2364_v17, %v2354_v23 }
0x13bc   :  { %v2372_v37 = vpop.xlane.xlu1 %2371  ;;  %v2379_v61 = vadd.f32 %v2377_v43, %v2367_v63 }
0x13bd   :  { %v2387_v25 = vpop.xlane.xlu0 %2386  ;;  %v2376_v48 = vmul.f32 %v2372_v37, %v4830_v10 }
0x13be   :  { %v2389_v36 = vmul.f32 %v2387_v25, %v4836_v14 }
0x13bf   :  { %v2378_v35 = vadd.f32 %v2376_v48, %v2366_v38  ;;  %v6159_v48 = vmov 0.0   ;;  %v6160_v38 = vpack.c.bf16 %v5402_v1, %v5407_v58 }
0x13c0   :  { %v2384_v52 = vpop.xlane.xlu1 %2383  ;;  %v2391_v34 = vadd.f32 %v2389_v36, %v2379_v61 }
0x13c1   :  { %v2399_v2 = vpop.xlane.xlu0 %2398  ;;  %v2388_v30 = vmul.f32 %v2384_v52, %v4836_v14 }
0x13c2   :  { %v2401_v15 = vmul.f32 %v2399_v2, %v4842_v26 }
0x13c3   :  { %v2390_v44 = vadd.f32 %v2388_v30, %v2378_v35 }
0x13c4   :  { %v2396_v31 = vpop.xlane.xlu1 %2395  ;;  %v2403_v7 = vadd.f32 %v2401_v15, %v2391_v34 }
0x13c5   :  { %v2411_v24 = vpop.xlane.xlu0 %2410  ;;  %v2400_v49 = vmul.f32 %v2396_v31, %v4842_v26 }
0x13c6   :  { %v2413_v62 = vmul.f32 %v2411_v24, %v4848_v6 }
0x13c7   :  { %v2402_v13 = vadd.f32 %v2400_v49, %v2390_v44 }
0x13c8   :  { %v2408_v55 = vpop.xlane.xlu1 %2407  ;;  %v2415_v59 = vadd.f32 %v2413_v62, %v2403_v7 }
0x13c9   :  { %v2423_v47 = vpop.xlane.xlu0 %2422  ;;  %v2412_v37 = vmul.f32 %v2408_v55, %v4848_v6 }
0x13ca   :  { %v2425_v25 = vmul.f32 %v2423_v47, %v4854_v27 }
0x13cb   :  { %v2414_v11 = vadd.f32 %v2412_v37, %v2402_v13 }
0x13cc   :  { %v2420_v19 = vpop.xlane.xlu1 %2419  ;;  %v2427_v46 = vadd.f32 %v2425_v25, %v2415_v59  ;;  %v6162_v59 = vmov 7  }
0x13cd   :  { %v2424_v52 = vmul.f32 %v2420_v19, %v4854_v27  ;;  %v2435_v60 = vpop.xlane.xlu0 %2434 }
0x13ce   :  { %v2437_v2 = vmul.f32 %v2435_v60, %v4859_v42  ;;  %v6161_v60 = vmov 4  }
0x13cf   :  { %v2426_v17 = vadd.f32 %v2424_v52, %v2414_v11 }
0x13d0   :  { %v2432_v21 = vpop.xlane.xlu1 %2431  ;;  %v2439_v23 = vadd.f32 %v2437_v2, %v2427_v46 }
0x13d1   :  { %v2436_v31 = vmul.f32 %v2432_v21, %v4859_v42  ;;  %v2486_v22 = vpop.permute.xlu0 %2485 }
0x13d2   :  { %3787 = vmatpush3.bf16.msra.mxu0 %v2486_v22 }
0x13d3   :  { %v2438_v43 = vadd.f32 %v2436_v31, %v2426_v17  ;;  %3798 = vmatprep.subr.bf16.mxu0 %v6159_v48 }
0x13d4   :  { %v2534_v24 = vpop.permute.xlu1 %2533 }
0x13d5   :  { %v2440_v63 = vpack.c.bf16 %v2439_v23, %v2438_v43  ;;  %3789 = vmatmul.mubr.msk.bf16.vlgmr.msra.gmra.mxu0 %vm282_vm2, %v6160_v38 }
0x13d6   :  { %3800 = vmatprep.mubr.msk.bf16.mxu0 %vm6049_vm11, %v6159_v48 }
0x13d7   :  { %3783 = vmatmul.mubr.msk.bf16.vlgmr.msra.gmra.mxu1 %vm282_vm2, %v2440_v63 }
0x13d8   :  { %3793 = vmatpush3.bf16.xpose.msra.mxu1 %v4420_v39  ;;  %v2762_v36 = vpop.permute.xlu1 %2761  ;;  %3794 = vmatprep.mubr.msk.bf16.mxu1 %vm6049_vm11, %v6159_v48 }
0x13d9   :  { %v2764_v30 = vsel %vm282_vm2, %v2762_v36, 0  ;;  %3804 = vmatprep.subr.bf16.mxu1 %v6159_v48 }
0x13da   :  { %3799 = vmatpush3.bf16.xpose.msra.mxu0 %v2764_v30 }
0x13db   :  { %3810 = vmatprep.subr.bf16.mxu0 %v6159_v48 }
0x13df   :  { %3795 = vmatmul.mubr.msk.bf16.vlgmr.msra.gmra.mxu1 %vm282_vm2, %v2534_v24 }
0x13e0   :  { %3805 = vmatpush3.bf16.msra.mxu1 %v5281_v0  ;;  %3806 = vmatprep.mubr.msk.bf16.mxu1 %vm6049_vm11, %v6159_v48 }
0x13e1   :  { %3801 = vmatmul.mubr.msk.bf16.vlgmr.msra.gmra.mxu0 %vm282_vm2, %v2534_v24  ;;  %3816 = vmatprep.subr.bf16.mxu1 %v6159_v48 }
0x13e2   :  { %3812 = vmatprep.mubr.msk.bf16.mxu0 %vm6049_vm11, %v6159_v48 }
0x1495   :  { %v2525_v39 = vpop.f32.mrf.mxu0 }
0x1497   :  { %v2478_v1 = vpop.f32.mrf.mxu1  ;;  %v3790_v58 = vpop.f32.mrf.mxu0 }
0x1498   :  { %v5586_v55 = vadd.f32 %v2525_v39, %v2478_v1 }
0x1499   :  { %v3784_v61 = vpop.f32.mrf.mxu1  ;;  %v2528_v35 = vpop.f32.mrf.mxu0 }
0x149b   :  { %v2481_v15 = vpop.f32.mrf.mxu1  ;;  %v3791_v49 = vpop.f32.mrf.mxu0 }
0x149c   :  { %v5588_v0 = vadd.f32 %v2528_v35, %v2481_v15 }
0x149d   :  { %v3785_v47 = vpop.f32.mrf.mxu1 }
0x149e   :  { %v2532_v34 = vpack.c.bf16 %v5588_v0, %v5586_v55 }
0x149f   :  { %v2572_v44 = vpop.f32.mrf.mxu1 }
0x14a0   :  { %2606 = vperm.xlu0 %3971, %v2572_v44   ;;  %2581 = vperm.xlu1 %3969, %v2572_v44  }
0x14a1   :  { %v3796_v62 = vpop.f32.mrf.mxu1  ;;  %v5592_v37 = vpop.f32.mrf.mxu0 }
0x14a3   :  { %v2575_v19 = vpop.f32.mrf.mxu1  ;;  %v3802_v7 = vpop.f32.mrf.mxu0 }
0x14a4   :  { %3974 = vset.pattern.permute.xlu0 %v6108_v57  ;;  %3970 = vset.pattern.permute.xlu1 %v6113_v56 }
0x14a5   :  { %v5596_v13 = vpop.f32.mrf.mxu0  ;;  %2642 = vperm.xlu0 %3974, %v2572_v44   ;;  %2594 = vperm.xlu1 %3970, %v2572_v44   ;;  %v3797_v25 = vpop.f32.mrf.mxu1 }
0x14a7   :  { %v3803_v52 = vpop.f32.mrf.mxu0 }
0x14a9   :  { %3977 = vset.pattern.permute.xlu0 %v6111_v54  ;;  %3972 = vset.pattern.permute.xlu1 %v6106_v32 }
0x14aa   :  { %2678 = vperm.xlu0 %3977, %v2572_v44   ;;  %2618 = vperm.xlu1 %3972, %v2572_v44  }
0x14ae   :  { %3980 = vset.pattern.permute.xlu0 %v6114_v41  ;;  %3973 = vset.pattern.permute.xlu1 %v6161_v60 }
0x14af   :  { %2714 = vperm.xlu0 %3980, %v2572_v44   ;;  %2630 = vperm.xlu1 %3973, %v2572_v44  }
0x14b3   :  { %3983 = vset.pattern.permute.xlu0 %v6110_v12  ;;  %3975 = vset.pattern.permute.xlu1 %v6109_v29 }
0x14b4   :  { %2654 = vperm.xlu1 %3975, %v2572_v44   ;;  %2586 = vperm.xlu0 %3983, %v2575_v19  }
0x14b8   :  { %3976 = vset.pattern.permute.xlu1 %v6162_v59  ;;  %3986 = vset.pattern.permute.xlu0 %v6106_v32  ;;  %v6163_v32 = vmov 14  }
0x14b9   :  { %2666 = vperm.xlu1 %3976, %v2572_v44   ;;  %2622 = vperm.xlu0 %3986, %v2575_v19  }
0x14bd   :  { %3978 = vset.pattern.permute.xlu1 %v6112_v4  ;;  %3989 = vset.pattern.permute.xlu0 %v6109_v29  ;;  %v6164_v29 = vmov 2  }
0x14be   :  { %2690 = vperm.xlu1 %3978, %v2572_v44   ;;  %2658 = vperm.xlu0 %3989, %v2575_v19  }
0x14c2   :  { %3979 = vset.pattern.permute.xlu1 %v6107_v20  ;;  %3992 = vset.pattern.permute.xlu0 %v6112_v4 }
0x14c3   :  { %2702 = vperm.xlu1 %3979, %v2572_v44   ;;  %2694 = vperm.xlu0 %3992, %v2575_v19  }
0x14c7   :  { %3981 = vset.pattern.permute.xlu1 %v6115_v3  ;;  %3995 = vset.pattern.permute.xlu0 %v6115_v3 }
0x14c8   :  { %2726 = vperm.xlu1 %3981, %v2572_v44   ;;  %2730 = vperm.xlu0 %3995, %v2575_v19  }
0x14cc   :  { %3982 = vset.pattern.permute.xlu1 %v6050_v50  ;;  %3996 = vset.pattern.permute.xlu0 %v6163_v32 }
0x14cd   :  { %2738 = vperm.xlu1 %3982, %v2572_v44   ;;  %2750 = vperm.xlu0 %3996, %v2572_v44  }
0x14d1   :  { %3984 = vset.pattern.permute.xlu1 %v6113_v56 }
0x14d2   :  { %2598 = vperm.xlu1 %3984, %v2575_v19  }
0x14d6   :  { %3985 = vset.pattern.permute.xlu1 %v6164_v29 }
0x14d7   :  { %2610 = vperm.xlu1 %3985, %v2575_v19  }
0x14db   :  { %3987 = vset.pattern.permute.xlu1 %v6161_v60 }
0x14dc   :  { %2634 = vperm.xlu1 %3987, %v2575_v19  }
0x14e0   :  { %3988 = vset.pattern.permute.xlu1 %v6108_v57 }
0x14e1   :  { %2646 = vperm.xlu1 %3988, %v2575_v19  }
0x14e5   :  { %3990 = vset.pattern.permute.xlu1 %v6162_v59 }
0x14e6   :  { %2670 = vperm.xlu1 %3990, %v2575_v19  }
0x14ea   :  { %3991 = vset.pattern.permute.xlu1 %v6111_v54 }
0x14eb   :  { %2682 = vperm.xlu1 %3991, %v2575_v19  }
0x14ef   :  { %3993 = vset.pattern.permute.xlu1 %v6107_v20 }
0x14f0   :  { %2706 = vperm.xlu1 %3993, %v2575_v19  }
0x14f4   :  { %3994 = vset.pattern.permute.xlu1 %v6114_v41 }
0x14f5   :  { %2718 = vperm.xlu1 %3994, %v2575_v19  }
0x14f9   :  { %3997 = vset.pattern.permute.xlu1 %v6050_v50 }
0x14fa   :  { %2742 = vperm.xlu1 %3997, %v2575_v19  }
0x14fe   :  { %3998 = vset.pattern.permute.xlu1 %v6163_v32 }
0x14ff   :  { %2754 = vperm.xlu1 %3998, %v2575_v19  }
0x151b   :  { %v2607_v57 = vpop.permute.xlu0 %2606  ;;  %v2582_v12 = vpop.permute.xlu1 %2581 }
0x151c   :  { %v2589_v54 = vsel %vm330_vm4, %v2582_v12, 0.0  ;;  %v2613_v41 = vsel %vm360_vm5, %v2607_v57, 0.0 }
0x1520   :  { %v2643_v4 = vpop.permute.xlu0 %2642  ;;  %v2595_v56 = vpop.permute.xlu1 %2594 }
0x1521   :  { %v2601_v20 = vsel %vm346_vm3, %v2595_v56, 0.0  ;;  %v2649_v43 = vsel %vm6167_vm10, %v2643_v4, 0.0  ;;  %vm6173_vm10 = vcmp.eq.s32.totalorder %v4527_v28, 11 }
0x1522   :  { %v2603_v3 = vadd.f32 %v2601_v20, %v2589_v54 }
0x1524   :  { %v2615_v2 = vadd.f32 %v2613_v41, %v2603_v3 }
0x1525   :  { %v2679_v11 = vpop.permute.xlu0 %2678  ;;  %v2619_v50 = vpop.permute.xlu1 %2618 }
0x1526   :  { %v2625_v21 = vsel %vm6165_vm9, %v2619_v50, 0.0  ;;  %v2685_v35 = vsel %vm6170_vm6, %v2679_v11, 0.0  ;;  %vm6171_vm9 = vcmp.eq.s32.totalorder %v4527_v28, 9  ;;  %vm6176_vm6 = vcmp.eq.s32.totalorder %v4537_v33, 2 }
0x1527   :  { %v2627_v46 = vadd.f32 %v2625_v21, %v2615_v2 }
0x152a   :  { %v2715_v17 = vpop.permute.xlu0 %2714  ;;  %v2631_v31 = vpop.permute.xlu1 %2630 }
0x152b   :  { %v2637_v22 = vsel %vm6166_vm7, %v2631_v31, 0.0  ;;  %vm6172_vm7 = vcmp.eq.s32.totalorder %v4527_v28, 10  ;;  %v2721_v60 = vsel %vm6173_vm10, %v2715_v17, 0.0  ;;  %vm6179_vm10 = vcmp.eq.s32.totalorder %v4537_v33, 5 }
0x152c   :  { %v2639_v23 = vadd.f32 %v2637_v22, %v2627_v46 }
0x152e   :  { %v2651_v38 = vadd.f32 %v2649_v43, %v2639_v23 }
0x152f   :  { %v2655_v24 = vpop.permute.xlu1 %2654  ;;  %v2587_v63 = vpop.permute.xlu0 %2586 }
0x1530   :  { %v2661_v36 = vsel %vm6168_vm14, %v2655_v24, 0.0  ;;  %vm6174_vm14 = vcmp.eq.s32.totalorder %v4537_v33, 1 }
0x1531   :  { %v2663_v30 = vadd.f32 %v2661_v36, %v2651_v38 }
0x1534   :  { %v2667_v39 = vpop.permute.xlu1 %2666  ;;  %v2623_v1 = vpop.permute.xlu0 %2622 }
0x1535   :  { %v2673_v58 = vsel %vm6169_vm8, %v2667_v39, 0.0  ;;  %vm6175_vm8 = vcmp.eq.s32.totalorder %v4537_v33, 0 }
0x1536   :  { %v2675_v61 = vadd.f32 %v2673_v58, %v2663_v30  ;;  %v2590_v46 = vsel %vm6175_vm8, %v2587_v63, 0.0  ;;  %vm6181_vm8 = vcmp.eq.s32.totalorder %v4537_v33, 7 }
0x1538   :  { %v2687_v47 = vadd.f32 %v2685_v35, %v2675_v61 }
0x1539   :  { %v2691_v15 = vpop.permute.xlu1 %2690  ;;  %v2659_v49 = vpop.permute.xlu0 %2658 }
0x153a   :  { %v2697_v44 = vsel %vm6171_vm9, %v2691_v15, 0.0  ;;  %vm6177_vm9 = vcmp.eq.s32.totalorder %v4537_v33, 3 }
0x153b   :  { %v2699_v62 = vadd.f32 %v2697_v44, %v2687_v47 }
0x153e   :  { %v2703_v19 = vpop.permute.xlu1 %2702  ;;  %v2695_v7 = vpop.permute.xlu0 %2694 }
0x153f   :  { %v2709_v25 = vsel %vm6172_vm7, %v2703_v19, 0.0  ;;  %vm6178_vm7 = vcmp.eq.s32.totalorder %v4537_v33, 4 }
0x1540   :  { %v2711_v52 = vadd.f32 %v2709_v25, %v2699_v62 }
0x1542   :  { %v2723_v29 = vadd.f32 %v2721_v60, %v2711_v52 }
0x1543   :  { %v2727_v59 = vpop.permute.xlu1 %2726  ;;  %v2731_v32 = vpop.permute.xlu0 %2730 }
0x1544   :  { %v2733_v57 = vsel %vm500_vm13, %v2727_v59, 0.0 }
0x1545   :  { %v2735_v12 = vadd.f32 %v2733_v57, %v2723_v29 }
0x1548   :  { %v2739_v4 = vpop.permute.xlu1 %2738  ;;  %v2751_v56 = vpop.permute.xlu0 %2750 }
0x1549   :  { %v2745_v54 = vsel %vm514_vm0, %v2739_v4, 0.0  ;;  %v2757_v3 = vsel %vm528_vm15, %v2751_v56, 0.0  ;;  %v2734_v4 = vsel %vm501_vm1, %v2731_v32, 0.0 }
0x154a   :  { %v2747_v20 = vadd.f32 %v2745_v54, %v2735_v12 }
0x154c   :  { %v2759_v41 = vadd.f32 %v2757_v3, %v2747_v20 }
0x154d   :  { %v2599_v11 = vpop.permute.xlu1 %2598 }
0x154e   :  { %v2801_v50 = vadd.f32 %v5592_v37, %v2759_v41  ;;  %v2602_v2 = vsel %vm6174_vm14, %v2599_v11, 0.0  ;;  %v2626_v37 = vsel %vm6177_vm9, %v2623_v1, 0.0  ;;  %vm6180_vm14 = vcmp.eq.s32.totalorder %v4537_v33, 6 }
0x154f   :  { %v2604_v17 = vadd.f32 %v2602_v2, %v2590_v46  ;;  %v2662_v61 = vsel %vm6180_vm14, %v2659_v49, 0.0  ;;  %vm6183_vm9 = vcmp.eq.s32.totalorder %v4537_v33, 9  ;;  %vm6186_vm14 = vcmp.eq.s32.totalorder %v4537_v33, 14 }
0x1550   :  { %v2807_v21 = vmul.f32 0.25, %v2801_v50  ;;  %v2698_v25 = vsel %vm6183_vm9, %v2695_v7, 0.0  ;;  %vm6192_vm9 = vcmp.eq.s32.totalorder %v4527_v28, 8 }
0x1552   :  { %v2611_v31 = vpop.permute.xlu1 %2610  ;;  %v2809_v22 = vadd.f32 %v5396_v18, %v2807_v21 }
0x1553   :  { %v2614_v23 = vsel %vm6176_vm6, %v2611_v31, 0.0  ;;  %vm6182_vm6 = vcmp.eq.s32.totalorder %v4537_v33, 8 }
0x1554   :  { %v2616_v43 = vadd.f32 %v2614_v23, %v2604_v17  ;;  %v2811_v24 = vsel %vm282_vm2, %v2809_v22, -inf }
0x1555   :  { %2812 = vmax.xlane.f32.xlu1 %v2811_v24 }
0x1556   :  { %v2628_v36 = vadd.f32 %v2626_v37, %v2616_v43 }
0x1557   :  { %v2635_v38 = vpop.permute.xlu1 %2634 }
0x1558   :  { %v2638_v30 = vsel %vm6178_vm7, %v2635_v38, 0.0  ;;  %vm6184_vm7 = vcmp.eq.s32.totalorder %v4537_v33, 10 }
0x1559   :  { %v2640_v63 = vadd.f32 %v2638_v30, %v2628_v36 }
0x155c   :  { %v2647_v39 = vpop.permute.xlu1 %2646 }
0x155d   :  { %v2650_v18 = vsel %vm6179_vm10, %v2647_v39, 0.0  ;;  %vm6185_vm10 = vcmp.eq.s32.totalorder %v4537_v33, 11 }
0x155e   :  { %v2652_v58 = vadd.f32 %v2650_v18, %v2640_v63 }
0x1560   :  { %v2664_v15 = vadd.f32 %v2662_v61, %v2652_v58 }
0x1561   :  { %v2671_v35 = vpop.permute.xlu1 %2670 }
0x1562   :  { %v2674_v47 = vsel %vm6181_vm8, %v2671_v35, 0.0  ;;  %vm6190_vm8 = vcmp.eq.s32.totalorder %v4527_v28, 6 }
0x1563   :  { %v2676_v1 = vadd.f32 %v2674_v47, %v2664_v15 }
0x1566   :  { %v2683_v44 = vpop.permute.xlu1 %2682 }
0x1567   :  { %v2686_v62 = vsel %vm6182_vm6, %v2683_v44, 0.0  ;;  %vm6191_vm6 = vcmp.eq.s32.totalorder %v4527_v28, 7 }
0x1568   :  { %v2688_v19 = vadd.f32 %v2686_v62, %v2676_v1 }
0x156a   :  { %v2700_v60 = vadd.f32 %v2698_v25, %v2688_v19 }
0x156b   :  { %v2707_v52 = vpop.permute.xlu1 %2706 }
0x156c   :  { %v2710_v59 = vsel %vm6184_vm7, %v2707_v52, 0.0  ;;  %vm6193_vm7 = vcmp.eq.s32.totalorder %v4527_v28, 9 }
0x156d   :  { %v2712_v49 = vadd.f32 %v2710_v59, %v2700_v60 }
0x1570   :  { %v2719_v29 = vpop.permute.xlu1 %2718 }
0x1571   :  { %v2722_v57 = vsel %vm6185_vm10, %v2719_v29, 0.0  ;;  %vm6194_vm10 = vcmp.eq.s32.totalorder %v4527_v28, 10 }
0x1572   :  { %v2724_v12 = vadd.f32 %v2722_v57, %v2712_v49 }
0x1574   :  { %v2736_v54 = vadd.f32 %v2734_v4, %v2724_v12 }
0x1575   :  { %v2743_v56 = vpop.permute.xlu1 %2742 }
0x1576   :  { %v2746_v20 = vsel %vm515_vm12, %v2743_v56, 0.0 }
0x1577   :  { %v2748_v7 = vadd.f32 %v2746_v20, %v2736_v54 }
0x157a   :  { %v2755_v3 = vpop.permute.xlu1 %2754 }
0x157b   :  { %v2758_v41 = vsel %vm6186_vm14, %v2755_v3, 0.0  ;;  %vm6195_vm14 = vcmp.eq.s32.totalorder %v4527_v28, 11 }
0x157c   :  { %v2760_v11 = vadd.f32 %v2758_v41, %v2748_v7 }
0x157e   :  { %v2804_v50 = vadd.f32 %v5596_v13, %v2760_v11 }
0x1580   :  { %v2808_v2 = vmul.f32 0.25, %v2804_v50 }
0x1582   :  { %v2810_v21 = vadd.f32 %v5392_v51, %v2808_v2 }
0x1584   :  { %v2814_v46 = vsel %vm282_vm2, %v2810_v21, -inf }
0x1585   :  { %2815 = vmax.xlane.f32.xlu0 %v2814_v46 }
0x15de   :  { %v2813_v32 = vpop.xlane.xlu1 %2812 }
0x15df   :  { %v2817_v17 = vsub.f32 %v2809_v22, %v2813_v32 }
0x15e1   :  { %v2819_v31 = vmul.f32 1.442695, %v2817_v17 }
0x15e3   :  { %4060 = vpow2.f32 %v2819_v31 }
0x15f0   :  { %v4061_v23 = vpop.eup %4060 }
0x15f1   :  { %v2823_v43 = vsel %vm282_vm2, %v4061_v23, 0.0 }
0x15f2   :  { %2824 = vadd.xlane.f32.xlu0 %v2823_v43 }
0x160e   :  { %v2816_v24 = vpop.xlane.xlu0 %2815 }
0x160f   :  { %v2818_v37 = vsub.f32 %v2810_v21, %v2816_v24 }
0x1611   :  { %v2821_v38 = vmul.f32 1.442695, %v2818_v37 }
0x1613   :  { %4062 = vpow2.f32 %v2821_v38 }
0x1620   :  { %v4063_v36 = vpop.eup %4062 }
0x1621   :  { %v2826_v13 = vsel %vm282_vm2, %v4063_v36, 0.0 }
0x1622   :  { %2827 = vadd.xlane.f32.xlu1 %v2826_v13 }
0x167b   :  { %v2825_v51 = vpop.xlane.xlu0 %2824 }
0x167c   :  { %4064 = vrcp.f32 %v2825_v51 }
0x1689   :  { %v4065_v30 = vpop.eup %4064 }
0x168a   :  { %v2831_v63 = vmul.f32 %v4065_v30, %v2825_v51 }
0x168c   :  { %v2833_v39 = vsub.f32 2.0, %v2831_v63 }
0x168e   :  { %v2835_v22 = vmul.f32 %v4065_v30, %v2833_v39 }
0x1690   :  { %v5692_v18 = vmul.f32 %v4061_v23, %v2835_v22 }
0x1692   :  { %v2840_v58 = vsel %vm330_vm4, %v5692_v18, 0.0  ;;  %v2852_v35 = vsel %vm346_vm3, %v5692_v18, 0.0  ;;  %v2864_v47 = vsel %vm360_vm5, %v5692_v18, 0.0  ;;  %vm6187_vm4 = vcmp.eq.s32.totalorder %v4527_v28, 3 }
0x1693   :  { %v2842_v61 = vsel %vm282_vm2, %v2840_v58, 0.0  ;;  %v2854_v15 = vsel %vm282_vm2, %v2852_v35, 0.0  ;;  %v2866_v1 = vsel %vm282_vm2, %v2864_v47, 0.0  ;;  %v2876_v44 = vsel %vm6187_vm4, %v5692_v18, 0.0 }
0x1694   :  { %2843 = vadd.xlane.f32.xlu0 %v2842_v61  ;;  %v2878_v62 = vsel %vm282_vm2, %v2876_v44, 0.0  ;;  %vm6188_vm3 = vcmp.eq.s32.totalorder %v4527_v28, 4  ;;  %vm6189_vm5 = vcmp.eq.s32.totalorder %v4527_v28, 5  ;;  %v2912_v59 = vsel %vm6190_vm8, %v5692_v18, 0.0 }
0x1695   :  { %v2888_v19 = vsel %vm6188_vm3, %v5692_v18, 0.0  ;;  %v2900_v52 = vsel %vm6189_vm5, %v5692_v18, 0.0  ;;  %v2914_v29 = vsel %vm282_vm2, %v2912_v59, 0.0  ;;  %v2924_v57 = vsel %vm6191_vm6, %v5692_v18, 0.0 }
0x1696   :  { %v2890_v25 = vsel %vm282_vm2, %v2888_v19, 0.0  ;;  %v2902_v60 = vsel %vm282_vm2, %v2900_v52, 0.0  ;;  %v2926_v12 = vsel %vm282_vm2, %v2924_v57, 0.0  ;;  %v2936_v4 = vsel %vm6192_vm9, %v5692_v18, 0.0 }
0x1697   :  { %v2938_v56 = vsel %vm282_vm2, %v2936_v4, 0.0  ;;  %v2948_v54 = vsel %vm6193_vm7, %v5692_v18, 0.0  ;;  %v2960_v7 = vsel %vm6194_vm10, %v5692_v18, 0.0  ;;  %v2972_v2 = vsel %vm6195_vm14, %v5692_v18, 0.0 }
0x1698   :  { %2855 = vadd.xlane.f32.xlu0 %v2854_v15  ;;  %v2950_v20 = vsel %vm282_vm2, %v2948_v54, 0.0  ;;  %v2962_v11 = vsel %vm282_vm2, %v2960_v7, 0.0  ;;  %v2974_v46 = vsel %vm282_vm2, %v2972_v2, 0.0  ;;  %v2984_v17 = vsel %vm500_vm13, %v5692_v18, 0.0 }
0x1699   :  { %vm6196_vm4 = vcmp.eq.s32.totalorder %v4537_v33, 0  ;;  %v2986_v43 = vsel %vm282_vm2, %v2984_v17, 0.0  ;;  %vm6197_vm3 = vcmp.eq.s32.totalorder %v4537_v33, 1  ;;  %v2996_v37 = vsel %vm514_vm0, %v5692_v18, 0.0 }
0x169a   :  { %vm6198_vm13 = vcmp.eq.s32.totalorder %v4537_v33, 2  ;;  %v3008_v51 = vsel %vm528_vm15, %v5692_v18, 0.0  ;;  %vm6199_vm0 = vcmp.eq.s32.totalorder %v4537_v33, 3  ;;  %vm6200_vm5 = vcmp.eq.s32.totalorder %v4537_v33, 4 }
0x169b   :  { %v3010_v39 = vsel %vm282_vm2, %v3008_v51, 0.0  ;;  %vm6201_vm15 = vcmp.eq.s32.totalorder %v4537_v33, 5  ;;  %vm6202_vm8 = vcmp.eq.s32.totalorder %v4537_v33, 6  ;;  %vm6203_vm6 = vcmp.eq.s32.totalorder %v4537_v33, 7 }
0x169c   :  { %2867 = vadd.xlane.f32.xlu0 %v2866_v1  ;;  %vm6204_vm9 = vcmp.eq.s32.totalorder %v4537_v33, 8  ;;  %vm6206_vm7 = vcmp.eq.s32.totalorder %v4537_v33, 9  ;;  %vm6207_vm10 = vcmp.eq.s32.totalorder %v4537_v33, 10  ;;  %vm6208_vm14 = vcmp.eq.s32.totalorder %v4537_v33, 11 }
0x16a0   :  { %2879 = vadd.xlane.f32.xlu0 %v2878_v62 }
0x16a4   :  { %2891 = vadd.xlane.f32.xlu0 %v2890_v25  ;;  %v6205_v25 = vld [vmem:[#allocation23_spill] sm:$0xff] }
0x16a8   :  { %2903 = vadd.xlane.f32.xlu0 %v2902_v60 }
0x16ab   :  { %v2828_v49 = vpop.xlane.xlu1 %2827 }
0x16ac   :  { %4066 = vrcp.f32 %v2828_v49  ;;  %2915 = vadd.xlane.f32.xlu0 %v2914_v29 }
0x16b0   :  { %2927 = vadd.xlane.f32.xlu0 %v2926_v12 }
0x16b4   :  { %2939 = vadd.xlane.f32.xlu0 %v2938_v56 }
0x16b8   :  { %2951 = vadd.xlane.f32.xlu0 %v2950_v20 }
0x16b9   :  { %v4067_v3 = vpop.eup %4066 }
0x16ba   :  { %v2832_v41 = vmul.f32 %v4067_v3, %v2828_v49 }
0x16bc   :  { %v2834_v50 = vsub.f32 2.0, %v2832_v41  ;;  %2963 = vadd.xlane.f32.xlu0 %v2962_v11 }
0x16be   :  { %v2836_v21 = vmul.f32 %v4067_v3, %v2834_v50  ;;  %v6210_v50 = vld [vmem:[#allocation20_spill] sm:$0xff] }
0x16c0   :  { %v5742_v32 = vmul.f32 %v4063_v36, %v2836_v21  ;;  %2975 = vadd.xlane.f32.xlu0 %v2974_v46  ;;  %v2998_v36 = vsel %vm282_vm2, %v2996_v37, 0.0  ;;  %v6211_v21 = vld [vmem:[#allocation19_spill] sm:$0xff] }
0x16c2   :  { %v2841_v31 = vsel %vm6196_vm4, %v5742_v32, 0.0  ;;  %v2853_v24 = vsel %vm6197_vm3, %v5742_v32, 0.0  ;;  %v2865_v13 = vsel %vm6198_vm13, %v5742_v32, 0.0  ;;  %v2839_v30 = vpack.c.bf16 %v5742_v32, %v5692_v18 }
0x16c3   :  { %v2845_v23 = vsel %vm282_vm2, %v2841_v31, 0.0  ;;  %v2857_v38 = vsel %vm282_vm2, %v2853_v24, 0.0  ;;  %v2869_v63 = vsel %vm282_vm2, %v2865_v13, 0.0  ;;  %v2877_v22 = vsel %vm6199_vm0, %v5742_v32, 0.0 }
0x16c4   :  { %2846 = vadd.xlane.f32.xlu1 %v2845_v23  ;;  %2987 = vadd.xlane.f32.xlu0 %v2986_v43  ;;  %v2881_v58 = vsel %vm282_vm2, %v2877_v22, 0.0  ;;  %v2889_v28 = vsel %vm6200_vm5, %v5742_v32, 0.0  ;;  %v2901_v35 = vsel %vm6201_vm15, %v5742_v32, 0.0  ;;  %v2913_v47 = vsel %vm6202_vm8, %v5742_v32, 0.0 }
0x16c5   :  { %v2893_v61 = vsel %vm282_vm2, %v2889_v28, 0.0  ;;  %v2905_v15 = vsel %vm282_vm2, %v2901_v35, 0.0  ;;  %v2917_v1 = vsel %vm282_vm2, %v2913_v47, 0.0  ;;  %v2925_v44 = vsel %vm6203_vm6, %v5742_v32, 0.0 }
0x16c6   :  { %v2929_v62 = vsel %vm282_vm2, %v2925_v44, 0.0  ;;  %v2937_v19 = vsel %vm6204_vm9, %v5742_v32, 0.0  ;;  %v2949_v60 = vsel %vm6206_vm7, %v5742_v32, 0.0  ;;  %v2961_v49 = vsel %vm6207_vm10, %v5742_v32, 0.0 }
0x16c7   :  { %v2941_v52 = vsel %vm282_vm2, %v2937_v19, 0.0  ;;  %v2953_v59 = vsel %vm282_vm2, %v2949_v60, 0.0  ;;  %v2965_v29 = vsel %vm282_vm2, %v2961_v49, 0.0  ;;  %v2973_v57 = vsel %vm6208_vm14, %v5742_v32, 0.0 }
0x16c8   :  { %2858 = vadd.xlane.f32.xlu1 %v2857_v38  ;;  %2999 = vadd.xlane.f32.xlu0 %v2998_v36  ;;  %v2977_v12 = vsel %vm282_vm2, %v2973_v57, 0.0  ;;  %v2985_v4 = vsel %vm501_vm1, %v5742_v32, 0.0  ;;  %v2997_v54 = vsel %vm515_vm12, %v5742_v32, 0.0  ;;  %vm6209_vm4 = vcmp.eq.s32.totalorder %v4537_v33, 14 }
0x16c9   :  { %v2989_v56 = vsel %vm282_vm2, %v2985_v4, 0.0  ;;  %v3001_v20 = vsel %vm282_vm2, %v2997_v54, 0.0  ;;  %v3009_v7 = vsel %vm6209_vm4, %v5742_v32, 0.0  ;;  %vm6213_vm1 = vcmask 261120  }
0x16ca   :  { %v3013_v3 = vsel %vm282_vm2, %v3009_v7, 0.0  ;;  %vm6216_vm12 = vmmov %vm6213_vm1  ;;  %vm6219_vm13 = vcmask 523264  }
0x16cb   :  { %vm6218_vm3 = vmmov %vm6213_vm1 }
0x16cc   :  { %2870 = vadd.xlane.f32.xlu1 %v2869_v63  ;;  %3011 = vadd.xlane.f32.xlu0 %v3010_v39  ;;  %vm6220_vm0 = vmmov %vm6213_vm1 }
0x16cd   :  { %vm6221_vm5 = vmmov %vm6220_vm0 }
0x16ce   :  { %vm6222_vm15 = vmmov %vm6220_vm0 }
0x16cf   :  { %vm6223_vm8 = vmmov %vm6220_vm0 }
0x16d0   :  { %2882 = vadd.xlane.f32.xlu1 %v2881_v58  ;;  %vm6224_vm6 = vmmov %vm6220_vm0 }
0x16d1   :  { %vm6225_vm9 = vmmov %vm6220_vm0 }
0x16d4   :  { %2894 = vadd.xlane.f32.xlu1 %v2893_v61 }
0x16d8   :  { %2906 = vadd.xlane.f32.xlu1 %v2905_v15 }
0x16dc   :  { %2918 = vadd.xlane.f32.xlu1 %v2917_v1 }
0x16e0   :  { %2930 = vadd.xlane.f32.xlu1 %v2929_v62 }
0x16e2   :  { %3065 = vrot.lane.b32.xlu0 %v6205_v25, %s4263_s22 }
0x16e4   :  { %2942 = vadd.xlane.f32.xlu1 %v2941_v52 }
0x16e8   :  { %2954 = vadd.xlane.f32.xlu1 %v2953_v59 }
0x16ec   :  { %2966 = vadd.xlane.f32.xlu1 %v2965_v29  ;;  %v4012_v29 = vld [vmem:[%s5948_s8 + $0x10] sm:$0xff]  }
0x16f0   :  { %2978 = vadd.xlane.f32.xlu1 %v2977_v12 }
0x16f4   :  { %2990 = vadd.xlane.f32.xlu1 %v2989_v56 }
0x16f8   :  { %3002 = vadd.xlane.f32.xlu1 %v3001_v20 }
0x16fc   :  { %3014 = vadd.xlane.f32.xlu1 %v3013_v3 }
0x171d   :  { %v2844_v41 = vpop.xlane.xlu0 %2843 }
0x171e   :  { %v2848_v2 = vmul.f32 %v2844_v41, %v6210_v50 }
0x1721   :  { %v2856_v11 = vpop.xlane.xlu0 %2855 }
0x1722   :  { %v2860_v46 = vmul.f32 %v2856_v11, %v6211_v21 }
0x1724   :  { %v2862_v17 = vadd.f32 %v2860_v46, %v2848_v2 }
0x1725   :  { %v2868_v31 = vpop.xlane.xlu0 %2867 }
0x1726   :  { %v2872_v23 = vmul.f32 %v2868_v31, %v4786_v40 }
0x1728   :  { %v2874_v43 = vadd.f32 %v2872_v23, %v2862_v17 }
0x1729   :  { %v2880_v24 = vpop.xlane.xlu0 %2879 }
0x172a   :  { %v2884_v37 = vmul.f32 %v2880_v24, %v4792_v45 }
0x172c   :  { %v2886_v38 = vadd.f32 %v2884_v37, %v2874_v43 }
0x172d   :  { %v2892_v33 = vpop.xlane.xlu0 %2891 }
0x172e   :  { %v2896_v36 = vmul.f32 %v2892_v33, %v4800_v53 }
0x1730   :  { %v2898_v13 = vadd.f32 %v2896_v36, %v2886_v38 }
0x1731   :  { %v2904_v51 = vpop.xlane.xlu0 %2903 }
0x1732   :  { %v2908_v63 = vmul.f32 %v2904_v51, %v4806_v9 }
0x1734   :  { %v2910_v39 = vadd.f32 %v2908_v63, %v2898_v13 }
0x1735   :  { %v2916_v22 = vpop.xlane.xlu0 %2915 }
0x1736   :  { %v2920_v58 = vmul.f32 %v2916_v22, %v4812_v16 }
0x1738   :  { %v2922_v28 = vadd.f32 %v2920_v58, %v2910_v39 }
0x1739   :  { %v2928_v61 = vpop.xlane.xlu0 %2927 }
0x173d   :  { %v2940_v35 = vpop.xlane.xlu0 %2939 }
0x173e   :  { %v2944_v17 = vmul.f32 %v2940_v35, %v4824_v8 }
0x1741   :  { %v2952_v15 = vpop.xlane.xlu0 %2951 }
0x1742   :  { %v2956_v43 = vmul.f32 %v2952_v15, %v4830_v10 }
0x1745   :  { %v2964_v47 = vpop.xlane.xlu0 %2963 }
0x1749   :  { %v2976_v1 = vpop.xlane.xlu0 %2975 }
0x174a   :  { %v2980_v13 = vmul.f32 %v2976_v1, %v4842_v26 }
0x174d   :  { %v2847_v44 = vpop.xlane.xlu1 %2846  ;;  %v2988_v62 = vpop.xlane.xlu0 %2987 }
0x174e   :  { %v2849_v32 = vmul.f32 %v2847_v44, %v6210_v50  ;;  %v2992_v39 = vmul.f32 %v2988_v62, %v4848_v6 }
0x1751   :  { %v2859_v19 = vpop.xlane.xlu1 %2858  ;;  %v3000_v25 = vpop.xlane.xlu0 %2999 }
0x1752   :  { %v2861_v18 = vmul.f32 %v2859_v19, %v6211_v21  ;;  %v2932_v21 = vmul.f32 %v2928_v61, %v4818_v5  ;;  %v3004_v61 = vmul.f32 %v3000_v25, %v4854_v27 }
0x1754   :  { %v2863_v20 = vadd.f32 %v2861_v18, %v2849_v32 }
0x1755   :  { %v2871_v52 = vpop.xlane.xlu1 %2870  ;;  %v3012_v60 = vpop.xlane.xlu0 %3011 }
0x1759   :  { %v2883_v59 = vpop.xlane.xlu1 %2882  ;;  %v3066_v49 = vpop.permute.xlu0 %3065 }
0x175a   :  { %3811 = vmatpush3.bf16.msra.mxu0 %v3066_v49  ;;  %v2885_v7 = vmul.f32 %v2883_v59, %v4792_v45 }
0x175b   :  { %3822 = vmatprep.subr.bf16.mxu0 %v6159_v48 }
0x175d   :  { %v2895_v57 = vpop.xlane.xlu1 %2894  ;;  %3813 = vmatmul.mubr.msk.bf16.vlgmr.msra.gmra.mxu0 %vm282_vm2, %v2839_v30  ;;  %v2873_v30 = vmul.f32 %v2871_v52, %v4786_v40 }
0x175e   :  { %3823 = vmatpush3.bf16.msra.mxu0 %v4012_v29  ;;  %3824 = vmatprep.mubr.msk.bf16.mxu0 %vm6049_vm11, %v6159_v48  ;;  %v2897_v41 = vmul.f32 %v2895_v57, %v4800_v53  ;;  %v2934_v53 = vadd.f32 %v2932_v21, %v2922_v28 }
0x175f   :  { %3836 = vmatprep.subr.bf16.mxu0 %v6159_v48  ;;  %v2875_v3 = vadd.f32 %v2873_v30, %v2863_v20 }
0x1760   :  { %v2946_v37 = vadd.f32 %v2944_v17, %v2934_v53 }
0x1761   :  { %v2907_v12 = vpop.xlane.xlu1 %2906  ;;  %v2887_v0 = vadd.f32 %v2885_v7, %v2875_v3 }
0x1763   :  { %v2899_v11 = vadd.f32 %v2897_v41, %v2887_v0  ;;  %v3577_v41 = vld [vmem:[%s5949_s9 + $0x1] ss:$0 sm:$0xff] }
0x1765   :  { %v2919_v4 = vpop.xlane.xlu1 %2918  ;;  %3825 = vmatmul.mubr.msk.bf16.vlgmr.msra.gmra.mxu0 %vm282_vm2, %v2532_v34  ;;  %v2909_v34 = vmul.f32 %v2907_v12, %v4806_v9 }
0x1766   :  { %3844 = vmatprep.mubr.msk.bf16.mxu0 %vm6049_vm11, %v6159_v48  ;;  %v2921_v2 = vmul.f32 %v2919_v4, %v4812_v16  ;;  %v2968_v16 = vmul.f32 %v2964_v47, %v4836_v14  ;;  %v3016_v47 = vmul.f32 %v3012_v60, %v4859_v42 }
0x1767   :  { %v2911_v50 = vadd.f32 %v2909_v34, %v2899_v11 }
0x1769   :  { %v2931_v56 = vpop.xlane.xlu1 %2930  ;;  %v2923_v31 = vadd.f32 %v2921_v2, %v2911_v50 }
0x176a   :  { %v2933_v40 = vmul.f32 %v2931_v56, %v4818_v5  ;;  %v2958_v5 = vadd.f32 %v2956_v43, %v2946_v37 }
0x176c   :  { %v2935_v24 = vadd.f32 %v2933_v40, %v2923_v31  ;;  %v2970_v63 = vadd.f32 %v2968_v16, %v2958_v5  ;;  %v6214_v31 = vld [vmem:[#allocation22_spill] sm:$0xff] }
0x176d   :  { %v2943_v54 = vpop.xlane.xlu1 %2942 }
0x176e   :  { %v2945_v45 = vmul.f32 %v2943_v54, %v4824_v8  ;;  %v2982_v28 = vadd.f32 %v2980_v13, %v2970_v63  ;;  %v4014_v13 = vld [vmem:[%s5952_s12 + $0x18] sm:$0xff]  }
0x1770   :  { %v2947_v38 = vadd.f32 %v2945_v45, %v2935_v24  ;;  %v2994_v15 = vadd.f32 %v2992_v39, %v2982_v28 }
0x1771   :  { %v2955_v55 = vpop.xlane.xlu1 %2954 }
0x1772   :  { %v2957_v9 = vmul.f32 %v2955_v55, %v4830_v10  ;;  %v3006_v19 = vadd.f32 %v3004_v61, %v2994_v15 }
0x1774   :  { %v2959_v51 = vadd.f32 %v2957_v9, %v2947_v38  ;;  %v3018_v62 = vadd.f32 %v3016_v47, %v3006_v19 }
0x1775   :  { %v2967_v46 = vpop.xlane.xlu1 %2966 }
0x1776   :  { %v2969_v33 = vmul.f32 %v2967_v46, %v4836_v14  ;;  %v6212_v46 = vld [vmem:[#allocation21_spill] sm:$0xff] }
0x1778   :  { %v2971_v22 = vadd.f32 %v2969_v33, %v2959_v51  ;;  %v4015_v51 = vld [vmem:[%s5952_s12 + $0x10] sm:$0xff]  }
0x1779   :  { %v2979_v23 = vpop.xlane.xlu1 %2978 }
0x177a   :  { %v2981_v8 = vmul.f32 %v2979_v23, %v4842_v26 }
0x177c   :  { %v2983_v35 = vadd.f32 %v2981_v8, %v2971_v22 }
0x177d   :  { %v2991_v36 = vpop.xlane.xlu1 %2990 }
0x177e   :  { %v2993_v58 = vmul.f32 %v2991_v36, %v4848_v6  ;;  %v4013_v6 = vld [vmem:[%s5948_s8 + $0x18] sm:$0xff]   ;;  %s4264_s8 = smov [#allocation13]  }
0x177f   :  { %s3502_s21 = sshll.u32 %s4264_s8, 4  ;;  %s3503_s21 = int_to_ptr.vmem [resolvable:$true] %s3502_s21 }
0x1780   :  { %v2995_v1 = vadd.f32 %v2993_v58, %v2983_v35  ;;  %v3580_v35 = vld [vmem:[%s5950_s10 + $0x1] ss:$0 sm:$0xff]  ;;  %p4208_p3 = scmp.lt.s32.totalorder %s3503_s21, %s3503_s21 }
0x1781   :  { %v3003_v10 = vpop.xlane.xlu1 %3002 }
0x1782   :  { %v3005_v14 = vmul.f32 %v3003_v10, %v4854_v27 }
0x1784   :  { %v3007_v26 = vadd.f32 %v3005_v14, %v2995_v1  ;;  %v3581_v1 = vld [vmem:[%s5951_s11 + $0x1] ss:$0 sm:$0xff] }
0x1785   :  { %v3015_v44 = vpop.xlane.xlu1 %3014 }
0x1786   :  { %v3017_v52 = vmul.f32 %v3015_v44, %v4859_v42 }
0x1788   :  { %v3019_v59 = vadd.f32 %v3017_v52, %v3007_v26 }
0x178a   :  { %v3020_v49 = vpack.c.bf16 %v3019_v59, %v3018_v62  ;;  %v4016_v62 = vld [vmem:[%s5954_s14 + $0x38] sm:$0xff]   ;;  %v4017_v59 = vld [vmem:[%s5954_s14 + $0x30] sm:$0xff]  }
0x178b   :  { %3837 = vmatpush3.bf16.msra.mxu0 %v4016_v62 }
0x178c   :  { %3807 = vmatmul.mubr.msk.bf16.vlgmr.msra.gmra.mxu1 %vm282_vm2, %v3020_v49  ;;  %3838 = vmatprep.subr.bf16.mxu0 %v6159_v48  ;;  %v4018_v49 = vld [vmem:[%s5954_s14 + $0x28] sm:$0xff]  }
0x178d   :  { %3818 = vmatprep.mubr.msk.bf16.mxu1 %vm6049_vm11, %v6159_v48  ;;  %3817 = vmatpush3.bf16.msra.mxu1 %v4013_v6  ;;  %v4019_v6 = vld [vmem:[%s5954_s14 + $0x20] sm:$0xff]  }
0x178e   :  { %3828 = vmatprep.subr.bf16.mxu1 %v6159_v48 }
0x178f   :  { %3839 = vmatpush3.bf16.msra.mxu0 %v4017_v59 }
0x1790   :  { %3840 = vmatprep.subr.bf16.mxu0 %v6159_v48 }
0x1793   :  { %3841 = vmatpush3.bf16.msra.mxu0 %v4018_v49 }
0x1794   :  { %3842 = vmatprep.subr.bf16.mxu0 %v6159_v48 }
0x1797   :  { %3843 = vmatpush3.bf16.msra.mxu0 %v4019_v6 }
0x181d   :  { %v3105_v27 = vpop.f32.mrf.mxu0 }
0x181f   :  { %v3814_v25 = vpop.f32.mrf.mxu0 }
0x1821   :  { %v3108_v60 = vpop.f32.mrf.mxu0 }
0x1823   :  { %v3815_v29 = vpop.f32.mrf.mxu0 }
0x1825   :  { %v3206_v42 = vpop.f32.mrf.mxu0 }
0x1827   :  { %v3826_v57 = vpop.f32.mrf.mxu0 }
0x1829   :  { %v3209_v12 = vpop.f32.mrf.mxu0 }
0x182b   :  { %v3827_v4 = vpop.f32.mrf.mxu0 }
0x184c   :  { %v3058_v56 = vpop.f32.mrf.mxu1 }
0x184d   :  { %v3106_v30 = vadd.f32 %v3105_v27, %v3058_v56  ;;  %v3587_v27 = vld [vmem:[%s5953_s13 + $0x1] ss:$0 sm:$0xff] }
0x184e   :  { %v3808_v18 = vpop.f32.mrf.mxu1 }
0x1850   :  { %v3061_v32 = vpop.f32.mrf.mxu1 }
0x1851   :  { %v3109_v54 = vadd.f32 %v3108_v60, %v3061_v32 }
0x1852   :  { %v3809_v20 = vpop.f32.mrf.mxu1 }
0x1853   :  { %v3112_v7 = vpack.c.bf16 %v3109_v54, %v3106_v30 }
0x1855   :  { %3819 = vmatmul.mubr.msk.bf16.vlgmr.msra.gmra.mxu1 %vm282_vm2, %v3112_v7  ;;  %vm6215_vm2 = vmmov %vm6213_vm1 }
0x1856   :  { %3832 = vmatprep.mubr.msk.bf16.mxu1 %vm6049_vm11, %v6159_v48  ;;  %vm6217_vm11 = vmmov %vm6213_vm1  ;;  %3829 = vmatpush3.bf16.msra.mxu1 %v4014_v13 }
0x1857   :  { %3830 = vmatprep.subr.bf16.mxu1 %v6159_v48 }
0x185a   :  { %3831 = vmatpush3.bf16.msra.mxu1 %v4015_v51 }
0x1915   :  { %v3156_v3 = vpop.f32.mrf.mxu1 }
0x1916   :  { %v3207_v55 = vadd.f32 %v3206_v42, %v3156_v3 }
0x1917   :  { %v3820_v0 = vpop.f32.mrf.mxu1 }
0x1918   :  { %v3221_v34 = vadd.f32 %v3577_v41, %v3207_v55 }
0x1919   :  { %v3159_v11 = vpop.f32.mrf.mxu1 }
0x191a   :  { %v3210_v2 = vadd.f32 %v3209_v12, %v3159_v11  ;;  %v3223_v21 = vadd.f32 %v3221_v34, %v6212_v46 }
0x191b   :  { %v3821_v50 = vpop.f32.mrf.mxu1 }
0x191c   :  { %v3222_v40 = vadd.f32 %v3577_v41, %v3210_v2  ;;  %v3229_v17 = vsel %vm6213_vm1, %v3223_v21, 0.0 }
0x191d   :  { %3230 = vadd.xlane.f32.xlu1 %v3229_v17 }
0x191e   :  { %v3224_v45 = vadd.f32 %v3222_v40, %v6214_v31  ;;  %v3600_v40 = vld [vmem:[%s5955_s15 + $0x1] ss:$0 sm:$0xff] }
0x1920   :  { %v3232_v23 = vsel %vm6215_vm2, %v3224_v45, 0.0 }
0x1921   :  { %3233 = vadd.xlane.f32.xlu1 %v3232_v23 }
0x19a6   :  { %v3231_v53 = vpop.xlane.xlu1 %3230 }
0x19a7   :  { %v3235_v43 = vmul.f32 0.03125, %v3231_v53 }
0x19a9   :  { %v3237_v24 = vsub.f32 %v3223_v21, %v3235_v43 }
0x19aa   :  { %v3234_v9 = vpop.xlane.xlu1 %3233 }
0x19ab   :  { %v3236_v37 = vmul.f32 0.03125, %v3234_v9  ;;  %v3239_v16 = vmul.f32 %v3237_v24, %v3237_v24 }
0x19ad   :  { %v3238_v38 = vsub.f32 %v3224_v45, %v3236_v37  ;;  %v3241_v33 = vsel %vm6216_vm12, %v3239_v16, 0.0 }
0x19ae   :  { %3242 = vadd.xlane.f32.xlu1 %v3241_v33 }
0x19af   :  { %v3240_v36 = vmul.f32 %v3238_v38, %v3238_v38 }
0x19b1   :  { %v3244_v5 = vsel %vm6217_vm11, %v3240_v36, 0.0 }
0x19b2   :  { %3245 = vadd.xlane.f32.xlu1 %v3244_v5 }
0x1a37   :  { %v3243_v8 = vpop.xlane.xlu1 %3242 }
0x1a38   :  { %v3247_v63 = vmul.f32 0.03125, %v3243_v8 }
0x1a3a   :  { %v3249_v39 = vadd.f32 1e-12, %v3247_v63 }
0x1a3b   :  { %v3246_v22 = vpop.xlane.xlu1 %3245 }
0x1a3c   :  { %4068 = vrsqrt.f32 %v3249_v39  ;;  %v3248_v58 = vmul.f32 0.03125, %v3246_v22 }
0x1a3e   :  { %v3250_v10 = vadd.f32 1e-12, %v3248_v58 }
0x1a40   :  { %4070 = vrsqrt.f32 %v3250_v10 }
0x1a49   :  { %v4069_v28 = vpop.eup %4068 }
0x1a4a   :  { %v3253_v61 = vmul.f32 %v4069_v28, %v3237_v24 }
0x1a4c   :  { %v3261_v47 = vmul.f32 %v3580_v35, %v3253_v61 }
0x1a4d   :  { %v4071_v14 = vpop.eup %4070 }
0x1a4e   :  { %v3254_v15 = vmul.f32 %v4071_v14, %v3238_v38  ;;  %v3269_v19 = vadd.f32 %v3581_v1, %v3261_v47  ;;  %v3608_v47 = vld [vmem:[%s5956_s16 + $0x1] ss:$0 sm:$0xff]  ;;  %s4203_s16 = scalar_lea.vmem %s3503_s21, 256 }
0x1a4f   :  { %p4204_p2 = scmp.ne.s32.totalorder %s3503_s21, %s4203_s16  ;;  %p4209_p4 = scmp.lt.s32.totalorder %s4203_s16, %s4203_s16 }
0x1a50   :  { %v3262_v44 = vmul.f32 %v3580_v35, %v3254_v15 }
0x1a51   :  { %p4210_p5 = por %p4209_p4, %p4208_p3 }
0x1a52   :  { %v3270_v26 = vadd.f32 %v3581_v1, %v3262_v44  ;;  %v3609_v44 = vld [vmem:[%s5957_s17 + $0x1] ss:$0 sm:$0xff] }
0x1a53   :  { %p4211_p6 = pnand %p4210_p5, %p4204_p2 }
0x1a54   :  { %v3271_v52 = vpack.c.bf16 %v3270_v26, %v3269_v19 }
0x1a56   :  { %3833 = vmatmul.mubr.msk.bf16.vlgmr.msra.gmra.mxu1 %vm6218_vm3, %v3271_v52 }
0x1b16   :  { %v3334_v25 = vpop.f32.mrf.mxu1 }
0x1b17   :  { %v3335_v60 = vadd.f32 %v3587_v27, %v3334_v25 }
0x1b18   :  { %v3834_v29 = vpop.f32.mrf.mxu1 }
0x1b19   :  { %v3343_v42 = vmul.f32 0.044715, %v3335_v60  ;;  %v3341_v34 = vmul.f32 0.5, %v3335_v60 }
0x1b1a   :  { %v3337_v57 = vpop.f32.mrf.mxu1 }
0x1b1b   :  { %v3345_v12 = vmul.f32 %v3343_v42, %v3335_v60  ;;  %v3338_v4 = vadd.f32 %v3587_v27, %v3337_v57 }
0x1b1c   :  { %v3835_v56 = vpop.f32.mrf.mxu1 }
0x1b1d   :  { %v3347_v18 = vmul.f32 %v3345_v12, %v3335_v60  ;;  %v3344_v32 = vmul.f32 0.044715, %v3338_v4  ;;  %v3342_v11 = vmul.f32 0.5, %v3338_v4 }
0x1b1f   :  { %v3349_v30 = vadd.f32 %v3347_v18, %v3335_v60  ;;  %v3346_v54 = vmul.f32 %v3344_v32, %v3338_v4 }
0x1b21   :  { %v3351_v20 = vmul.f32 0.7978846, %v3349_v30  ;;  %v3348_v7 = vmul.f32 %v3346_v54, %v3338_v4 }
0x1b23   :  { %4072 = vtanh.f32 %v3351_v20  ;;  %v3350_v48 = vadd.f32 %v3348_v7, %v3338_v4 }
0x1b25   :  { %v3352_v3 = vmul.f32 0.7978846, %v3350_v48 }
0x1b27   :  { %4074 = vtanh.f32 %v3352_v3 }
0x1b30   :  { %v4073_v41 = vpop.eup %4072 }
0x1b31   :  { %v3355_v55 = vadd.f32 1.0, %v4073_v41 }
0x1b33   :  { %v3357_v46 = vmul.f32 %v3355_v55, %v3341_v34 }
0x1b34   :  { %v4075_v0 = vpop.eup %4074 }
0x1b35   :  { %v3356_v2 = vadd.f32 1.0, %v4075_v0 }
0x1b37   :  { %v3358_v21 = vmul.f32 %v3356_v2, %v3342_v11 }
0x1b39   :  { %v3359_v50 = vpack.c.bf16 %v3358_v21, %v3357_v46 }
0x1b3b   :  { %3845 = vmatmul.mubr.msk.bf16.vlgmr.msra.gmra.mxu0 %vm6219_vm13, %v3359_v50 }
0x1bfb   :  { %v3438_v17 = vpop.f32.mrf.mxu0 }
0x1bfc   :  { %v3439_v31 = vadd.f32 %v3600_v40, %v3438_v17 }
0x1bfd   :  { %v3846_v45 = vpop.f32.mrf.mxu0 }
0x1bfe   :  { %v3445_v23 = vadd.f32 %v3439_v31, %v3269_v19 }
0x1bff   :  { %v3441_v53 = vpop.f32.mrf.mxu0 }
0x1c00   :  { %v3442_v43 = vadd.f32 %v3600_v40, %v3441_v53  ;;  %v3451_v24 = vsel %vm6220_vm0, %v3445_v23, 0.0 }
0x1c01   :  { %3452 = vadd.xlane.f32.xlu1 %v3451_v24  ;;  %v3847_v9 = vpop.f32.mrf.mxu0 }
0x1c02   :  { %v3446_v37 = vadd.f32 %v3442_v43, %v3270_v26 }
0x1c04   :  { %v3454_v16 = vsel %vm6221_vm5, %v3446_v37, 0.0 }
0x1c05   :  { %3455 = vadd.xlane.f32.xlu1 %v3454_v16 }
0x1c8a   :  { %v3453_v38 = vpop.xlane.xlu1 %3452 }
0x1c8b   :  { %v3457_v33 = vmul.f32 0.03125, %v3453_v38 }
0x1c8d   :  { %v3459_v36 = vsub.f32 %v3445_v23, %v3457_v33 }
0x1c8e   :  { %v3456_v5 = vpop.xlane.xlu1 %3455 }
0x1c8f   :  { %v3458_v13 = vmul.f32 0.03125, %v3456_v5  ;;  %v3461_v51 = vmul.f32 %v3459_v36, %v3459_v36 }
0x1c91   :  { %v3460_v8 = vsub.f32 %v3446_v37, %v3458_v13  ;;  %v3463_v63 = vsel %vm6222_vm15, %v3461_v51, 0.0 }
0x1c92   :  { %3464 = vadd.xlane.f32.xlu0 %v3463_v63 }
0x1c93   :  { %v3462_v39 = vmul.f32 %v3460_v8, %v3460_v8 }
0x1c95   :  { %v3466_v22 = vsel %vm6223_vm8, %v3462_v39, 0.0 }
0x1c96   :  { %3467 = vadd.xlane.f32.xlu1 %v3466_v22 }
0x1d1b   :  { %v3465_v58 = vpop.xlane.xlu0 %3464 }
0x1d1c   :  { %v3469_v10 = vmul.f32 0.03125, %v3465_v58 }
0x1d1e   :  { %v3471_v28 = vadd.f32 1e-12, %v3469_v10 }
0x1d1f   :  { %v3468_v61 = vpop.xlane.xlu1 %3467 }
0x1d20   :  { %4076 = vrsqrt.f32 %v3471_v28  ;;  %v3470_v35 = vmul.f32 0.03125, %v3468_v61 }
0x1d22   :  { %v3472_v14 = vadd.f32 1e-12, %v3470_v35 }
0x1d24   :  { %4078 = vrsqrt.f32 %v3472_v14 }
0x1d2d   :  { %v4077_v15 = vpop.eup %4076 }
0x1d2e   :  { %v3475_v1 = vmul.f32 %v4077_v15, %v3459_v36 }
0x1d30   :  { %v3483_v19 = vmul.f32 %v3608_v47, %v3475_v1 }
0x1d31   :  { %v4079_v26 = vpop.eup %4078 }
0x1d32   :  { %v3476_v52 = vmul.f32 %v4079_v26, %v3460_v8  ;;  %v3491_v62 = vadd.f32 %v3609_v44, %v3483_v19 }
0x1d34   :  { %v3484_v59 = vmul.f32 %v3608_v47, %v3476_v52  ;;  %v3493_v49 = vsel %vm6224_vm6, %v3491_v62, 0.0 }
0x1d35   :  { %3495 = vst [vmem:[#allocation13] sm:$0xff] %v3493_v49 }
0x1d36   :  { %v3492_v6 = vadd.f32 %v3609_v44, %v3484_v59 }
0x1d38   :  { %v3494_v27 = vsel %vm6225_vm9, %v3492_v6, 0.0 }
0x1d39   :  { %3496 = vst [vmem:[#allocation13 + $0x8] sm:$0xff] %v3494_v27 }
0x1d3a   :  { %4214 = shalt.err (!%p4211_p6)
}
0x1d3b   :  { %3508 = dma.vmem_to_hbm [thread:$0]  %s3503_s21, 256, %s5958_s18, [#allocation4], %s4235_s19, %s4235_s19, %s4236_s1  }
0x1d3c   :  { %4231 = dma.done.wait [#allocation4], 256  }
0x1d3d   :  { %4232 = vsyncadd [#allocation4], 4294967040 }
0x1d3e   :  { %3512 = vsyncpa [#allocation3], 1 }
0x1d3f   :  { %3513 = vsyncpa [#allocation6], 1 }
0x1d40   :  { %3514 = vsyncpa [#allocation9], 1 }
0x1d41   :  { %3515 = vsyncpa [#allocation12], 1 }
0x1d42   :  { %3516 = vsyncpa [#allocation4], 1 }

</bundles_post_ra>
